<compile_context>
chip_gen: v7x
topology: tpu7x:2x2x1
jax: 0.10.0
libtpu: 0.0.40
codegen_flags: <defaults>
</compile_context>

<pallas_src>
import functools

import jax
import jax.numpy as jnp
from jax.experimental import pallas as pl
from jax.experimental.pallas import tpu as pltpu

BN_EPS = 1e-5
LRELU_SLOPE = 0.2
ACT_DTYPE = jnp.bfloat16          # inter-layer activations / matmul inputs
TILE_CAP = 1024                   # max rows per M tile (keeps blocks << VMEM)


# ----------------------------- Pallas kernels ------------------------------ #

def _fused_conv_bn_lrelu_kernel(p_ref, w_ref, g_ref, b_ref, o_ref):
    """Single-step fusion: conv (im2col matmul) + training-mode BN + LeakyReLU.

    p_ref: (M, K) bf16, w_ref: (K, C) bf16, g_ref/b_ref: (1, C) f32 (gamma/beta)
    o_ref: (M, C) bf16.  The f32 conv output stays in VMEM; BN statistics use
    the centered form (no E[y^2]-E[y]^2 cancellation).  No conv bias: it is
    exactly cancelled by batch-statistics BN.
    """
    y = jnp.dot(p_ref[...], w_ref[...], preferred_element_type=jnp.float32)
    inv_m = jnp.float32(1.0 / y.shape[0])
    mean = jnp.sum(y, axis=0, keepdims=True) * inv_m
    d = y - mean
    var = jnp.sum(d * d, axis=0, keepdims=True) * inv_m
    scale = g_ref[...] * jax.lax.rsqrt(var + BN_EPS)
    z = d * scale + b_ref[...]
    o_ref[...] = jnp.where(z >= 0.0, z, LRELU_SLOPE * z).astype(o_ref.dtype)


def _matmul_stats_kernel(p_ref, w_ref, y_ref, s1_ref, s2_ref):
    """Tiled pass 1: y = patches @ W (f32 accumulate), per-block channel stats.

    y is stored as bf16 (halves the HBM round trip); stats are computed on the
    f32 result.  Stats are per-block outputs (no resident accumulator) so the
    M grid axis can be "parallel" (megacore-shardable on v7x).  Each (8, C)
    stats block holds block_sum/8 broadcast across the 8 sublanes; summing all
    rows host-side recovers the exact total (divisions by 8 are exact in f32).
    """
    y = jnp.dot(p_ref[...], w_ref[...], preferred_element_type=jnp.float32)
    y_ref[...] = y.astype(y_ref.dtype)
    s1 = jnp.sum(y, axis=0, keepdims=True) * jnp.float32(0.125)
    s2 = jnp.sum(y * y, axis=0, keepdims=True) * jnp.float32(0.125)
    zeros = jnp.zeros(s1_ref.shape, jnp.float32)
    s1_ref[...] = zeros + s1
    s2_ref[...] = zeros + s2


def _bn_lrelu_kernel(y_ref, scale_ref, shift_ref, o_ref):
    """Tiled pass 2: z = y*scale + shift ; LeakyReLU(0.2) ; bf16 store."""
    z = y_ref[...].astype(jnp.float32) * scale_ref[...] + shift_ref[...]
    o_ref[...] = jnp.where(z >= 0.0, z, LRELU_SLOPE * z).astype(o_ref.dtype)


def _final_kernel(p_ref, w_ref, b_ref, o_ref):
    """Final Cout=1 conv: VPU multiply + lane (XLU) reduction, robust sigmoid."""
    prod = p_ref[...].astype(jnp.float32) * w_ref[...]
    y = jnp.sum(prod, axis=-1, keepdims=True) + b_ref[...]
    o_ref[...] = 0.5 * (jnp.tanh(0.5 * y) + 1.0)   # sigmoid via EUP tanh


# --------------------------------- Helpers ---------------------------------- #

def _choose_tile(m, cap=TILE_CAP, min_tile=256):
    """Return (tile, m_padded).  m <= cap -> single full block (no padding).
    Otherwise tile is a multiple of 8, <= cap, preferring exact divisors
    >= min_tile; if none exists m is padded up to a multiple of the tile."""
    if m <= cap:
        return m, m
    cap8 = cap - cap % 8
    for d in range(cap8, max(min_tile, 8) - 1, -8):
        if m % d == 0:
            return d, m
    m_pad = ((m + cap8 - 1) // cap8) * cap8
    return cap8, m_pad


def _divisor_tile(m, cap=TILE_CAP):
    """Largest exact-divisor tile of m (<= cap, multiple of 8 or == m); None if
    no suitable divisor exists."""
    if m <= cap:
        return m
    for d in range(cap - cap % 8, 7, -8):
        if m % d == 0:
            return d
    return None


def _vmem_limit_bytes(block_bytes):
    """Scoped-VMEM request derived from the tile footprint: 2x for
    double-buffering + headroom, clamped for v7x's 64 MiB physical VMEM."""
    return int(min(max(2 * block_bytes + (8 << 20), 24 << 20), 40 << 20))


def _im2col_ndhwc(a, ksize, stride, pad):
    """a: (N, D, H, W, C) -> patches (M, K), K ordered (kd, kh, kw, c)."""
    N, D, H, W, C = a.shape
    kD, kH, kW = ksize
    Do = (D + 2 * pad - kD) // stride + 1
    Ho = (H + 2 * pad - kH) // stride + 1
    Wo = (W + 2 * pad - kW) // stride + 1
    ap = jnp.pad(a, ((0, 0), (pad, pad), (pad, pad), (pad, pad), (0, 0)))
    cols = []
    for kd in range(kD):
        for kh in range(kH):
            for kw in range(kW):
                cols.append(ap[:,
                               kd:kd + stride * (Do - 1) + 1:stride,
                               kh:kh + stride * (Ho - 1) + 1:stride,
                               kw:kw + stride * (Wo - 1) + 1:stride, :])
    patches = jnp.concatenate(cols, axis=-1)          # (N, Do, Ho, Wo, kk*C)
    M = N * Do * Ho * Wo
    K = kD * kH * kW * C
    return patches.reshape(M, K), (N, Do, Ho, Wo)


def _wmat(w):
    """(Cout, Cin, kD, kH, kW) -> (K, Cout) matching the (kd, kh, kw, c) order."""
    Cout = w.shape[0]
    return w.transpose(2, 3, 4, 1, 0).reshape(-1, Cout)


# ------------------------------- Layer wrappers ----------------------------- #

def _bn_lrelu(y, scale_c, shift_c, tile_fallback):
    """Per-channel affine + LeakyReLU sweep over the bf16 pass-1 intermediate.

    For Cout < 128 the (M, C) array is re-viewed as (M/rep, 128) (free row-major
    reshape) with tiled scale/shift vectors so stores/loads are lane-dense."""
    Mp, C = y.shape
    yv, L, tile_r = y, C, None
    scale = scale_c.reshape(1, C)
    shift = shift_c.reshape(1, C)
    if C < 128 and 128 % C == 0 and Mp % (128 // C) == 0:
        rep = 128 // C
        t = _divisor_tile(Mp // rep)
        if t is not None:
            yv = y.reshape(Mp // rep, C * rep)
            L = C * rep
            scale = jnp.tile(scale_c, rep).reshape(1, L)
            shift = jnp.tile(shift_c, rep).reshape(1, L)
            tile_r = t
    if tile_r is None:
        tile_r = tile_fallback          # always divides Mp (pass-1 partition)
    R = yv.shape[0]
    blk_bytes = 2 * tile_r * L * 2 + 2 * L * 4

    out = pl.pallas_call(
        _bn_lrelu_kernel,
        out_shape=jax.ShapeDtypeStruct((R, L), ACT_DTYPE),
        grid_spec=pltpu.PrefetchScalarGridSpec(
            num_scalar_prefetch=0,
            grid=(R // tile_r,),
            in_specs=[pl.BlockSpec((tile_r, L), lambda i: (i, 0)),
                      pl.BlockSpec((1, L), lambda i: (0, 0)),
                      pl.BlockSpec((1, L), lambda i: (0, 0))],
            out_specs=pl.BlockSpec((tile_r, L), lambda i: (i, 0))),
        compiler_params=pltpu.CompilerParams(
            dimension_semantics=("parallel",),
            vmem_limit_bytes=_vmem_limit_bytes(blk_bytes)),
    )(yv, scale, shift)
    return out.reshape(Mp, C)


def _disc_layer(a, w, gamma, beta, *, stride, pad):
    """Conv3d (no bias: cancelled by BN batch stats) + BatchNorm3d (training-mode
    statistics) + LeakyReLU(0.2), channels-last bf16 in/out."""
    ksize = tuple(w.shape[2:])
    Cout = w.shape[0]
    patches, (N, Do, Ho, Wo) = _im2col_ndhwc(a, ksize, stride, pad)
    M, K = patches.shape
    patches = patches.astype(ACT_DTYPE)
    wmat = _wmat(w).astype(ACT_DTYPE)                       # (K, Cout)
    g2 = gamma.reshape(1, Cout).astype(jnp.float32)
    b2 = beta.reshape(1, Cout).astype(jnp.float32)

    if M <= TILE_CAP:
        # ---------------- fully fused single-step path ---------------- #
        blk_bytes = M * K * 2 + K * Cout * 2 + 2 * Cout * 4 + M * Cout * 2
        out = pl.pallas_call(
            _fused_conv_bn_lrelu_kernel,
            out_shape=jax.ShapeDtypeStruct((M, Cout), ACT_DTYPE),
            in_specs=[pl.BlockSpec(memory_space=pltpu.MemorySpace.VMEM)] * 4,
            out_specs=pl.BlockSpec(memory_space=pltpu.MemorySpace.VMEM),
            compiler_params=pltpu.CompilerParams(
                vmem_limit_bytes=_vmem_limit_bytes(blk_bytes)),
        )(patches, wmat, g2, b2)
        return out.reshape(N, Do, Ho, Wo, Cout)

    # ------------------- tiled two-pass path (large M) ------------------- #
    tile_m, M_pad = _choose_tile(M)
    if M_pad > M:
        # Padded rows are exactly zero (no bias) -> contribute 0 to the stats.
        patches = jnp.pad(patches, ((0, M_pad - M), (0, 0)))
    nblk = M_pad // tile_m
    blk_bytes = tile_m * K * 2 + K * Cout * 2 + tile_m * Cout * 2 + 2 * 8 * Cout * 4

    y, s1, s2 = pl.pallas_call(
        _matmul_stats_kernel,
        out_shape=(jax.ShapeDtypeStruct((M_pad, Cout), ACT_DTYPE),
                   jax.ShapeDtypeStruct((nblk * 8, Cout), jnp.float32),
                   jax.ShapeDtypeStruct((nblk * 8, Cout), jnp.float32)),
        grid_spec=pltpu.PrefetchScalarGridSpec(
            num_scalar_prefetch=0,
            grid=(nblk,),
            in_specs=[pl.BlockSpec((tile_m, K), lambda i: (i, 0)),
                      pl.BlockSpec((K, Cout), lambda i: (0, 0))],
            out_specs=[pl.BlockSpec((tile_m, Cout), lambda i: (i, 0)),
                       pl.BlockSpec((8, Cout), lambda i: (i, 0)),
                       pl.BlockSpec((8, Cout), lambda i: (i, 0))]),
        compiler_params=pltpu.CompilerParams(
            dimension_semantics=("parallel",),       # no resident accumulators
            vmem_limit_bytes=_vmem_limit_bytes(blk_bytes)),
    )(patches, wmat)

    # Tiny per-channel math in f32 (divide by the TRUE M, padded rows are 0).
    # NOTE: E[y^2]-E[y]^2 with a max(.,0) clamp; the fused path uses the
    # centered (cancellation-free) form.  Acceptable here since the weights are
    # zero-mean so E[y] ~ 0; switch to shifted/Welford if M gets very large.
    inv_m = jnp.float32(1.0 / M)
    mean = jnp.sum(s1, axis=0) * inv_m
    var = jnp.maximum(jnp.sum(s2, axis=0) * inv_m - mean * mean, 0.0)
    scale_c = gamma.astype(jnp.float32) * jax.lax.rsqrt(var + BN_EPS)
    shift_c = beta.astype(jnp.float32) - mean * scale_c

    out = _bn_lrelu(y, scale_c, shift_c, tile_m)            # (M_pad, Cout) bf16
    return out[:M].reshape(N, Do, Ho, Wo, Cout)


def _final_layer(a, w, b):
    """Conv3d (Cout=1, k=3, s=3, p=1) + sigmoid, tiled over M ("parallel")."""
    ksize = tuple(w.shape[2:])
    patches, (N, Do, Ho, Wo) = _im2col_ndhwc(a, ksize, 3, 1)
    M, K = patches.shape
    patches = patches.astype(ACT_DTYPE)
    wrow = _wmat(w).reshape(1, K).astype(jnp.float32)       # (1, K)
    b2 = b.reshape(1, 1).astype(jnp.float32)

    # Smaller cap: the (tile, K) f32 product temp must stay modest in VMEM.
    tile_m, M_pad = _choose_tile(M, cap=256, min_tile=64)
    if M_pad > M:
        patches = jnp.pad(patches, ((0, M_pad - M), (0, 0)))
    blk_bytes = tile_m * K * 2 + K * 4 + tile_m * K * 4 + tile_m * 4

    out = pl.pallas_call(
        _final_kernel,
        out_shape=jax.ShapeDtypeStruct((M_pad, 1), jnp.float32),
        grid_spec=pltpu.PrefetchScalarGridSpec(
            num_scalar_prefetch=0,
            grid=(M_pad // tile_m,),
            in_specs=[pl.BlockSpec((tile_m, K), lambda i: (i, 0)),
                      pl.BlockSpec((1, K), lambda i: (0, 0)),
                      pl.BlockSpec((1, 1), lambda i: (0, 0))],
            out_specs=pl.BlockSpec((tile_m, 1), lambda i: (i, 0))),
        compiler_params=pltpu.CompilerParams(
            dimension_semantics=("parallel",),
            vmem_limit_bytes=_vmem_limit_bytes(blk_bytes)),
    )(patches, wrow, b2)
    return out[:M].reshape(N, Do, Ho, Wo, 1)


# ------------------------------ Discriminator ------------------------------ #

def init_discriminator_params(key, cube_resolution=32, num_channels=2):
    specs = [  # (Cin, Cout, kernel)
        (num_channels, cube_resolution, (4, 4, 4)),
        (cube_resolution, 64, (4, 4, 4)),
        (64, 128, (4, 4, 4)),
        (128, 256, (3, 3, 3)),
        (256, 1, (3, 3, 3)),
    ]
    params = {}
    for i, (cin, cout, k) in enumerate(specs, start=1):
        key, wk, bk = jax.random.split(key, 3)
        params[f"w{i}"] = 0.02 * jax.random.normal(wk, (cout, cin) + k, jnp.float32)
        params[f"b{i}"] = 0.02 * jax.random.normal(bk, (cout,), jnp.float32)
        if i < 5:
            params[f"gamma{i}"] = jnp.ones((cout,), jnp.float32)   # BN default init
            params[f"beta{i}"] = jnp.zeros((cout,), jnp.float32)
    return params


def discriminator_forward(params, x, condition=None):
    # `condition` is accepted but unused — exactly as in the PyTorch forward.
    del condition
    # Single layout conversion: NCDHW (PyTorch) -> NDHWC (channels-last, bf16).
    a = jnp.transpose(x, (0, 2, 3, 4, 1)).astype(ACT_DTYPE)
    # b1..b4 are intentionally unused: training-mode BN cancels them exactly.
    a = _disc_layer(a, params["w1"], params["gamma1"], params["beta1"], stride=2, pad=1)
    a = _disc_layer(a, params["w2"], params["gamma2"], params["beta2"], stride=2, pad=1)
    a = _disc_layer(a, params["w3"], params["gamma3"], params["beta3"], stride=2, pad=1)
    a = _disc_layer(a, params["w4"], params["gamma4"], params["beta4"], stride=2, pad=1)
    a = _final_layer(a, params["w5"], params["b5"])
    return jnp.squeeze(a)   # (N, 1, 1, 1, 1) -> (N,)


# -------------------------- Pure-JAX f32 reference -------------------------- #

def _reference_forward(params, x):
    """f32 reference: lax.conv (with bias) + training-mode BN + LReLU + sigmoid."""
    def conv(a, w, b, stride, pad):
        y = jax.lax.conv_general_dilated(
            a, w, window_strides=(stride,) * 3, padding=[(pad, pad)] * 3,
            dimension_numbers=("NCDHW", "OIDHW", "NCDHW"))
        return y + b.reshape(1, -1, 1, 1, 1)

    def bn_lrelu(y, gamma, beta):
        mean = jnp.mean(y, axis=(0, 2, 3, 4), keepdims=True)
        var = jnp.mean((y - mean) ** 2, axis=(0, 2, 3, 4), keepdims=True)
        z = (y - mean) * jax.lax.rsqrt(var + BN_EPS)
        z = z * gamma.reshape(1, -1, 1, 1, 1) + beta.reshape(1, -1, 1, 1, 1)
        return jnp.where(z >= 0, z, LRELU_SLOPE * z)

    a = x
    a = bn_lrelu(conv(a, params["w1"], params["b1"], 2, 1), params["gamma1"], params["beta1"])
    a = bn_lrelu(conv(a, params["w2"], params["b2"], 2, 1), params["gamma2"], params["beta2"])
    a = bn_lrelu(conv(a, params["w3"], params["b3"], 2, 1), params["gamma3"], params["beta3"])
    a = bn_lrelu(conv(a, params["w4"], params["b4"], 2, 1), params["gamma4"], params["beta4"])
    a = conv(a, params["w5"], params["b5"], 3, 1)
    return jnp.squeeze(jax.nn.sigmoid(a))


# ---------------------------------- Main ------------------------------------ #

if __name__ == "__main__":
    key = jax.random.PRNGKey(0)
    cube_resolution = 16   # small but stride-consistent: 16 -> 8 -> 4 -> 2 -> 1 -> 1
    num_channels = 2

    pkey, xkey, ckey = jax.random.split(key, 3)
    params = init_discriminator_params(pkey, cube_resolution, num_channels)

    fwd = jax.jit(functools.partial(discriminator_forward, params))
    ref = jax.jit(functools.partial(_reference_forward, params))

    # batch=2: every layer takes the fully fused single-step path.
    # batch=4: layer 1 (M=2048) additionally exercises the tiled two-pass path.
    for batch in (2, 4):
        xk = jax.random.fold_in(xkey, batch)
        x = jax.random.normal(
            xk, (batch, num_channels) + (cube_resolution,) * 3, jnp.float32)
        condition = jax.random.normal(ckey, (batch, 10), jnp.float32)  # unused

        out = jax.block_until_ready(fwd(x, condition))
        assert out.shape == (batch,), out.shape
        assert bool(jnp.all(jnp.isfinite(out)))
        assert bool(jnp.all((out >= 0.0) & (out <= 1.0)))

        ref_out = jax.block_until_ready(ref(x))
        max_err = float(jnp.max(jnp.abs(out.astype(jnp.float32) - ref_out)))
        # bf16 activations/matmuls vs f32 reference, output sits behind sigmoid.
        assert max_err < 0.1, f"batch={batch} max_err={max_err}"

    print("KERNEL_OK")
</pallas_src>

<mosaic_0001>
module attributes {stable_mosaic.version = 11 : i64} {
  func.func @_fused_conv_bn_lrelu_kernel(%arg0: memref<1024x128xbf16, #tpu.memory_space<vmem>>, %arg1: memref<128x16xbf16, #tpu.memory_space<vmem>>, %arg2: memref<1x16xf32, #tpu.memory_space<vmem>>, %arg3: memref<1x16xf32, #tpu.memory_space<vmem>>, %arg4: memref<1024x16xbf16, #tpu.memory_space<vmem>>) attributes {dimension_semantics = [], scalar_prefetch = 0 : i64, scratch_operands = 0 : i64, tpu.core_type = #tpu.core_type<tc>} {
    %c0 = arith.constant 0 : index
    %c0_0 = arith.constant 0 : index
    %0 = vector.load %arg0[%c0, %c0_0] : memref<1024x128xbf16, #tpu.memory_space<vmem>>, vector<1024x128xbf16>
    %c0_1 = arith.constant 0 : index
    %c0_2 = arith.constant 0 : index
    %1 = vector.load %arg1[%c0_1, %c0_2] : memref<128x16xbf16, #tpu.memory_space<vmem>>, vector<128x16xbf16>
    %cst = arith.constant dense<0.000000e+00> : vector<1024x16xf32>
    %2 = tpu.matmul %0, %1, %cst {dimension_numbers = #tpu.dot_dimension_numbers<[1], [0], [0], [1], [0, 0, 1, 1], [], []>} : vector<1024x128xbf16>, vector<128x16xbf16>, vector<1024x16xf32> -> vector<1024x16xf32>
    %cst_3 = arith.constant dense<0.000000e+00> : vector<16xf32>
    %3 = vector.multi_reduction <add>, %2, %cst_3 [0] : vector<1024x16xf32> to vector<16xf32>
    %4 = vector.shape_cast %3 : vector<16xf32> to vector<1x16xf32>
    %cst_4 = arith.constant 9.765625E-4 : f32
    %5 = vector.broadcast %cst_4 : f32 to vector<1x16xf32>
    %6 = arith.mulf %4, %5 : vector<1x16xf32>
    %7 = vector.broadcast %6 : vector<1x16xf32> to vector<1024x16xf32>
    %8 = arith.subf %2, %7 : vector<1024x16xf32>
    %9 = arith.mulf %8, %8 : vector<1024x16xf32>
    %cst_5 = arith.constant dense<0.000000e+00> : vector<16xf32>
    %10 = vector.multi_reduction <add>, %9, %cst_5 [0] : vector<1024x16xf32> to vector<16xf32>
    %11 = vector.shape_cast %10 : vector<16xf32> to vector<1x16xf32>
    %cst_6 = arith.constant 9.765625E-4 : f32
    %12 = vector.broadcast %cst_6 : f32 to vector<1x16xf32>
    %13 = arith.mulf %11, %12 : vector<1x16xf32>
    %c0_7 = arith.constant 0 : index
    %c0_8 = arith.constant 0 : index
    %14 = vector.load %arg2[%c0_7, %c0_8] : memref<1x16xf32, #tpu.memory_space<vmem>>, vector<1x16xf32>
    %cst_9 = arith.constant 9.99999974E-6 : f32
    %15 = vector.broadcast %cst_9 : f32 to vector<1x16xf32>
    %16 = arith.addf %13, %15 : vector<1x16xf32>
    %17 = math.rsqrt %16 : vector<1x16xf32>
    %18 = arith.mulf %14, %17 : vector<1x16xf32>
    %19 = vector.broadcast %18 : vector<1x16xf32> to vector<1024x16xf32>
    %20 = arith.mulf %8, %19 : vector<1024x16xf32>
    %c0_10 = arith.constant 0 : index
    %c0_11 = arith.constant 0 : index
    %21 = vector.load %arg3[%c0_10, %c0_11] : memref<1x16xf32, #tpu.memory_space<vmem>>, vector<1x16xf32>
    %22 = vector.broadcast %21 : vector<1x16xf32> to vector<1024x16xf32>
    %23 = arith.addf %20, %22 : vector<1024x16xf32>
    %cst_12 = arith.constant 0.000000e+00 : f32
    %24 = vector.broadcast %cst_12 : f32 to vector<1024x16xf32>
    %25 = arith.cmpf oge, %23, %24 : vector<1024x16xf32>
    %cst_13 = arith.constant 2.000000e-01 : f32
    %26 = vector.broadcast %cst_13 : f32 to vector<1024x16xf32>
    %27 = arith.mulf %26, %23 : vector<1024x16xf32>
    %28 = arith.select %25, %23, %27 : vector<1024x16xi1>, vector<1024x16xf32>
    %29 = arith.truncf %28 : vector<1024x16xf32> to vector<1024x16xbf16>
    %c0_14 = arith.constant 0 : index
    %c0_15 = arith.constant 0 : index
    %30 = vector.load %arg4[%c0_14, %c0_15] : memref<1024x16xbf16, #tpu.memory_space<vmem>>, vector<1024x16xbf16>
    tpu.vector_store %arg4[%c0_14, %c0_15], %29 {strides = array<i32>} : memref<1024x16xbf16, #tpu.memory_space<vmem>>, vector<1024x16xbf16>,
    return
  }
}

module attributes {stable_mosaic.version = 11 : i64} {
  func.func @_fused_conv_bn_lrelu_kernel(%arg0: memref<128x1024xbf16, #tpu.memory_space<vmem>>, %arg1: memref<1024x64xbf16, #tpu.memory_space<vmem>>, %arg2: memref<1x64xf32, #tpu.memory_space<vmem>>, %arg3: memref<1x64xf32, #tpu.memory_space<vmem>>, %arg4: memref<128x64xbf16, #tpu.memory_space<vmem>>) attributes {dimension_semantics = [], scalar_prefetch = 0 : i64, scratch_operands = 0 : i64, tpu.core_type = #tpu.core_type<tc>} {
    %c0 = arith.constant 0 : index
    %c0_0 = arith.constant 0 : index
    %0 = vector.load %arg0[%c0, %c0_0] : memref<128x1024xbf16, #tpu.memory_space<vmem>>, vector<128x1024xbf16>
    %c0_1 = arith.constant 0 : index
    %c0_2 = arith.constant 0 : index
    %1 = vector.load %arg1[%c0_1, %c0_2] : memref<1024x64xbf16, #tpu.memory_space<vmem>>, vector<1024x64xbf16>
    %cst = arith.constant dense<0.000000e+00> : vector<128x64xf32>
    %2 = tpu.matmul %0, %1, %cst {dimension_numbers = #tpu.dot_dimension_numbers<[1], [0], [0], [1], [0, 0, 1, 1], [], []>} : vector<128x1024xbf16>, vector<1024x64xbf16>, vector<128x64xf32> -> vector<128x64xf32>
    %cst_3 = arith.constant dense<0.000000e+00> : vector<64xf32>
    %3 = vector.multi_reduction <add>, %2, %cst_3 [0] : vector<128x64xf32> to vector<64xf32>
    %4 = vector.shape_cast %3 : vector<64xf32> to vector<1x64xf32>
    %cst_4 = arith.constant 7.812500e-03 : f32
    %5 = vector.broadcast %cst_4 : f32 to vector<1x64xf32>
    %6 = arith.mulf %4, %5 : vector<1x64xf32>
    %7 = vector.broadcast %6 : vector<1x64xf32> to vector<128x64xf32>
    %8 = arith.subf %2, %7 : vector<128x64xf32>
    %9 = arith.mulf %8, %8 : vector<128x64xf32>
    %cst_5 = arith.constant dense<0.000000e+00> : vector<64xf32>
    %10 = vector.multi_reduction <add>, %9, %cst_5 [0] : vector<128x64xf32> to vector<64xf32>
    %11 = vector.shape_cast %10 : vector<64xf32> to vector<1x64xf32>
    %cst_6 = arith.constant 7.812500e-03 : f32
    %12 = vector.broadcast %cst_6 : f32 to vector<1x64xf32>
    %13 = arith.mulf %11, %12 : vector<1x64xf32>
    %c0_7 = arith.constant 0 : index
    %c0_8 = arith.constant 0 : index
    %14 = vector.load %arg2[%c0_7, %c0_8] : memref<1x64xf32, #tpu.memory_space<vmem>>, vector<1x64xf32>
    %cst_9 = arith.constant 9.99999974E-6 : f32
    %15 = vector.broadcast %cst_9 : f32 to vector<1x64xf32>
    %16 = arith.addf %13, %15 : vector<1x64xf32>
    %17 = math.rsqrt %16 : vector<1x64xf32>
    %18 = arith.mulf %14, %17 : vector<1x64xf32>
    %19 = vector.broadcast %18 : vector<1x64xf32> to vector<128x64xf32>
    %20 = arith.mulf %8, %19 : vector<128x64xf32>
    %c0_10 = arith.constant 0 : index
    %c0_11 = arith.constant 0 : index
    %21 = vector.load %arg3[%c0_10, %c0_11] : memref<1x64xf32, #tpu.memory_space<vmem>>, vector<1x64xf32>
    %22 = vector.broadcast %21 : vector<1x64xf32> to vector<128x64xf32>
    %23 = arith.addf %20, %22 : vector<128x64xf32>
    %cst_12 = arith.constant 0.000000e+00 : f32
    %24 = vector.broadcast %cst_12 : f32 to vector<128x64xf32>
    %25 = arith.cmpf oge, %23, %24 : vector<128x64xf32>
    %cst_13 = arith.constant 2.000000e-01 : f32
    %26 = vector.broadcast %cst_13 : f32 to vector<128x64xf32>
    %27 = arith.mulf %26, %23 : vector<128x64xf32>
    %28 = arith.select %25, %23, %27 : vector<128x64xi1>, vector<128x64xf32>
    %29 = arith.truncf %28 : vector<128x64xf32> to vector<128x64xbf16>
    %c0_14 = arith.constant 0 : index
    %c0_15 = arith.constant 0 : index
    %30 = vector.load %arg4[%c0_14, %c0_15] : memref<128x64xbf16, #tpu.memory_space<vmem>>, vector<128x64xbf16>
    tpu.vector_store %arg4[%c0_14, %c0_15], %29 {strides = array<i32>} : memref<128x64xbf16, #tpu.memory_space<vmem>>, vector<128x64xbf16>,
    return
  }
}

module attributes {stable_mosaic.version = 11 : i64} {
  func.func @_fused_conv_bn_lrelu_kernel(%arg0: memref<16x4096xbf16, #tpu.memory_space<vmem>>, %arg1: memref<4096x128xbf16, #tpu.memory_space<vmem>>, %arg2: memref<1x128xf32, #tpu.memory_space<vmem>>, %arg3: memref<1x128xf32, #tpu.memory_space<vmem>>, %arg4: memref<16x128xbf16, #tpu.memory_space<vmem>>) attributes {dimension_semantics = [], scalar_prefetch = 0 : i64, scratch_operands = 0 : i64, tpu.core_type = #tpu.core_type<tc>} {
    %c0 = arith.constant 0 : index
    %c0_0 = arith.constant 0 : index
    %0 = vector.load %arg0[%c0, %c0_0] : memref<16x4096xbf16, #tpu.memory_space<vmem>>, vector<16x4096xbf16>
    %c0_1 = arith.constant 0 : index
    %c0_2 = arith.constant 0 : index
    %1 = vector.load %arg1[%c0_1, %c0_2] : memref<4096x128xbf16, #tpu.memory_space<vmem>>, vector<4096x128xbf16>
    %cst = arith.constant dense<0.000000e+00> : vector<16x128xf32>
    %2 = tpu.matmul %0, %1, %cst {dimension_numbers = #tpu.dot_dimension_numbers<[1], [0], [0], [1], [0, 0, 1, 1], [], []>} : vector<16x4096xbf16>, vector<4096x128xbf16>, vector<16x128xf32> -> vector<16x128xf32>
    %cst_3 = arith.constant dense<0.000000e+00> : vector<128xf32>
    %3 = vector.multi_reduction <add>, %2, %cst_3 [0] : vector<16x128xf32> to vector<128xf32>
    %4 = vector.shape_cast %3 : vector<128xf32> to vector<1x128xf32>
    %cst_4 = arith.constant 6.250000e-02 : f32
    %5 = vector.broadcast %cst_4 : f32 to vector<1x128xf32>
    %6 = arith.mulf %4, %5 : vector<1x128xf32>
    %7 = vector.broadcast %6 : vector<1x128xf32> to vector<16x128xf32>
    %8 = arith.subf %2, %7 : vector<16x128xf32>
    %9 = arith.mulf %8, %8 : vector<16x128xf32>
    %cst_5 = arith.constant dense<0.000000e+00> : vector<128xf32>
    %10 = vector.multi_reduction <add>, %9, %cst_5 [0] : vector<16x128xf32> to vector<128xf32>
    %11 = vector.shape_cast %10 : vector<128xf32> to vector<1x128xf32>
    %cst_6 = arith.constant 6.250000e-02 : f32
    %12 = vector.broadcast %cst_6 : f32 to vector<1x128xf32>
    %13 = arith.mulf %11, %12 : vector<1x128xf32>
    %c0_7 = arith.constant 0 : index
    %c0_8 = arith.constant 0 : index
    %14 = vector.load %arg2[%c0_7, %c0_8] : memref<1x128xf32, #tpu.memory_space<vmem>>, vector<1x128xf32>
    %cst_9 = arith.constant 9.99999974E-6 : f32
    %15 = vector.broadcast %cst_9 : f32 to vector<1x128xf32>
    %16 = arith.addf %13, %15 : vector<1x128xf32>
    %17 = math.rsqrt %16 : vector<1x128xf32>
    %18 = arith.mulf %14, %17 : vector<1x128xf32>
    %19 = vector.broadcast %18 : vector<1x128xf32> to vector<16x128xf32>
    %20 = arith.mulf %8, %19 : vector<16x128xf32>
    %c0_10 = arith.constant 0 : index
    %c0_11 = arith.constant 0 : index
    %21 = vector.load %arg3[%c0_10, %c0_11] : memref<1x128xf32, #tpu.memory_space<vmem>>, vector<1x128xf32>
    %22 = vector.broadcast %21 : vector<1x128xf32> to vector<16x128xf32>
    %23 = arith.addf %20, %22 : vector<16x128xf32>
    %cst_12 = arith.constant 0.000000e+00 : f32
    %24 = vector.broadcast %cst_12 : f32 to vector<16x128xf32>
    %25 = arith.cmpf oge, %23, %24 : vector<16x128xf32>
    %cst_13 = arith.constant 2.000000e-01 : f32
    %26 = vector.broadcast %cst_13 : f32 to vector<16x128xf32>
    %27 = arith.mulf %26, %23 : vector<16x128xf32>
    %28 = arith.select %25, %23, %27 : vector<16x128xi1>, vector<16x128xf32>
    %29 = arith.truncf %28 : vector<16x128xf32> to vector<16x128xbf16>
    %c0_14 = arith.constant 0 : index
    %c0_15 = arith.constant 0 : index
    %30 = vector.load %arg4[%c0_14, %c0_15] : memref<16x128xbf16, #tpu.memory_space<vmem>>, vector<16x128xbf16>
    tpu.vector_store %arg4[%c0_14, %c0_15], %29 {strides = array<i32>} : memref<16x128xbf16, #tpu.memory_space<vmem>>, vector<16x128xbf16>,
    return
  }
}

module attributes {stable_mosaic.version = 11 : i64} {
  func.func @_fused_conv_bn_lrelu_kernel(%arg0: memref<2x3456xbf16, #tpu.memory_space<vmem>>, %arg1: memref<3456x256xbf16, #tpu.memory_space<vmem>>, %arg2: memref<1x256xf32, #tpu.memory_space<vmem>>, %arg3: memref<1x256xf32, #tpu.memory_space<vmem>>, %arg4: memref<2x256xbf16, #tpu.memory_space<vmem>>) attributes {dimension_semantics = [], scalar_prefetch = 0 : i64, scratch_operands = 0 : i64, tpu.core_type = #tpu.core_type<tc>} {
    %c0 = arith.constant 0 : index
    %c0_0 = arith.constant 0 : index
    %0 = vector.load %arg0[%c0, %c0_0] : memref<2x3456xbf16, #tpu.memory_space<vmem>>, vector<2x3456xbf16>
    %c0_1 = arith.constant 0 : index
    %c0_2 = arith.constant 0 : index
    %1 = vector.load %arg1[%c0_1, %c0_2] : memref<3456x256xbf16, #tpu.memory_space<vmem>>, vector<3456x256xbf16>
    %cst = arith.constant dense<0.000000e+00> : vector<2x256xf32>
    %2 = tpu.matmul %0, %1, %cst {dimension_numbers = #tpu.dot_dimension_numbers<[1], [0], [0], [1], [0, 0, 1, 1], [], []>} : vector<2x3456xbf16>, vector<3456x256xbf16>, vector<2x256xf32> -> vector<2x256xf32>
    %cst_3 = arith.constant dense<0.000000e+00> : vector<256xf32>
    %3 = vector.multi_reduction <add>, %2, %cst_3 [0] : vector<2x256xf32> to vector<256xf32>
    %4 = vector.shape_cast %3 : vector<256xf32> to vector<1x256xf32>
    %cst_4 = arith.constant 5.000000e-01 : f32
    %5 = vector.broadcast %cst_4 : f32 to vector<1x256xf32>
    %6 = arith.mulf %4, %5 : vector<1x256xf32>
    %7 = vector.broadcast %6 : vector<1x256xf32> to vector<2x256xf32>
    %8 = arith.subf %2, %7 : vector<2x256xf32>
    %9 = arith.mulf %8, %8 : vector<2x256xf32>
    %cst_5 = arith.constant dense<0.000000e+00> : vector<256xf32>
    %10 = vector.multi_reduction <add>, %9, %cst_5 [0] : vector<2x256xf32> to vector<256xf32>
    %11 = vector.shape_cast %10 : vector<256xf32> to vector<1x256xf32>
    %cst_6 = arith.constant 5.000000e-01 : f32
    %12 = vector.broadcast %cst_6 : f32 to vector<1x256xf32>
    %13 = arith.mulf %11, %12 : vector<1x256xf32>
    %c0_7 = arith.constant 0 : index
    %c0_8 = arith.constant 0 : index
    %14 = vector.load %arg2[%c0_7, %c0_8] : memref<1x256xf32, #tpu.memory_space<vmem>>, vector<1x256xf32>
    %cst_9 = arith.constant 9.99999974E-6 : f32
    %15 = vector.broadcast %cst_9 : f32 to vector<1x256xf32>
    %16 = arith.addf %13, %15 : vector<1x256xf32>
    %17 = math.rsqrt %16 : vector<1x256xf32>
    %18 = arith.mulf %14, %17 : vector<1x256xf32>
    %19 = vector.broadcast %18 : vector<1x256xf32> to vector<2x256xf32>
    %20 = arith.mulf %8, %19 : vector<2x256xf32>
    %c0_10 = arith.constant 0 : index
    %c0_11 = arith.constant 0 : index
    %21 = vector.load %arg3[%c0_10, %c0_11] : memref<1x256xf32, #tpu.memory_space<vmem>>, vector<1x256xf32>
    %22 = vector.broadcast %21 : vector<1x256xf32> to vector<2x256xf32>
    %23 = arith.addf %20, %22 : vector<2x256xf32>
    %cst_12 = arith.constant 0.000000e+00 : f32
    %24 = vector.broadcast %cst_12 : f32 to vector<2x256xf32>
    %25 = arith.cmpf oge, %23, %24 : vector<2x256xf32>
    %cst_13 = arith.constant 2.000000e-01 : f32
    %26 = vector.broadcast %cst_13 : f32 to vector<2x256xf32>
    %27 = arith.mulf %26, %23 : vector<2x256xf32>
    %28 = arith.select %25, %23, %27 : vector<2x256xi1>, vector<2x256xf32>
    %29 = arith.truncf %28 : vector<2x256xf32> to vector<2x256xbf16>
    %c0_14 = arith.constant 0 : index
    %c0_15 = arith.constant 0 : index
    %30 = vector.load %arg4[%c0_14, %c0_15] : memref<2x256xbf16, #tpu.memory_space<vmem>>, vector<2x256xbf16>
    tpu.vector_store %arg4[%c0_14, %c0_15], %29 {strides = array<i32>} : memref<2x256xbf16, #tpu.memory_space<vmem>>, vector<2x256xbf16>,
    return
  }
}

module attributes {stable_mosaic.version = 11 : i64} {
  func.func @_final_kernel(%arg0: i32, %arg1: memref<2x6912xbf16, #tpu.memory_space<vmem>>, %arg2: memref<1x6912xf32, #tpu.memory_space<vmem>>, %arg3: memref<1x1xf32, #tpu.memory_space<vmem>>, %arg4: memref<2x1xf32, #tpu.memory_space<vmem>>) attributes {dimension_semantics = [#tpu.dimension_semantics<parallel>], iteration_bounds = array<i64: 1>, scalar_prefetch = 0 : i64, scratch_operands = 0 : i64, tpu.core_type = #tpu.core_type<tc>, window_params = [{transform_indices = @transform_0, window_bounds = array<i64: 2, 6912>}, {pipeline_mode = #tpu.pipeline_mode<synchronous>, transform_indices = @transform_1, window_bounds = array<i64: 1, 6912>}, {pipeline_mode = #tpu.pipeline_mode<synchronous>, transform_indices = @transform_2, window_bounds = array<i64: 1, 1>}, {transform_indices = @transform_3, window_bounds = array<i64: 2, 1>}]} {
    %c0 = arith.constant 0 : index
    %c0_0 = arith.constant 0 : index
    %0 = vector.load %arg1[%c0, %c0_0] : memref<2x6912xbf16, #tpu.memory_space<vmem>>, vector<2x6912xbf16>
    %1 = arith.extf %0 : vector<2x6912xbf16> to vector<2x6912xf32>
    %c0_1 = arith.constant 0 : index
    %c0_2 = arith.constant 0 : index
    %2 = vector.load %arg2[%c0_1, %c0_2] : memref<1x6912xf32, #tpu.memory_space<vmem>>, vector<1x6912xf32>
    %3 = vector.broadcast %2 : vector<1x6912xf32> to vector<2x6912xf32>
    %4 = arith.mulf %1, %3 : vector<2x6912xf32>
    %cst = arith.constant dense<0.000000e+00> : vector<2xf32>
    %5 = vector.multi_reduction <add>, %4, %cst [1] : vector<2x6912xf32> to vector<2xf32>
    %6 = vector.shape_cast %5 : vector<2xf32> to vector<2x1xf32>
    %c0_3 = arith.constant 0 : index
    %c0_4 = arith.constant 0 : index
    %7 = vector.load %arg3[%c0_3, %c0_4] : memref<1x1xf32, #tpu.memory_space<vmem>>, vector<1x1xf32>
    %8 = vector.broadcast %7 : vector<1x1xf32> to vector<2x1xf32>
    %9 = arith.addf %6, %8 : vector<2x1xf32>
    %cst_5 = arith.constant 5.000000e-01 : f32
    %10 = vector.broadcast %cst_5 : f32 to vector<2x1xf32>
    %11 = arith.mulf %10, %9 : vector<2x1xf32>
    %12 = math.tanh %11 : vector<2x1xf32>
    %cst_6 = arith.constant 1.000000e+00 : f32
    %13 = vector.broadcast %cst_6 : f32 to vector<2x1xf32>
    %14 = arith.addf %12, %13 : vector<2x1xf32>
    %cst_7 = arith.constant 5.000000e-01 : f32
    %15 = vector.broadcast %cst_7 : f32 to vector<2x1xf32>
    %16 = arith.mulf %15, %14 : vector<2x1xf32>
    %c0_8 = arith.constant 0 : index
    %c0_9 = arith.constant 0 : index
    %17 = vector.load %arg4[%c0_8, %c0_9] : memref<2x1xf32, #tpu.memory_space<vmem>>, vector<2x1xf32>
    tpu.vector_store %arg4[%c0_8, %c0_9], %16 {strides = array<i32>} : memref<2x1xf32, #tpu.memory_space<vmem>>, vector<2x1xf32>,
    return
  }
  func.func @transform_0(%arg0: i32) -> (i32, i32) {
    %c0_i32 = arith.constant 0 : i32
    %c0_i32_0 = arith.constant 0 : i32
    return %arg0, %c0_i32 : i32, i32
  }
  func.func @transform_1(%arg0: i32) -> (i32, i32) {
    %c0_i32 = arith.constant 0 : i32
    %c0_i32_0 = arith.constant 0 : i32
    %c0_i32_1 = arith.constant 0 : i32
    return %c0_i32, %c0_i32_0 : i32, i32
  }
  func.func @transform_2(%arg0: i32) -> (i32, i32) {
    %c0_i32 = arith.constant 0 : i32
    %c0_i32_0 = arith.constant 0 : i32
    %c0_i32_1 = arith.constant 0 : i32
    return %c0_i32, %c0_i32_0 : i32, i32
  }
  func.func @transform_3(%arg0: i32) -> (i32, i32) {
    %c0_i32 = arith.constant 0 : i32
    %c0_i32_0 = arith.constant 0 : i32
    return %arg0, %c0_i32 : i32, i32
  }
}

</mosaic_0001>

<bundles_post_ra>
// kernel: discriminator_forward.5
= control target key start
LH: loop header
LB: loop body
LE: loop exit
PB: predicated region body
PF: predicated region fallthrough
CT: control target
= control target key end

     0   :  { %vm1139_vm0 = vcmask 130048   ;;  %s8929_s1 = inlined_call_operand.vmem [shape: bf16[128,16], index: 1, kind: input, shape index: {}]   ;;  %s8930_s0 = inlined_call_operand.vmem [shape: bf16[1024,128], index: 0, kind: input, shape index: {}]   ;;  %s8931_s2 = inlined_call_operand.vmem [shape: f32[1,16], index: 2, kind: input, shape index: {}]   ;;  %s8932_s3 = inlined_call_operand.vmem [shape: f32[1,16], index: 3, kind: input, shape index: {}]   ;;  %s8933_s4 = inlined_call_operand.vmem [shape: bf16[1024,16], index: 4, kind: output, shape index: {}]  }
   0x1   :  { %v3783_v0 = vld [vmem:[%s8929_s1] sm:$0xff]   ;;  %v3784_v1 = vld [vmem:[%s8929_s1 + $0x8] sm:$0xff]   ;;  %v3785_v2 = vld [vmem:[%s8929_s1 + $0x10] sm:$0xff]  }
   0x2   :  { %3623 = vmatprep.subr.bf16.mxu0 %v3783_v0  ;;  %3767 = vmatprep.subr.bf16.mxu1 %v3783_v0  ;;  %v3786_v3 = vld [vmem:[%s8929_s1 + $0x18] sm:$0xff]   ;;  %v3791_v4 = vld [vmem:[%s8930_s0] sm:$0xff]   ;;  %v3788_v6 = vld [vmem:[%s8929_s1 + $0x28] sm:$0xff]  }
   0x3   :  { %3624 = vmatpush3.bf16.msra.mxu0 %v3783_v0  ;;  %3775 = vmatpush3.bf16.msra.mxu1 %v3783_v0  ;;  %v3787_v5 = vld [vmem:[%s8929_s1 + $0x20] sm:$0xff]   ;;  %v3789_v7 = vld [vmem:[%s8929_s1 + $0x30] sm:$0xff]   ;;  %v3790_v8 = vld [vmem:[%s8929_s1 + $0x38] sm:$0xff]  }
   0x4   :  { %3625 = vmatprep.subr.bf16.mxu0 %v3784_v1  ;;  %3768 = vmatprep.subr.bf16.mxu1 %v3784_v1  ;;  %v3792_v9 = vld [vmem:[%s8930_s0 + $0x8] sm:$0xff]   ;;  %v3793_v10 = vld [vmem:[%s8930_s0 + $0x10] sm:$0xff]   ;;  %v3794_v11 = vld [vmem:[%s8930_s0 + $0x18] sm:$0xff]  }
   0x5   :  { %3639 = vmatprep.mubr.bf16.mxu0 %v3791_v4  ;;  %v3795_v12 = vld [vmem:[%s8930_s0 + $0x20] sm:$0xff]   ;;  %v3824_v14 = vld [vmem:[%s8930_s0 + $0x108] sm:$0xff]   ;;  %v3825_v15 = vld [vmem:[%s8930_s0 + $0x110] sm:$0xff]  }
   0x6   :  { %v3823_v13 = vld [vmem:[%s8930_s0 + $0x100] sm:$0xff]   ;;  %v3796_v16 = vld [vmem:[%s8930_s0 + $0x28] sm:$0xff]   ;;  %v3797_v17 = vld [vmem:[%s8930_s0 + $0x30] sm:$0xff]  }
   0x7   :  { %3626 = vmatpush3.bf16.msra.mxu0 %v3784_v1  ;;  %3776 = vmatpush3.bf16.msra.mxu1 %v3784_v1  ;;  %v3826_v18 = vld [vmem:[%s8930_s0 + $0x118] sm:$0xff]   ;;  %v3827_v19 = vld [vmem:[%s8930_s0 + $0x120] sm:$0xff]   ;;  %v3828_v22 = vld [vmem:[%s8930_s0 + $0x128] sm:$0xff]  }
   0x8   :  { %3627 = vmatprep.subr.bf16.mxu0 %v3785_v2  ;;  %3769 = vmatprep.subr.bf16.mxu1 %v3785_v2  ;;  %v3798_v20 = vld [vmem:[%s8930_s0 + $0x38] sm:$0xff]   ;;  %v3799_v21 = vld [vmem:[%s8930_s0 + $0x40] sm:$0xff]   ;;  %v3829_v23 = vld [vmem:[%s8930_s0 + $0x130] sm:$0xff]  }
   0x9   :  { %3703 = vmatprep.mubr.bf16.mxu1 %v3823_v13  ;;  %v3800_v24 = vld [vmem:[%s8930_s0 + $0x48] sm:$0xff]   ;;  %v3801_v25 = vld [vmem:[%s8930_s0 + $0x50] sm:$0xff]   ;;  %v3830_v26 = vld [vmem:[%s8930_s0 + $0x138] sm:$0xff]  }
   0xa   :  { %v3831_v27 = vld [vmem:[%s8930_s0 + $0x140] sm:$0xff]   ;;  %v3802_v28 = vld [vmem:[%s8930_s0 + $0x58] sm:$0xff]   ;;  %v3832_v30 = vld [vmem:[%s8930_s0 + $0x148] sm:$0xff]  }
   0xb   :  { %3628 = vmatpush3.bf16.msra.mxu0 %v3785_v2  ;;  %3777 = vmatpush3.bf16.msra.mxu1 %v3785_v2  ;;  %v3803_v29 = vld [vmem:[%s8930_s0 + $0x60] sm:$0xff]   ;;  %v3833_v31 = vld [vmem:[%s8930_s0 + $0x150] sm:$0xff]   ;;  %v3804_v32 = vld [vmem:[%s8930_s0 + $0x68] sm:$0xff]  }
   0xc   :  { %3629 = vmatprep.subr.bf16.mxu0 %v3786_v3  ;;  %3770 = vmatprep.subr.bf16.mxu1 %v3786_v3  ;;  %v3805_v33 = vld [vmem:[%s8930_s0 + $0x70] sm:$0xff]   ;;  %v3834_v34 = vld [vmem:[%s8930_s0 + $0x158] sm:$0xff]   ;;  %v3835_v35 = vld [vmem:[%s8930_s0 + $0x160] sm:$0xff]  }
   0xd   :  { %v3806_v36 = vld [vmem:[%s8930_s0 + $0x78] sm:$0xff]   ;;  %v3807_v37 = vld [vmem:[%s8930_s0 + $0x80] sm:$0xff]   ;;  %v3836_v38 = vld [vmem:[%s8930_s0 + $0x168] sm:$0xff]  }
   0xe   :  { %v3837_v39 = vld [vmem:[%s8930_s0 + $0x170] sm:$0xff]   ;;  %v3808_v40 = vld [vmem:[%s8930_s0 + $0x88] sm:$0xff]   ;;  %v3838_v42 = vld [vmem:[%s8930_s0 + $0x178] sm:$0xff]  }
   0xf   :  { %3630 = vmatpush3.bf16.msra.mxu0 %v3786_v3  ;;  %3778 = vmatpush3.bf16.msra.mxu1 %v3786_v3  ;;  %v3809_v41 = vld [vmem:[%s8930_s0 + $0x90] sm:$0xff]   ;;  %v3839_v43 = vld [vmem:[%s8930_s0 + $0x180] sm:$0xff]   ;;  %v3810_v44 = vld [vmem:[%s8930_s0 + $0x98] sm:$0xff]  }
  0x10   :  { %3631 = vmatprep.subr.bf16.mxu0 %v3787_v5  ;;  %3771 = vmatprep.subr.bf16.mxu1 %v3787_v5  ;;  %v3811_v45 = vld [vmem:[%s8930_s0 + $0xa0] sm:$0xff]   ;;  %v3840_v46 = vld [vmem:[%s8930_s0 + $0x188] sm:$0xff]   ;;  %v3841_v47 = vld [vmem:[%s8930_s0 + $0x190] sm:$0xff]  }
  0x11   :  { %v3812_v48 = vld [vmem:[%s8930_s0 + $0xa8] sm:$0xff]   ;;  %v3813_v49 = vld [vmem:[%s8930_s0 + $0xb0] sm:$0xff]   ;;  %v3842_v50 = vld [vmem:[%s8930_s0 + $0x198] sm:$0xff]  }
  0x12   :  { %v3843_v51 = vld [vmem:[%s8930_s0 + $0x1a0] sm:$0xff]   ;;  %v3814_v52 = vld [vmem:[%s8930_s0 + $0xb8] sm:$0xff]   ;;  %v3844_v54 = vld [vmem:[%s8930_s0 + $0x1a8] sm:$0xff]  }
  0x13   :  { %3632 = vmatpush3.bf16.msra.mxu0 %v3787_v5  ;;  %3779 = vmatpush3.bf16.msra.mxu1 %v3787_v5  ;;  %v3815_v53 = vld [vmem:[%s8930_s0 + $0xc0] sm:$0xff]   ;;  %v3845_v55 = vld [vmem:[%s8930_s0 + $0x1b0] sm:$0xff]   ;;  %v3816_v56 = vld [vmem:[%s8930_s0 + $0xc8] sm:$0xff]  }
  0x14   :  { %3633 = vmatprep.subr.bf16.mxu0 %v3788_v6  ;;  %3772 = vmatprep.subr.bf16.mxu1 %v3788_v6  ;;  %v3817_v57 = vld [vmem:[%s8930_s0 + $0xd0] sm:$0xff]   ;;  %v3846_v58 = vld [vmem:[%s8930_s0 + $0x1b8] sm:$0xff]   ;;  %v3847_v59 = vld [vmem:[%s8930_s0 + $0x1c0] sm:$0xff]  }
  0x15   :  { %v3818_v60 = vld [vmem:[%s8930_s0 + $0xd8] sm:$0xff]   ;;  %v3819_v61 = vld [vmem:[%s8930_s0 + $0xe0] sm:$0xff]   ;;  %v3848_v62 = vld [vmem:[%s8930_s0 + $0x1c8] sm:$0xff]  }
  0x16   :  { %v3849_v63 = vld [vmem:[%s8930_s0 + $0x1d0] sm:$0xff]   ;;  %v3820_v0 = vld [vmem:[%s8930_s0 + $0xe8] sm:$0xff]   ;;  %v3850_v2 = vld [vmem:[%s8930_s0 + $0x1d8] sm:$0xff]  }
  0x17   :  { %3634 = vmatpush3.bf16.msra.mxu0 %v3788_v6  ;;  %3780 = vmatpush3.bf16.msra.mxu1 %v3788_v6  ;;  %v3821_v1 = vld [vmem:[%s8930_s0 + $0xf0] sm:$0xff]   ;;  %v3851_v3 = vld [vmem:[%s8930_s0 + $0x1e0] sm:$0xff]   ;;  %v3822_v4 = vld [vmem:[%s8930_s0 + $0xf8] sm:$0xff]  }
  0x18   :  { %3635 = vmatprep.subr.bf16.mxu0 %v3789_v7  ;;  %3773 = vmatprep.subr.bf16.mxu1 %v3789_v7  ;;  %v3852_v5 = vld [vmem:[%s8930_s0 + $0x1e8] sm:$0xff]   ;;  %v3853_v6 = vld [vmem:[%s8930_s0 + $0x1f0] sm:$0xff]  }
  0x1b   :  { %3636 = vmatpush3.bf16.msra.mxu0 %v3789_v7  ;;  %3781 = vmatpush3.bf16.msra.mxu1 %v3789_v7  ;;  %v3854_v7 = vld [vmem:[%s8930_s0 + $0x1f8] sm:$0xff]  }
  0x1c   :  { %3637 = vmatprep.subr.bf16.mxu0 %v3790_v8  ;;  %3774 = vmatprep.subr.bf16.mxu1 %v3790_v8 }
  0x1f   :  { %3638 = vmatpush3.bf16.msra.mxu0 %v3790_v8  ;;  %3782 = vmatpush3.bf16.msra.mxu1 %v3790_v8 }
  0x22   :  { %3640 = vmatmul.mubr.bf16.vlgmr.msra.gmra.mrb[0].mxu0 %v3792_v9  ;;  %3704 = vmatmul.mubr.bf16.vlgmr.msra.gmra.mrb[0].mxu1 %v3824_v14 }
  0x23   :  { %3643 = vmatprep.mubr.bf16.mxu0 %v3793_v10  ;;  %3707 = vmatprep.mubr.bf16.mxu1 %v3825_v15 }
  0x2a   :  { %3644 = vmatmul.mubr.bf16.gmra.mrb[4].mxu0 %v3794_v11  ;;  %3708 = vmatmul.mubr.bf16.gmra.mrb[4].mxu1 %v3826_v18 }
  0x2b   :  { %3647 = vmatprep.mubr.bf16.mxu0 %v3795_v12  ;;  %3711 = vmatprep.mubr.bf16.mxu1 %v3827_v19 }
  0x32   :  { %3648 = vmatmul.mubr.bf16.gmra.mrb[8].mxu0 %v3796_v16  ;;  %3712 = vmatmul.mubr.bf16.gmra.mrb[8].mxu1 %v3828_v22 }
  0x33   :  { %3651 = vmatprep.mubr.bf16.mxu0 %v3797_v17  ;;  %3715 = vmatprep.mubr.bf16.mxu1 %v3829_v23 }
  0x3a   :  { %3652 = vmatmul.mubr.bf16.gmra.mrb[12].mxu0 %v3798_v20  ;;  %3716 = vmatmul.mubr.bf16.gmra.mrb[12].mxu1 %v3830_v26 }
  0x3b   :  { %3655 = vmatprep.mubr.bf16.mxu0 %v3799_v21  ;;  %3719 = vmatprep.mubr.bf16.mxu1 %v3831_v27 }
  0x42   :  { %3656 = vmatmul.mubr.bf16.gmra.mrb[16].mxu0 %v3800_v24  ;;  %3720 = vmatmul.mubr.bf16.gmra.mrb[16].mxu1 %v3832_v30 }
  0x43   :  { %3659 = vmatprep.mubr.bf16.mxu0 %v3801_v25  ;;  %3723 = vmatprep.mubr.bf16.mxu1 %v3833_v31 }
  0x4a   :  { %3660 = vmatmul.mubr.bf16.gmra.mrb[20].mxu0 %v3802_v28  ;;  %3724 = vmatmul.mubr.bf16.gmra.mrb[20].mxu1 %v3834_v34 }
  0x4b   :  { %3663 = vmatprep.mubr.bf16.mxu0 %v3803_v29  ;;  %3727 = vmatprep.mubr.bf16.mxu1 %v3835_v35 }
  0x52   :  { %3664 = vmatmul.mubr.bf16.gmra.mrb[24].mxu0 %v3804_v32  ;;  %3728 = vmatmul.mubr.bf16.gmra.mrb[24].mxu1 %v3836_v38 }
  0x53   :  { %3667 = vmatprep.mubr.bf16.mxu0 %v3805_v33  ;;  %3731 = vmatprep.mubr.bf16.mxu1 %v3837_v39 }
  0x5a   :  { %3668 = vmatmul.mubr.bf16.gmra.mrb[28].mxu0 %v3806_v36  ;;  %3732 = vmatmul.mubr.bf16.gmra.mrb[28].mxu1 %v3838_v42 }
  0x5b   :  { %3671 = vmatprep.mubr.bf16.mxu0 %v3807_v37  ;;  %3735 = vmatprep.mubr.bf16.mxu1 %v3839_v43 }
  0x62   :  { %3672 = vmatmul.mubr.bf16.gmra.mrb[32].mxu0 %v3808_v40  ;;  %3736 = vmatmul.mubr.bf16.gmra.mrb[32].mxu1 %v3840_v46 }
  0x63   :  { %3675 = vmatprep.mubr.bf16.mxu0 %v3809_v41  ;;  %3739 = vmatprep.mubr.bf16.mxu1 %v3841_v47 }
  0x6a   :  { %3676 = vmatmul.mubr.bf16.gmra.mrb[36].mxu0 %v3810_v44  ;;  %3740 = vmatmul.mubr.bf16.gmra.mrb[36].mxu1 %v3842_v50 }
  0x6b   :  { %3679 = vmatprep.mubr.bf16.mxu0 %v3811_v45  ;;  %3743 = vmatprep.mubr.bf16.mxu1 %v3843_v51 }
  0x72   :  { %3680 = vmatmul.mubr.bf16.gmra.mrb[40].mxu0 %v3812_v48  ;;  %3744 = vmatmul.mubr.bf16.gmra.mrb[40].mxu1 %v3844_v54 }
  0x73   :  { %3683 = vmatprep.mubr.bf16.mxu0 %v3813_v49  ;;  %3747 = vmatprep.mubr.bf16.mxu1 %v3845_v55 }
  0x7a   :  { %3684 = vmatmul.mubr.bf16.gmra.mrb[44].mxu0 %v3814_v52  ;;  %3748 = vmatmul.mubr.bf16.gmra.mrb[44].mxu1 %v3846_v58 }
  0x7b   :  { %3687 = vmatprep.mubr.bf16.mxu0 %v3815_v53  ;;  %3751 = vmatprep.mubr.bf16.mxu1 %v3847_v59 }
  0x82   :  { %3688 = vmatmul.mubr.bf16.gmra.mrb[48].mxu0 %v3816_v56  ;;  %3752 = vmatmul.mubr.bf16.gmra.mrb[48].mxu1 %v3848_v62 }
  0x83   :  { %3691 = vmatprep.mubr.bf16.mxu0 %v3817_v57  ;;  %3755 = vmatprep.mubr.bf16.mxu1 %v3849_v63 }
  0x8a   :  { %3692 = vmatmul.mubr.bf16.gmra.mrb[52].mxu0 %v3818_v60  ;;  %3756 = vmatmul.mubr.bf16.gmra.mrb[52].mxu1 %v3850_v2 }
  0x8b   :  { %3695 = vmatprep.mubr.bf16.mxu0 %v3819_v61  ;;  %3759 = vmatprep.mubr.bf16.mxu1 %v3851_v3 }
  0x92   :  { %3696 = vmatmul.mubr.bf16.gmra.mrb[56].mxu0 %v3820_v0  ;;  %3760 = vmatmul.mubr.bf16.gmra.mrb[56].mxu1 %v3852_v5 }
  0x93   :  { %3699 = vmatprep.mubr.bf16.mxu0 %v3821_v1  ;;  %3763 = vmatprep.mubr.bf16.mxu1 %v3853_v6 }
  0x9a   :  { %3700 = vmatmul.mubr.bf16.gmra.mrb[60].mxu0 %v3822_v4  ;;  %3764 = vmatmul.mubr.bf16.gmra.mrb[60].mxu1 %v3854_v7 }
  0xf5   :  { %v4098_v8 = vpop.f32.mrb[0].mxu0  ;;  %v4118_v21 = vpop.f32.mrb[0].mxu1 }
  0xf6   :  { %9315 = vst [vmem:[#allocation2_spill] sm:$0xff] %v4098_v8  ;;  %v4100_v9 = vpop.f32.mrb[1].mxu0  ;;  %v1143_v15 = vsel %vm1139_vm0, %v4098_v8, 0.0  ;;  %v4124_v24 = vpop.f32.mrb[1].mxu1 }
  0xf7   :  { %9316 = vst [vmem:[#allocation3_spill] sm:$0xff] %v4100_v9  ;;  %v4102_v10 = vpop.f32.mrb[2].mxu0  ;;  %v1140_v12 = vsel %vm1139_vm0, %v4100_v9, 0.0  ;;  %9322 = vst [vmem:[#allocation9_spill] sm:$0xff] %v4124_v24  ;;  %v4128_v27 = vpop.f32.mrb[2].mxu1 }
  0xf8   :  { %9317 = vst [vmem:[#allocation4_spill] sm:$0xff] %v4102_v10  ;;  %v4104_v11 = vpop.f32.mrb[3].mxu0  ;;  %v1145_v17 = vsel %vm1139_vm0, %v4102_v10, 0.0  ;;  %9324 = vst [vmem:[#allocation11_spill] sm:$0xff] %v4128_v27  ;;  %v4132_v29 = vpop.f32.mrb[3].mxu1 }
  0xf9   :  { %9318 = vst [vmem:[#allocation5_spill] sm:$0xff] %v4104_v11  ;;  %v1141_v13 = vsel %vm1139_vm0, %v4104_v11, 0.0  ;;  %9325 = vst [vmem:[#allocation12_spill] sm:$0xff] %v4132_v29 }
  0xfa   :  { %v1142_v14 = vadd.f32 %v1141_v13, %v1140_v12 }
  0xfc   :  { %v1144_v16 = vadd.f32 %v1143_v15, %v1142_v14 }
  0xfd   :  { %v4114_v18 = vpop.f32.mrb[4].mxu0  ;;  %v4142_v37 = vpop.f32.mrb[4].mxu1 }
  0xfe   :  { %9319 = vst [vmem:[#allocation6_spill] sm:$0xff] %v4114_v18  ;;  %v1146_v19 = vadd.f32 %v1145_v17, %v1144_v16  ;;  %v4116_v20 = vpop.f32.mrb[5].mxu0  ;;  %v1151_v31 = vsel %vm1139_vm0, %v4114_v18, 0.0  ;;  %v4148_v40 = vpop.f32.mrb[5].mxu1 }
  0xff   :  { %9320 = vst [vmem:[#allocation7_spill] sm:$0xff] %v4116_v20  ;;  %v1147_v22 = vsel %vm1139_vm0, %v4116_v20, 0.0  ;;  %v4122_v23 = vpop.f32.mrb[6].mxu0  ;;  %v4152_v43 = vpop.f32.mrb[6].mxu1 }
 0x100   :  { %9321 = vst [vmem:[#allocation8_spill] sm:$0xff] %v4122_v23  ;;  %v1148_v25 = vadd.f32 %v1147_v22, %v1146_v19  ;;  %v4126_v26 = vpop.f32.mrb[7].mxu0  ;;  %v1153_v33 = vsel %vm1139_vm0, %v4122_v23, 0.0  ;;  %v4156_v45 = vpop.f32.mrb[7].mxu1 }
 0x101   :  { %9323 = vst [vmem:[#allocation10_spill] sm:$0xff] %v4126_v26  ;;  %v1149_v28 = vsel %vm1139_vm0, %v4126_v26, 0.0 }
 0x102   :  { %v1150_v30 = vadd.f32 %v1149_v28, %v1148_v25 }
 0x104   :  { %v1152_v32 = vadd.f32 %v1151_v31, %v1150_v30 }
 0x105   :  { %v4138_v34 = vpop.f32.mrb[8].mxu0  ;;  %v4166_v53 = vpop.f32.mrb[8].mxu1 }
 0x106   :  { %9326 = vst [vmem:[#allocation13_spill] sm:$0xff] %v4138_v34  ;;  %v4140_v35 = vpop.f32.mrb[9].mxu0  ;;  %v1154_v36 = vadd.f32 %v1153_v33, %v1152_v32  ;;  %v1159_v47 = vsel %vm1139_vm0, %v4138_v34, 0.0  ;;  %v4172_v56 = vpop.f32.mrb[9].mxu1 }
 0x107   :  { %9327 = vst [vmem:[#allocation14_spill] sm:$0xff] %v4140_v35  ;;  %v1155_v38 = vsel %vm1139_vm0, %v4140_v35, 0.0  ;;  %v4146_v39 = vpop.f32.mrb[10].mxu0  ;;  %v4176_v59 = vpop.f32.mrb[10].mxu1 }
 0x108   :  { %9328 = vst [vmem:[#allocation15_spill] sm:$0xff] %v4146_v39  ;;  %v1156_v41 = vadd.f32 %v1155_v38, %v1154_v36  ;;  %v4150_v42 = vpop.f32.mrb[11].mxu0  ;;  %v1161_v49 = vsel %vm1139_vm0, %v4146_v39, 0.0  ;;  %v4180_v61 = vpop.f32.mrb[11].mxu1 }
 0x109   :  { %9329 = vst [vmem:[#allocation16_spill] sm:$0xff] %v4150_v42  ;;  %v1157_v44 = vsel %vm1139_vm0, %v4150_v42, 0.0 }
 0x10a   :  { %v1158_v46 = vadd.f32 %v1157_v44, %v1156_v41 }
 0x10c   :  { %v1160_v48 = vadd.f32 %v1159_v47, %v1158_v46 }
 0x10d   :  { %v4162_v50 = vpop.f32.mrb[12].mxu0  ;;  %v4190_v5 = vpop.f32.mrb[12].mxu1 }
 0x10e   :  { %9330 = vst [vmem:[#allocation17_spill] sm:$0xff] %v4162_v50  ;;  %v4164_v51 = vpop.f32.mrb[13].mxu0  ;;  %v1162_v52 = vadd.f32 %v1161_v49, %v1160_v48  ;;  %v1167_v63 = vsel %vm1139_vm0, %v4162_v50, 0.0  ;;  %v4196_v12 = vpop.f32.mrb[13].mxu1 }
 0x10f   :  { %9331 = vst [vmem:[#allocation18_spill] sm:$0xff] %v4164_v51  ;;  %v1163_v54 = vsel %vm1139_vm0, %v4164_v51, 0.0  ;;  %v4170_v55 = vpop.f32.mrb[14].mxu0  ;;  %v4200_v15 = vpop.f32.mrb[14].mxu1 }
 0x110   :  { %9332 = vst [vmem:[#allocation19_spill] sm:$0xff] %v4170_v55  ;;  %v1164_v57 = vadd.f32 %v1163_v54, %v1162_v52  ;;  %v4174_v58 = vpop.f32.mrb[15].mxu0  ;;  %v1169_v1 = vsel %vm1139_vm0, %v4170_v55, 0.0  ;;  %v4204_v17 = vpop.f32.mrb[15].mxu1 }
 0x111   :  { %9333 = vst [vmem:[#allocation20_spill] sm:$0xff] %v4174_v58  ;;  %v1165_v60 = vsel %vm1139_vm0, %v4174_v58, 0.0 }
 0x112   :  { %v1166_v62 = vadd.f32 %v1165_v60, %v1164_v57 }
 0x114   :  { %v1168_v0 = vadd.f32 %v1167_v63, %v1166_v62 }
 0x115   :  { %v4186_v2 = vpop.f32.mrb[16].mxu0  ;;  %v4214_v33 = vpop.f32.mrb[16].mxu1 }
 0x116   :  { %9334 = vst [vmem:[#allocation21_spill] sm:$0xff] %v4186_v2  ;;  %v4188_v3 = vpop.f32.mrb[17].mxu0  ;;  %v1170_v4 = vadd.f32 %v1169_v1, %v1168_v0  ;;  %v1175_v22 = vsel %vm1139_vm0, %v4186_v2, 0.0  ;;  %v4220_v41 = vpop.f32.mrb[17].mxu1 }
 0x117   :  { %9335 = vst [vmem:[#allocation22_spill] sm:$0xff] %v4188_v3  ;;  %v1171_v6 = vsel %vm1139_vm0, %v4188_v3, 0.0  ;;  %v4194_v7 = vpop.f32.mrb[18].mxu0  ;;  %v4224_v47 = vpop.f32.mrb[18].mxu1 }
 0x118   :  { %9336 = vst [vmem:[#allocation23_spill] sm:$0xff] %v4194_v7  ;;  %v1172_v13 = vadd.f32 %v1171_v6, %v1170_v4  ;;  %v4198_v14 = vpop.f32.mrb[19].mxu0  ;;  %v1177_v28 = vsel %vm1139_vm0, %v4194_v7, 0.0  ;;  %v4228_v49 = vpop.f32.mrb[19].mxu1 }
 0x119   :  { %9337 = vst [vmem:[#allocation24_spill] sm:$0xff] %v4198_v14  ;;  %v1173_v16 = vsel %vm1139_vm0, %v4198_v14, 0.0 }
 0x11a   :  { %v1174_v19 = vadd.f32 %v1173_v16, %v1172_v13 }
 0x11c   :  { %v1176_v25 = vadd.f32 %v1175_v22, %v1174_v19 }
 0x11d   :  { %v4210_v30 = vpop.f32.mrb[20].mxu0  ;;  %v4238_v1 = vpop.f32.mrb[20].mxu1 }
 0x11e   :  { %9338 = vst [vmem:[#allocation25_spill] sm:$0xff] %v4210_v30  ;;  %v4212_v31 = vpop.f32.mrb[21].mxu0  ;;  %v1178_v32 = vadd.f32 %v1177_v28, %v1176_v25  ;;  %v1183_v54 = vsel %vm1139_vm0, %v4210_v30, 0.0  ;;  %v4244_v13 = vpop.f32.mrb[21].mxu1 }
 0x11f   :  { %9339 = vst [vmem:[#allocation26_spill] sm:$0xff] %v4212_v31  ;;  %v1179_v36 = vsel %vm1139_vm0, %v4212_v31, 0.0  ;;  %v4218_v38 = vpop.f32.mrb[22].mxu0  ;;  %v4248_v22 = vpop.f32.mrb[22].mxu1 }
 0x120   :  { %9340 = vst [vmem:[#allocation27_spill] sm:$0xff] %v4218_v38  ;;  %v1180_v44 = vadd.f32 %v1179_v36, %v1178_v32  ;;  %v4222_v46 = vpop.f32.mrb[23].mxu0  ;;  %v1185_v60 = vsel %vm1139_vm0, %v4218_v38, 0.0  ;;  %v4252_v28 = vpop.f32.mrb[23].mxu1 }
 0x121   :  { %9341 = vst [vmem:[#allocation28_spill] sm:$0xff] %v4222_v46  ;;  %v1181_v48 = vsel %vm1139_vm0, %v4222_v46, 0.0 }
 0x122   :  { %v1182_v52 = vadd.f32 %v1181_v48, %v1180_v44 }
 0x124   :  { %v1184_v57 = vadd.f32 %v1183_v54, %v1182_v52 }
 0x125   :  { %v4234_v62 = vpop.f32.mrb[24].mxu0 }
 0x126   :  { %9342 = vst [vmem:[#allocation29_spill] sm:$0xff] %v4234_v62  ;;  %v4236_v63 = vpop.f32.mrb[25].mxu0  ;;  %v1186_v0 = vadd.f32 %v1185_v60, %v1184_v57  ;;  %v1191_v36 = vsel %vm1139_vm0, %v4234_v62, 0.0  ;;  %v4262_v60 = vpop.f32.mrb[24].mxu1 }
 0x127   :  { %9343 = vst [vmem:[#allocation30_spill] sm:$0xff] %v4236_v63  ;;  %v1187_v4 = vsel %vm1139_vm0, %v4236_v63, 0.0  ;;  %v4242_v6 = vpop.f32.mrb[26].mxu0 }
 0x128   :  { %9344 = vst [vmem:[#allocation31_spill] sm:$0xff] %v4242_v6  ;;  %v1188_v16 = vadd.f32 %v1187_v4, %v1186_v0  ;;  %v4246_v19 = vpop.f32.mrb[27].mxu0  ;;  %v1193_v48 = vsel %vm1139_vm0, %v4242_v6, 0.0 }
 0x129   :  { %9345 = vst [vmem:[#allocation32_spill] sm:$0xff] %v4246_v19  ;;  %v1189_v25 = vsel %vm1139_vm0, %v4246_v19, 0.0 }
 0x12a   :  { %v1190_v32 = vadd.f32 %v1189_v25, %v1188_v16  ;;  %v4268_v16 = vpop.f32.mrb[25].mxu1 }
 0x12c   :  { %v1192_v44 = vadd.f32 %v1191_v36, %v1190_v32  ;;  %v4272_v32 = vpop.f32.mrb[26].mxu1 }
 0x12d   :  { %v4258_v52 = vpop.f32.mrb[28].mxu0  ;;  %v4276_v6 = vpop.f32.mrb[27].mxu1 }
 0x12e   :  { %9346 = vst [vmem:[#allocation33_spill] sm:$0xff] %v4258_v52  ;;  %v4260_v54 = vpop.f32.mrb[29].mxu0  ;;  %v1194_v57 = vadd.f32 %v1193_v48, %v1192_v44  ;;  %v1199_v48 = vsel %vm1139_vm0, %v4258_v52, 0.0  ;;  %v4286_v38 = vpop.f32.mrb[28].mxu1 }
 0x12f   :  { %9347 = vst [vmem:[#allocation34_spill] sm:$0xff] %v4260_v54  ;;  %v1195_v0 = vsel %vm1139_vm0, %v4260_v54, 0.0  ;;  %v4266_v4 = vpop.f32.mrb[30].mxu0 }
 0x130   :  { %9348 = vst [vmem:[#allocation35_spill] sm:$0xff] %v4266_v4  ;;  %v1196_v25 = vadd.f32 %v1195_v0, %v1194_v57  ;;  %v4270_v62 = vpop.f32.mrb[31].mxu0  ;;  %v1201_v54 = vsel %vm1139_vm0, %v4266_v4, 0.0 }
 0x131   :  { %9349 = vst [vmem:[#allocation36_spill] sm:$0xff] %v4270_v62  ;;  %v1197_v36 = vsel %vm1139_vm0, %v4270_v62, 0.0 }
 0x132   :  { %v1198_v44 = vadd.f32 %v1197_v36, %v1196_v25  ;;  %v4292_v25 = vpop.f32.mrb[29].mxu1 }
 0x134   :  { %v1200_v19 = vadd.f32 %v1199_v48, %v1198_v44  ;;  %v4296_v44 = vpop.f32.mrb[30].mxu1 }
 0x135   :  { %v4282_v63 = vpop.f32.mrb[32].mxu0  ;;  %v4300_v4 = vpop.f32.mrb[31].mxu1 }
 0x136   :  { %9350 = vst [vmem:[#allocation37_spill] sm:$0xff] %v4282_v63  ;;  %v4284_v57 = vpop.f32.mrb[33].mxu0  ;;  %v1202_v0 = vadd.f32 %v1201_v54, %v1200_v19  ;;  %v1207_v54 = vsel %vm1139_vm0, %v4282_v63, 0.0  ;;  %v4310_v7 = vpop.f32.mrb[32].mxu1 }
 0x137   :  { %9351 = vst [vmem:[#allocation38_spill] sm:$0xff] %v4284_v57  ;;  %v1203_v62 = vsel %vm1139_vm0, %v4284_v57, 0.0  ;;  %v4290_v30 = vpop.f32.mrb[34].mxu0 }
 0x138   :  { %9352 = vst [vmem:[#allocation39_spill] sm:$0xff] %v4290_v30  ;;  %v1204_v36 = vadd.f32 %v1203_v62, %v1202_v0  ;;  %v4294_v52 = vpop.f32.mrb[35].mxu0  ;;  %v1209_v57 = vsel %vm1139_vm0, %v4290_v30, 0.0 }
 0x139   :  { %9353 = vst [vmem:[#allocation40_spill] sm:$0xff] %v4294_v52  ;;  %v1205_v48 = vsel %vm1139_vm0, %v4294_v52, 0.0 }
 0x13a   :  { %v1206_v19 = vadd.f32 %v1205_v48, %v1204_v36  ;;  %v4316_v36 = vpop.f32.mrb[33].mxu1 }
 0x13c   :  { %v1208_v46 = vadd.f32 %v1207_v54, %v1206_v19  ;;  %v4320_v19 = vpop.f32.mrb[34].mxu1 }
 0x13d   :  { %v4306_v31 = vpop.f32.mrb[36].mxu0  ;;  %v4324_v30 = vpop.f32.mrb[35].mxu1 }
 0x13e   :  { %9354 = vst [vmem:[#allocation41_spill] sm:$0xff] %v4306_v31  ;;  %v4308_v62 = vpop.f32.mrb[37].mxu0  ;;  %v1210_v0 = vadd.f32 %v1209_v57, %v1208_v46  ;;  %v1215_v57 = vsel %vm1139_vm0, %v4306_v31, 0.0  ;;  %v4334_v55 = vpop.f32.mrb[36].mxu1 }
 0x13f   :  { %9355 = vst [vmem:[#allocation42_spill] sm:$0xff] %v4308_v62  ;;  %v1211_v52 = vsel %vm1139_vm0, %v4308_v62, 0.0  ;;  %v4314_v2 = vpop.f32.mrb[38].mxu0 }
 0x140   :  { %9356 = vst [vmem:[#allocation43_spill] sm:$0xff] %v4314_v2  ;;  %v1212_v48 = vadd.f32 %v1211_v52, %v1210_v0  ;;  %v4318_v63 = vpop.f32.mrb[39].mxu0  ;;  %v1217_v62 = vsel %vm1139_vm0, %v4314_v2, 0.0 }
 0x141   :  { %9357 = vst [vmem:[#allocation44_spill] sm:$0xff] %v4318_v63  ;;  %v1213_v54 = vsel %vm1139_vm0, %v4318_v63, 0.0 }
 0x142   :  { %v1214_v46 = vadd.f32 %v1213_v54, %v1212_v48  ;;  %v4340_v48 = vpop.f32.mrb[37].mxu1 }
 0x144   :  { %v1216_v14 = vadd.f32 %v1215_v57, %v1214_v46  ;;  %v4344_v46 = vpop.f32.mrb[38].mxu1 }
 0x145   :  { %v4330_v3 = vpop.f32.mrb[40].mxu0  ;;  %v4348_v2 = vpop.f32.mrb[39].mxu1 }
 0x146   :  { %9358 = vst [vmem:[#allocation45_spill] sm:$0xff] %v4330_v3  ;;  %v4332_v52 = vpop.f32.mrb[41].mxu0  ;;  %v1218_v0 = vadd.f32 %v1217_v62, %v1216_v14  ;;  %v1223_v62 = vsel %vm1139_vm0, %v4330_v3, 0.0  ;;  %v4358_v39 = vpop.f32.mrb[40].mxu1 }
 0x147   :  { %9359 = vst [vmem:[#allocation46_spill] sm:$0xff] %v4332_v52  ;;  %v1219_v63 = vsel %vm1139_vm0, %v4332_v52, 0.0  ;;  %v4338_v50 = vpop.f32.mrb[42].mxu0 }
 0x148   :  { %9360 = vst [vmem:[#allocation47_spill] sm:$0xff] %v4338_v50  ;;  %v1220_v54 = vadd.f32 %v1219_v63, %v1218_v0  ;;  %v4342_v31 = vpop.f32.mrb[43].mxu0  ;;  %v1225_v52 = vsel %vm1139_vm0, %v4338_v50, 0.0 }
 0x149   :  { %9361 = vst [vmem:[#allocation48_spill] sm:$0xff] %v4342_v31  ;;  %v1221_v57 = vsel %vm1139_vm0, %v4342_v31, 0.0 }
 0x14a   :  { %v1222_v14 = vadd.f32 %v1221_v57, %v1220_v54  ;;  %v4364_v54 = vpop.f32.mrb[41].mxu1 }
 0x14c   :  { %v1224_v58 = vadd.f32 %v1223_v62, %v1222_v14  ;;  %v4368_v14 = vpop.f32.mrb[42].mxu1 }
 0x14d   :  { %v4354_v51 = vpop.f32.mrb[44].mxu0  ;;  %9366 = vst [vmem:[#allocation53_spill] sm:$0xff] %v4368_v14  ;;  %v4372_v50 = vpop.f32.mrb[43].mxu1 }
 0x14e   :  { %9362 = vst [vmem:[#allocation49_spill] sm:$0xff] %v4354_v51  ;;  %v4356_v63 = vpop.f32.mrb[45].mxu0  ;;  %v1226_v0 = vadd.f32 %v1225_v52, %v1224_v58  ;;  %v1231_v52 = vsel %vm1139_vm0, %v4354_v51, 0.0  ;;  %v4382_v23 = vpop.f32.mrb[44].mxu1 }
 0x14f   :  { %9363 = vst [vmem:[#allocation50_spill] sm:$0xff] %v4356_v63  ;;  %v1227_v31 = vsel %vm1139_vm0, %v4356_v63, 0.0  ;;  %v4362_v34 = vpop.f32.mrb[46].mxu0  ;;  %9369 = vst [vmem:[#allocation56_spill] sm:$0xff] %v4382_v23 }
 0x150   :  { %9364 = vst [vmem:[#allocation51_spill] sm:$0xff] %v4362_v34  ;;  %v1228_v57 = vadd.f32 %v1227_v31, %v1226_v0  ;;  %v4366_v3 = vpop.f32.mrb[47].mxu0  ;;  %v1233_v63 = vsel %vm1139_vm0, %v4362_v34, 0.0 }
 0x151   :  { %9365 = vst [vmem:[#allocation52_spill] sm:$0xff] %v4366_v3  ;;  %v1229_v62 = vsel %vm1139_vm0, %v4366_v3, 0.0 }
 0x152   :  { %v1230_v58 = vadd.f32 %v1229_v62, %v1228_v57  ;;  %v4388_v57 = vpop.f32.mrb[45].mxu1 }
 0x153   :  { %9371 = vst [vmem:[#allocation58_spill] sm:$0xff] %v4388_v57 }
 0x154   :  { %v1232_v42 = vadd.f32 %v1231_v52, %v1230_v58  ;;  %v4392_v58 = vpop.f32.mrb[46].mxu1 }
 0x155   :  { %v4378_v35 = vpop.f32.mrb[48].mxu0  ;;  %9373 = vst [vmem:[#allocation60_spill] sm:$0xff] %v4392_v58  ;;  %v4396_v34 = vpop.f32.mrb[47].mxu1 }
 0x156   :  { %9367 = vst [vmem:[#allocation54_spill] sm:$0xff] %v4378_v35  ;;  %v4380_v31 = vpop.f32.mrb[49].mxu0  ;;  %v1234_v0 = vadd.f32 %v1233_v63, %v1232_v42  ;;  %9374 = vst [vmem:[#allocation61_spill] sm:$0xff] %v4396_v34  ;;  %v1239_v63 = vsel %vm1139_vm0, %v4378_v35, 0.0  ;;  %v4406_v10 = vpop.f32.mrb[48].mxu1 }
 0x157   :  { %9368 = vst [vmem:[#allocation55_spill] sm:$0xff] %v4380_v31  ;;  %v1235_v3 = vsel %vm1139_vm0, %v4380_v31, 0.0  ;;  %v4386_v18 = vpop.f32.mrb[50].mxu0  ;;  %9377 = vst [vmem:[#allocation64_spill] sm:$0xff] %v4406_v10 }
 0x158   :  { %9370 = vst [vmem:[#allocation57_spill] sm:$0xff] %v4386_v18  ;;  %v1236_v62 = vadd.f32 %v1235_v3, %v1234_v0  ;;  %v4390_v51 = vpop.f32.mrb[51].mxu0  ;;  %v1241_v31 = vsel %vm1139_vm0, %v4386_v18, 0.0 }
 0x159   :  { %9372 = vst [vmem:[#allocation59_spill] sm:$0xff] %v4390_v51  ;;  %v1237_v52 = vsel %vm1139_vm0, %v4390_v51, 0.0 }
 0x15a   :  { %v1238_v42 = vadd.f32 %v1237_v52, %v1236_v62  ;;  %v4412_v62 = vpop.f32.mrb[49].mxu1 }
 0x15c   :  { %v1240_v26 = vadd.f32 %v1239_v63, %v1238_v42  ;;  %v4416_v42 = vpop.f32.mrb[50].mxu1 }
 0x15d   :  { %v4402_v20 = vpop.f32.mrb[52].mxu0  ;;  %9380 = vst [vmem:[#allocation67_spill] sm:$0xff] %v4416_v42  ;;  %v4420_v18 = vpop.f32.mrb[51].mxu1 }
 0x15e   :  { %9375 = vst [vmem:[#allocation62_spill] sm:$0xff] %v4402_v20  ;;  %v4404_v3 = vpop.f32.mrb[53].mxu0  ;;  %v1242_v0 = vadd.f32 %v1241_v31, %v1240_v26  ;;  %9381 = vst [vmem:[#allocation68_spill] sm:$0xff] %v4420_v18  ;;  %v1247_v31 = vsel %vm1139_vm0, %v4402_v20, 0.0  ;;  %v4430_v10 = vpop.f32.mrb[52].mxu1 }
 0x15f   :  { %9376 = vst [vmem:[#allocation63_spill] sm:$0xff] %v4404_v3  ;;  %v1243_v51 = vsel %vm1139_vm0, %v4404_v3, 0.0  ;;  %v4410_v8 = vpop.f32.mrb[54].mxu0  ;;  %9384 = vst [vmem:[#allocation71_spill] sm:$0xff] %v4430_v10 }
 0x160   :  { %9378 = vst [vmem:[#allocation65_spill] sm:$0xff] %v4410_v8  ;;  %v1244_v52 = vadd.f32 %v1243_v51, %v1242_v0  ;;  %v4414_v35 = vpop.f32.mrb[55].mxu0  ;;  %v1249_v3 = vsel %vm1139_vm0, %v4410_v8, 0.0 }
 0x161   :  { %9379 = vst [vmem:[#allocation66_spill] sm:$0xff] %v4414_v35  ;;  %v1245_v63 = vsel %vm1139_vm0, %v4414_v35, 0.0 }
 0x162   :  { %v1246_v26 = vadd.f32 %v1245_v63, %v1244_v52  ;;  %v4436_v52 = vpop.f32.mrb[53].mxu1 }
 0x163   :  { %9386 = vst [vmem:[#allocation73_spill] sm:$0xff] %v4436_v52 }
 0x164   :  { %v1248_v11 = vadd.f32 %v1247_v31, %v1246_v26  ;;  %v4440_v26 = vpop.f32.mrb[54].mxu1 }
 0x165   :  { %v4426_v9 = vpop.f32.mrb[56].mxu0  ;;  %9388 = vst [vmem:[#allocation75_spill] sm:$0xff] %v4440_v26  ;;  %v4444_v8 = vpop.f32.mrb[55].mxu1 }
 0x166   :  { %9382 = vst [vmem:[#allocation69_spill] sm:$0xff] %v4426_v9  ;;  %v4428_v51 = vpop.f32.mrb[57].mxu0  ;;  %v1250_v0 = vadd.f32 %v1249_v3, %v1248_v11  ;;  %9389 = vst [vmem:[#allocation76_spill] sm:$0xff] %v4444_v8  ;;  %v1255_v3 = vsel %vm1139_vm0, %v4426_v9, 0.0  ;;  %v4454_v52 = vpop.f32.mrb[56].mxu1 }
 0x167   :  { %9383 = vst [vmem:[#allocation70_spill] sm:$0xff] %v4428_v51  ;;  %v1251_v35 = vsel %vm1139_vm0, %v4428_v51, 0.0  ;;  %v4434_v42 = vpop.f32.mrb[58].mxu0  ;;  %9392 = vst [vmem:[#allocation79_spill] sm:$0xff] %v4454_v52 }
 0x168   :  { %9385 = vst [vmem:[#allocation72_spill] sm:$0xff] %v4434_v42  ;;  %v1252_v63 = vadd.f32 %v1251_v35, %v1250_v0  ;;  %v4438_v20 = vpop.f32.mrb[59].mxu0  ;;  %v1257_v51 = vsel %vm1139_vm0, %v4434_v42, 0.0 }
 0x169   :  { %9387 = vst [vmem:[#allocation74_spill] sm:$0xff] %v4438_v20  ;;  %v1253_v31 = vsel %vm1139_vm0, %v4438_v20, 0.0 }
 0x16a   :  { %v1254_v11 = vadd.f32 %v1253_v31, %v1252_v63  ;;  %v4460_v63 = vpop.f32.mrb[57].mxu1 }
 0x16b   :  { %9394 = vst [vmem:[#allocation81_spill] sm:$0xff] %v4460_v63 }
 0x16c   :  { %v1256_v10 = vadd.f32 %v1255_v3, %v1254_v11  ;;  %v4464_v11 = vpop.f32.mrb[58].mxu1 }
 0x16d   :  { %v4450_v18 = vpop.f32.mrb[60].mxu0  ;;  %9396 = vst [vmem:[#allocation83_spill] sm:$0xff] %v4464_v11  ;;  %v4468_v42 = vpop.f32.mrb[59].mxu1 }
 0x16e   :  { %9390 = vst [vmem:[#allocation77_spill] sm:$0xff] %v4450_v18  ;;  %v4452_v35 = vpop.f32.mrb[61].mxu0  ;;  %v1258_v0 = vadd.f32 %v1257_v51, %v1256_v10  ;;  %9397 = vst [vmem:[#allocation84_spill] sm:$0xff] %v4468_v42  ;;  %v1263_v51 = vsel %vm1139_vm0, %v4450_v18, 0.0  ;;  %v4476_v63 = vpop.f32.mrb[60].mxu1 }
 0x16f   :  { %9391 = vst [vmem:[#allocation78_spill] sm:$0xff] %v4452_v35  ;;  %v1259_v20 = vsel %vm1139_vm0, %v4452_v35, 0.0  ;;  %v4458_v26 = vpop.f32.mrb[62].mxu0  ;;  %v4478_v11 = vpop.f32.mrb[61].mxu1 }
 0x170   :  { %9393 = vst [vmem:[#allocation80_spill] sm:$0xff] %v4458_v26  ;;  %v1260_v31 = vadd.f32 %v1259_v20, %v1258_v0  ;;  %v4462_v9 = vpop.f32.mrb[63].mxu0  ;;  %v1265_v35 = vsel %vm1139_vm0, %v4458_v26, 0.0  ;;  %v1267_v20 = vsel %vm1139_vm0, %v4124_v24, 0.0  ;;  %9398 = vst [vmem:[#allocation85_spill] sm:$0xff] %v4478_v11 }
 0x171   :  { %9395 = vst [vmem:[#allocation82_spill] sm:$0xff] %v4462_v9  ;;  %v1261_v3 = vsel %vm1139_vm0, %v4462_v9, 0.0  ;;  %v4480_v9 = vpop.f32.mrb[62].mxu1 }
 0x172   :  { %v1262_v10 = vadd.f32 %v1261_v3, %v1260_v31  ;;  %v1269_v31 = vsel %vm1139_vm0, %v4132_v29, 0.0  ;;  %v4484_v3 = vpop.f32.mrb[63].mxu1  ;;  %v1279_v29 = vsel %vm1139_vm0, %v4142_v37, 0.0 }
 0x174   :  { %v1264_v52 = vadd.f32 %v1263_v51, %v1262_v10  ;;  %v1271_v51 = vsel %vm1139_vm0, %v4118_v21, 0.0 }
 0x176   :  { %v1266_v0 = vadd.f32 %v1265_v35, %v1264_v52  ;;  %v1273_v52 = vsel %vm1139_vm0, %v4128_v27, 0.0  ;;  %v1275_v35 = vsel %vm1139_vm0, %v4148_v40, 0.0 }
 0x178   :  { %v1268_v8 = vadd.f32 %v1267_v20, %v1266_v0  ;;  %v1277_v0 = vsel %vm1139_vm0, %v4156_v45, 0.0 }
 0x17a   :  { %v1270_v10 = vadd.f32 %v1269_v31, %v1268_v8  ;;  %v1281_v31 = vsel %vm1139_vm0, %v4152_v43, 0.0 }
 0x17c   :  { %v1272_v26 = vadd.f32 %v1271_v51, %v1270_v10  ;;  %v1283_v10 = vsel %vm1139_vm0, %v4172_v56, 0.0 }
 0x17e   :  { %v1274_v24 = vadd.f32 %v1273_v52, %v1272_v26  ;;  %v1285_v26 = vsel %vm1139_vm0, %v4180_v61, 0.0  ;;  %v1287_v52 = vsel %vm1139_vm0, %v4166_v53, 0.0 }
 0x180   :  { %v1276_v20 = vadd.f32 %v1275_v35, %v1274_v24 }
 0x182   :  { %v1278_v18 = vadd.f32 %v1277_v0, %v1276_v20  ;;  %v1289_v20 = vsel %vm1139_vm0, %v4176_v59, 0.0 }
 0x184   :  { %v1280_v8 = vadd.f32 %v1279_v29, %v1278_v18  ;;  %v1291_v18 = vsel %vm1139_vm0, %v4196_v12, 0.0 }
 0x186   :  { %v1282_v51 = vadd.f32 %v1281_v31, %v1280_v8  ;;  %v1293_v8 = vsel %vm1139_vm0, %v4204_v17, 0.0 }
 0x188   :  { %v1284_v27 = vadd.f32 %v1283_v10, %v1282_v51  ;;  %v1295_v10 = vsel %vm1139_vm0, %v4190_v5, 0.0  ;;  %v1297_v51 = vsel %vm1139_vm0, %v4200_v15, 0.0 }
 0x18a   :  { %v1286_v24 = vadd.f32 %v1285_v26, %v1284_v27  ;;  %v1299_v26 = vsel %vm1139_vm0, %v4220_v41, 0.0 }
 0x18c   :  { %v1288_v35 = vadd.f32 %v1287_v52, %v1286_v24 }
 0x18e   :  { %v1290_v29 = vadd.f32 %v1289_v20, %v1288_v35  ;;  %v1301_v35 = vsel %vm1139_vm0, %v4228_v49, 0.0 }
 0x190   :  { %v1292_v0 = vadd.f32 %v1291_v18, %v1290_v29  ;;  %v1303_v18 = vsel %vm1139_vm0, %v4214_v33, 0.0 }
 0x192   :  { %v1294_v31 = vadd.f32 %v1293_v8, %v1292_v0  ;;  %v1305_v0 = vsel %vm1139_vm0, %v4224_v47, 0.0  ;;  %v1307_v8 = vsel %vm1139_vm0, %v4244_v13, 0.0 }
 0x194   :  { %v1296_v27 = vadd.f32 %v1295_v10, %v1294_v31 }
 0x196   :  { %v1298_v24 = vadd.f32 %v1297_v51, %v1296_v27  ;;  %v1309_v27 = vsel %vm1139_vm0, %v4252_v28, 0.0 }
 0x198   :  { %v1300_v52 = vadd.f32 %v1299_v26, %v1298_v24  ;;  %v1311_v26 = vsel %vm1139_vm0, %v4238_v1, 0.0 }
 0x19a   :  { %v1302_v20 = vadd.f32 %v1301_v35, %v1300_v52  ;;  %v1313_v52 = vsel %vm1139_vm0, %v4248_v22, 0.0  ;;  %v1315_v35 = vsel %vm1139_vm0, %v4268_v16, 0.0 }
 0x19c   :  { %v1304_v29 = vadd.f32 %v1303_v18, %v1302_v20 }
 0x19e   :  { %v1306_v31 = vadd.f32 %v1305_v0, %v1304_v29  ;;  %v1317_v29 = vsel %vm1139_vm0, %v4276_v6, 0.0 }
 0x1a0   :  { %v1308_v10 = vadd.f32 %v1307_v8, %v1306_v31  ;;  %v1319_v8 = vsel %vm1139_vm0, %v4262_v60, 0.0 }
 0x1a2   :  { %v1310_v51 = vadd.f32 %v1309_v27, %v1308_v10  ;;  %v1321_v10 = vsel %vm1139_vm0, %v4272_v32, 0.0  ;;  %v1323_v27 = vsel %vm1139_vm0, %v4292_v25, 0.0 }
 0x1a4   :  { %v1312_v24 = vadd.f32 %v1311_v26, %v1310_v51 }
 0x1a6   :  { %v1314_v20 = vadd.f32 %v1313_v52, %v1312_v24  ;;  %v1325_v24 = vsel %vm1139_vm0, %v4300_v4, 0.0 }
 0x1a8   :  { %v1316_v18 = vadd.f32 %v1315_v35, %v1314_v20  ;;  %v1327_v35 = vsel %vm1139_vm0, %v4286_v38, 0.0 }
 0x1aa   :  { %v1318_v0 = vadd.f32 %v1317_v29, %v1316_v18  ;;  %v1329_v18 = vsel %vm1139_vm0, %v4296_v44, 0.0  ;;  %v1331_v29 = vsel %vm1139_vm0, %v4316_v36, 0.0 }
 0x1ac   :  { %v1320_v31 = vadd.f32 %v1319_v8, %v1318_v0 }
 0x1ae   :  { %v1322_v51 = vadd.f32 %v1321_v10, %v1320_v31  ;;  %v1333_v31 = vsel %vm1139_vm0, %v4324_v30, 0.0 }
 0x1b0   :  { %v1324_v26 = vadd.f32 %v1323_v27, %v1322_v51  ;;  %v1335_v27 = vsel %vm1139_vm0, %v4310_v7, 0.0 }
 0x1b2   :  { %v1326_v52 = vadd.f32 %v1325_v24, %v1324_v26  ;;  %v1337_v26 = vsel %vm1139_vm0, %v4320_v19, 0.0  ;;  %v1339_v24 = vsel %vm1139_vm0, %v4340_v48, 0.0 }
 0x1b4   :  { %v1328_v20 = vadd.f32 %v1327_v35, %v1326_v52 }
 0x1b6   :  { %v1330_v0 = vadd.f32 %v1329_v18, %v1328_v20  ;;  %v1341_v20 = vsel %vm1139_vm0, %v4348_v2, 0.0 }
 0x1b8   :  { %v1332_v8 = vadd.f32 %v1331_v29, %v1330_v0  ;;  %v1343_v29 = vsel %vm1139_vm0, %v4334_v55, 0.0 }
 0x1ba   :  { %v1334_v10 = vadd.f32 %v1333_v31, %v1332_v8  ;;  %v1345_v8 = vsel %vm1139_vm0, %v4344_v46, 0.0  ;;  %v1347_v31 = vsel %vm1139_vm0, %v4364_v54, 0.0 }
 0x1bc   :  { %v1336_v51 = vadd.f32 %v1335_v27, %v1334_v10 }
 0x1be   :  { %v1338_v52 = vadd.f32 %v1337_v26, %v1336_v51  ;;  %v1349_v51 = vsel %vm1139_vm0, %v4372_v50, 0.0 }
 0x1c0   :  { %v1340_v35 = vadd.f32 %v1339_v24, %v1338_v52  ;;  %v1351_v24 = vsel %vm1139_vm0, %v4358_v39, 0.0 }
 0x1c2   :  { %v1342_v18 = vadd.f32 %v1341_v20, %v1340_v35  ;;  %v1353_v35 = vsel %vm1139_vm0, %v4368_v14, 0.0  ;;  %v1355_v20 = vsel %vm1139_vm0, %v4388_v57, 0.0  ;;  %v9399_v14 = vld [vmem:[#allocation68_spill] sm:$0xff] }
 0x1c3   :  { %v9403_v57 = vld [vmem:[#allocation76_spill] sm:$0xff] }
 0x1c4   :  { %v1344_v0 = vadd.f32 %v1343_v29, %v1342_v18 }
 0x1c6   :  { %v1346_v10 = vadd.f32 %v1345_v8, %v1344_v0  ;;  %v1357_v0 = vsel %vm1139_vm0, %v4396_v34, 0.0 }
 0x1c8   :  { %v1348_v27 = vadd.f32 %v1347_v31, %v1346_v10  ;;  %v1359_v31 = vsel %vm1139_vm0, %v4382_v23, 0.0 }
 0x1ca   :  { %v1350_v26 = vadd.f32 %v1349_v51, %v1348_v27  ;;  %v1361_v27 = vsel %vm1139_vm0, %v4392_v58, 0.0  ;;  %v1363_v51 = vsel %vm1139_vm0, %v4412_v62, 0.0 }
 0x1cc   :  { %v1352_v52 = vadd.f32 %v1351_v24, %v1350_v26 }
 0x1ce   :  { %v1354_v18 = vadd.f32 %v1353_v35, %v1352_v52  ;;  %v1365_v52 = vsel %vm1139_vm0, %v9399_v14, 0.0 }
 0x1d0   :  { %v1356_v29 = vadd.f32 %v1355_v20, %v1354_v18  ;;  %v9400_v20 = vld [vmem:[#allocation64_spill] sm:$0xff] }
 0x1d1   :  { %v1367_v18 = vsel %vm1139_vm0, %v9400_v20, 0.0 }
 0x1d2   :  { %v1358_v8 = vadd.f32 %v1357_v0, %v1356_v29  ;;  %v9401_v0 = vld [vmem:[#allocation67_spill] sm:$0xff] }
 0x1d3   :  { %v1369_v23 = vsel %vm1139_vm0, %v9401_v0, 0.0 }
 0x1d4   :  { %v1360_v10 = vadd.f32 %v1359_v31, %v1358_v8  ;;  %v9402_v8 = vld [vmem:[#allocation73_spill] sm:$0xff] }
 0x1d5   :  { %v1371_v31 = vsel %vm1139_vm0, %v9402_v8, 0.0 }
 0x1d6   :  { %v1362_v26 = vadd.f32 %v1361_v27, %v1360_v10  ;;  %v1373_v10 = vsel %vm1139_vm0, %v9403_v57, 0.0 }
 0x1d8   :  { %v1364_v24 = vadd.f32 %v1363_v51, %v1362_v26  ;;  %v9404_v51 = vld [vmem:[#allocation71_spill] sm:$0xff] }
 0x1d9   :  { %v1375_v26 = vsel %vm1139_vm0, %v9404_v51, 0.0 }
 0x1da   :  { %v1366_v35 = vadd.f32 %v1365_v52, %v1364_v24  ;;  %v9405_v52 = vld [vmem:[#allocation75_spill] sm:$0xff] }
 0x1db   :  { %v1377_v20 = vsel %vm1139_vm0, %v9405_v52, 0.0 }
 0x1dc   :  { %v1368_v29 = vadd.f32 %v1367_v18, %v1366_v35  ;;  %v9406_v35 = vld [vmem:[#allocation81_spill] sm:$0xff] }
 0x1dd   :  { %v1379_v18 = vsel %vm1139_vm0, %v9406_v35, 0.0 }
 0x1de   :  { %v1370_v58 = vadd.f32 %v1369_v23, %v1368_v29  ;;  %v1381_v23 = vsel %vm1139_vm0, %v4468_v42, 0.0  ;;  %v9407_v29 = vld [vmem:[#allocation79_spill] sm:$0xff] }
 0x1e0   :  { %v1372_v34 = vadd.f32 %v1371_v31, %v1370_v58  ;;  %v1383_v31 = vsel %vm1139_vm0, %v9407_v29, 0.0 }
 0x1e2   :  { %v1374_v27 = vadd.f32 %v1373_v10, %v1372_v34  ;;  %v9408_v10 = vld [vmem:[#allocation83_spill] sm:$0xff] }
 0x1e3   :  { %v1385_v51 = vsel %vm1139_vm0, %v9408_v10, 0.0 }
 0x1e4   :  { %v1376_v24 = vadd.f32 %v1375_v26, %v1374_v27  ;;  %v1387_v27 = vsel %vm1139_vm0, %v4478_v11, 0.0 }
 0x1e6   :  { %v1378_v0 = vadd.f32 %v1377_v20, %v1376_v24  ;;  %v1389_v20 = vsel %vm1139_vm0, %v4484_v3, 0.0  ;;  %v1391_v24 = vsel %vm1139_vm0, %v4476_v63, 0.0 }
 0x1e8   :  { %v1380_v14 = vadd.f32 %v1379_v18, %v1378_v0  ;;  %v1393_v18 = vsel %vm1139_vm0, %v4480_v9, 0.0 }
 0x1ea   :  { %v1382_v58 = vadd.f32 %v1381_v23, %v1380_v14 }
 0x1ec   :  { %v1384_v34 = vadd.f32 %v1383_v31, %v1382_v58 }
 0x1ee   :  { %v1386_v26 = vadd.f32 %v1385_v51, %v1384_v34  ;;  %v9409_v34 = vld [vmem:[#allocation3_spill] sm:$0xff] }
 0x1f0   :  { %v1388_v52 = vadd.f32 %v1387_v27, %v1386_v26 }
 0x1f2   :  { %v1390_v0 = vadd.f32 %v1389_v20, %v1388_v52  ;;  %v9411_v52 = vld [vmem:[#allocation5_spill] sm:$0xff]  ;;  %v9413_v20 = vld [vmem:[#allocation2_spill] sm:$0xff] }
 0x1f4   :  { %v1392_v14 = vadd.f32 %v1391_v24, %v1390_v0  ;;  %v9415_v24 = vld [vmem:[#allocation4_spill] sm:$0xff] }
 0x1f6   :  { %v1394_v23 = vadd.f32 %v1393_v18, %v1392_v14  ;;  %v9421_v18 = vld [vmem:[#allocation6_spill] sm:$0xff] }
 0x1f8   :  { %v1395_v58 = vrot.slane %v1394_v23, 4 }
 0x1fa   :  { %v1396_v31 = vadd.f32 %v1395_v58, %v1394_v23  ;;  %v9423_v58 = vld [vmem:[#allocation8_spill] sm:$0xff] }
 0x1fc   :  { %v1397_v10 = vrot.slane %v1396_v31, 2 }
 0x1fe   :  { %v1398_v29 = vadd.f32 %v1397_v10, %v1396_v31 }
 0x200   :  { %v1399_v42 = vrot.slane %v1398_v29, 1 }
 0x202   :  { %v1400_v11 = vadd.f32 %v1399_v42, %v1398_v29  ;;  %v9417_v42 = vld [vmem:[#allocation7_spill] sm:$0xff]  ;;  %v9419_v29 = vld [vmem:[#allocation10_spill] sm:$0xff] }
 0x204   :  { %v4610_v51 = vmul.f32 0.0009765625, %v1400_v11 }
 0x206   :  { %v4614_v27 = vsub.f32 %v9409_v34, %v4610_v51  ;;  %v4618_v26 = vsub.f32 %v9411_v52, %v4610_v51  ;;  %v4622_v0 = vsub.f32 %v9413_v20, %v4610_v51  ;;  %v4626_v14 = vsub.f32 %v9415_v24, %v4610_v51  ;;  %v9425_v34 = vld [vmem:[#allocation14_spill] sm:$0xff]  ;;  %v9427_v20 = vld [vmem:[#allocation16_spill] sm:$0xff] }
 0x207   :  { %v4630_v11 = vsub.f32 %v9417_v42, %v4610_v51  ;;  %v4634_v10 = vsub.f32 %v9419_v29, %v4610_v51  ;;  %v4638_v23 = vsub.f32 %v9421_v18, %v4610_v51  ;;  %v4642_v31 = vsub.f32 %v9423_v58, %v4610_v51  ;;  %v9429_v42 = vld [vmem:[#allocation13_spill] sm:$0xff] }
 0x208   :  { %9410 = vst [vmem:[#allocation73_spill] sm:$0xff] %v4614_v27  ;;  %9412 = vst [vmem:[#allocation76_spill] sm:$0xff] %v4618_v26  ;;  %v4646_v52 = vsub.f32 %v9425_v34, %v4610_v51  ;;  %v4650_v24 = vsub.f32 %v9427_v20, %v4610_v51  ;;  %v4654_v29 = vsub.f32 %v9429_v42, %v4610_v51 }
 0x209   :  { %9414 = vst [vmem:[#allocation81_spill] sm:$0xff] %v4622_v0  ;;  %9416 = vst [vmem:[#allocation3_spill] sm:$0xff] %v4626_v14 }
 0x20a   :  { %9418 = vst [vmem:[#allocation5_spill] sm:$0xff] %v4630_v11  ;;  %9420 = vst [vmem:[#allocation2_spill] sm:$0xff] %v4634_v10  ;;  %v9431_v10 = vld [vmem:[#allocation15_spill] sm:$0xff] }
 0x20b   :  { %9422 = vst [vmem:[#allocation4_spill] sm:$0xff] %v4638_v23  ;;  %9424 = vst [vmem:[#allocation7_spill] sm:$0xff] %v4642_v31  ;;  %v4658_v18 = vsub.f32 %v9431_v10, %v4610_v51  ;;  %v9433_v23 = vld [vmem:[#allocation18_spill] sm:$0xff]  ;;  %v9435_v31 = vld [vmem:[#allocation20_spill] sm:$0xff] }
 0x20c   :  { %9426 = vst [vmem:[#allocation10_spill] sm:$0xff] %v4646_v52  ;;  %9428 = vst [vmem:[#allocation6_spill] sm:$0xff] %v4650_v24  ;;  %v4662_v58 = vsub.f32 %v9433_v23, %v4610_v51  ;;  %v4666_v34 = vsub.f32 %v9435_v31, %v4610_v51  ;;  %v9437_v52 = vld [vmem:[#allocation17_spill] sm:$0xff]  ;;  %v9439_v24 = vld [vmem:[#allocation19_spill] sm:$0xff] }
 0x20d   :  { %9430 = vst [vmem:[#allocation8_spill] sm:$0xff] %v4654_v29  ;;  %9432 = vst [vmem:[#allocation14_spill] sm:$0xff] %v4658_v18  ;;  %v4670_v20 = vsub.f32 %v9437_v52, %v4610_v51  ;;  %v4674_v42 = vsub.f32 %v9439_v24, %v4610_v51  ;;  %v9441_v29 = vld [vmem:[#allocation22_spill] sm:$0xff]  ;;  %v9443_v18 = vld [vmem:[#allocation24_spill] sm:$0xff] }
 0x20e   :  { %9434 = vst [vmem:[#allocation16_spill] sm:$0xff] %v4662_v58  ;;  %9436 = vst [vmem:[#allocation13_spill] sm:$0xff] %v4666_v34  ;;  %v4678_v10 = vsub.f32 %v9441_v29, %v4610_v51  ;;  %v4682_v23 = vsub.f32 %v9443_v18, %v4610_v51  ;;  %v9445_v58 = vld [vmem:[#allocation21_spill] sm:$0xff]  ;;  %v9447_v34 = vld [vmem:[#allocation23_spill] sm:$0xff] }
 0x20f   :  { %9438 = vst [vmem:[#allocation15_spill] sm:$0xff] %v4670_v20  ;;  %9440 = vst [vmem:[#allocation18_spill] sm:$0xff] %v4674_v42  ;;  %v4686_v31 = vsub.f32 %v9445_v58, %v4610_v51  ;;  %v4690_v52 = vsub.f32 %v9447_v34, %v4610_v51  ;;  %v9449_v20 = vld [vmem:[#allocation26_spill] sm:$0xff]  ;;  %v9451_v42 = vld [vmem:[#allocation28_spill] sm:$0xff] }
 0x210   :  { %9442 = vst [vmem:[#allocation20_spill] sm:$0xff] %v4678_v10  ;;  %9444 = vst [vmem:[#allocation17_spill] sm:$0xff] %v4682_v23  ;;  %v4694_v24 = vsub.f32 %v9449_v20, %v4610_v51  ;;  %v4698_v29 = vsub.f32 %v9451_v42, %v4610_v51  ;;  %v9453_v10 = vld [vmem:[#allocation25_spill] sm:$0xff]  ;;  %v9455_v23 = vld [vmem:[#allocation27_spill] sm:$0xff] }
 0x211   :  { %9446 = vst [vmem:[#allocation19_spill] sm:$0xff] %v4686_v31  ;;  %9448 = vst [vmem:[#allocation22_spill] sm:$0xff] %v4690_v52  ;;  %v4702_v18 = vsub.f32 %v9453_v10, %v4610_v51  ;;  %v4706_v58 = vsub.f32 %v9455_v23, %v4610_v51  ;;  %v9457_v31 = vld [vmem:[#allocation30_spill] sm:$0xff]  ;;  %v9459_v52 = vld [vmem:[#allocation32_spill] sm:$0xff] }
 0x212   :  { %9450 = vst [vmem:[#allocation24_spill] sm:$0xff] %v4694_v24  ;;  %9452 = vst [vmem:[#allocation21_spill] sm:$0xff] %v4698_v29  ;;  %v4710_v34 = vsub.f32 %v9457_v31, %v4610_v51  ;;  %v4714_v20 = vsub.f32 %v9459_v52, %v4610_v51  ;;  %v9461_v24 = vld [vmem:[#allocation29_spill] sm:$0xff]  ;;  %v9463_v29 = vld [vmem:[#allocation31_spill] sm:$0xff] }
 0x213   :  { %9454 = vst [vmem:[#allocation23_spill] sm:$0xff] %v4702_v18  ;;  %9456 = vst [vmem:[#allocation26_spill] sm:$0xff] %v4706_v58  ;;  %v4718_v42 = vsub.f32 %v9461_v24, %v4610_v51  ;;  %v4722_v10 = vsub.f32 %v9463_v29, %v4610_v51  ;;  %v9465_v18 = vld [vmem:[#allocation34_spill] sm:$0xff]  ;;  %v9467_v58 = vld [vmem:[#allocation36_spill] sm:$0xff] }
 0x214   :  { %9458 = vst [vmem:[#allocation28_spill] sm:$0xff] %v4710_v34  ;;  %9460 = vst [vmem:[#allocation25_spill] sm:$0xff] %v4714_v20  ;;  %v4726_v23 = vsub.f32 %v9465_v18, %v4610_v51  ;;  %v4730_v31 = vsub.f32 %v9467_v58, %v4610_v51  ;;  %v9469_v34 = vld [vmem:[#allocation33_spill] sm:$0xff]  ;;  %v9471_v20 = vld [vmem:[#allocation35_spill] sm:$0xff] }
 0x215   :  { %9462 = vst [vmem:[#allocation27_spill] sm:$0xff] %v4718_v42  ;;  %9464 = vst [vmem:[#allocation30_spill] sm:$0xff] %v4722_v10  ;;  %v4734_v52 = vsub.f32 %v9469_v34, %v4610_v51  ;;  %v4738_v24 = vsub.f32 %v9471_v20, %v4610_v51  ;;  %v9473_v42 = vld [vmem:[#allocation38_spill] sm:$0xff]  ;;  %v9475_v10 = vld [vmem:[#allocation40_spill] sm:$0xff] }
 0x216   :  { %9466 = vst [vmem:[#allocation32_spill] sm:$0xff] %v4726_v23  ;;  %9468 = vst [vmem:[#allocation29_spill] sm:$0xff] %v4730_v31  ;;  %v4742_v29 = vsub.f32 %v9473_v42, %v4610_v51  ;;  %v4746_v18 = vsub.f32 %v9475_v10, %v4610_v51  ;;  %v9477_v23 = vld [vmem:[#allocation37_spill] sm:$0xff]  ;;  %v9479_v31 = vld [vmem:[#allocation39_spill] sm:$0xff] }
 0x217   :  { %9470 = vst [vmem:[#allocation31_spill] sm:$0xff] %v4734_v52  ;;  %9472 = vst [vmem:[#allocation34_spill] sm:$0xff] %v4738_v24  ;;  %v4750_v58 = vsub.f32 %v9477_v23, %v4610_v51  ;;  %v4754_v34 = vsub.f32 %v9479_v31, %v4610_v51  ;;  %v9481_v52 = vld [vmem:[#allocation42_spill] sm:$0xff]  ;;  %v9483_v24 = vld [vmem:[#allocation44_spill] sm:$0xff] }
 0x218   :  { %9474 = vst [vmem:[#allocation36_spill] sm:$0xff] %v4742_v29  ;;  %9476 = vst [vmem:[#allocation33_spill] sm:$0xff] %v4746_v18  ;;  %v4758_v20 = vsub.f32 %v9481_v52, %v4610_v51  ;;  %v4762_v42 = vsub.f32 %v9483_v24, %v4610_v51  ;;  %v9485_v29 = vld [vmem:[#allocation41_spill] sm:$0xff]  ;;  %v9487_v18 = vld [vmem:[#allocation43_spill] sm:$0xff] }
 0x219   :  { %9478 = vst [vmem:[#allocation35_spill] sm:$0xff] %v4750_v58  ;;  %9480 = vst [vmem:[#allocation38_spill] sm:$0xff] %v4754_v34  ;;  %v4766_v10 = vsub.f32 %v9485_v29, %v4610_v51  ;;  %v4770_v23 = vsub.f32 %v9487_v18, %v4610_v51  ;;  %v9489_v58 = vld [vmem:[#allocation46_spill] sm:$0xff]  ;;  %v9491_v34 = vld [vmem:[#allocation48_spill] sm:$0xff] }
 0x21a   :  { %9482 = vst [vmem:[#allocation40_spill] sm:$0xff] %v4758_v20  ;;  %9484 = vst [vmem:[#allocation37_spill] sm:$0xff] %v4762_v42  ;;  %v4774_v31 = vsub.f32 %v9489_v58, %v4610_v51  ;;  %v4778_v52 = vsub.f32 %v9491_v34, %v4610_v51  ;;  %v9493_v20 = vld [vmem:[#allocation45_spill] sm:$0xff]  ;;  %v9495_v42 = vld [vmem:[#allocation47_spill] sm:$0xff] }
 0x21b   :  { %9486 = vst [vmem:[#allocation39_spill] sm:$0xff] %v4766_v10  ;;  %9488 = vst [vmem:[#allocation42_spill] sm:$0xff] %v4770_v23  ;;  %v4782_v24 = vsub.f32 %v9493_v20, %v4610_v51  ;;  %v4786_v29 = vsub.f32 %v9495_v42, %v4610_v51  ;;  %v9497_v10 = vld [vmem:[#allocation50_spill] sm:$0xff]  ;;  %v9499_v23 = vld [vmem:[#allocation52_spill] sm:$0xff] }
 0x21c   :  { %9490 = vst [vmem:[#allocation44_spill] sm:$0xff] %v4774_v31  ;;  %9492 = vst [vmem:[#allocation41_spill] sm:$0xff] %v4778_v52  ;;  %v4790_v18 = vsub.f32 %v9497_v10, %v4610_v51  ;;  %v4794_v58 = vsub.f32 %v9499_v23, %v4610_v51  ;;  %v9501_v31 = vld [vmem:[#allocation49_spill] sm:$0xff]  ;;  %v9503_v52 = vld [vmem:[#allocation51_spill] sm:$0xff] }
 0x21d   :  { %9494 = vst [vmem:[#allocation43_spill] sm:$0xff] %v4782_v24  ;;  %9496 = vst [vmem:[#allocation46_spill] sm:$0xff] %v4786_v29  ;;  %v4798_v34 = vsub.f32 %v9501_v31, %v4610_v51  ;;  %v4802_v20 = vsub.f32 %v9503_v52, %v4610_v51  ;;  %v9505_v24 = vld [vmem:[#allocation55_spill] sm:$0xff] }
 0x21e   :  { %9498 = vst [vmem:[#allocation48_spill] sm:$0xff] %v4790_v18  ;;  %9500 = vst [vmem:[#allocation45_spill] sm:$0xff] %v4794_v58  ;;  %v4806_v42 = vsub.f32 %v9505_v24, %v4610_v51  ;;  %v9507_v29 = vld [vmem:[#allocation59_spill] sm:$0xff]  ;;  %v9509_v18 = vld [vmem:[#allocation54_spill] sm:$0xff] }
 0x21f   :  { %9502 = vst [vmem:[#allocation47_spill] sm:$0xff] %v4798_v34  ;;  %9504 = vst [vmem:[#allocation50_spill] sm:$0xff] %v4802_v20  ;;  %v4810_v10 = vsub.f32 %v9507_v29, %v4610_v51  ;;  %v4814_v23 = vsub.f32 %v9509_v18, %v4610_v51  ;;  %v9511_v58 = vld [vmem:[#allocation57_spill] sm:$0xff]  ;;  %v9513_v34 = vld [vmem:[#allocation63_spill] sm:$0xff] }
 0x220   :  { %9506 = vst [vmem:[#allocation52_spill] sm:$0xff] %v4806_v42  ;;  %v4818_v31 = vsub.f32 %v9511_v58, %v4610_v51  ;;  %v4822_v52 = vsub.f32 %v9513_v34, %v4610_v51  ;;  %v9515_v20 = vld [vmem:[#allocation66_spill] sm:$0xff] }
 0x221   :  { %9508 = vst [vmem:[#allocation49_spill] sm:$0xff] %v4810_v10  ;;  %9510 = vst [vmem:[#allocation51_spill] sm:$0xff] %v4814_v23  ;;  %v4826_v24 = vsub.f32 %v9515_v20, %v4610_v51  ;;  %v9517_v42 = vld [vmem:[#allocation62_spill] sm:$0xff]  ;;  %v9519_v10 = vld [vmem:[#allocation65_spill] sm:$0xff] }
 0x222   :  { %9512 = vst [vmem:[#allocation55_spill] sm:$0xff] %v4818_v31  ;;  %9514 = vst [vmem:[#allocation59_spill] sm:$0xff] %v4822_v52  ;;  %v4830_v29 = vsub.f32 %v9517_v42, %v4610_v51  ;;  %v4834_v18 = vsub.f32 %v9519_v10, %v4610_v51  ;;  %v9521_v23 = vld [vmem:[#allocation70_spill] sm:$0xff]  ;;  %v9525_v52 = vld [vmem:[#allocation69_spill] sm:$0xff] }
 0x223   :  { %9516 = vst [vmem:[#allocation54_spill] sm:$0xff] %v4826_v24  ;;  %v4838_v58 = vsub.f32 %v9521_v23, %v4610_v51  ;;  %v9523_v31 = vld [vmem:[#allocation74_spill] sm:$0xff]  ;;  %v4846_v20 = vsub.f32 %v9525_v52, %v4610_v51  ;;  %v9527_v24 = vld [vmem:[#allocation72_spill] sm:$0xff] }
 0x224   :  { %9518 = vst [vmem:[#allocation57_spill] sm:$0xff] %v4830_v29  ;;  %9520 = vst [vmem:[#allocation63_spill] sm:$0xff] %v4834_v18  ;;  %v4842_v34 = vsub.f32 %v9523_v31, %v4610_v51  ;;  %v4850_v42 = vsub.f32 %v9527_v24, %v4610_v51  ;;  %v9529_v29 = vld [vmem:[#allocation78_spill] sm:$0xff] }
 0x225   :  { %9522 = vst [vmem:[#allocation66_spill] sm:$0xff] %v4838_v58  ;;  %9526 = vst [vmem:[#allocation65_spill] sm:$0xff] %v4846_v20  ;;  %v4854_v10 = vsub.f32 %v9529_v29, %v4610_v51  ;;  %v9530_v18 = vld [vmem:[#allocation82_spill] sm:$0xff]  ;;  %v9532_v58 = vld [vmem:[#allocation77_spill] sm:$0xff] }
 0x226   :  { %9524 = vst [vmem:[#allocation62_spill] sm:$0xff] %v4842_v34  ;;  %9528 = vst [vmem:[#allocation70_spill] sm:$0xff] %v4850_v42  ;;  %v4858_v23 = vsub.f32 %v9530_v18, %v4610_v51  ;;  %v4862_v31 = vsub.f32 %v9532_v58, %v4610_v51  ;;  %v9533_v34 = vld [vmem:[#allocation80_spill] sm:$0xff]  ;;  %v9534_v20 = vld [vmem:[#allocation9_spill] sm:$0xff]  ;;  %v4878_v18 = vsub.f32 %v4118_v21, %v4610_v51 }
 0x227   :  { %v4866_v52 = vsub.f32 %v9533_v34, %v4610_v51  ;;  %v4870_v24 = vsub.f32 %v9534_v20, %v4610_v51  ;;  %v9535_v42 = vld [vmem:[#allocation12_spill] sm:$0xff]  ;;  %v4886_v34 = vsub.f32 %v4148_v40, %v4610_v51  ;;  %v4890_v20 = vsub.f32 %v4156_v45, %v4610_v51 }
 0x228   :  { %9531 = vst [vmem:[#allocation74_spill] sm:$0xff] %v4858_v23  ;;  %v4874_v29 = vsub.f32 %v9535_v42, %v4610_v51  ;;  %v9536_v23 = vld [vmem:[#allocation11_spill] sm:$0xff]  ;;  %v4894_v42 = vsub.f32 %v4142_v37, %v4610_v51  ;;  %v4898_v21 = vsub.f32 %v4152_v43, %v4610_v51  ;;  %v4906_v40 = vsub.f32 %v4180_v61, %v4610_v51 }
 0x229   :  { %v4882_v58 = vsub.f32 %v9536_v23, %v4610_v51  ;;  %v4902_v23 = vsub.f32 %v4172_v56, %v4610_v51  ;;  %v4910_v45 = vsub.f32 %v4166_v53, %v4610_v51  ;;  %v4914_v37 = vsub.f32 %v4176_v59, %v4610_v51 }
 0x22a   :  { %v4918_v43 = vsub.f32 %v4196_v12, %v4610_v51  ;;  %v4922_v56 = vsub.f32 %v4204_v17, %v4610_v51  ;;  %v4926_v61 = vsub.f32 %v4190_v5, %v4610_v51  ;;  %v4930_v53 = vsub.f32 %v4200_v15, %v4610_v51 }
 0x22b   :  { %v4934_v59 = vsub.f32 %v4220_v41, %v4610_v51  ;;  %v4938_v12 = vsub.f32 %v4228_v49, %v4610_v51  ;;  %v4942_v17 = vsub.f32 %v4214_v33, %v4610_v51  ;;  %v4946_v5 = vsub.f32 %v4224_v47, %v4610_v51 }
 0x22c   :  { %v4950_v15 = vsub.f32 %v4244_v13, %v4610_v51  ;;  %v4954_v41 = vsub.f32 %v4252_v28, %v4610_v51  ;;  %v4958_v49 = vsub.f32 %v4238_v1, %v4610_v51  ;;  %v4962_v33 = vsub.f32 %v4248_v22, %v4610_v51 }
 0x22d   :  { %v4966_v47 = vsub.f32 %v4268_v16, %v4610_v51  ;;  %v4970_v13 = vsub.f32 %v4276_v6, %v4610_v51  ;;  %v4974_v28 = vsub.f32 %v4262_v60, %v4610_v51  ;;  %v4978_v1 = vsub.f32 %v4272_v32, %v4610_v51 }
 0x22e   :  { %9537 = vst [vmem:[#allocation69_spill] sm:$0xff] %v4958_v49  ;;  %9538 = vst [vmem:[#allocation72_spill] sm:$0xff] %v4962_v33  ;;  %v4982_v22 = vsub.f32 %v4292_v25, %v4610_v51  ;;  %v4986_v16 = vsub.f32 %v4300_v4, %v4610_v51  ;;  %v4990_v6 = vsub.f32 %v4286_v38, %v4610_v51 }
 0x22f   :  { %9539 = vst [vmem:[#allocation78_spill] sm:$0xff] %v4966_v47  ;;  %9540 = vst [vmem:[#allocation82_spill] sm:$0xff] %v4970_v13  ;;  %v4994_v60 = vsub.f32 %v4296_v44, %v4610_v51  ;;  %v4998_v32 = vsub.f32 %v4316_v36, %v4610_v51  ;;  %v5002_v25 = vsub.f32 %v4324_v30, %v4610_v51 }
 0x230   :  { %9541 = vst [vmem:[#allocation77_spill] sm:$0xff] %v4974_v28  ;;  %9542 = vst [vmem:[#allocation80_spill] sm:$0xff] %v4978_v1  ;;  %v5006_v4 = vsub.f32 %v4310_v7, %v4610_v51  ;;  %v5010_v38 = vsub.f32 %v4320_v19, %v4610_v51  ;;  %v5014_v44 = vsub.f32 %v4340_v48, %v4610_v51 }
 0x231   :  { %9543 = vst [vmem:[#allocation9_spill] sm:$0xff] %v4982_v22  ;;  %9544 = vst [vmem:[#allocation12_spill] sm:$0xff] %v4986_v16  ;;  %v5018_v36 = vsub.f32 %v4348_v2, %v4610_v51  ;;  %v5022_v30 = vsub.f32 %v4334_v55, %v4610_v51  ;;  %v5026_v7 = vsub.f32 %v4344_v46, %v4610_v51 }
 0x232   :  { %9545 = vst [vmem:[#allocation11_spill] sm:$0xff] %v4990_v6  ;;  %9546 = vst [vmem:[#allocation86_spill] sm:$0xff] %v4994_v60  ;;  %v5030_v19 = vsub.f32 %v4364_v54, %v4610_v51  ;;  %v5034_v48 = vsub.f32 %v4372_v50, %v4610_v51  ;;  %v5038_v2 = vsub.f32 %v4358_v39, %v4610_v51 }
 0x233   :  { %9547 = vst [vmem:[#allocation87_spill] sm:$0xff] %v4998_v32  ;;  %9548 = vst [vmem:[#allocation88_spill] sm:$0xff] %v5002_v25 }
 0x234   :  { %9549 = vst [vmem:[#allocation89_spill] sm:$0xff] %v5006_v4  ;;  %9550 = vst [vmem:[#allocation90_spill] sm:$0xff] %v5010_v38 }
 0x235   :  { %9551 = vst [vmem:[#allocation91_spill] sm:$0xff] %v5014_v44  ;;  %9552 = vst [vmem:[#allocation92_spill] sm:$0xff] %v5018_v36  ;;  %v9558_v36 = vld [vmem:[#allocation53_spill] sm:$0xff] }
 0x236   :  { %9553 = vst [vmem:[#allocation93_spill] sm:$0xff] %v5022_v30  ;;  %9554 = vst [vmem:[#allocation94_spill] sm:$0xff] %v5026_v7  ;;  %v5042_v55 = vsub.f32 %v9558_v36, %v4610_v51  ;;  %v9560_v30 = vld [vmem:[#allocation58_spill] sm:$0xff]  ;;  %v9562_v7 = vld [vmem:[#allocation61_spill] sm:$0xff]  ;;  %v5062_v36 = vsub.f32 %v4412_v62, %v4610_v51  ;;  %v5082_v62 = vsub.f32 %v9403_v57, %v4610_v51 }
 0x237   :  { %9555 = vst [vmem:[#allocation95_spill] sm:$0xff] %v5030_v19  ;;  %9556 = vst [vmem:[#allocation96_spill] sm:$0xff] %v5034_v48  ;;  %v5046_v46 = vsub.f32 %v9560_v30, %v4610_v51  ;;  %v5050_v54 = vsub.f32 %v9562_v7, %v4610_v51  ;;  %v9564_v19 = vld [vmem:[#allocation56_spill] sm:$0xff] }
 0x238   :  { %9557 = vst [vmem:[#allocation97_spill] sm:$0xff] %v5038_v2  ;;  %9559 = vst [vmem:[#allocation53_spill] sm:$0xff] %v5042_v55  ;;  %v5054_v50 = vsub.f32 %v9564_v19, %v4610_v51  ;;  %v9566_v48 = vld [vmem:[#allocation60_spill] sm:$0xff] }
 0x239   :  { %9561 = vst [vmem:[#allocation58_spill] sm:$0xff] %v5046_v46  ;;  %9563 = vst [vmem:[#allocation61_spill] sm:$0xff] %v5050_v54  ;;  %v5058_v39 = vsub.f32 %v9566_v48, %v4610_v51  ;;  %v9569_v55 = vld [vmem:[#allocation68_spill] sm:$0xff]  ;;  %v9572_v54 = vld [vmem:[#allocation67_spill] sm:$0xff]  ;;  %v5078_v48 = vsub.f32 %v9402_v8, %v4610_v51 }
 0x23a   :  { %9565 = vst [vmem:[#allocation56_spill] sm:$0xff] %v5054_v50  ;;  %9568 = vst [vmem:[#allocation98_spill] sm:$0xff] %v5062_v36  ;;  %v5066_v30 = vsub.f32 %v9569_v55, %v4610_v51  ;;  %v9571_v46 = vld [vmem:[#allocation64_spill] sm:$0xff]  ;;  %v5074_v19 = vsub.f32 %v9572_v54, %v4610_v51  ;;  %v9576_v36 = vld [vmem:[#allocation71_spill] sm:$0xff]  ;;  %v5094_v54 = vsub.f32 %v9406_v35, %v4610_v51 }
 0x23b   :  { %9567 = vst [vmem:[#allocation60_spill] sm:$0xff] %v5058_v39  ;;  %v5070_v7 = vsub.f32 %v9571_v46, %v4610_v51  ;;  %9574 = vst [vmem:[#allocation67_spill] sm:$0xff] %v5078_v48  ;;  %v5086_v55 = vsub.f32 %v9576_v36, %v4610_v51  ;;  %v9581_v48 = vld [vmem:[#allocation79_spill] sm:$0xff]  ;;  %v5114_v35 = vsub.f32 %v4484_v3, %v4610_v51 }
 0x23c   :  { %9570 = vst [vmem:[#allocation68_spill] sm:$0xff] %v5066_v30  ;;  %9573 = vst [vmem:[#allocation64_spill] sm:$0xff] %v5074_v19  ;;  %v9578_v30 = vld [vmem:[#allocation75_spill] sm:$0xff]  ;;  %v9579_v19 = vld [vmem:[#allocation84_spill] sm:$0xff]  ;;  %v5102_v57 = vsub.f32 %v9581_v48, %v4610_v51  ;;  %v5122_v48 = vsub.f32 %v4480_v9, %v4610_v51  ;;  %v1533_v3 = vmul.f32 %v4626_v14, %v4626_v14 }
 0x23d   :  { %9575 = vst [vmem:[#allocation99_spill] sm:$0xff] %v5082_v62  ;;  %9577 = vst [vmem:[#allocation71_spill] sm:$0xff] %v5086_v55  ;;  %v5090_v46 = vsub.f32 %v9578_v30, %v4610_v51  ;;  %v5098_v8 = vsub.f32 %v9579_v19, %v4610_v51  ;;  %v9583_v62 = vld [vmem:[#allocation83_spill] sm:$0xff]  ;;  %v9585_v55 = vld [vmem:[#allocation85_spill] sm:$0xff]  ;;  %v5118_v19 = vsub.f32 %v4476_v63, %v4610_v51 }
 0x23e   :  { %9582 = vst [vmem:[#allocation84_spill] sm:$0xff] %v5102_v57  ;;  %v5106_v36 = vsub.f32 %v9583_v62, %v4610_v51  ;;  %v5110_v30 = vsub.f32 %v9585_v55, %v4610_v51  ;;  %9587 = vst [vmem:[#allocation85_spill] sm:$0xff] %v5114_v35  ;;  %v1530_v62 = vmul.f32 %v4614_v27, %v4614_v27  ;;  %v9591_v57 = vld [vmem:[#allocation4_spill] sm:$0xff] }
 0x23f   :  { %9580 = vst [vmem:[#allocation75_spill] sm:$0xff] %v5098_v8  ;;  %9588 = vst [vmem:[#allocation100_spill] sm:$0xff] %v5118_v19  ;;  %v1532_v55 = vmul.f32 %v4622_v0, %v4622_v0  ;;  %v1534_v9 = vmul.f32 %v4630_v11, %v4630_v11  ;;  %v1536_v14 = vmul.f32 %v9591_v57, %v9591_v57 }
 0x240   :  { %9584 = vst [vmem:[#allocation79_spill] sm:$0xff] %v5106_v36  ;;  %9586 = vst [vmem:[#allocation83_spill] sm:$0xff] %v5110_v30  ;;  %v1531_v36 = vmul.f32 %v4618_v26, %v4618_v26  ;;  %v1658_v35 = vsel %vm1139_vm0, %v1530_v62, 0.0  ;;  %v1663_v30 = vsel %vm1139_vm0, %v1533_v3, 0.0  ;;  %v9594_v3 = vld [vmem:[#allocation6_spill] sm:$0xff] }
 0x241   :  { %9589 = vst [vmem:[#allocation101_spill] sm:$0xff] %v5122_v48  ;;  %v1661_v51 = vsel %vm1139_vm0, %v1532_v55, 0.0  ;;  %v9590_v48 = vld [vmem:[#allocation2_spill] sm:$0xff]  ;;  %v1665_v62 = vsel %vm1139_vm0, %v1534_v9, 0.0  ;;  %v9595_v9 = vld [vmem:[#allocation8_spill] sm:$0xff] }
 0x242   :  { %v1659_v63 = vsel %vm1139_vm0, %v1531_v36, 0.0  ;;  %v1535_v26 = vmul.f32 %v9590_v48, %v9590_v48  ;;  %v9592_v36 = vld [vmem:[#allocation7_spill] sm:$0xff]  ;;  %v9593_v55 = vld [vmem:[#allocation10_spill] sm:$0xff] }
 0x243   :  { %v1660_v19 = vadd.f32 %v1659_v63, %v1658_v35  ;;  %v1537_v35 = vmul.f32 %v9592_v36, %v9592_v36 }
 0x244   :  { %v1667_v63 = vsel %vm1139_vm0, %v1535_v26, 0.0  ;;  %v9596_v26 = vld [vmem:[#allocation14_spill] sm:$0xff] }
 0x245   :  { %v1662_v27 = vadd.f32 %v1661_v51, %v1660_v19  ;;  %v1538_v19 = vmul.f32 %v9593_v55, %v9593_v55  ;;  %v1669_v51 = vsel %vm1139_vm0, %v1536_v14, 0.0  ;;  %v9597_v14 = vld [vmem:[#allocation16_spill] sm:$0xff] }
 0x247   :  { %v1664_v0 = vadd.f32 %v1663_v30, %v1662_v27  ;;  %v1539_v27 = vmul.f32 %v9594_v3, %v9594_v3  ;;  %v1671_v30 = vsel %vm1139_vm0, %v1537_v35, 0.0  ;;  %v9598_v35 = vld [vmem:[#allocation13_spill] sm:$0xff] }
 0x249   :  { %v1666_v8 = vadd.f32 %v1665_v62, %v1664_v0  ;;  %v1540_v0 = vmul.f32 %v9595_v9, %v9595_v9  ;;  %v1673_v62 = vsel %vm1139_vm0, %v1538_v19, 0.0  ;;  %v9599_v19 = vld [vmem:[#allocation15_spill] sm:$0xff] }
 0x24b   :  { %v1668_v11 = vadd.f32 %v1667_v63, %v1666_v8  ;;  %v1541_v8 = vmul.f32 %v9596_v26, %v9596_v26  ;;  %v1675_v63 = vsel %vm1139_vm0, %v1539_v27, 0.0  ;;  %v9600_v27 = vld [vmem:[#allocation18_spill] sm:$0xff] }
 0x24d   :  { %v1670_v48 = vadd.f32 %v1669_v51, %v1668_v11  ;;  %v1542_v11 = vmul.f32 %v9597_v14, %v9597_v14  ;;  %v1677_v51 = vsel %vm1139_vm0, %v1540_v0, 0.0  ;;  %v9601_v0 = vld [vmem:[#allocation20_spill] sm:$0xff] }
 0x24f   :  { %v1672_v57 = vadd.f32 %v1671_v30, %v1670_v48  ;;  %v1543_v48 = vmul.f32 %v9598_v35, %v9598_v35  ;;  %v1679_v30 = vsel %vm1139_vm0, %v1541_v8, 0.0  ;;  %v9602_v8 = vld [vmem:[#allocation17_spill] sm:$0xff] }
 0x251   :  { %v1674_v36 = vadd.f32 %v1673_v62, %v1672_v57  ;;  %v1544_v57 = vmul.f32 %v9599_v19, %v9599_v19  ;;  %v1681_v62 = vsel %vm1139_vm0, %v1542_v11, 0.0  ;;  %v9603_v11 = vld [vmem:[#allocation19_spill] sm:$0xff] }
 0x253   :  { %v1676_v55 = vadd.f32 %v1675_v63, %v1674_v36  ;;  %v1545_v36 = vmul.f32 %v9600_v27, %v9600_v27  ;;  %v1683_v63 = vsel %vm1139_vm0, %v1543_v48, 0.0  ;;  %v9604_v48 = vld [vmem:[#allocation22_spill] sm:$0xff] }
 0x255   :  { %v1678_v3 = vadd.f32 %v1677_v51, %v1676_v55  ;;  %v1546_v55 = vmul.f32 %v9601_v0, %v9601_v0  ;;  %v1685_v51 = vsel %vm1139_vm0, %v1544_v57, 0.0  ;;  %v9605_v57 = vld [vmem:[#allocation24_spill] sm:$0xff] }
 0x257   :  { %v1680_v9 = vadd.f32 %v1679_v30, %v1678_v3  ;;  %v1547_v3 = vmul.f32 %v9602_v8, %v9602_v8  ;;  %v1687_v30 = vsel %vm1139_vm0, %v1545_v36, 0.0  ;;  %v9606_v36 = vld [vmem:[#allocation21_spill] sm:$0xff] }
 0x259   :  { %v1682_v26 = vadd.f32 %v1681_v62, %v1680_v9  ;;  %v1548_v9 = vmul.f32 %v9603_v11, %v9603_v11  ;;  %v1689_v62 = vsel %vm1139_vm0, %v1546_v55, 0.0  ;;  %v9607_v55 = vld [vmem:[#allocation23_spill] sm:$0xff] }
 0x25b   :  { %v1684_v14 = vadd.f32 %v1683_v63, %v1682_v26  ;;  %v1549_v26 = vmul.f32 %v9604_v48, %v9604_v48  ;;  %v1691_v63 = vsel %vm1139_vm0, %v1547_v3, 0.0  ;;  %v9608_v3 = vld [vmem:[#allocation26_spill] sm:$0xff] }
 0x25d   :  { %v1686_v35 = vadd.f32 %v1685_v51, %v1684_v14  ;;  %v1550_v14 = vmul.f32 %v9605_v57, %v9605_v57  ;;  %v1693_v51 = vsel %vm1139_vm0, %v1548_v9, 0.0  ;;  %v9609_v9 = vld [vmem:[#allocation28_spill] sm:$0xff] }
 0x25f   :  { %v1688_v19 = vadd.f32 %v1687_v30, %v1686_v35  ;;  %v1551_v35 = vmul.f32 %v9606_v36, %v9606_v36  ;;  %v1695_v30 = vsel %vm1139_vm0, %v1549_v26, 0.0  ;;  %v9610_v26 = vld [vmem:[#allocation25_spill] sm:$0xff] }
 0x261   :  { %v1690_v27 = vadd.f32 %v1689_v62, %v1688_v19  ;;  %v1552_v19 = vmul.f32 %v9607_v55, %v9607_v55  ;;  %v1697_v62 = vsel %vm1139_vm0, %v1550_v14, 0.0  ;;  %v9611_v14 = vld [vmem:[#allocation27_spill] sm:$0xff] }
 0x263   :  { %v1692_v0 = vadd.f32 %v1691_v63, %v1690_v27  ;;  %v1553_v27 = vmul.f32 %v9608_v3, %v9608_v3  ;;  %v1699_v63 = vsel %vm1139_vm0, %v1551_v35, 0.0  ;;  %v9612_v35 = vld [vmem:[#allocation30_spill] sm:$0xff] }
 0x265   :  { %v1694_v8 = vadd.f32 %v1693_v51, %v1692_v0  ;;  %v1554_v0 = vmul.f32 %v9609_v9, %v9609_v9  ;;  %v1701_v51 = vsel %vm1139_vm0, %v1552_v19, 0.0  ;;  %v9613_v19 = vld [vmem:[#allocation32_spill] sm:$0xff] }
 0x267   :  { %v1696_v11 = vadd.f32 %v1695_v30, %v1694_v8  ;;  %v1555_v8 = vmul.f32 %v9610_v26, %v9610_v26  ;;  %v1703_v30 = vsel %vm1139_vm0, %v1553_v27, 0.0  ;;  %v9614_v27 = vld [vmem:[#allocation29_spill] sm:$0xff] }
 0x269   :  { %v1698_v48 = vadd.f32 %v1697_v62, %v1696_v11  ;;  %v1556_v11 = vmul.f32 %v9611_v14, %v9611_v14  ;;  %v1705_v62 = vsel %vm1139_vm0, %v1554_v0, 0.0  ;;  %v9615_v0 = vld [vmem:[#allocation31_spill] sm:$0xff] }
 0x26b   :  { %v1700_v57 = vadd.f32 %v1699_v63, %v1698_v48  ;;  %v1557_v48 = vmul.f32 %v9612_v35, %v9612_v35  ;;  %v1707_v63 = vsel %vm1139_vm0, %v1555_v8, 0.0  ;;  %v9616_v8 = vld [vmem:[#allocation34_spill] sm:$0xff] }
 0x26d   :  { %v1702_v36 = vadd.f32 %v1701_v51, %v1700_v57  ;;  %v1558_v57 = vmul.f32 %v9613_v19, %v9613_v19  ;;  %v1709_v51 = vsel %vm1139_vm0, %v1556_v11, 0.0  ;;  %v9617_v11 = vld [vmem:[#allocation36_spill] sm:$0xff] }
 0x26f   :  { %v1704_v55 = vadd.f32 %v1703_v30, %v1702_v36  ;;  %v1559_v36 = vmul.f32 %v9614_v27, %v9614_v27  ;;  %v1711_v30 = vsel %vm1139_vm0, %v1557_v48, 0.0  ;;  %v9618_v48 = vld [vmem:[#allocation33_spill] sm:$0xff] }
 0x271   :  { %v1706_v3 = vadd.f32 %v1705_v62, %v1704_v55  ;;  %v1560_v55 = vmul.f32 %v9615_v0, %v9615_v0  ;;  %v1713_v62 = vsel %vm1139_vm0, %v1558_v57, 0.0  ;;  %v9619_v57 = vld [vmem:[#allocation35_spill] sm:$0xff] }
 0x273   :  { %v1708_v9 = vadd.f32 %v1707_v63, %v1706_v3  ;;  %v1561_v3 = vmul.f32 %v9616_v8, %v9616_v8  ;;  %v1715_v63 = vsel %vm1139_vm0, %v1559_v36, 0.0  ;;  %v9620_v36 = vld [vmem:[#allocation38_spill] sm:$0xff] }
 0x275   :  { %v1710_v26 = vadd.f32 %v1709_v51, %v1708_v9  ;;  %v1562_v9 = vmul.f32 %v9617_v11, %v9617_v11  ;;  %v1717_v51 = vsel %vm1139_vm0, %v1560_v55, 0.0  ;;  %v9621_v55 = vld [vmem:[#allocation40_spill] sm:$0xff] }
 0x277   :  { %v1712_v14 = vadd.f32 %v1711_v30, %v1710_v26  ;;  %v1563_v26 = vmul.f32 %v9618_v48, %v9618_v48  ;;  %v1719_v30 = vsel %vm1139_vm0, %v1561_v3, 0.0  ;;  %v9622_v3 = vld [vmem:[#allocation37_spill] sm:$0xff] }
 0x279   :  { %v1714_v35 = vadd.f32 %v1713_v62, %v1712_v14  ;;  %v1564_v14 = vmul.f32 %v9619_v57, %v9619_v57  ;;  %v1721_v62 = vsel %vm1139_vm0, %v1562_v9, 0.0  ;;  %v9623_v9 = vld [vmem:[#allocation39_spill] sm:$0xff] }
 0x27b   :  { %v1716_v19 = vadd.f32 %v1715_v63, %v1714_v35  ;;  %v1565_v35 = vmul.f32 %v9620_v36, %v9620_v36  ;;  %v1723_v63 = vsel %vm1139_vm0, %v1563_v26, 0.0  ;;  %v9624_v26 = vld [vmem:[#allocation42_spill] sm:$0xff] }
 0x27d   :  { %v1718_v27 = vadd.f32 %v1717_v51, %v1716_v19  ;;  %v1566_v19 = vmul.f32 %v9621_v55, %v9621_v55  ;;  %v1725_v51 = vsel %vm1139_vm0, %v1564_v14, 0.0  ;;  %v9625_v14 = vld [vmem:[#allocation44_spill] sm:$0xff] }
 0x27f   :  { %v1720_v0 = vadd.f32 %v1719_v30, %v1718_v27  ;;  %v1567_v27 = vmul.f32 %v9622_v3, %v9622_v3  ;;  %v1727_v30 = vsel %vm1139_vm0, %v1565_v35, 0.0  ;;  %v9626_v35 = vld [vmem:[#allocation41_spill] sm:$0xff] }
 0x281   :  { %v1722_v8 = vadd.f32 %v1721_v62, %v1720_v0  ;;  %v1568_v0 = vmul.f32 %v9623_v9, %v9623_v9  ;;  %v1729_v62 = vsel %vm1139_vm0, %v1566_v19, 0.0  ;;  %v9627_v19 = vld [vmem:[#allocation43_spill] sm:$0xff] }
 0x283   :  { %v1724_v11 = vadd.f32 %v1723_v63, %v1722_v8  ;;  %v1569_v8 = vmul.f32 %v9624_v26, %v9624_v26  ;;  %v1731_v63 = vsel %vm1139_vm0, %v1567_v27, 0.0  ;;  %v9628_v27 = vld [vmem:[#allocation46_spill] sm:$0xff] }
 0x285   :  { %v1726_v48 = vadd.f32 %v1725_v51, %v1724_v11  ;;  %v1570_v11 = vmul.f32 %v9625_v14, %v9625_v14  ;;  %v1733_v51 = vsel %vm1139_vm0, %v1568_v0, 0.0  ;;  %v9629_v0 = vld [vmem:[#allocation48_spill] sm:$0xff] }
 0x287   :  { %v1728_v57 = vadd.f32 %v1727_v30, %v1726_v48  ;;  %v1571_v48 = vmul.f32 %v9626_v35, %v9626_v35  ;;  %v1735_v30 = vsel %vm1139_vm0, %v1569_v8, 0.0  ;;  %v9630_v8 = vld [vmem:[#allocation45_spill] sm:$0xff] }
 0x289   :  { %v1730_v36 = vadd.f32 %v1729_v62, %v1728_v57  ;;  %v1572_v57 = vmul.f32 %v9627_v19, %v9627_v19  ;;  %v1737_v62 = vsel %vm1139_vm0, %v1570_v11, 0.0  ;;  %v9631_v11 = vld [vmem:[#allocation47_spill] sm:$0xff] }
 0x28b   :  { %v1732_v55 = vadd.f32 %v1731_v63, %v1730_v36  ;;  %v1573_v36 = vmul.f32 %v9628_v27, %v9628_v27  ;;  %v1739_v63 = vsel %vm1139_vm0, %v1571_v48, 0.0  ;;  %v9632_v48 = vld [vmem:[#allocation50_spill] sm:$0xff] }
 0x28d   :  { %v1734_v3 = vadd.f32 %v1733_v51, %v1732_v55  ;;  %v1574_v55 = vmul.f32 %v9629_v0, %v9629_v0  ;;  %v1741_v51 = vsel %vm1139_vm0, %v1572_v57, 0.0  ;;  %v9633_v57 = vld [vmem:[#allocation52_spill] sm:$0xff] }
 0x28f   :  { %v1736_v9 = vadd.f32 %v1735_v30, %v1734_v3  ;;  %v1575_v3 = vmul.f32 %v9630_v8, %v9630_v8  ;;  %v1743_v30 = vsel %vm1139_vm0, %v1573_v36, 0.0  ;;  %v9634_v36 = vld [vmem:[#allocation49_spill] sm:$0xff] }
 0x291   :  { %v1738_v26 = vadd.f32 %v1737_v62, %v1736_v9  ;;  %v1576_v9 = vmul.f32 %v9631_v11, %v9631_v11  ;;  %v1745_v62 = vsel %vm1139_vm0, %v1574_v55, 0.0  ;;  %v9635_v55 = vld [vmem:[#allocation51_spill] sm:$0xff] }
 0x293   :  { %v1740_v14 = vadd.f32 %v1739_v63, %v1738_v26  ;;  %v1577_v26 = vmul.f32 %v9632_v48, %v9632_v48  ;;  %v1747_v63 = vsel %vm1139_vm0, %v1575_v3, 0.0  ;;  %v9636_v3 = vld [vmem:[#allocation55_spill] sm:$0xff] }
 0x295   :  { %v1742_v35 = vadd.f32 %v1741_v51, %v1740_v14  ;;  %v1578_v14 = vmul.f32 %v9633_v57, %v9633_v57  ;;  %v1749_v51 = vsel %vm1139_vm0, %v1576_v9, 0.0  ;;  %v9637_v9 = vld [vmem:[#allocation59_spill] sm:$0xff] }
 0x297   :  { %v1744_v19 = vadd.f32 %v1743_v30, %v1742_v35  ;;  %v1579_v35 = vmul.f32 %v9634_v36, %v9634_v36  ;;  %v1751_v30 = vsel %vm1139_vm0, %v1577_v26, 0.0  ;;  %v9638_v26 = vld [vmem:[#allocation54_spill] sm:$0xff] }
 0x299   :  { %v1746_v27 = vadd.f32 %v1745_v62, %v1744_v19  ;;  %v1580_v19 = vmul.f32 %v9635_v55, %v9635_v55  ;;  %v1753_v62 = vsel %vm1139_vm0, %v1578_v14, 0.0  ;;  %v9639_v14 = vld [vmem:[#allocation57_spill] sm:$0xff] }
 0x29b   :  { %v1748_v0 = vadd.f32 %v1747_v63, %v1746_v27  ;;  %v1581_v27 = vmul.f32 %v9636_v3, %v9636_v3  ;;  %v1755_v63 = vsel %vm1139_vm0, %v1579_v35, 0.0  ;;  %v9640_v35 = vld [vmem:[#allocation63_spill] sm:$0xff] }
 0x29d   :  { %v1750_v8 = vadd.f32 %v1749_v51, %v1748_v0  ;;  %v1582_v0 = vmul.f32 %v9637_v9, %v9637_v9  ;;  %v1757_v51 = vsel %vm1139_vm0, %v1580_v19, 0.0  ;;  %v9641_v19 = vld [vmem:[#allocation66_spill] sm:$0xff] }
 0x29f   :  { %v1752_v11 = vadd.f32 %v1751_v30, %v1750_v8  ;;  %v1583_v8 = vmul.f32 %v9638_v26, %v9638_v26  ;;  %v1759_v30 = vsel %vm1139_vm0, %v1581_v27, 0.0  ;;  %v9642_v27 = vld [vmem:[#allocation62_spill] sm:$0xff] }
 0x2a1   :  { %v1754_v48 = vadd.f32 %v1753_v62, %v1752_v11  ;;  %v1584_v11 = vmul.f32 %v9639_v14, %v9639_v14  ;;  %v1761_v62 = vsel %vm1139_vm0, %v1582_v0, 0.0  ;;  %v9643_v0 = vld [vmem:[#allocation65_spill] sm:$0xff] }
 0x2a3   :  { %v1756_v57 = vadd.f32 %v1755_v63, %v1754_v48  ;;  %v1585_v48 = vmul.f32 %v9640_v35, %v9640_v35  ;;  %v1763_v63 = vsel %vm1139_vm0, %v1583_v8, 0.0  ;;  %v9644_v8 = vld [vmem:[#allocation70_spill] sm:$0xff] }
 0x2a5   :  { %v1758_v36 = vadd.f32 %v1757_v51, %v1756_v57  ;;  %v1586_v57 = vmul.f32 %v9641_v19, %v9641_v19  ;;  %v1765_v51 = vsel %vm1139_vm0, %v1584_v11, 0.0 }
 0x2a7   :  { %v1760_v55 = vadd.f32 %v1759_v30, %v1758_v36  ;;  %v1587_v36 = vmul.f32 %v9642_v27, %v9642_v27  ;;  %v1767_v30 = vsel %vm1139_vm0, %v1585_v48, 0.0  ;;  %v9645_v48 = vld [vmem:[#allocation74_spill] sm:$0xff] }
 0x2a9   :  { %v1762_v3 = vadd.f32 %v1761_v62, %v1760_v55  ;;  %v1588_v55 = vmul.f32 %v9643_v0, %v9643_v0  ;;  %v1769_v62 = vsel %vm1139_vm0, %v1586_v57, 0.0 }
 0x2ab   :  { %v1764_v9 = vadd.f32 %v1763_v63, %v1762_v3  ;;  %v1589_v3 = vmul.f32 %v9644_v8, %v9644_v8  ;;  %v1771_v63 = vsel %vm1139_vm0, %v1587_v36, 0.0  ;;  %v1773_v11 = vsel %vm1139_vm0, %v1588_v55, 0.0 }
 0x2ad   :  { %v1766_v26 = vadd.f32 %v1765_v51, %v1764_v9  ;;  %v1590_v9 = vmul.f32 %v4854_v10, %v4854_v10 }
 0x2af   :  { %v1768_v14 = vadd.f32 %v1767_v30, %v1766_v26  ;;  %v1591_v26 = vmul.f32 %v9645_v48, %v9645_v48  ;;  %v1775_v30 = vsel %vm1139_vm0, %v1589_v3, 0.0  ;;  %v1777_v57 = vsel %vm1139_vm0, %v1590_v9, 0.0 }
 0x2b0   :  { %v1595_v3 = vmul.f32 %v4874_v29, %v4874_v29 }
 0x2b1   :  { %v1770_v35 = vadd.f32 %v1769_v62, %v1768_v14  ;;  %v1592_v14 = vmul.f32 %v4862_v31, %v4862_v31  ;;  %v1779_v36 = vsel %vm1139_vm0, %v1591_v26, 0.0  ;;  %v1597_v26 = vmul.f32 %v4882_v58, %v4882_v58 }
 0x2b3   :  { %v1772_v19 = vadd.f32 %v1771_v63, %v1770_v35  ;;  %v1593_v35 = vmul.f32 %v4866_v52, %v4866_v52  ;;  %v1781_v55 = vsel %vm1139_vm0, %v1592_v14, 0.0  ;;  %v1598_v14 = vmul.f32 %v4886_v34, %v4886_v34 }
 0x2b5   :  { %v1774_v51 = vadd.f32 %v1773_v11, %v1772_v19  ;;  %v1594_v19 = vmul.f32 %v4870_v24, %v4870_v24 }
 0x2b7   :  { %v1776_v0 = vadd.f32 %v1775_v30, %v1774_v51  ;;  %v1783_v51 = vsel %vm1139_vm0, %v1593_v35, 0.0  ;;  %v1785_v9 = vsel %vm1139_vm0, %v1594_v19, 0.0  ;;  %v1599_v35 = vmul.f32 %v4890_v20, %v4890_v20 }
 0x2b8   :  { %v1600_v19 = vmul.f32 %v4894_v42, %v4894_v42 }
 0x2b9   :  { %v1778_v62 = vadd.f32 %v1777_v57, %v1776_v0  ;;  %v1596_v0 = vmul.f32 %v4878_v18, %v4878_v18 }
 0x2bb   :  { %v1780_v63 = vadd.f32 %v1779_v36, %v1778_v62  ;;  %v1787_v62 = vsel %vm1139_vm0, %v1595_v3, 0.0  ;;  %v1601_v3 = vmul.f32 %v4898_v21, %v4898_v21 }
 0x2bd   :  { %v1782_v11 = vadd.f32 %v1781_v55, %v1780_v63  ;;  %v1789_v63 = vsel %vm1139_vm0, %v1596_v0, 0.0  ;;  %v1602_v0 = vmul.f32 %v4902_v23, %v4902_v23 }
 0x2bf   :  { %v1784_v30 = vadd.f32 %v1783_v51, %v1782_v11  ;;  %v1791_v11 = vsel %vm1139_vm0, %v1597_v26, 0.0  ;;  %v1603_v26 = vmul.f32 %v4906_v40, %v4906_v40 }
 0x2c1   :  { %v1786_v57 = vadd.f32 %v1785_v9, %v1784_v30  ;;  %v1793_v30 = vsel %vm1139_vm0, %v1598_v14, 0.0  ;;  %v1604_v14 = vmul.f32 %v4910_v45, %v4910_v45 }
 0x2c3   :  { %v1788_v36 = vadd.f32 %v1787_v62, %v1786_v57  ;;  %v1795_v57 = vsel %vm1139_vm0, %v1599_v35, 0.0  ;;  %v1605_v35 = vmul.f32 %v4914_v37, %v4914_v37 }
 0x2c5   :  { %v1790_v55 = vadd.f32 %v1789_v63, %v1788_v36  ;;  %v1797_v36 = vsel %vm1139_vm0, %v1600_v19, 0.0  ;;  %v1606_v19 = vmul.f32 %v4918_v43, %v4918_v43 }
 0x2c7   :  { %v1792_v51 = vadd.f32 %v1791_v11, %v1790_v55  ;;  %v1799_v55 = vsel %vm1139_vm0, %v1601_v3, 0.0  ;;  %v1607_v3 = vmul.f32 %v4922_v56, %v4922_v56 }
 0x2c9   :  { %v1794_v9 = vadd.f32 %v1793_v30, %v1792_v51  ;;  %v1801_v51 = vsel %vm1139_vm0, %v1602_v0, 0.0  ;;  %v1608_v0 = vmul.f32 %v4926_v61, %v4926_v61 }
 0x2cb   :  { %v1796_v62 = vadd.f32 %v1795_v57, %v1794_v9  ;;  %v1803_v9 = vsel %vm1139_vm0, %v1603_v26, 0.0  ;;  %v1609_v26 = vmul.f32 %v4930_v53, %v4930_v53 }
 0x2cd   :  { %v1798_v63 = vadd.f32 %v1797_v36, %v1796_v62  ;;  %v1805_v62 = vsel %vm1139_vm0, %v1604_v14, 0.0  ;;  %v1610_v14 = vmul.f32 %v4934_v59, %v4934_v59 }
 0x2cf   :  { %v1800_v11 = vadd.f32 %v1799_v55, %v1798_v63  ;;  %v1807_v63 = vsel %vm1139_vm0, %v1605_v35, 0.0  ;;  %v1611_v35 = vmul.f32 %v4938_v12, %v4938_v12 }
 0x2d1   :  { %v1802_v30 = vadd.f32 %v1801_v51, %v1800_v11  ;;  %v1809_v11 = vsel %vm1139_vm0, %v1606_v19, 0.0  ;;  %v1612_v19 = vmul.f32 %v4942_v17, %v4942_v17 }
 0x2d3   :  { %v1804_v57 = vadd.f32 %v1803_v9, %v1802_v30  ;;  %v1811_v30 = vsel %vm1139_vm0, %v1607_v3, 0.0  ;;  %v1613_v3 = vmul.f32 %v4946_v5, %v4946_v5 }
 0x2d5   :  { %v1806_v36 = vadd.f32 %v1805_v62, %v1804_v57  ;;  %v1813_v57 = vsel %vm1139_vm0, %v1608_v0, 0.0  ;;  %v1614_v0 = vmul.f32 %v4950_v15, %v4950_v15 }
 0x2d7   :  { %v1808_v55 = vadd.f32 %v1807_v63, %v1806_v36  ;;  %v1815_v36 = vsel %vm1139_vm0, %v1609_v26, 0.0  ;;  %v1615_v26 = vmul.f32 %v4954_v41, %v4954_v41 }
 0x2d9   :  { %v1810_v51 = vadd.f32 %v1809_v11, %v1808_v55  ;;  %v1817_v55 = vsel %vm1139_vm0, %v1610_v14, 0.0  ;;  %v1616_v14 = vmul.f32 %v4958_v49, %v4958_v49 }
 0x2db   :  { %v1812_v9 = vadd.f32 %v1811_v30, %v1810_v51  ;;  %v1819_v51 = vsel %vm1139_vm0, %v1611_v35, 0.0  ;;  %v1617_v35 = vmul.f32 %v4962_v33, %v4962_v33 }
 0x2dd   :  { %v1814_v62 = vadd.f32 %v1813_v57, %v1812_v9  ;;  %v1821_v9 = vsel %vm1139_vm0, %v1612_v19, 0.0  ;;  %v1618_v19 = vmul.f32 %v4966_v47, %v4966_v47 }
 0x2df   :  { %v1816_v63 = vadd.f32 %v1815_v36, %v1814_v62  ;;  %v1823_v62 = vsel %vm1139_vm0, %v1613_v3, 0.0  ;;  %v1619_v3 = vmul.f32 %v4970_v13, %v4970_v13 }
 0x2e1   :  { %v1818_v11 = vadd.f32 %v1817_v55, %v1816_v63  ;;  %v1825_v63 = vsel %vm1139_vm0, %v1614_v0, 0.0  ;;  %v1620_v0 = vmul.f32 %v4974_v28, %v4974_v28 }
 0x2e3   :  { %v1820_v30 = vadd.f32 %v1819_v51, %v1818_v11  ;;  %v1827_v11 = vsel %vm1139_vm0, %v1615_v26, 0.0  ;;  %v1621_v26 = vmul.f32 %v4978_v1, %v4978_v1 }
 0x2e5   :  { %v1822_v57 = vadd.f32 %v1821_v9, %v1820_v30  ;;  %v1829_v30 = vsel %vm1139_vm0, %v1616_v14, 0.0  ;;  %v1622_v14 = vmul.f32 %v4982_v22, %v4982_v22 }
 0x2e7   :  { %v1824_v36 = vadd.f32 %v1823_v62, %v1822_v57  ;;  %v1831_v57 = vsel %vm1139_vm0, %v1617_v35, 0.0  ;;  %v1623_v35 = vmul.f32 %v4986_v16, %v4986_v16 }
 0x2e9   :  { %v1826_v55 = vadd.f32 %v1825_v63, %v1824_v36  ;;  %v1833_v36 = vsel %vm1139_vm0, %v1618_v19, 0.0  ;;  %v1624_v19 = vmul.f32 %v4990_v6, %v4990_v6 }
 0x2eb   :  { %v1828_v51 = vadd.f32 %v1827_v11, %v1826_v55  ;;  %v1835_v55 = vsel %vm1139_vm0, %v1619_v3, 0.0  ;;  %v1625_v3 = vmul.f32 %v4994_v60, %v4994_v60 }
 0x2ed   :  { %v1830_v9 = vadd.f32 %v1829_v30, %v1828_v51  ;;  %v1837_v51 = vsel %vm1139_vm0, %v1620_v0, 0.0  ;;  %v1626_v0 = vmul.f32 %v4998_v32, %v4998_v32 }
 0x2ef   :  { %v1832_v62 = vadd.f32 %v1831_v57, %v1830_v9  ;;  %v1839_v9 = vsel %vm1139_vm0, %v1621_v26, 0.0  ;;  %v1627_v26 = vmul.f32 %v5002_v25, %v5002_v25 }
 0x2f1   :  { %v1834_v63 = vadd.f32 %v1833_v36, %v1832_v62  ;;  %v1841_v62 = vsel %vm1139_vm0, %v1622_v14, 0.0  ;;  %v1628_v14 = vmul.f32 %v5006_v4, %v5006_v4 }
 0x2f3   :  { %v1836_v11 = vadd.f32 %v1835_v55, %v1834_v63  ;;  %v1843_v63 = vsel %vm1139_vm0, %v1623_v35, 0.0  ;;  %v1629_v35 = vmul.f32 %v5010_v38, %v5010_v38 }
 0x2f5   :  { %v1838_v30 = vadd.f32 %v1837_v51, %v1836_v11  ;;  %v1845_v11 = vsel %vm1139_vm0, %v1624_v19, 0.0  ;;  %v1630_v19 = vmul.f32 %v5014_v44, %v5014_v44 }
 0x2f7   :  { %v1840_v57 = vadd.f32 %v1839_v9, %v1838_v30  ;;  %v1847_v30 = vsel %vm1139_vm0, %v1625_v3, 0.0  ;;  %v9646_v3 = vld [vmem:[#allocation92_spill] sm:$0xff] }
 0x2f9   :  { %v1842_v36 = vadd.f32 %v1841_v62, %v1840_v57  ;;  %v1849_v57 = vsel %vm1139_vm0, %v1626_v0, 0.0  ;;  %v9647_v0 = vld [vmem:[#allocation93_spill] sm:$0xff] }
 0x2fb   :  { %v1844_v55 = vadd.f32 %v1843_v63, %v1842_v36  ;;  %v1851_v36 = vsel %vm1139_vm0, %v1627_v26, 0.0  ;;  %v9648_v26 = vld [vmem:[#allocation94_spill] sm:$0xff] }
 0x2fd   :  { %v1846_v51 = vadd.f32 %v1845_v11, %v1844_v55  ;;  %v1853_v55 = vsel %vm1139_vm0, %v1628_v14, 0.0  ;;  %v9649_v14 = vld [vmem:[#allocation95_spill] sm:$0xff] }
 0x2ff   :  { %v1848_v9 = vadd.f32 %v1847_v30, %v1846_v51  ;;  %v1631_v51 = vmul.f32 %v9646_v3, %v9646_v3  ;;  %v1855_v30 = vsel %vm1139_vm0, %v1629_v35, 0.0  ;;  %v9650_v35 = vld [vmem:[#allocation96_spill] sm:$0xff] }
 0x301   :  { %v1850_v62 = vadd.f32 %v1849_v57, %v1848_v9  ;;  %v1632_v9 = vmul.f32 %v9647_v0, %v9647_v0  ;;  %v1857_v57 = vsel %vm1139_vm0, %v1630_v19, 0.0 }
 0x303   :  { %v1852_v63 = vadd.f32 %v1851_v36, %v1850_v62  ;;  %v1633_v62 = vmul.f32 %v9648_v26, %v9648_v26  ;;  %v1859_v36 = vsel %vm1139_vm0, %v1631_v51, 0.0  ;;  %v9651_v51 = vld [vmem:[#allocation53_spill] sm:$0xff] }
 0x305   :  { %v1854_v11 = vadd.f32 %v1853_v55, %v1852_v63  ;;  %v1634_v63 = vmul.f32 %v9649_v14, %v9649_v14  ;;  %v1861_v55 = vsel %vm1139_vm0, %v1632_v9, 0.0  ;;  %v9652_v9 = vld [vmem:[#allocation58_spill] sm:$0xff] }
 0x307   :  { %v1856_v4 = vadd.f32 %v1855_v30, %v1854_v11  ;;  %v1635_v11 = vmul.f32 %v9650_v35, %v9650_v35  ;;  %v1863_v30 = vsel %vm1139_vm0, %v1633_v62, 0.0  ;;  %v1865_v19 = vsel %vm1139_vm0, %v1634_v63, 0.0  ;;  %v9653_v62 = vld [vmem:[#allocation61_spill] sm:$0xff] }
 0x309   :  { %v1858_v38 = vadd.f32 %v1857_v57, %v1856_v4  ;;  %v1636_v4 = vmul.f32 %v5038_v2, %v5038_v2 }
 0x30b   :  { %v1860_v44 = vadd.f32 %v1859_v36, %v1858_v38  ;;  %v1637_v38 = vmul.f32 %v9651_v51, %v9651_v51  ;;  %v1867_v36 = vsel %vm1139_vm0, %v1635_v11, 0.0  ;;  %v1641_v11 = vmul.f32 %v5058_v39, %v5058_v39 }
 0x30d   :  { %v1862_v3 = vadd.f32 %v1861_v55, %v1860_v44  ;;  %v1638_v44 = vmul.f32 %v9652_v9, %v9652_v9  ;;  %v1869_v55 = vsel %vm1139_vm0, %v1636_v4, 0.0  ;;  %v9654_v4 = vld [vmem:[#allocation98_spill] sm:$0xff] }
 0x30f   :  { %v1864_v0 = vadd.f32 %v1863_v30, %v1862_v3  ;;  %v1639_v3 = vmul.f32 %v9653_v62, %v9653_v62  ;;  %v1871_v30 = vsel %vm1139_vm0, %v1637_v38, 0.0  ;;  %v1873_v63 = vsel %vm1139_vm0, %v1638_v44, 0.0  ;;  %v9655_v38 = vld [vmem:[#allocation68_spill] sm:$0xff] }
 0x311   :  { %v1866_v57 = vadd.f32 %v1865_v19, %v1864_v0  ;;  %v1640_v0 = vmul.f32 %v5054_v50, %v5054_v50 }
 0x313   :  { %v1868_v14 = vadd.f32 %v1867_v36, %v1866_v57  ;;  %v1875_v57 = vsel %vm1139_vm0, %v1639_v3, 0.0  ;;  %v9656_v3 = vld [vmem:[#allocation64_spill] sm:$0xff] }
 0x315   :  { %v1870_v35 = vadd.f32 %v1869_v55, %v1868_v14  ;;  %v1642_v14 = vmul.f32 %v9654_v4, %v9654_v4  ;;  %v1877_v55 = vsel %vm1139_vm0, %v1640_v0, 0.0  ;;  %v9657_v0 = vld [vmem:[#allocation67_spill] sm:$0xff] }
 0x317   :  { %v1872_v2 = vadd.f32 %v1871_v30, %v1870_v35  ;;  %v1643_v35 = vmul.f32 %v9655_v38, %v9655_v38  ;;  %v1879_v30 = vsel %vm1139_vm0, %v1641_v11, 0.0  ;;  %v1881_v44 = vsel %vm1139_vm0, %v1642_v14, 0.0  ;;  %v9658_v11 = vld [vmem:[#allocation99_spill] sm:$0xff] }
 0x318   :  { %v9659_v14 = vld [vmem:[#allocation71_spill] sm:$0xff] }
 0x319   :  { %v1874_v19 = vadd.f32 %v1873_v63, %v1872_v2  ;;  %v1644_v2 = vmul.f32 %v5070_v7, %v5070_v7 }
 0x31b   :  { %v1876_v36 = vadd.f32 %v1875_v57, %v1874_v19  ;;  %v1645_v19 = vmul.f32 %v9656_v3, %v9656_v3  ;;  %v1883_v57 = vsel %vm1139_vm0, %v1643_v35, 0.0  ;;  %v1649_v35 = vmul.f32 %v5090_v46, %v5090_v46 }
 0x31d   :  { %v1878_v62 = vadd.f32 %v1877_v55, %v1876_v36  ;;  %v1646_v36 = vmul.f32 %v9657_v0, %v9657_v0  ;;  %v1885_v55 = vsel %vm1139_vm0, %v1644_v2, 0.0 }
 0x31f   :  { %v1880_v50 = vadd.f32 %v1879_v30, %v1878_v62  ;;  %v1647_v62 = vmul.f32 %v9658_v11, %v9658_v11  ;;  %v1887_v30 = vsel %vm1139_vm0, %v1645_v19, 0.0  ;;  %v9660_v19 = vld [vmem:[#allocation75_spill] sm:$0xff] }
 0x321   :  { %v1882_v63 = vadd.f32 %v1881_v44, %v1880_v50  ;;  %v1648_v50 = vmul.f32 %v9659_v14, %v9659_v14  ;;  %v1889_v44 = vsel %vm1139_vm0, %v1646_v36, 0.0  ;;  %v9661_v36 = vld [vmem:[#allocation84_spill] sm:$0xff] }
 0x323   :  { %v1884_v4 = vadd.f32 %v1883_v57, %v1882_v63  ;;  %v1891_v63 = vsel %vm1139_vm0, %v1647_v62, 0.0  ;;  %v1893_v2 = vsel %vm1139_vm0, %v1648_v50, 0.0  ;;  %v9662_v62 = vld [vmem:[#allocation79_spill] sm:$0xff] }
 0x324   :  { %v9663_v50 = vld [vmem:[#allocation83_spill] sm:$0xff] }
 0x325   :  { %v1886_v39 = vadd.f32 %v1885_v55, %v1884_v4  ;;  %v1650_v4 = vmul.f32 %v5094_v54, %v5094_v54 }
 0x327   :  { %v1888_v9 = vadd.f32 %v1887_v30, %v1886_v39  ;;  %v1651_v39 = vmul.f32 %v9660_v19, %v9660_v19  ;;  %v1895_v30 = vsel %vm1139_vm0, %v1649_v35, 0.0  ;;  %v9664_v35 = vld [vmem:[#allocation85_spill] sm:$0xff] }
 0x329   :  { %v1890_v51 = vadd.f32 %v1889_v44, %v1888_v9  ;;  %v1652_v9 = vmul.f32 %v9661_v36, %v9661_v36  ;;  %v1897_v44 = vsel %vm1139_vm0, %v1650_v4, 0.0  ;;  %v9665_v4 = vld [vmem:[#allocation100_spill] sm:$0xff] }
 0x32b   :  { %v1892_v57 = vadd.f32 %v1891_v63, %v1890_v51  ;;  %v1653_v51 = vmul.f32 %v9662_v62, %v9662_v62  ;;  %v1899_v63 = vsel %vm1139_vm0, %v1651_v39, 0.0  ;;  %v9666_v39 = vld [vmem:[#allocation101_spill] sm:$0xff] }
 0x32d   :  { %v1894_v55 = vadd.f32 %v1893_v2, %v1892_v57  ;;  %v1654_v57 = vmul.f32 %v9663_v50, %v9663_v50  ;;  %v1901_v2 = vsel %vm1139_vm0, %v1652_v9, 0.0 }
 0x32f   :  { %v1896_v26 = vadd.f32 %v1895_v30, %v1894_v55  ;;  %v1655_v55 = vmul.f32 %v9664_v35, %v9664_v35  ;;  %v1903_v30 = vsel %vm1139_vm0, %v1653_v51, 0.0 }
 0x331   :  { %v1898_v25 = vadd.f32 %v1897_v44, %v1896_v26  ;;  %v1656_v26 = vmul.f32 %v9665_v4, %v9665_v4  ;;  %v1905_v44 = vsel %vm1139_vm0, %v1654_v57, 0.0 }
 0x333   :  { %v1900_v32 = vadd.f32 %v1899_v63, %v1898_v25  ;;  %v1657_v25 = vmul.f32 %v9666_v39, %v9666_v39  ;;  %v1907_v63 = vsel %vm1139_vm0, %v1655_v55, 0.0 }
 0x335   :  { %v1902_v60 = vadd.f32 %v1901_v2, %v1900_v32  ;;  %v1909_v32 = vsel %vm1139_vm0, %v1656_v26, 0.0  ;;  %v1911_v2 = vsel %vm1139_vm0, %v1657_v25, 0.0  ;;  %v9683_v25 = vld [vmem:[#allocation76_spill] sm:$0xff] }
 0x337   :  { %v1904_v6 = vadd.f32 %v1903_v30, %v1902_v60 }
 0x339   :  { %v1906_v16 = vadd.f32 %v1905_v44, %v1904_v6  ;;  %v1925_v44 = vlaneseq }
 0x33b   :  { %v1908_v22 = vadd.f32 %v1907_v63, %v1906_v16  ;;  %v1926_v33 = vshrl.u32 %v1925_v44, 7  ;;  %v1920_v16 = vld [vmem:[%s8931_s2] sm:$0x1]  ;;  %v9684_v63 = vld [vmem:[#allocation81_spill] sm:$0xff] }
 0x33c   :  { %v9690_v44 = vld [vmem:[#allocation10_spill] sm:$0xff] }
 0x33d   :  { %v1910_v9 = vadd.f32 %v1909_v32, %v1908_v22  ;;  %v1927_v55 = vsub.s32 0, %v1926_v33  ;;  %v9685_v32 = vld [vmem:[#allocation3_spill] sm:$0xff] }
 0x33f   :  { %v1912_v1 = vadd.f32 %v1911_v2, %v1910_v9  ;;  %v9686_v9 = vld [vmem:[#allocation5_spill] sm:$0xff]  ;;  %v9687_v2 = vld [vmem:[#allocation2_spill] sm:$0xff] }
 0x341   :  { %v1913_v51 = vrot.slane %v1912_v1, 4 }
 0x343   :  { %v1914_v60 = vadd.f32 %v1913_v51, %v1912_v1 }
 0x345   :  { %v1915_v30 = vrot.slane %v1914_v60, 2 }
 0x347   :  { %v1916_v28 = vadd.f32 %v1915_v30, %v1914_v60  ;;  %v9688_v60 = vld [vmem:[#allocation4_spill] sm:$0xff] }
 0x349   :  { %v1917_v13 = vrot.slane %v1916_v28, 1 }
 0x34b   :  { %v1918_v47 = vadd.f32 %v1917_v13, %v1916_v28 }
 0x34d   :  { %v1919_v57 = vmul.f32 0.0009765625, %v1918_v47 }
 0x34f   :  { %v1921_v6 = vadd.f32 1e-05, %v1919_v57  ;;  %v9689_v57 = vld [vmem:[#allocation7_spill] sm:$0xff] }
 0x351   :  { %3855 = vrsqrt.f32 %v1921_v6 }
 0x35b   :  { %v3856_v49 = vpop.eup %3855 }
 0x35c   :  { %v1923_v22 = vmul.f32 %v3856_v49, %v1920_v16 }
 0x35e   :  { %v5511_v26 = vrot.slane %v1923_v22, %v1927_v55  ;;  %v9691_v22 = vld [vmem:[#allocation6_spill] sm:$0xff] }
 0x360   :  { %v5515_v1 = vmul.f32 %v5511_v26, %v9655_v38  ;;  %v5519_v47 = vmul.f32 %v5511_v26, %v5070_v7  ;;  %v5523_v13 = vmul.f32 %v5511_v26, %v9656_v3  ;;  %v5527_v28 = vmul.f32 %v5511_v26, %v9657_v0 }
 0x361   :  { %v5531_v49 = vmul.f32 %v5511_v26, %v9658_v11  ;;  %v5535_v33 = vmul.f32 %v5511_v26, %v9659_v14  ;;  %v5539_v7 = vmul.f32 %v5511_v26, %v5090_v46  ;;  %v5543_v38 = vmul.f32 %v5511_v26, %v5094_v54 }
 0x362   :  { %9667 = vst [vmem:[#allocation62_spill] sm:$0xff] %v5515_v1  ;;  %9668 = vst [vmem:[#allocation70_spill] sm:$0xff] %v5519_v47  ;;  %v5547_v3 = vmul.f32 %v5511_v26, %v9660_v19  ;;  %v5551_v0 = vmul.f32 %v5511_v26, %v9661_v36  ;;  %v5555_v11 = vmul.f32 %v5511_v26, %v9662_v62  ;;  %v9682_v36 = vld [vmem:[#allocation73_spill] sm:$0xff]  ;;  %v9714_v47 = vld [vmem:[#allocation32_spill] sm:$0xff] }
 0x363   :  { %9669 = vst [vmem:[#allocation74_spill] sm:$0xff] %v5523_v13  ;;  %9670 = vst [vmem:[#allocation68_spill] sm:$0xff] %v5527_v28  ;;  %v5559_v46 = vmul.f32 %v5511_v26, %v9663_v50  ;;  %v5563_v54 = vmul.f32 %v5511_v26, %v9664_v35  ;;  %v5567_v14 = vmul.f32 %v5511_v26, %v9665_v4  ;;  %v9710_v28 = vld [vmem:[#allocation27_spill] sm:$0xff]  ;;  %v9712_v13 = vld [vmem:[#allocation30_spill] sm:$0xff] }
 0x364   :  { %9671 = vst [vmem:[#allocation64_spill] sm:$0xff] %v5531_v49  ;;  %9672 = vst [vmem:[#allocation67_spill] sm:$0xff] %v5535_v33  ;;  %v5571_v19 = vmul.f32 %v5511_v26, %v9666_v39  ;;  %v5575_v62 = vmul.f32 %v5511_v26, %v9682_v36  ;;  %v5579_v50 = vmul.f32 %v5511_v26, %v9683_v25  ;;  %v9692_v36 = vld [vmem:[#allocation8_spill] sm:$0xff]  ;;  %v9708_v49 = vld [vmem:[#allocation25_spill] sm:$0xff] }
 0x365   :  { %9673 = vst [vmem:[#allocation99_spill] sm:$0xff] %v5539_v7  ;;  %9674 = vst [vmem:[#allocation71_spill] sm:$0xff] %v5543_v38  ;;  %v5583_v35 = vmul.f32 %v5511_v26, %v9684_v63  ;;  %v5587_v4 = vmul.f32 %v5511_v26, %v9685_v32  ;;  %v5591_v39 = vmul.f32 %v5511_v26, %v9686_v9  ;;  %v9693_v63 = vld [vmem:[#allocation14_spill] sm:$0xff]  ;;  %v9694_v9 = vld [vmem:[#allocation16_spill] sm:$0xff] }
 0x366   :  { %9675 = vst [vmem:[#allocation75_spill] sm:$0xff] %v5547_v3  ;;  %9676 = vst [vmem:[#allocation84_spill] sm:$0xff] %v5551_v0  ;;  %v5595_v51 = vmul.f32 %v5511_v26, %v9687_v2  ;;  %v5599_v30 = vmul.f32 %v5511_v26, %v9688_v60  ;;  %v5603_v6 = vmul.f32 %v5511_v26, %v9689_v57  ;;  %v9695_v60 = vld [vmem:[#allocation13_spill] sm:$0xff]  ;;  %v9702_v0 = vld [vmem:[#allocation24_spill] sm:$0xff] }
 0x367   :  { %9677 = vst [vmem:[#allocation79_spill] sm:$0xff] %v5555_v11  ;;  %9678 = vst [vmem:[#allocation83_spill] sm:$0xff] %v5559_v46  ;;  %v5607_v16 = vmul.f32 %v5511_v26, %v9690_v44  ;;  %v5611_v55 = vmul.f32 %v5511_v26, %v9691_v22  ;;  %v5615_v25 = vmul.f32 %v5511_v26, %v9692_v36  ;;  %v9696_v44 = vld [vmem:[#allocation15_spill] sm:$0xff]  ;;  %v9701_v11 = vld [vmem:[#allocation22_spill] sm:$0xff] }
 0x368   :  { %9679 = vst [vmem:[#allocation85_spill] sm:$0xff] %v5563_v54  ;;  %9680 = vst [vmem:[#allocation100_spill] sm:$0xff] %v5567_v14  ;;  %v5619_v32 = vmul.f32 %v5511_v26, %v9693_v63  ;;  %v5623_v2 = vmul.f32 %v5511_v26, %v9694_v9  ;;  %v5627_v57 = vmul.f32 %v5511_v26, %v9695_v60  ;;  %v9698_v14 = vld [vmem:[#allocation20_spill] sm:$0xff]  ;;  %v9699_v54 = vld [vmem:[#allocation17_spill] sm:$0xff] }
 0x369   :  { %9681 = vst [vmem:[#allocation101_spill] sm:$0xff] %v5571_v19  ;;  %v5631_v22 = vmul.f32 %v5511_v26, %v9696_v44  ;;  %v9697_v19 = vld [vmem:[#allocation18_spill] sm:$0xff]  ;;  %v5639_v63 = vmul.f32 %v5511_v26, %v9698_v14  ;;  %v5643_v9 = vmul.f32 %v5511_v26, %v9699_v54  ;;  %v9700_v46 = vld [vmem:[#allocation19_spill] sm:$0xff]  ;;  %v5651_v44 = vmul.f32 %v5511_v26, %v9701_v11  ;;  %v9703_v3 = vld [vmem:[#allocation21_spill] sm:$0xff] }
 0x36a   :  { %v5635_v36 = vmul.f32 %v5511_v26, %v9697_v19  ;;  %v5647_v60 = vmul.f32 %v5511_v26, %v9700_v46  ;;  %v5655_v19 = vmul.f32 %v5511_v26, %v9702_v0  ;;  %v5659_v14 = vmul.f32 %v5511_v26, %v9703_v3  ;;  %v9704_v38 = vld [vmem:[#allocation23_spill] sm:$0xff]  ;;  %v9705_v7 = vld [vmem:[#allocation26_spill] sm:$0xff]  ;;  %v9706_v33 = vld [vmem:[#allocation28_spill] sm:$0xff] }
 0x36b   :  { %v5663_v54 = vmul.f32 %v5511_v26, %v9704_v38  ;;  %v5667_v46 = vmul.f32 %v5511_v26, %v9705_v7  ;;  %v5671_v11 = vmul.f32 %v5511_v26, %v9706_v33  ;;  %v5675_v0 = vmul.f32 %v5511_v26, %v9708_v49  ;;  %v9716_v1 = vld [vmem:[#allocation29_spill] sm:$0xff] }
 0x36c   :  { %v5679_v3 = vmul.f32 %v5511_v26, %v9710_v28  ;;  %v5683_v38 = vmul.f32 %v5511_v26, %v9712_v13  ;;  %v5687_v7 = vmul.f32 %v5511_v26, %v9714_v47  ;;  %v5691_v33 = vmul.f32 %v5511_v26, %v9716_v1 }
 0x36d   :  { %9707 = vst [vmem:[#allocation73_spill] sm:$0xff] %v5671_v11  ;;  %9709 = vst [vmem:[#allocation76_spill] sm:$0xff] %v5675_v0  ;;  %v9718_v11 = vld [vmem:[#allocation31_spill] sm:$0xff]  ;;  %v9720_v0 = vld [vmem:[#allocation34_spill] sm:$0xff] }
 0x36e   :  { %9711 = vst [vmem:[#allocation81_spill] sm:$0xff] %v5679_v3  ;;  %9713 = vst [vmem:[#allocation3_spill] sm:$0xff] %v5683_v38  ;;  %v5695_v49 = vmul.f32 %v5511_v26, %v9718_v11  ;;  %v5699_v28 = vmul.f32 %v5511_v26, %v9720_v0  ;;  %v9722_v3 = vld [vmem:[#allocation36_spill] sm:$0xff]  ;;  %v9724_v38 = vld [vmem:[#allocation33_spill] sm:$0xff] }
 0x36f   :  { %9715 = vst [vmem:[#allocation5_spill] sm:$0xff] %v5687_v7  ;;  %9717 = vst [vmem:[#allocation2_spill] sm:$0xff] %v5691_v33  ;;  %v5703_v13 = vmul.f32 %v5511_v26, %v9722_v3  ;;  %v5707_v47 = vmul.f32 %v5511_v26, %v9724_v38  ;;  %v9726_v7 = vld [vmem:[#allocation35_spill] sm:$0xff]  ;;  %v9728_v33 = vld [vmem:[#allocation38_spill] sm:$0xff] }
 0x370   :  { %9719 = vst [vmem:[#allocation4_spill] sm:$0xff] %v5695_v49  ;;  %9721 = vst [vmem:[#allocation7_spill] sm:$0xff] %v5699_v28  ;;  %v5711_v1 = vmul.f32 %v5511_v26, %v9726_v7  ;;  %v5715_v11 = vmul.f32 %v5511_v26, %v9728_v33  ;;  %v9730_v49 = vld [vmem:[#allocation40_spill] sm:$0xff]  ;;  %v9732_v28 = vld [vmem:[#allocation37_spill] sm:$0xff] }
 0x371   :  { %9723 = vst [vmem:[#allocation10_spill] sm:$0xff] %v5703_v13  ;;  %9725 = vst [vmem:[#allocation6_spill] sm:$0xff] %v5707_v47  ;;  %v5719_v0 = vmul.f32 %v5511_v26, %v9730_v49  ;;  %v5723_v3 = vmul.f32 %v5511_v26, %v9732_v28  ;;  %v9734_v13 = vld [vmem:[#allocation39_spill] sm:$0xff]  ;;  %v9736_v47 = vld [vmem:[#allocation42_spill] sm:$0xff] }
 0x372   :  { %9727 = vst [vmem:[#allocation8_spill] sm:$0xff] %v5711_v1  ;;  %9729 = vst [vmem:[#allocation14_spill] sm:$0xff] %v5715_v11  ;;  %v5727_v38 = vmul.f32 %v5511_v26, %v9734_v13  ;;  %v5731_v7 = vmul.f32 %v5511_v26, %v9736_v47  ;;  %v9738_v1 = vld [vmem:[#allocation44_spill] sm:$0xff]  ;;  %v9740_v11 = vld [vmem:[#allocation41_spill] sm:$0xff] }
 0x373   :  { %9731 = vst [vmem:[#allocation16_spill] sm:$0xff] %v5719_v0  ;;  %9733 = vst [vmem:[#allocation13_spill] sm:$0xff] %v5723_v3  ;;  %v5735_v33 = vmul.f32 %v5511_v26, %v9738_v1  ;;  %v5739_v49 = vmul.f32 %v5511_v26, %v9740_v11  ;;  %v9742_v0 = vld [vmem:[#allocation43_spill] sm:$0xff]  ;;  %v9744_v3 = vld [vmem:[#allocation46_spill] sm:$0xff] }
 0x374   :  { %9735 = vst [vmem:[#allocation15_spill] sm:$0xff] %v5727_v38  ;;  %9737 = vst [vmem:[#allocation18_spill] sm:$0xff] %v5731_v7  ;;  %v5743_v28 = vmul.f32 %v5511_v26, %v9742_v0  ;;  %v5747_v13 = vmul.f32 %v5511_v26, %v9744_v3  ;;  %v9746_v38 = vld [vmem:[#allocation48_spill] sm:$0xff]  ;;  %v9748_v7 = vld [vmem:[#allocation45_spill] sm:$0xff] }
 0x375   :  { %9739 = vst [vmem:[#allocation20_spill] sm:$0xff] %v5735_v33  ;;  %9741 = vst [vmem:[#allocation17_spill] sm:$0xff] %v5739_v49  ;;  %v5751_v47 = vmul.f32 %v5511_v26, %v9746_v38  ;;  %v5755_v1 = vmul.f32 %v5511_v26, %v9748_v7  ;;  %v9750_v33 = vld [vmem:[#allocation47_spill] sm:$0xff]  ;;  %v9752_v49 = vld [vmem:[#allocation50_spill] sm:$0xff] }
 0x376   :  { %9743 = vst [vmem:[#allocation19_spill] sm:$0xff] %v5743_v28  ;;  %9745 = vst [vmem:[#allocation22_spill] sm:$0xff] %v5747_v13  ;;  %v5759_v11 = vmul.f32 %v5511_v26, %v9750_v33  ;;  %v5763_v0 = vmul.f32 %v5511_v26, %v9752_v49  ;;  %v9754_v28 = vld [vmem:[#allocation52_spill] sm:$0xff]  ;;  %v9756_v13 = vld [vmem:[#allocation49_spill] sm:$0xff] }
 0x377   :  { %9747 = vst [vmem:[#allocation24_spill] sm:$0xff] %v5751_v47  ;;  %9749 = vst [vmem:[#allocation21_spill] sm:$0xff] %v5755_v1  ;;  %v5767_v3 = vmul.f32 %v5511_v26, %v9754_v28  ;;  %v5771_v38 = vmul.f32 %v5511_v26, %v9756_v13  ;;  %v9758_v47 = vld [vmem:[#allocation51_spill] sm:$0xff] }
 0x378   :  { %9751 = vst [vmem:[#allocation23_spill] sm:$0xff] %v5759_v11  ;;  %9753 = vst [vmem:[#allocation26_spill] sm:$0xff] %v5763_v0  ;;  %v5775_v7 = vmul.f32 %v5511_v26, %v9758_v47  ;;  %v9760_v1 = vld [vmem:[#allocation55_spill] sm:$0xff]  ;;  %v9763_v0 = vld [vmem:[#allocation54_spill] sm:$0xff] }
 0x379   :  { %9755 = vst [vmem:[#allocation28_spill] sm:$0xff] %v5767_v3  ;;  %9757 = vst [vmem:[#allocation25_spill] sm:$0xff] %v5771_v38  ;;  %v5779_v33 = vmul.f32 %v5511_v26, %v9760_v1  ;;  %v9761_v11 = vld [vmem:[#allocation59_spill] sm:$0xff]  ;;  %v5787_v28 = vmul.f32 %v5511_v26, %v9763_v0  ;;  %v9764_v3 = vld [vmem:[#allocation57_spill] sm:$0xff] }
 0x37a   :  { %9759 = vst [vmem:[#allocation27_spill] sm:$0xff] %v5775_v7  ;;  %v5783_v49 = vmul.f32 %v5511_v26, %v9761_v11  ;;  %v5791_v13 = vmul.f32 %v5511_v26, %v9764_v3  ;;  %v9765_v38 = vld [vmem:[#allocation63_spill] sm:$0xff]  ;;  %v9766_v7 = vld [vmem:[#allocation66_spill] sm:$0xff]  ;;  %v5803_v11 = vmul.f32 %v5511_v26, %v9642_v27  ;;  %v5811_v3 = vmul.f32 %v5511_v26, %v9644_v8 }
 0x37b   :  { %v5795_v47 = vmul.f32 %v5511_v26, %v9765_v38  ;;  %v5799_v1 = vmul.f32 %v5511_v26, %v9766_v7  ;;  %v5815_v38 = vmul.f32 %v5511_v26, %v4854_v10  ;;  %v5819_v7 = vmul.f32 %v5511_v26, %v9645_v48 }
 0x37c   :  { %9762 = vst [vmem:[#allocation30_spill] sm:$0xff] %v5783_v49  ;;  %v9767_v49 = vld [vmem:[#allocation65_spill] sm:$0xff]  ;;  %v5823_v27 = vmul.f32 %v5511_v26, %v4862_v31  ;;  %v5831_v8 = vmul.f32 %v5511_v26, %v4870_v24  ;;  %v5835_v10 = vmul.f32 %v5511_v26, %v4874_v29  ;;  %v5839_v48 = vmul.f32 %v5511_v26, %v4878_v18 }
 0x37d   :  { %v5807_v0 = vmul.f32 %v5511_v26, %v9767_v49  ;;  %v5827_v49 = vmul.f32 %v5511_v26, %v4866_v52  ;;  %v5843_v31 = vmul.f32 %v5511_v26, %v4882_v58  ;;  %v5847_v52 = vmul.f32 %v5511_v26, %v4886_v34 }
 0x37e   :  { %v5851_v24 = vmul.f32 %v5511_v26, %v4890_v20  ;;  %v5855_v29 = vmul.f32 %v5511_v26, %v4894_v42  ;;  %v5859_v18 = vmul.f32 %v5511_v26, %v4898_v21  ;;  %v5863_v58 = vmul.f32 %v5511_v26, %v4902_v23 }
 0x37f   :  { %v5867_v34 = vmul.f32 %v5511_v26, %v4906_v40  ;;  %v5871_v20 = vmul.f32 %v5511_v26, %v4910_v45  ;;  %v5875_v42 = vmul.f32 %v5511_v26, %v4914_v37  ;;  %v5879_v21 = vmul.f32 %v5511_v26, %v4918_v43 }
 0x380   :  { %v5883_v23 = vmul.f32 %v5511_v26, %v4922_v56  ;;  %v5887_v40 = vmul.f32 %v5511_v26, %v4926_v61  ;;  %v5891_v45 = vmul.f32 %v5511_v26, %v4930_v53  ;;  %v5895_v37 = vmul.f32 %v5511_v26, %v4934_v59 }
 0x381   :  { %v5899_v43 = vmul.f32 %v5511_v26, %v4938_v12  ;;  %v5903_v56 = vmul.f32 %v5511_v26, %v4942_v17  ;;  %v5907_v61 = vmul.f32 %v5511_v26, %v4946_v5  ;;  %v5911_v53 = vmul.f32 %v5511_v26, %v4950_v15 }
 0x382   :  { %9768 = vst [vmem:[#allocation32_spill] sm:$0xff] %v5891_v45  ;;  %9769 = vst [vmem:[#allocation29_spill] sm:$0xff] %v5895_v37  ;;  %v5915_v59 = vmul.f32 %v5511_v26, %v4954_v41  ;;  %v9775_v37 = vld [vmem:[#allocation69_spill] sm:$0xff] }
 0x383   :  { %9770 = vst [vmem:[#allocation31_spill] sm:$0xff] %v5899_v43  ;;  %9771 = vst [vmem:[#allocation34_spill] sm:$0xff] %v5903_v56  ;;  %v5919_v12 = vmul.f32 %v5511_v26, %v9775_v37  ;;  %v9777_v43 = vld [vmem:[#allocation72_spill] sm:$0xff]  ;;  %v9779_v56 = vld [vmem:[#allocation78_spill] sm:$0xff] }
 0x384   :  { %9772 = vst [vmem:[#allocation36_spill] sm:$0xff] %v5907_v61  ;;  %9773 = vst [vmem:[#allocation33_spill] sm:$0xff] %v5911_v53  ;;  %v5923_v17 = vmul.f32 %v5511_v26, %v9777_v43  ;;  %v5927_v5 = vmul.f32 %v5511_v26, %v9779_v56  ;;  %v9781_v61 = vld [vmem:[#allocation82_spill] sm:$0xff]  ;;  %v9783_v53 = vld [vmem:[#allocation77_spill] sm:$0xff] }
 0x385   :  { %9774 = vst [vmem:[#allocation35_spill] sm:$0xff] %v5915_v59  ;;  %9776 = vst [vmem:[#allocation38_spill] sm:$0xff] %v5919_v12  ;;  %v5931_v15 = vmul.f32 %v5511_v26, %v9781_v61  ;;  %v5935_v41 = vmul.f32 %v5511_v26, %v9783_v53  ;;  %v9785_v59 = vld [vmem:[#allocation80_spill] sm:$0xff]  ;;  %v9787_v12 = vld [vmem:[#allocation9_spill] sm:$0xff] }
 0x386   :  { %9778 = vst [vmem:[#allocation40_spill] sm:$0xff] %v5923_v17  ;;  %9780 = vst [vmem:[#allocation37_spill] sm:$0xff] %v5927_v5  ;;  %v5939_v37 = vmul.f32 %v5511_v26, %v9785_v59  ;;  %v5943_v43 = vmul.f32 %v5511_v26, %v9787_v12  ;;  %v9789_v17 = vld [vmem:[#allocation12_spill] sm:$0xff]  ;;  %v9791_v5 = vld [vmem:[#allocation11_spill] sm:$0xff] }
 0x387   :  { %9782 = vst [vmem:[#allocation39_spill] sm:$0xff] %v5931_v15  ;;  %9784 = vst [vmem:[#allocation42_spill] sm:$0xff] %v5935_v41  ;;  %v5947_v56 = vmul.f32 %v5511_v26, %v9789_v17  ;;  %v5951_v61 = vmul.f32 %v5511_v26, %v9791_v5  ;;  %v9793_v15 = vld [vmem:[#allocation86_spill] sm:$0xff]  ;;  %v9795_v41 = vld [vmem:[#allocation87_spill] sm:$0xff] }
 0x388   :  { %9786 = vst [vmem:[#allocation44_spill] sm:$0xff] %v5939_v37  ;;  %9788 = vst [vmem:[#allocation41_spill] sm:$0xff] %v5943_v43  ;;  %v5955_v53 = vmul.f32 %v5511_v26, %v9793_v15  ;;  %v5959_v59 = vmul.f32 %v5511_v26, %v9795_v41  ;;  %v9797_v37 = vld [vmem:[#allocation88_spill] sm:$0xff]  ;;  %v9799_v43 = vld [vmem:[#allocation89_spill] sm:$0xff] }
 0x389   :  { %9790 = vst [vmem:[#allocation43_spill] sm:$0xff] %v5947_v56  ;;  %9792 = vst [vmem:[#allocation46_spill] sm:$0xff] %v5951_v61  ;;  %v5963_v12 = vmul.f32 %v5511_v26, %v9797_v37  ;;  %v5967_v17 = vmul.f32 %v5511_v26, %v9799_v43  ;;  %v9801_v56 = vld [vmem:[#allocation90_spill] sm:$0xff]  ;;  %v9803_v61 = vld [vmem:[#allocation91_spill] sm:$0xff] }
 0x38a   :  { %9794 = vst [vmem:[#allocation48_spill] sm:$0xff] %v5955_v53  ;;  %9796 = vst [vmem:[#allocation45_spill] sm:$0xff] %v5959_v59  ;;  %v5971_v5 = vmul.f32 %v5511_v26, %v9801_v56  ;;  %v5975_v15 = vmul.f32 %v5511_v26, %v9803_v61  ;;  %v9805_v53 = vld [vmem:[#allocation92_spill] sm:$0xff]  ;;  %v9807_v59 = vld [vmem:[#allocation93_spill] sm:$0xff] }
 0x38b   :  { %9798 = vst [vmem:[#allocation47_spill] sm:$0xff] %v5963_v12  ;;  %9800 = vst [vmem:[#allocation50_spill] sm:$0xff] %v5967_v17  ;;  %v5979_v41 = vmul.f32 %v5511_v26, %v9805_v53  ;;  %v5983_v37 = vmul.f32 %v5511_v26, %v9807_v59  ;;  %v9809_v12 = vld [vmem:[#allocation94_spill] sm:$0xff]  ;;  %v9819_v45 = vld [vmem:[#allocation61_spill] sm:$0xff] }
 0x38c   :  { %9802 = vst [vmem:[#allocation52_spill] sm:$0xff] %v5971_v5  ;;  %9804 = vst [vmem:[#allocation49_spill] sm:$0xff] %v5975_v15  ;;  %v5987_v43 = vmul.f32 %v5511_v26, %v9809_v12  ;;  %v5992_v56 = vld [vmem:[%s8932_s3] ss:$0 sm:$0xff]  ;;  %v9811_v5 = vld [vmem:[#allocation95_spill] sm:$0xff] }
 0x38d   :  { %9806 = vst [vmem:[#allocation51_spill] sm:$0xff] %v5979_v41  ;;  %9808 = vst [vmem:[#allocation55_spill] sm:$0xff] %v5983_v37  ;;  %v5996_v61 = vmul.f32 %v5511_v26, %v9811_v5  ;;  %v9813_v15 = vld [vmem:[#allocation96_spill] sm:$0xff]  ;;  %v9815_v41 = vld [vmem:[#allocation97_spill] sm:$0xff]  ;;  %v6016_v5 = vmul.f32 %v5511_v26, %v9819_v45  ;;  %v6036_v45 = vadd.f32 %v5992_v56, %v5579_v50 }
 0x38e   :  { %9810 = vst [vmem:[#allocation59_spill] sm:$0xff] %v5987_v43  ;;  %v6000_v53 = vmul.f32 %v5511_v26, %v9813_v15  ;;  %v6004_v59 = vmul.f32 %v5511_v26, %v9815_v41  ;;  %v9817_v37 = vld [vmem:[#allocation53_spill] sm:$0xff]  ;;  %v9818_v43 = vld [vmem:[#allocation58_spill] sm:$0xff]  ;;  %v6056_v50 = vadd.f32 %v5992_v56, %v5599_v30  ;;  %v6076_v30 = vadd.f32 %v5992_v56, %v5619_v32 }
 0x38f   :  { %9812 = vst [vmem:[#allocation54_spill] sm:$0xff] %v5996_v61  ;;  %v6008_v12 = vmul.f32 %v5511_v26, %v9817_v37  ;;  %v6012_v17 = vmul.f32 %v5511_v26, %v9818_v43  ;;  %v9820_v61 = vld [vmem:[#allocation56_spill] sm:$0xff]  ;;  %v6032_v43 = vadd.f32 %v5992_v56, %v5575_v62  ;;  %v6052_v62 = vadd.f32 %v5992_v56, %v5595_v51 }
 0x390   :  { %9814 = vst [vmem:[#allocation57_spill] sm:$0xff] %v6000_v53  ;;  %9816 = vst [vmem:[#allocation63_spill] sm:$0xff] %v6004_v59  ;;  %v6020_v15 = vmul.f32 %v5511_v26, %v9820_v61  ;;  %v9821_v53 = vld [vmem:[#allocation60_spill] sm:$0xff]  ;;  %v9822_v59 = vld [vmem:[#allocation98_spill] sm:$0xff]  ;;  %v6040_v61 = vadd.f32 %v5992_v56, %v5583_v35  ;;  %v6060_v35 = vadd.f32 %v5992_v56, %v5603_v6  ;;  %vm2194_vm2 = vcmp.ge.f32.partialorder %v6036_v45, 0.0 }
 0x391   :  { %v6024_v41 = vmul.f32 %v5511_v26, %v9821_v53  ;;  %v6028_v37 = vmul.f32 %v5511_v26, %v9822_v59  ;;  %v6044_v53 = vadd.f32 %v5992_v56, %v5587_v4  ;;  %v6048_v26 = vadd.f32 %v5992_v56, %v5591_v39  ;;  %v9828_v59 = vld [vmem:[#allocation73_spill] sm:$0xff] }
 0x392   :  { %v6064_v4 = vadd.f32 %v5992_v56, %v5607_v16  ;;  %v6068_v39 = vadd.f32 %v5992_v56, %v5611_v55  ;;  %v6072_v51 = vadd.f32 %v5992_v56, %v5615_v25  ;;  %v6080_v6 = vadd.f32 %v5992_v56, %v5623_v2 }
 0x393   :  { %v6084_v16 = vadd.f32 %v5992_v56, %v5627_v57  ;;  %v6088_v55 = vadd.f32 %v5992_v56, %v5631_v22  ;;  %v6092_v25 = vadd.f32 %v5992_v56, %v5635_v36  ;;  %v6096_v32 = vadd.f32 %v5992_v56, %v5639_v63 }
 0x394   :  { %v6100_v2 = vadd.f32 %v5992_v56, %v5643_v9  ;;  %v6104_v57 = vadd.f32 %v5992_v56, %v5647_v60  ;;  %v6108_v22 = vadd.f32 %v5992_v56, %v5651_v44  ;;  %v6112_v36 = vadd.f32 %v5992_v56, %v5655_v19 }
 0x395   :  { %v6116_v63 = vadd.f32 %v5992_v56, %v5659_v14  ;;  %v6120_v9 = vadd.f32 %v5992_v56, %v5663_v54  ;;  %v6124_v60 = vadd.f32 %v5992_v56, %v5667_v46  ;;  %v6128_v44 = vadd.f32 %v5992_v56, %v9828_v59 }
 0x396   :  { %9823 = vst [vmem:[#allocation66_spill] sm:$0xff] %v6108_v22  ;;  %9824 = vst [vmem:[#allocation65_spill] sm:$0xff] %v6112_v36  ;;  %v9830_v22 = vld [vmem:[#allocation76_spill] sm:$0xff]  ;;  %v9832_v36 = vld [vmem:[#allocation81_spill] sm:$0xff]  ;;  %vm2193_vm1 = vcmp.ge.f32.partialorder %v6032_v43, 0.0  ;;  %vm2195_vm3 = vcmp.ge.f32.partialorder %v6040_v61, 0.0 }
 0x397   :  { %9825 = vst [vmem:[#allocation69_spill] sm:$0xff] %v6116_v63  ;;  %9826 = vst [vmem:[#allocation72_spill] sm:$0xff] %v6120_v9  ;;  %v6132_v19 = vadd.f32 %v5992_v56, %v9830_v22  ;;  %v6136_v14 = vadd.f32 %v5992_v56, %v9832_v36  ;;  %v9834_v63 = vld [vmem:[#allocation3_spill] sm:$0xff]  ;;  %v9836_v9 = vld [vmem:[#allocation5_spill] sm:$0xff]  ;;  %vm2196_vm4 = vcmp.ge.f32.partialorder %v6044_v53, 0.0  ;;  %vm2197_vm5 = vcmp.ge.f32.partialorder %v6048_v26, 0.0 }
 0x398   :  { %9827 = vst [vmem:[#allocation78_spill] sm:$0xff] %v6124_v60  ;;  %9829 = vst [vmem:[#allocation82_spill] sm:$0xff] %v6128_v44  ;;  %v6140_v54 = vadd.f32 %v5992_v56, %v9834_v63  ;;  %v6144_v46 = vadd.f32 %v5992_v56, %v9836_v9  ;;  %v9838_v60 = vld [vmem:[#allocation2_spill] sm:$0xff]  ;;  %v9840_v44 = vld [vmem:[#allocation4_spill] sm:$0xff]  ;;  %vm2198_vm6 = vcmp.ge.f32.partialorder %v6052_v62, 0.0  ;;  %vm2199_vm7 = vcmp.ge.f32.partialorder %v6056_v50, 0.0 }
 0x399   :  { %9831 = vst [vmem:[#allocation77_spill] sm:$0xff] %v6132_v19  ;;  %9833 = vst [vmem:[#allocation80_spill] sm:$0xff] %v6136_v14  ;;  %v6148_v59 = vadd.f32 %v5992_v56, %v9838_v60  ;;  %v6152_v22 = vadd.f32 %v5992_v56, %v9840_v44  ;;  %v9842_v19 = vld [vmem:[#allocation7_spill] sm:$0xff]  ;;  %v9844_v14 = vld [vmem:[#allocation10_spill] sm:$0xff]  ;;  %vm2200_vm8 = vcmp.ge.f32.partialorder %v6060_v35, 0.0  ;;  %vm2201_vm9 = vcmp.ge.f32.partialorder %v6064_v4, 0.0 }
 0x39a   :  { %9835 = vst [vmem:[#allocation9_spill] sm:$0xff] %v6140_v54  ;;  %9837 = vst [vmem:[#allocation12_spill] sm:$0xff] %v6144_v46  ;;  %v6156_v36 = vadd.f32 %v5992_v56, %v9842_v19  ;;  %v6160_v63 = vadd.f32 %v5992_v56, %v9844_v14  ;;  %v9846_v54 = vld [vmem:[#allocation6_spill] sm:$0xff]  ;;  %v9848_v46 = vld [vmem:[#allocation8_spill] sm:$0xff]  ;;  %vm2202_vm10 = vcmp.ge.f32.partialorder %v6068_v39, 0.0  ;;  %vm2203_vm11 = vcmp.ge.f32.partialorder %v6072_v51, 0.0 }
 0x39b   :  { %9839 = vst [vmem:[#allocation11_spill] sm:$0xff] %v6148_v59  ;;  %9841 = vst [vmem:[#allocation86_spill] sm:$0xff] %v6152_v22  ;;  %v6164_v9 = vadd.f32 %v5992_v56, %v9846_v54  ;;  %v6168_v60 = vadd.f32 %v5992_v56, %v9848_v46  ;;  %v9850_v59 = vld [vmem:[#allocation14_spill] sm:$0xff]  ;;  %v9852_v22 = vld [vmem:[#allocation16_spill] sm:$0xff]  ;;  %vm2204_vm12 = vcmp.ge.f32.partialorder %v6076_v30, 0.0  ;;  %vm2205_vm13 = vcmp.ge.f32.partialorder %v6080_v6, 0.0 }
 0x39c   :  { %9843 = vst [vmem:[#allocation87_spill] sm:$0xff] %v6156_v36  ;;  %9845 = vst [vmem:[#allocation88_spill] sm:$0xff] %v6160_v63  ;;  %v6172_v44 = vadd.f32 %v5992_v56, %v9850_v59  ;;  %v6176_v19 = vadd.f32 %v5992_v56, %v9852_v22  ;;  %v9854_v36 = vld [vmem:[#allocation13_spill] sm:$0xff]  ;;  %v9856_v63 = vld [vmem:[#allocation15_spill] sm:$0xff]  ;;  %vm2206_vm14 = vcmp.ge.f32.partialorder %v6084_v16, 0.0  ;;  %vm2207_vm15 = vcmp.ge.f32.partialorder %v6088_v55, 0.0 }
 0x39d   :  { %9847 = vst [vmem:[#allocation89_spill] sm:$0xff] %v6164_v9  ;;  %9849 = vst [vmem:[#allocation90_spill] sm:$0xff] %v6168_v60  ;;  %v6180_v14 = vadd.f32 %v5992_v56, %v9854_v36  ;;  %v6184_v54 = vadd.f32 %v5992_v56, %v9856_v63  ;;  %v9858_v9 = vld [vmem:[#allocation18_spill] sm:$0xff]  ;;  %v9860_v60 = vld [vmem:[#allocation20_spill] sm:$0xff]  ;;  %vm2208_vm0 = vcmp.ge.f32.partialorder %v6092_v25, 0.0 }
 0x39e   :  { %9851 = vst [vmem:[#allocation91_spill] sm:$0xff] %v6172_v44  ;;  %9853 = vst [vmem:[#allocation92_spill] sm:$0xff] %v6176_v19  ;;  %v6188_v46 = vadd.f32 %v5992_v56, %v9858_v9  ;;  %v6192_v59 = vadd.f32 %v5992_v56, %v9860_v60  ;;  %v9862_v44 = vld [vmem:[#allocation17_spill] sm:$0xff]  ;;  %v9864_v19 = vld [vmem:[#allocation19_spill] sm:$0xff] }
 0x39f   :  { %9855 = vst [vmem:[#allocation93_spill] sm:$0xff] %v6180_v14  ;;  %9857 = vst [vmem:[#allocation94_spill] sm:$0xff] %v6184_v54  ;;  %v6196_v22 = vadd.f32 %v5992_v56, %v9862_v44  ;;  %v6200_v36 = vadd.f32 %v5992_v56, %v9864_v19  ;;  %v9866_v14 = vld [vmem:[#allocation22_spill] sm:$0xff]  ;;  %v9868_v54 = vld [vmem:[#allocation24_spill] sm:$0xff] }
 0x3a0   :  { %9859 = vst [vmem:[#allocation95_spill] sm:$0xff] %v6188_v46  ;;  %9861 = vst [vmem:[#allocation96_spill] sm:$0xff] %v6192_v59  ;;  %v6204_v63 = vadd.f32 %v5992_v56, %v9866_v14  ;;  %v6208_v9 = vadd.f32 %v5992_v56, %v9868_v54  ;;  %v9870_v46 = vld [vmem:[#allocation21_spill] sm:$0xff]  ;;  %v9871_v59 = vld [vmem:[#allocation23_spill] sm:$0xff] }
 0x3a1   :  { %9863 = vst [vmem:[#allocation97_spill] sm:$0xff] %v6196_v22  ;;  %9865 = vst [vmem:[#allocation53_spill] sm:$0xff] %v6200_v36  ;;  %v6212_v60 = vadd.f32 %v5992_v56, %v9870_v46  ;;  %v6216_v44 = vadd.f32 %v5992_v56, %v9871_v59  ;;  %v9873_v22 = vld [vmem:[#allocation26_spill] sm:$0xff]  ;;  %v9874_v36 = vld [vmem:[#allocation28_spill] sm:$0xff]  ;;  %v6236_v59 = vadd.f32 %v5992_v56, %v5779_v33 }
 0x3a2   :  { %9867 = vst [vmem:[#allocation58_spill] sm:$0xff] %v6204_v63  ;;  %9869 = vst [vmem:[#allocation61_spill] sm:$0xff] %v6208_v9  ;;  %v6220_v19 = vadd.f32 %v5992_v56, %v9873_v22  ;;  %v6224_v14 = vadd.f32 %v5992_v56, %v9874_v36  ;;  %v9875_v63 = vld [vmem:[#allocation25_spill] sm:$0xff]  ;;  %v9876_v9 = vld [vmem:[#allocation27_spill] sm:$0xff]  ;;  %v6244_v36 = vadd.f32 %v5992_v56, %v5787_v28 }
 0x3a3   :  { %9872 = vst [vmem:[#allocation56_spill] sm:$0xff] %v6216_v44  ;;  %v6228_v54 = vadd.f32 %v5992_v56, %v9875_v63  ;;  %v6232_v46 = vadd.f32 %v5992_v56, %v9876_v9  ;;  %v9877_v44 = vld [vmem:[#allocation30_spill] sm:$0xff]  ;;  %v6248_v63 = vadd.f32 %v5992_v56, %v5791_v13  ;;  %v6252_v9 = vadd.f32 %v5992_v56, %v5795_v47 }
 0x3a4   :  { %v6240_v22 = vadd.f32 %v5992_v56, %v9877_v44  ;;  %v6256_v33 = vadd.f32 %v5992_v56, %v5799_v1  ;;  %v6260_v44 = vadd.f32 %v5992_v56, %v5803_v11  ;;  %v6264_v28 = vadd.f32 %v5992_v56, %v5807_v0 }
 0x3a5   :  { %v6268_v13 = vadd.f32 %v5992_v56, %v5811_v3  ;;  %v6272_v47 = vadd.f32 %v5992_v56, %v5815_v38  ;;  %v6276_v1 = vadd.f32 %v5992_v56, %v5819_v7  ;;  %v6280_v11 = vadd.f32 %v5992_v56, %v5823_v27 }
 0x3a6   :  { %v6284_v0 = vadd.f32 %v5992_v56, %v5827_v49  ;;  %v6288_v3 = vadd.f32 %v5992_v56, %v5831_v8  ;;  %v6292_v38 = vadd.f32 %v5992_v56, %v5835_v10  ;;  %v6296_v7 = vadd.f32 %v5992_v56, %v5839_v48 }
 0x3a7   :  { %v6300_v27 = vadd.f32 %v5992_v56, %v5843_v31  ;;  %v6304_v49 = vadd.f32 %v5992_v56, %v5847_v52  ;;  %v6308_v8 = vadd.f32 %v5992_v56, %v5851_v24  ;;  %v6312_v10 = vadd.f32 %v5992_v56, %v5855_v29 }
 0x3a8   :  { %9878 = vst [vmem:[#allocation60_spill] sm:$0xff] %v6296_v7  ;;  %v6316_v48 = vadd.f32 %v5992_v56, %v5859_v18  ;;  %v6320_v31 = vadd.f32 %v5992_v56, %v5863_v58  ;;  %v6324_v52 = vadd.f32 %v5992_v56, %v5867_v34  ;;  %v6328_v24 = vadd.f32 %v5992_v56, %v5871_v20 }
 0x3a9   :  { %9879 = vst [vmem:[#allocation98_spill] sm:$0xff] %v6300_v27  ;;  %9880 = vst [vmem:[#allocation73_spill] sm:$0xff] %v6304_v49  ;;  %v6332_v29 = vadd.f32 %v5992_v56, %v5875_v42  ;;  %v6336_v18 = vadd.f32 %v5992_v56, %v5879_v21  ;;  %v6340_v58 = vadd.f32 %v5992_v56, %v5883_v23 }
 0x3aa   :  { %9881 = vst [vmem:[#allocation76_spill] sm:$0xff] %v6308_v8  ;;  %9882 = vst [vmem:[#allocation81_spill] sm:$0xff] %v6312_v10  ;;  %v6344_v34 = vadd.f32 %v5992_v56, %v5887_v40  ;;  %v9996_v10 = vld [vmem:[#allocation78_spill] sm:$0xff] }
 0x3ab   :  { %9883 = vst [vmem:[#allocation3_spill] sm:$0xff] %v6316_v48  ;;  %9884 = vst [vmem:[#allocation5_spill] sm:$0xff] %v6320_v31  ;;  %v6624_v8 = vmul.f32 0.2, %v9996_v10 }
 0x3ac   :  { %9885 = vst [vmem:[#allocation2_spill] sm:$0xff] %v6324_v52  ;;  %9886 = vst [vmem:[#allocation4_spill] sm:$0xff] %v6328_v24  ;;  %v9891_v52 = vld [vmem:[#allocation32_spill] sm:$0xff]  ;;  %v9893_v24 = vld [vmem:[#allocation29_spill] sm:$0xff] }
 0x3ad   :  { %9887 = vst [vmem:[#allocation7_spill] sm:$0xff] %v6332_v29  ;;  %9888 = vst [vmem:[#allocation10_spill] sm:$0xff] %v6336_v18  ;;  %v6348_v20 = vadd.f32 %v5992_v56, %v9891_v52  ;;  %v6352_v42 = vadd.f32 %v5992_v56, %v9893_v24  ;;  %v9895_v29 = vld [vmem:[#allocation31_spill] sm:$0xff]  ;;  %v9897_v18 = vld [vmem:[#allocation34_spill] sm:$0xff] }
 0x3ae   :  { %9889 = vst [vmem:[#allocation6_spill] sm:$0xff] %v6340_v58  ;;  %9890 = vst [vmem:[#allocation8_spill] sm:$0xff] %v6344_v34  ;;  %v6356_v21 = vadd.f32 %v5992_v56, %v9895_v29  ;;  %v6360_v23 = vadd.f32 %v5992_v56, %v9897_v18  ;;  %v9899_v58 = vld [vmem:[#allocation36_spill] sm:$0xff]  ;;  %v9901_v34 = vld [vmem:[#allocation33_spill] sm:$0xff] }
 0x3af   :  { %9892 = vst [vmem:[#allocation14_spill] sm:$0xff] %v6348_v20  ;;  %9894 = vst [vmem:[#allocation16_spill] sm:$0xff] %v6352_v42  ;;  %v6364_v40 = vadd.f32 %v5992_v56, %v9899_v58  ;;  %v6368_v52 = vadd.f32 %v5992_v56, %v9901_v34  ;;  %v9903_v20 = vld [vmem:[#allocation35_spill] sm:$0xff]  ;;  %v9905_v42 = vld [vmem:[#allocation38_spill] sm:$0xff] }
 0x3b0   :  { %9896 = vst [vmem:[#allocation13_spill] sm:$0xff] %v6356_v21  ;;  %9898 = vst [vmem:[#allocation15_spill] sm:$0xff] %v6360_v23  ;;  %v6372_v24 = vadd.f32 %v5992_v56, %v9903_v20  ;;  %v6376_v29 = vadd.f32 %v5992_v56, %v9905_v42  ;;  %v9907_v21 = vld [vmem:[#allocation40_spill] sm:$0xff]  ;;  %v9909_v23 = vld [vmem:[#allocation37_spill] sm:$0xff] }
 0x3b1   :  { %9900 = vst [vmem:[#allocation18_spill] sm:$0xff] %v6364_v40  ;;  %9902 = vst [vmem:[#allocation20_spill] sm:$0xff] %v6368_v52  ;;  %v6380_v18 = vadd.f32 %v5992_v56, %v9907_v21  ;;  %v6384_v58 = vadd.f32 %v5992_v56, %v9909_v23  ;;  %v9911_v40 = vld [vmem:[#allocation39_spill] sm:$0xff]  ;;  %v9913_v52 = vld [vmem:[#allocation42_spill] sm:$0xff] }
 0x3b2   :  { %9904 = vst [vmem:[#allocation17_spill] sm:$0xff] %v6372_v24  ;;  %9906 = vst [vmem:[#allocation19_spill] sm:$0xff] %v6376_v29  ;;  %v6388_v34 = vadd.f32 %v5992_v56, %v9911_v40  ;;  %v6392_v20 = vadd.f32 %v5992_v56, %v9913_v52  ;;  %v9915_v24 = vld [vmem:[#allocation44_spill] sm:$0xff]  ;;  %v9917_v29 = vld [vmem:[#allocation41_spill] sm:$0xff] }
 0x3b3   :  { %9908 = vst [vmem:[#allocation22_spill] sm:$0xff] %v6380_v18  ;;  %9910 = vst [vmem:[#allocation24_spill] sm:$0xff] %v6384_v58  ;;  %v6396_v42 = vadd.f32 %v5992_v56, %v9915_v24  ;;  %v6400_v21 = vadd.f32 %v5992_v56, %v9917_v29  ;;  %v9919_v18 = vld [vmem:[#allocation43_spill] sm:$0xff]  ;;  %v9921_v58 = vld [vmem:[#allocation46_spill] sm:$0xff] }
 0x3b4   :  { %9912 = vst [vmem:[#allocation21_spill] sm:$0xff] %v6388_v34  ;;  %9914 = vst [vmem:[#allocation23_spill] sm:$0xff] %v6392_v20  ;;  %v6404_v23 = vadd.f32 %v5992_v56, %v9919_v18  ;;  %v6408_v40 = vadd.f32 %v5992_v56, %v9921_v58  ;;  %v9923_v34 = vld [vmem:[#allocation48_spill] sm:$0xff]  ;;  %v9925_v20 = vld [vmem:[#allocation45_spill] sm:$0xff] }
 0x3b5   :  { %9916 = vst [vmem:[#allocation26_spill] sm:$0xff] %v6396_v42  ;;  %9918 = vst [vmem:[#allocation28_spill] sm:$0xff] %v6400_v21  ;;  %v6412_v52 = vadd.f32 %v5992_v56, %v9923_v34  ;;  %v6416_v24 = vadd.f32 %v5992_v56, %v9925_v20  ;;  %v9927_v42 = vld [vmem:[#allocation47_spill] sm:$0xff]  ;;  %v9929_v21 = vld [vmem:[#allocation50_spill] sm:$0xff] }
 0x3b6   :  { %9920 = vst [vmem:[#allocation25_spill] sm:$0xff] %v6404_v23  ;;  %9922 = vst [vmem:[#allocation27_spill] sm:$0xff] %v6408_v40  ;;  %v6420_v29 = vadd.f32 %v5992_v56, %v9927_v42  ;;  %v6424_v18 = vadd.f32 %v5992_v56, %v9929_v21  ;;  %v9931_v23 = vld [vmem:[#allocation52_spill] sm:$0xff]  ;;  %v9933_v40 = vld [vmem:[#allocation49_spill] sm:$0xff] }
 0x3b7   :  { %9924 = vst [vmem:[#allocation30_spill] sm:$0xff] %v6412_v52  ;;  %9926 = vst [vmem:[#allocation32_spill] sm:$0xff] %v6416_v24  ;;  %v6428_v58 = vadd.f32 %v5992_v56, %v9931_v23  ;;  %v6432_v34 = vadd.f32 %v5992_v56, %v9933_v40  ;;  %v9935_v52 = vld [vmem:[#allocation51_spill] sm:$0xff] }
 0x3b8   :  { %9928 = vst [vmem:[#allocation29_spill] sm:$0xff] %v6420_v29  ;;  %9930 = vst [vmem:[#allocation31_spill] sm:$0xff] %v6424_v18  ;;  %v6436_v20 = vadd.f32 %v5992_v56, %v9935_v52  ;;  %v9937_v24 = vld [vmem:[#allocation55_spill] sm:$0xff]  ;;  %v9941_v18 = vld [vmem:[#allocation54_spill] sm:$0xff] }
 0x3b9   :  { %9932 = vst [vmem:[#allocation34_spill] sm:$0xff] %v6428_v58  ;;  %9934 = vst [vmem:[#allocation36_spill] sm:$0xff] %v6432_v34  ;;  %v6440_v42 = vadd.f32 %v5992_v56, %v9937_v24  ;;  %v9939_v29 = vld [vmem:[#allocation59_spill] sm:$0xff]  ;;  %v6448_v23 = vadd.f32 %v5992_v56, %v9941_v18  ;;  %v9943_v58 = vld [vmem:[#allocation57_spill] sm:$0xff]  ;;  %v6460_v24 = vadd.f32 %v5992_v56, %v6008_v12 }
 0x3ba   :  { %9936 = vst [vmem:[#allocation33_spill] sm:$0xff] %v6436_v20  ;;  %v6444_v21 = vadd.f32 %v5992_v56, %v9939_v29  ;;  %v6452_v40 = vadd.f32 %v5992_v56, %v9943_v58  ;;  %v9945_v34 = vld [vmem:[#allocation63_spill] sm:$0xff]  ;;  %v6464_v29 = vadd.f32 %v5992_v56, %v6012_v17  ;;  %v6468_v18 = vadd.f32 %v5992_v56, %v6016_v5 }
 0x3bb   :  { %9938 = vst [vmem:[#allocation35_spill] sm:$0xff] %v6440_v42  ;;  %9942 = vst [vmem:[#allocation40_spill] sm:$0xff] %v6448_v23  ;;  %v6456_v52 = vadd.f32 %v5992_v56, %v9945_v34  ;;  %v6472_v58 = vadd.f32 %v5992_v56, %v6020_v15  ;;  %v6476_v34 = vadd.f32 %v5992_v56, %v6024_v41  ;;  %v2333_v23 = vmul.f32 0.2, %v6080_v6  ;;  %v9989_v42 = vld [vmem:[#allocation65_spill] sm:$0xff] }
 0x3bc   :  { %9940 = vst [vmem:[#allocation38_spill] sm:$0xff] %v6444_v21  ;;  %9944 = vst [vmem:[#allocation37_spill] sm:$0xff] %v6452_v40  ;;  %v6480_v12 = vadd.f32 %v5992_v56, %v6028_v37  ;;  %v6588_v21 = vmul.f32 0.2, %v6092_v25  ;;  %v6609_v20 = vmul.f32 0.2, %v9989_v42 }
 0x3bd   :  { %9946 = vst [vmem:[#allocation39_spill] sm:$0xff] %v6456_v52  ;;  %9947 = vst [vmem:[#allocation42_spill] sm:$0xff] %v6460_v24  ;;  %v9953_v24 = vld [vmem:[#allocation62_spill] sm:$0xff]  ;;  %v2332_v52 = vmul.f32 0.2, %v6076_v30 }
 0x3be   :  { %9948 = vst [vmem:[#allocation44_spill] sm:$0xff] %v6464_v29  ;;  %9949 = vst [vmem:[#allocation41_spill] sm:$0xff] %v6468_v18  ;;  %v6484_v17 = vadd.f32 %v5992_v56, %v9953_v24  ;;  %v9955_v29 = vld [vmem:[#allocation70_spill] sm:$0xff] }
 0x3bf   :  { %9950 = vst [vmem:[#allocation43_spill] sm:$0xff] %v6472_v58  ;;  %9951 = vst [vmem:[#allocation46_spill] sm:$0xff] %v6476_v34  ;;  %v6488_v5 = vadd.f32 %v5992_v56, %v9955_v29  ;;  %v9957_v18 = vld [vmem:[#allocation74_spill] sm:$0xff]  ;;  %v9959_v58 = vld [vmem:[#allocation68_spill] sm:$0xff] }
 0x3c0   :  { %9952 = vst [vmem:[#allocation48_spill] sm:$0xff] %v6480_v12  ;;  %9954 = vst [vmem:[#allocation45_spill] sm:$0xff] %v6484_v17  ;;  %v6492_v15 = vadd.f32 %v5992_v56, %v9957_v18  ;;  %v6496_v41 = vadd.f32 %v5992_v56, %v9959_v58  ;;  %v9961_v34 = vld [vmem:[#allocation64_spill] sm:$0xff]  ;;  %v9963_v12 = vld [vmem:[#allocation67_spill] sm:$0xff] }
 0x3c1   :  { %9956 = vst [vmem:[#allocation47_spill] sm:$0xff] %v6488_v5  ;;  %v6500_v37 = vadd.f32 %v5992_v56, %v9961_v34  ;;  %v6504_v24 = vadd.f32 %v5992_v56, %v9963_v12  ;;  %v9965_v17 = vld [vmem:[#allocation99_spill] sm:$0xff] }
 0x3c2   :  { %9958 = vst [vmem:[#allocation50_spill] sm:$0xff] %v6492_v15  ;;  %9960 = vst [vmem:[#allocation52_spill] sm:$0xff] %v6496_v41  ;;  %v6508_v29 = vadd.f32 %v5992_v56, %v9965_v17  ;;  %v9967_v5 = vld [vmem:[#allocation71_spill] sm:$0xff]  ;;  %v9971_v41 = vld [vmem:[#allocation84_spill] sm:$0xff] }
 0x3c3   :  { %9962 = vst [vmem:[#allocation49_spill] sm:$0xff] %v6500_v37  ;;  %9964 = vst [vmem:[#allocation51_spill] sm:$0xff] %v6504_v24  ;;  %v6512_v18 = vadd.f32 %v5992_v56, %v9967_v5  ;;  %v9969_v15 = vld [vmem:[#allocation75_spill] sm:$0xff]  ;;  %v6520_v34 = vadd.f32 %v5992_v56, %v9971_v41 }
 0x3c4   :  { %9966 = vst [vmem:[#allocation55_spill] sm:$0xff] %v6508_v29  ;;  %v6516_v58 = vadd.f32 %v5992_v56, %v9969_v15  ;;  %v9973_v37 = vld [vmem:[#allocation79_spill] sm:$0xff]  ;;  %v9977_v29 = vld [vmem:[#allocation85_spill] sm:$0xff]  ;;  %v9979_v15 = vld [vmem:[#allocation100_spill] sm:$0xff] }
 0x3c5   :  { %9968 = vst [vmem:[#allocation59_spill] sm:$0xff] %v6512_v18  ;;  %9972 = vst [vmem:[#allocation57_spill] sm:$0xff] %v6520_v34  ;;  %v6524_v12 = vadd.f32 %v5992_v56, %v9973_v37  ;;  %v9975_v24 = vld [vmem:[#allocation83_spill] sm:$0xff]  ;;  %v6532_v5 = vadd.f32 %v5992_v56, %v9977_v29  ;;  %v6545_v41 = vadd.f32 %v5992_v56, %v9979_v15  ;;  %v2321_v37 = vmul.f32 0.2, %v6032_v43 }
 0x3c6   :  { %9970 = vst [vmem:[#allocation54_spill] sm:$0xff] %v6516_v58  ;;  %v6528_v17 = vadd.f32 %v5992_v56, %v9975_v24  ;;  %v2322_v24 = vmul.f32 0.2, %v6036_v45  ;;  %v2323_v29 = vmul.f32 0.2, %v6040_v61  ;;  %9990 = vst [vmem:[#allocation84_spill] sm:$0xff] %v6609_v20 }
 0x3c7   :  { %9974 = vst [vmem:[#allocation63_spill] sm:$0xff] %v6524_v12  ;;  %9978 = vst [vmem:[#allocation70_spill] sm:$0xff] %v6532_v5  ;;  %v9981_v5 = vld [vmem:[#allocation101_spill] sm:$0xff]  ;;  %v2324_v12 = vmul.f32 0.2, %v6044_v53 }
 0x3c8   :  { %9976 = vst [vmem:[#allocation62_spill] sm:$0xff] %v6528_v17  ;;  %9980 = vst [vmem:[#allocation74_spill] sm:$0xff] %v6545_v41  ;;  %v6553_v17 = vadd.f32 %v5992_v56, %v9981_v5  ;;  %v2325_v34 = vmul.f32 0.2, %v6048_v26  ;;  %v2326_v15 = vmul.f32 0.2, %v6052_v62  ;;  %v6566_v56 = vsel %vm2193_vm1, %v6032_v43, %v2321_v37 }
 0x3c9   :  { %v2327_v41 = vmul.f32 0.2, %v6056_v50  ;;  %v2328_v58 = vmul.f32 0.2, %v6060_v35  ;;  %v2329_v18 = vmul.f32 0.2, %v6064_v4  ;;  %v6575_v40 = vsel %vm2194_vm2, %v6036_v45, %v2322_v24 }
 0x3ca   :  { %9982 = vst [vmem:[#allocation68_spill] sm:$0xff] %v6553_v17  ;;  %9983 = vst [vmem:[#allocation64_spill] sm:$0xff] %v6566_v56  ;;  %v2330_v5 = vmul.f32 0.2, %v6068_v39  ;;  %v2331_v17 = vmul.f32 0.2, %v6072_v51  ;;  %v6584_v56 = vsel %vm2195_vm3, %v6040_v61, %v2323_v29  ;;  %v6614_v31 = vsel %vm2197_vm5, %v6048_v26, %v2325_v34 }
 0x3cb   :  { %9984 = vst [vmem:[#allocation67_spill] sm:$0xff] %v6575_v40  ;;  %v2334_v43 = vmul.f32 0.2, %v6084_v16  ;;  %v2335_v37 = vmul.f32 0.2, %v6088_v55  ;;  %9985 = vst [vmem:[#allocation99_spill] sm:$0xff] %v6584_v56  ;;  %v6599_v40 = vsel %vm2196_vm4, %v6044_v53, %v2324_v12  ;;  %v6629_v20 = vsel %vm2198_vm6, %v6052_v62, %v2326_v15 }
 0x3cc   :  { %v6591_v45 = vmul.f32 0.2, %v6096_v32  ;;  %v6594_v24 = vmul.f32 0.2, %v6100_v2  ;;  %9986 = vst [vmem:[#allocation71_spill] sm:$0xff] %v6599_v40  ;;  %v9987_v29 = vld [vmem:[#allocation66_spill] sm:$0xff] }
 0x3cd   :  { %v6603_v61 = vmul.f32 0.2, %v6104_v57  ;;  %v6606_v56 = vmul.f32 0.2, %v9987_v29  ;;  %9991 = vst [vmem:[#allocation79_spill] sm:$0xff] %v6614_v31  ;;  %vm2209_vm1 = vcmp.ge.f32.partialorder %v6096_v32, 0.0 }
 0x3ce   :  { %v9992_v53 = vld [vmem:[#allocation69_spill] sm:$0xff]  ;;  %v9994_v40 = vld [vmem:[#allocation72_spill] sm:$0xff]  ;;  %9997 = vst [vmem:[#allocation100_spill] sm:$0xff] %v6624_v8  ;;  %9998 = vst [vmem:[#allocation101_spill] sm:$0xff] %v6629_v20  ;;  %vm2210_vm2 = vcmp.ge.f32.partialorder %v6100_v2, 0.0  ;;  %v6644_v8 = vsel %vm2199_vm7, %v6056_v50, %v2327_v41  ;;  %vm2211_vm3 = vcmp.ge.f32.partialorder %v6104_v57, 0.0 }
 0x3cf   :  { %9988 = vst [vmem:[#allocation75_spill] sm:$0xff] %v6606_v56  ;;  %v6618_v12 = vmul.f32 0.2, %v9992_v53  ;;  %v6621_v48 = vmul.f32 0.2, %v9994_v40  ;;  %v9999_v26 = vld [vmem:[#allocation82_spill] sm:$0xff] }
 0x3d0   :  { %v6633_v34 = vmul.f32 0.2, %v9999_v26  ;;  %v10001_v31 = vld [vmem:[#allocation77_spill] sm:$0xff]  ;;  %10005 = vst [vmem:[#allocation78_spill] sm:$0xff] %v6644_v8  ;;  %v10008_v20 = vld [vmem:[#allocation12_spill] sm:$0xff]  ;;  %vm2212_vm4 = vcmp.ge.f32.partialorder %v9987_v29, 0.0 }
 0x3d1   :  { %9993 = vst [vmem:[#allocation83_spill] sm:$0xff] %v6618_v12  ;;  %9995 = vst [vmem:[#allocation85_spill] sm:$0xff] %v6621_v48  ;;  %v6636_v49 = vmul.f32 0.2, %v10001_v31  ;;  %v10003_v12 = vld [vmem:[#allocation80_spill] sm:$0xff]  ;;  %v10006_v62 = vld [vmem:[#allocation9_spill] sm:$0xff] }
 0x3d2   :  { %10000 = vst [vmem:[#allocation65_spill] sm:$0xff] %v6633_v34  ;;  %v6639_v27 = vmul.f32 0.2, %v10003_v12  ;;  %v6648_v15 = vmul.f32 0.2, %v10006_v62  ;;  %v10010_v34 = vld [vmem:[#allocation11_spill] sm:$0xff] }
 0x3d3   :  { %10002 = vst [vmem:[#allocation69_spill] sm:$0xff] %v6636_v49  ;;  %v6651_v48 = vmul.f32 0.2, %v10008_v20  ;;  %v6654_v7 = vmul.f32 0.2, %v10010_v34  ;;  %v10013_v50 = vld [vmem:[#allocation86_spill] sm:$0xff] }
 0x3d4   :  { %10004 = vst [vmem:[#allocation72_spill] sm:$0xff] %v6639_v27  ;;  %10007 = vst [vmem:[#allocation82_spill] sm:$0xff] %v6648_v15  ;;  %v6659_v27 = vsel %vm2200_vm8, %v6060_v35, %v2328_v58  ;;  %v6663_v41 = vmul.f32 0.2, %v10013_v50  ;;  %v10015_v8 = vld [vmem:[#allocation87_spill] sm:$0xff]  ;;  %v10017_v15 = vld [vmem:[#allocation88_spill] sm:$0xff] }
 0x3d5   :  { %10009 = vst [vmem:[#allocation77_spill] sm:$0xff] %v6651_v48  ;;  %10011 = vst [vmem:[#allocation80_spill] sm:$0xff] %v6654_v7  ;;  %v6666_v49 = vmul.f32 0.2, %v10015_v8  ;;  %v6669_v56 = vmul.f32 0.2, %v10017_v15  ;;  %v6674_v7 = vsel %vm2201_vm9, %v6064_v4, %v2329_v18 }
 0x3d6   :  { %10012 = vst [vmem:[#allocation9_spill] sm:$0xff] %v6659_v27  ;;  %10014 = vst [vmem:[#allocation12_spill] sm:$0xff] %v6663_v41  ;;  %vm2213_vm5 = vcmp.ge.f32.partialorder %v9989_v42, 0.0  ;;  %v10020_v35 = vld [vmem:[#allocation89_spill] sm:$0xff]  ;;  %v10022_v27 = vld [vmem:[#allocation90_spill] sm:$0xff]  ;;  %vm2214_vm6 = vcmp.ge.f32.partialorder %v9992_v53, 0.0 }
 0x3d7   :  { %10016 = vst [vmem:[#allocation11_spill] sm:$0xff] %v6666_v49  ;;  %10018 = vst [vmem:[#allocation86_spill] sm:$0xff] %v6669_v56  ;;  %v6678_v58 = vmul.f32 0.2, %v10020_v35  ;;  %v6681_v48 = vmul.f32 0.2, %v10022_v27  ;;  %v6689_v56 = vsel %vm2202_vm10, %v6068_v39, %v2330_v5 }
 0x3d8   :  { %10019 = vst [vmem:[#allocation87_spill] sm:$0xff] %v6674_v7  ;;  %v10024_v41 = vld [vmem:[#allocation91_spill] sm:$0xff]  ;;  %10026 = vst [vmem:[#allocation102_spill] sm:$0xff] %v6689_v56  ;;  %v10027_v4 = vld [vmem:[#allocation92_spill] sm:$0xff]  ;;  %vm2215_vm7 = vcmp.ge.f32.partialorder %v9994_v40, 0.0  ;;  %vm2216_vm8 = vcmp.ge.f32.partialorder %v9996_v10, 0.0 }
 0x3d9   :  { %10021 = vst [vmem:[#allocation88_spill] sm:$0xff] %v6678_v58  ;;  %10023 = vst [vmem:[#allocation90_spill] sm:$0xff] %v6681_v48  ;;  %v6684_v29 = vmul.f32 0.2, %v10024_v41  ;;  %v6693_v18 = vmul.f32 0.2, %v10027_v4 }
 0x3da   :  { %v10029_v7 = vld [vmem:[#allocation93_spill] sm:$0xff]  ;;  %v10031_v58 = vld [vmem:[#allocation94_spill] sm:$0xff]  ;;  %v10034_v39 = vld [vmem:[#allocation95_spill] sm:$0xff]  ;;  %vm2217_vm9 = vcmp.ge.f32.partialorder %v9999_v26, 0.0  ;;  %vm2218_vm10 = vcmp.ge.f32.partialorder %v10001_v31, 0.0 }
 0x3db   :  { %10025 = vst [vmem:[#allocation91_spill] sm:$0xff] %v6684_v29  ;;  %10028 = vst [vmem:[#allocation103_spill] sm:$0xff] %v6693_v18  ;;  %v6696_v49 = vmul.f32 0.2, %v10029_v7  ;;  %v6699_v35 = vmul.f32 0.2, %v10031_v58  ;;  %v6704_v29 = vsel %vm2203_vm11, %v6072_v51, %v2331_v17 }
 0x3dc   :  { %10033 = vst [vmem:[#allocation104_spill] sm:$0xff] %v6704_v29  ;;  %v6708_v5 = vmul.f32 0.2, %v10034_v39  ;;  %v10036_v56 = vld [vmem:[#allocation96_spill] sm:$0xff]  ;;  %v10038_v18 = vld [vmem:[#allocation97_spill] sm:$0xff]  ;;  %v10043_v29 = vld [vmem:[#allocation58_spill] sm:$0xff] }
 0x3dd   :  { %10030 = vst [vmem:[#allocation93_spill] sm:$0xff] %v6696_v49  ;;  %10032 = vst [vmem:[#allocation94_spill] sm:$0xff] %v6699_v35  ;;  %v6711_v48 = vmul.f32 0.2, %v10036_v56  ;;  %v6714_v4 = vmul.f32 0.2, %v10038_v18  ;;  %v6719_v35 = vsel %vm2204_vm12, %v6076_v30, %v2332_v52 }
 0x3de   :  { %10035 = vst [vmem:[#allocation105_spill] sm:$0xff] %v6708_v5  ;;  %10040 = vst [vmem:[#allocation106_spill] sm:$0xff] %v6719_v35  ;;  %v10041_v51 = vld [vmem:[#allocation53_spill] sm:$0xff]  ;;  %v6726_v49 = vmul.f32 0.2, %v10043_v29  ;;  %v10049_v52 = vld [vmem:[#allocation56_spill] sm:$0xff] }
 0x3df   :  { %10037 = vst [vmem:[#allocation96_spill] sm:$0xff] %v6711_v48  ;;  %10039 = vst [vmem:[#allocation97_spill] sm:$0xff] %v6714_v4  ;;  %v6723_v17 = vmul.f32 0.2, %v10041_v51  ;;  %v10045_v5 = vld [vmem:[#allocation61_spill] sm:$0xff]  ;;  %v6734_v4 = vsel %vm2205_vm13, %v6080_v6, %v2333_v23  ;;  %vm2219_vm11 = vcmp.ge.f32.partialorder %v10003_v12, 0.0 }
 0x3e0   :  { %10044 = vst [vmem:[#allocation58_spill] sm:$0xff] %v6726_v49  ;;  %v6729_v39 = vmul.f32 0.2, %v10045_v5  ;;  %10047 = vst [vmem:[#allocation107_spill] sm:$0xff] %v6734_v4  ;;  %v6738_v30 = vmul.f32 0.2, %v6212_v60 }
 0x3e1   :  { %10042 = vst [vmem:[#allocation53_spill] sm:$0xff] %v6723_v17  ;;  %v6741_v35 = vmul.f32 0.2, %v10049_v52  ;;  %v6744_v17 = vmul.f32 0.2, %v6220_v19  ;;  %vm2220_vm12 = vcmp.ge.f32.partialorder %v10006_v62, 0.0 }
 0x3e2   :  { %10046 = vst [vmem:[#allocation61_spill] sm:$0xff] %v6729_v39  ;;  %10048 = vst [vmem:[#allocation108_spill] sm:$0xff] %v6738_v30  ;;  %v6749_v39 = vsel %vm2206_vm14, %v6084_v16, %v2334_v43  ;;  %v6753_v6 = vmul.f32 0.2, %v6224_v14  ;;  %v6756_v23 = vmul.f32 0.2, %v6228_v54 }
 0x3e3   :  { %10050 = vst [vmem:[#allocation56_spill] sm:$0xff] %v6741_v35  ;;  %10051 = vst [vmem:[#allocation109_spill] sm:$0xff] %v6744_v17  ;;  %v6759_v4 = vmul.f32 0.2, %v6232_v46  ;;  %v6764_v17 = vsel %vm2207_vm15, %v6088_v55, %v2335_v37  ;;  %v6768_v16 = vmul.f32 0.2, %v6236_v59 }
 0x3e4   :  { %10052 = vst [vmem:[#allocation110_spill] sm:$0xff] %v6749_v39  ;;  %10053 = vst [vmem:[#allocation111_spill] sm:$0xff] %v6753_v6  ;;  %v6771_v43 = vmul.f32 0.2, %v6240_v22  ;;  %v6774_v39 = vmul.f32 0.2, %v6244_v36 }
 0x3e5   :  { %10054 = vst [vmem:[#allocation112_spill] sm:$0xff] %v6756_v23  ;;  %10055 = vst [vmem:[#allocation113_spill] sm:$0xff] %v6759_v4  ;;  %v6780_v4 = vsel %vm2208_vm0, %v6092_v25, %v6588_v21  ;;  %v6784_v55 = vmul.f32 0.2, %v6248_v63  ;;  %v6787_v37 = vmul.f32 0.2, %v6252_v9 }
 0x3e6   :  { %10056 = vst [vmem:[#allocation114_spill] sm:$0xff] %v6764_v17  ;;  %10057 = vst [vmem:[#allocation115_spill] sm:$0xff] %v6768_v16  ;;  %v6790_v17 = vmul.f32 0.2, %v6256_v33  ;;  %vm2221_vm13 = vcmp.ge.f32.partialorder %v10008_v20, 0.0  ;;  %vm2222_vm14 = vcmp.ge.f32.partialorder %v10010_v34, 0.0 }
 0x3e7   :  { %10058 = vst [vmem:[#allocation116_spill] sm:$0xff] %v6771_v43  ;;  %10059 = vst [vmem:[#allocation117_spill] sm:$0xff] %v6774_v39  ;;  %v6796_v39 = vsel %vm2209_vm1, %v6096_v32, %v6591_v45  ;;  %v6800_v25 = vmul.f32 0.2, %v6260_v44  ;;  %v6803_v21 = vmul.f32 0.2, %v6264_v28 }
 0x3e8   :  { %10060 = vst [vmem:[#allocation118_spill] sm:$0xff] %v6780_v4  ;;  %10061 = vst [vmem:[#allocation119_spill] sm:$0xff] %v6784_v55  ;;  %v6806_v4 = vmul.f32 0.2, %v6268_v13  ;;  %v6816_v32 = vmul.f32 0.2, %v6272_v47 }
 0x3e9   :  { %10062 = vst [vmem:[#allocation120_spill] sm:$0xff] %v6787_v37  ;;  %10063 = vst [vmem:[#allocation121_spill] sm:$0xff] %v6790_v17  ;;  %v6812_v17 = vsel %vm2210_vm2, %v6100_v2, %v6594_v24  ;;  %v6819_v45 = vmul.f32 0.2, %v6276_v1  ;;  %vm2223_vm15 = vcmp.ge.f32.partialorder %v10013_v50, 0.0  ;;  %vm2224_vm0 = vcmp.ge.f32.partialorder %v10015_v8, 0.0 }
 0x3ea   :  { %10064 = vst [vmem:[#allocation122_spill] sm:$0xff] %v6796_v39  ;;  %10065 = vst [vmem:[#allocation123_spill] sm:$0xff] %v6800_v25  ;;  %v6822_v39 = vmul.f32 0.2, %v6280_v11  ;;  %v6832_v2 = vmul.f32 0.2, %v6284_v0 }
 0x3eb   :  { %10066 = vst [vmem:[#allocation124_spill] sm:$0xff] %v6803_v21  ;;  %10067 = vst [vmem:[#allocation125_spill] sm:$0xff] %v6806_v4  ;;  %v6828_v4 = vsel %vm2211_vm3, %v6104_v57, %v6603_v61  ;;  %v6835_v24 = vmul.f32 0.2, %v6288_v3  ;;  %v10079_v57 = vld [vmem:[#allocation60_spill] sm:$0xff]  ;;  %vm2225_vm1 = vcmp.ge.f32.partialorder %v10017_v15, 0.0 }
 0x3ec   :  { %10068 = vst [vmem:[#allocation126_spill] sm:$0xff] %v6812_v17  ;;  %10069 = vst [vmem:[#allocation127_spill] sm:$0xff] %v6816_v32  ;;  %v6838_v17 = vmul.f32 0.2, %v6292_v38  ;;  %v10077_v32 = vld [vmem:[#allocation66_spill] sm:$0xff]  ;;  %v10095_v43 = vld [vmem:[#allocation89_spill] sm:$0xff] }
 0x3ed   :  { %10070 = vst [vmem:[#allocation128_spill] sm:$0xff] %v6819_v45  ;;  %10071 = vst [vmem:[#allocation129_spill] sm:$0xff] %v6822_v39  ;;  %v10076_v45 = vld [vmem:[#allocation75_spill] sm:$0xff]  ;;  %v6848_v61 = vmul.f32 0.2, %v10079_v57  ;;  %vm2226_vm2 = vcmp.ge.f32.partialorder %v10095_v43, 0.0 }
 0x3ee   :  { %10072 = vst [vmem:[#allocation130_spill] sm:$0xff] %v6828_v4  ;;  %10073 = vst [vmem:[#allocation131_spill] sm:$0xff] %v6832_v2  ;;  %v6844_v39 = vsel %vm2212_vm4, %v10077_v32, %v10076_v45  ;;  %v10081_v4 = vld [vmem:[#allocation98_spill] sm:$0xff]  ;;  %v10083_v2 = vld [vmem:[#allocation73_spill] sm:$0xff]  ;;  %vm2227_vm3 = vcmp.ge.f32.partialorder %v10022_v27, 0.0  ;;  %vm2228_vm4 = vcmp.ge.f32.partialorder %v10024_v41, 0.0 }
 0x3ef   :  { %10074 = vst [vmem:[#allocation132_spill] sm:$0xff] %v6835_v24  ;;  %10075 = vst [vmem:[#allocation133_spill] sm:$0xff] %v6838_v17  ;;  %v6851_v21 = vmul.f32 0.2, %v10081_v4  ;;  %v6854_v25 = vmul.f32 0.2, %v10083_v2 }
 0x3f0   :  { %10078 = vst [vmem:[#allocation75_spill] sm:$0xff] %v6844_v39  ;;  %10080 = vst [vmem:[#allocation66_spill] sm:$0xff] %v6848_v61  ;;  %v10085_v24 = vld [vmem:[#allocation84_spill] sm:$0xff]  ;;  %v10089_v39 = vld [vmem:[#allocation81_spill] sm:$0xff] }
 0x3f1   :  { %10082 = vst [vmem:[#allocation60_spill] sm:$0xff] %v6851_v21  ;;  %10084 = vst [vmem:[#allocation98_spill] sm:$0xff] %v6854_v25  ;;  %v6860_v17 = vsel %vm2213_vm5, %v9989_v42, %v10085_v24  ;;  %v10087_v32 = vld [vmem:[#allocation76_spill] sm:$0xff]  ;;  %v6867_v37 = vmul.f32 0.2, %v10089_v39  ;;  %v10091_v61 = vld [vmem:[#allocation3_spill] sm:$0xff] }
 0x3f2   :  { %10086 = vst [vmem:[#allocation73_spill] sm:$0xff] %v6860_v17  ;;  %v6864_v45 = vmul.f32 0.2, %v10087_v32  ;;  %v6870_v55 = vmul.f32 0.2, %v10091_v61  ;;  %v10093_v21 = vld [vmem:[#allocation83_spill] sm:$0xff] }
 0x3f3   :  { %10090 = vst [vmem:[#allocation76_spill] sm:$0xff] %v6867_v37  ;;  %v6876_v25 = vsel %vm2214_vm6, %v9992_v53, %v10093_v21  ;;  %v10096_v42 = vld [vmem:[#allocation5_spill] sm:$0xff]  ;;  %v10098_v17 = vld [vmem:[#allocation2_spill] sm:$0xff]  ;;  %v10104_v53 = vld [vmem:[#allocation7_spill] sm:$0xff]  ;;  %vm2230_vm6 = vcmp.ge.f32.partialorder %v10029_v7, 0.0 }
 0x3f4   :  { %10088 = vst [vmem:[#allocation84_spill] sm:$0xff] %v6864_v45  ;;  %10092 = vst [vmem:[#allocation81_spill] sm:$0xff] %v6870_v55  ;;  %v6880_v24 = vmul.f32 0.2, %v10096_v42  ;;  %v6883_v16 = vmul.f32 0.2, %v10098_v17 }
 0x3f5   :  { %10094 = vst [vmem:[#allocation3_spill] sm:$0xff] %v6876_v25  ;;  %v10100_v45 = vld [vmem:[#allocation4_spill] sm:$0xff]  ;;  %v10102_v37 = vld [vmem:[#allocation85_spill] sm:$0xff]  ;;  %v6896_v21 = vmul.f32 0.2, %v10104_v53  ;;  %v10106_v25 = vld [vmem:[#allocation10_spill] sm:$0xff] }
 0x3f6   :  { %10097 = vst [vmem:[#allocation83_spill] sm:$0xff] %v6880_v24  ;;  %10099 = vst [vmem:[#allocation89_spill] sm:$0xff] %v6883_v16  ;;  %v6886_v23 = vmul.f32 0.2, %v10100_v45  ;;  %v6892_v55 = vsel %vm2215_vm7, %v9994_v40, %v10102_v37  ;;  %v6899_v6 = vmul.f32 0.2, %v10106_v25 }
 0x3f7   :  { %10103 = vst [vmem:[#allocation2_spill] sm:$0xff] %v6892_v55  ;;  %10105 = vst [vmem:[#allocation85_spill] sm:$0xff] %v6896_v21  ;;  %v10108_v24 = vld [vmem:[#allocation6_spill] sm:$0xff]  ;;  %v10110_v16 = vld [vmem:[#allocation100_spill] sm:$0xff]  ;;  %vm2231_vm7 = vcmp.ge.f32.partialorder %v10031_v58, 0.0 }
 0x3f8   :  { %10101 = vst [vmem:[#allocation5_spill] sm:$0xff] %v6886_v23  ;;  %10107 = vst [vmem:[#allocation134_spill] sm:$0xff] %v6899_v6  ;;  %v6902_v35 = vmul.f32 0.2, %v10108_v24  ;;  %v6908_v23 = vsel %vm2216_vm8, %v9996_v10, %v10110_v16  ;;  %v10112_v40 = vld [vmem:[#allocation8_spill] sm:$0xff]  ;;  %v10114_v55 = vld [vmem:[#allocation14_spill] sm:$0xff] }
 0x3f9   :  { %10111 = vst [vmem:[#allocation100_spill] sm:$0xff] %v6908_v23  ;;  %v6912_v37 = vmul.f32 0.2, %v10112_v40  ;;  %v6915_v30 = vmul.f32 0.2, %v10114_v55  ;;  %v10116_v21 = vld [vmem:[#allocation16_spill] sm:$0xff] }
 0x3fa   :  { %10109 = vst [vmem:[#allocation135_spill] sm:$0xff] %v6902_v35  ;;  %v6918_v49 = vmul.f32 0.2, %v10116_v21  ;;  %v10118_v6 = vld [vmem:[#allocation65_spill] sm:$0xff]  ;;  %v10120_v48 = vld [vmem:[#allocation92_spill] sm:$0xff]  ;;  %v10123_v23 = vld [vmem:[#allocation15_spill] sm:$0xff] }
 0x3fb   :  { %10113 = vst [vmem:[#allocation136_spill] sm:$0xff] %v6912_v37  ;;  %10115 = vst [vmem:[#allocation137_spill] sm:$0xff] %v6915_v30  ;;  %v6924_v35 = vsel %vm2217_vm9, %v9999_v26, %v10118_v6  ;;  %vm2229_vm5 = vcmp.ge.f32.partialorder %v10120_v48, 0.0  ;;  %v10121_v10 = vld [vmem:[#allocation13_spill] sm:$0xff]  ;;  %v6931_v40 = vmul.f32 0.2, %v10123_v23 }
 0x3fc   :  { %10117 = vst [vmem:[#allocation138_spill] sm:$0xff] %v6918_v49  ;;  %10119 = vst [vmem:[#allocation65_spill] sm:$0xff] %v6924_v35  ;;  %v6928_v16 = vmul.f32 0.2, %v10121_v10  ;;  %v10125_v37 = vld [vmem:[#allocation18_spill] sm:$0xff]  ;;  %v10127_v30 = vld [vmem:[#allocation69_spill] sm:$0xff] }
 0x3fd   :  { %10124 = vst [vmem:[#allocation139_spill] sm:$0xff] %v6931_v40  ;;  %v6934_v55 = vmul.f32 0.2, %v10125_v37  ;;  %v6940_v49 = vsel %vm2218_vm10, %v10001_v31, %v10127_v30  ;;  %v10129_v26 = vld [vmem:[#allocation20_spill] sm:$0xff]  ;;  %v10131_v35 = vld [vmem:[#allocation17_spill] sm:$0xff]  ;;  %v10137_v31 = vld [vmem:[#allocation22_spill] sm:$0xff] }
 0x3fe   :  { %10122 = vst [vmem:[#allocation92_spill] sm:$0xff] %v6928_v16  ;;  %10128 = vst [vmem:[#allocation69_spill] sm:$0xff] %v6940_v49  ;;  %v6944_v6 = vmul.f32 0.2, %v10129_v26  ;;  %v6947_v10 = vmul.f32 0.2, %v10131_v35 }
 0x3ff   :  { %10126 = vst [vmem:[#allocation18_spill] sm:$0xff] %v6934_v55  ;;  %v10133_v16 = vld [vmem:[#allocation19_spill] sm:$0xff]  ;;  %v10135_v40 = vld [vmem:[#allocation72_spill] sm:$0xff]  ;;  %v6960_v30 = vmul.f32 0.2, %v10137_v31  ;;  %vm2233_vm9 = vcmp.ge.f32.partialorder %v10036_v56, 0.0 }
 0x400   :  { %10130 = vst [vmem:[#allocation140_spill] sm:$0xff] %v6944_v6  ;;  %10132 = vst [vmem:[#allocation141_spill] sm:$0xff] %v6947_v10  ;;  %v6950_v23 = vmul.f32 0.2, %v10133_v16  ;;  %v6956_v55 = vsel %vm2219_vm11, %v10003_v12, %v10135_v40  ;;  %v10139_v49 = vld [vmem:[#allocation24_spill] sm:$0xff]  ;;  %v10141_v6 = vld [vmem:[#allocation21_spill] sm:$0xff] }
 0x401   :  { %10136 = vst [vmem:[#allocation72_spill] sm:$0xff] %v6956_v55  ;;  %10138 = vst [vmem:[#allocation143_spill] sm:$0xff] %v6960_v30  ;;  %v6963_v26 = vmul.f32 0.2, %v10139_v49  ;;  %v6966_v35 = vmul.f32 0.2, %v10141_v6 }
 0x402   :  { %10134 = vst [vmem:[#allocation142_spill] sm:$0xff] %v6950_v23  ;;  %v10143_v10 = vld [vmem:[#allocation82_spill] sm:$0xff]  ;;  %v10145_v16 = vld [vmem:[#allocation95_spill] sm:$0xff]  ;;  %v10150_v30 = vld [vmem:[#allocation28_spill] sm:$0xff]  ;;  %vm2235_vm11 = vcmp.ge.f32.partialorder %v10041_v51, 0.0 }
 0x403   :  { %10140 = vst [vmem:[#allocation144_spill] sm:$0xff] %v6963_v26  ;;  %10142 = vst [vmem:[#allocation145_spill] sm:$0xff] %v6966_v35  ;;  %v6972_v23 = vsel %vm2220_vm12, %v10006_v62, %v10143_v10  ;;  %vm2232_vm8 = vcmp.ge.f32.partialorder %v10145_v16, 0.0  ;;  %v10146_v12 = vld [vmem:[#allocation23_spill] sm:$0xff]  ;;  %v10148_v55 = vld [vmem:[#allocation26_spill] sm:$0xff] }
 0x404   :  { %10144 = vst [vmem:[#allocation82_spill] sm:$0xff] %v6972_v23  ;;  %v6976_v40 = vmul.f32 0.2, %v10146_v12  ;;  %v6979_v31 = vmul.f32 0.2, %v10148_v55  ;;  %v10152_v26 = vld [vmem:[#allocation77_spill] sm:$0xff] }
 0x405   :  { %v6982_v49 = vmul.f32 0.2, %v10150_v30  ;;  %v6988_v35 = vsel %vm2221_vm13, %v10008_v20, %v10152_v26  ;;  %v10154_v62 = vld [vmem:[#allocation25_spill] sm:$0xff]  ;;  %v10156_v23 = vld [vmem:[#allocation27_spill] sm:$0xff]  ;;  %v10162_v20 = vld [vmem:[#allocation32_spill] sm:$0xff] }
 0x406   :  { %10147 = vst [vmem:[#allocation95_spill] sm:$0xff] %v6976_v40  ;;  %10149 = vst [vmem:[#allocation23_spill] sm:$0xff] %v6979_v31  ;;  %v6993_v10 = vmul.f32 0.2, %v10154_v62  ;;  %v6996_v40 = vmul.f32 0.2, %v10156_v23 }
 0x407   :  { %10151 = vst [vmem:[#allocation146_spill] sm:$0xff] %v6982_v49  ;;  %10153 = vst [vmem:[#allocation77_spill] sm:$0xff] %v6988_v35  ;;  %v10158_v31 = vld [vmem:[#allocation30_spill] sm:$0xff]  ;;  %v10160_v49 = vld [vmem:[#allocation80_spill] sm:$0xff]  ;;  %v7012_v26 = vmul.f32 0.2, %v10162_v20 }
 0x408   :  { %10155 = vst [vmem:[#allocation25_spill] sm:$0xff] %v6993_v10  ;;  %10157 = vst [vmem:[#allocation27_spill] sm:$0xff] %v6996_v40  ;;  %v6999_v55 = vmul.f32 0.2, %v10158_v31  ;;  %v7005_v30 = vsel %vm2222_vm14, %v10010_v34, %v10160_v49  ;;  %v10164_v35 = vld [vmem:[#allocation29_spill] sm:$0xff]  ;;  %v10168_v31 = vld [vmem:[#allocation12_spill] sm:$0xff] }
 0x409   :  { %10161 = vst [vmem:[#allocation80_spill] sm:$0xff] %v7005_v30  ;;  %10163 = vst [vmem:[#allocation32_spill] sm:$0xff] %v7012_v26  ;;  %v7015_v40 = vmul.f32 0.2, %v10164_v35  ;;  %v7024_v49 = vsel %vm2223_vm15, %v10013_v50, %v10168_v31  ;;  %vm2239_vm14 = vcmp.ge.f32.partialorder %v10049_v52, 0.0  ;;  %v10170_v34 = vld [vmem:[#allocation34_spill] sm:$0xff] }
 0x40a   :  { %10159 = vst [vmem:[#allocation147_spill] sm:$0xff] %v6999_v55  ;;  %v10166_v55 = vld [vmem:[#allocation31_spill] sm:$0xff]  ;;  %10169 = vst [vmem:[#allocation12_spill] sm:$0xff] %v7024_v49  ;;  %v7031_v30 = vmul.f32 0.2, %v10170_v34  ;;  %vm2243_vm15 = vcmp.ge.f32.partialorder %v6232_v46, 0.0 }
 0x40b   :  { %10165 = vst [vmem:[#allocation148_spill] sm:$0xff] %v7015_v40  ;;  %v7018_v10 = vmul.f32 0.2, %v10166_v55  ;;  %v10172_v40 = vld [vmem:[#allocation36_spill] sm:$0xff]  ;;  %v10176_v35 = vld [vmem:[#allocation11_spill] sm:$0xff]  ;;  %v10258_v24 = vld [vmem:[#allocation22_spill] sm:$0xff] }
 0x40c   :  { %10171 = vst [vmem:[#allocation34_spill] sm:$0xff] %v7031_v30  ;;  %v7034_v26 = vmul.f32 0.2, %v10172_v40  ;;  %v7043_v50 = vsel %vm2224_vm0, %v10015_v8, %v10176_v35  ;;  %v10178_v31 = vld [vmem:[#allocation35_spill] sm:$0xff]  ;;  %v10184_v40 = vld [vmem:[#allocation86_spill] sm:$0xff]  ;;  %vm2247_vm0 = vcmp.ge.f32.partialorder %v6248_v63, 0.0 }
 0x40d   :  { %10167 = vst [vmem:[#allocation149_spill] sm:$0xff] %v7018_v10  ;;  %v10174_v10 = vld [vmem:[#allocation33_spill] sm:$0xff]  ;;  %10177 = vst [vmem:[#allocation11_spill] sm:$0xff] %v7043_v50  ;;  %v7050_v49 = vmul.f32 0.2, %v10178_v31  ;;  %v7062_v8 = vsel %vm2225_vm1, %v10017_v15, %v10184_v40  ;;  %vm2251_vm1 = vcmp.ge.f32.partialorder %v6264_v28, 0.0 }
 0x40e   :  { %10173 = vst [vmem:[#allocation150_spill] sm:$0xff] %v7034_v26  ;;  %v7037_v55 = vmul.f32 0.2, %v10174_v10  ;;  %v10180_v26 = vld [vmem:[#allocation38_spill] sm:$0xff]  ;;  %10185 = vst [vmem:[#allocation86_spill] sm:$0xff] %v7062_v8  ;;  %v10186_v35 = vld [vmem:[#allocation37_spill] sm:$0xff] }
 0x40f   :  { %10179 = vst [vmem:[#allocation35_spill] sm:$0xff] %v7050_v49  ;;  %v7053_v30 = vmul.f32 0.2, %v10180_v26  ;;  %v7069_v50 = vmul.f32 0.2, %v10186_v35  ;;  %v10192_v26 = vld [vmem:[#allocation88_spill] sm:$0xff] }
 0x410   :  { %10175 = vst [vmem:[#allocation151_spill] sm:$0xff] %v7037_v55  ;;  %v10182_v55 = vld [vmem:[#allocation40_spill] sm:$0xff]  ;;  %v7081_v15 = vsel %vm2226_vm2, %v10095_v43, %v10192_v26  ;;  %vm2255_vm2 = vcmp.ge.f32.partialorder %v6280_v11, 0.0  ;;  %v10202_v26 = vld [vmem:[#allocation46_spill] sm:$0xff] }
 0x411   :  { %10181 = vst [vmem:[#allocation152_spill] sm:$0xff] %v7053_v30  ;;  %v7056_v10 = vmul.f32 0.2, %v10182_v55  ;;  %10187 = vst [vmem:[#allocation37_spill] sm:$0xff] %v7069_v50  ;;  %v10188_v30 = vld [vmem:[#allocation39_spill] sm:$0xff]  ;;  %v10194_v40 = vld [vmem:[#allocation44_spill] sm:$0xff] }
 0x412   :  { %v7072_v49 = vmul.f32 0.2, %v10188_v30  ;;  %10193 = vst [vmem:[#allocation88_spill] sm:$0xff] %v7081_v15  ;;  %v7088_v8 = vmul.f32 0.2, %v10194_v40  ;;  %v10200_v30 = vld [vmem:[#allocation90_spill] sm:$0xff] }
 0x413   :  { %10183 = vst [vmem:[#allocation153_spill] sm:$0xff] %v7056_v10  ;;  %v10190_v10 = vld [vmem:[#allocation42_spill] sm:$0xff]  ;;  %v7100_v43 = vsel %vm2227_vm3, %v10022_v27, %v10200_v30  ;;  %v7107_v15 = vmul.f32 0.2, %v10202_v26  ;;  %vm2259_vm3 = vcmp.ge.f32.partialorder %v10079_v57, 0.0  ;;  %v10210_v30 = vld [vmem:[#allocation47_spill] sm:$0xff] }
 0x414   :  { %10189 = vst [vmem:[#allocation154_spill] sm:$0xff] %v7072_v49  ;;  %v7075_v55 = vmul.f32 0.2, %v10190_v10  ;;  %10195 = vst [vmem:[#allocation44_spill] sm:$0xff] %v7088_v8  ;;  %v10196_v49 = vld [vmem:[#allocation41_spill] sm:$0xff] }
 0x415   :  { %v7091_v50 = vmul.f32 0.2, %v10196_v49  ;;  %10201 = vst [vmem:[#allocation90_spill] sm:$0xff] %v7100_v43  ;;  %10203 = vst [vmem:[#allocation46_spill] sm:$0xff] %v7107_v15  ;;  %v10208_v49 = vld [vmem:[#allocation91_spill] sm:$0xff] }
 0x416   :  { %10191 = vst [vmem:[#allocation155_spill] sm:$0xff] %v7075_v55  ;;  %v10198_v55 = vld [vmem:[#allocation43_spill] sm:$0xff]  ;;  %v7119_v27 = vsel %vm2228_vm4, %v10024_v41, %v10208_v49  ;;  %v7126_v43 = vmul.f32 0.2, %v10210_v30  ;;  %vm2263_vm4 = vcmp.ge.f32.partialorder %v10089_v39, 0.0  ;;  %v10218_v49 = vld [vmem:[#allocation49_spill] sm:$0xff] }
 0x417   :  { %10197 = vst [vmem:[#allocation156_spill] sm:$0xff] %v7091_v50  ;;  %v7094_v10 = vmul.f32 0.2, %v10198_v55  ;;  %v10204_v50 = vld [vmem:[#allocation48_spill] sm:$0xff]  ;;  %10209 = vst [vmem:[#allocation91_spill] sm:$0xff] %v7119_v27 }
 0x418   :  { %v7110_v8 = vmul.f32 0.2, %v10204_v50  ;;  %10211 = vst [vmem:[#allocation47_spill] sm:$0xff] %v7126_v43  ;;  %v10216_v50 = vld [vmem:[#allocation103_spill] sm:$0xff]  ;;  %v7145_v27 = vmul.f32 0.2, %v10218_v49 }
 0x419   :  { %10199 = vst [vmem:[#allocation157_spill] sm:$0xff] %v7094_v10  ;;  %v10206_v10 = vld [vmem:[#allocation45_spill] sm:$0xff]  ;;  %v7138_v41 = vsel %vm2229_vm5, %v10120_v48, %v10216_v50  ;;  %vm2267_vm5 = vcmp.ge.f32.partialorder %v10100_v45, 0.0  ;;  %v10226_v50 = vld [vmem:[#allocation59_spill] sm:$0xff] }
 0x41a   :  { %10205 = vst [vmem:[#allocation158_spill] sm:$0xff] %v7110_v8  ;;  %v7113_v55 = vmul.f32 0.2, %v10206_v10  ;;  %v10212_v8 = vld [vmem:[#allocation50_spill] sm:$0xff]  ;;  %10217 = vst [vmem:[#allocation103_spill] sm:$0xff] %v7138_v41  ;;  %v10243_v45 = vld [vmem:[#allocation105_spill] sm:$0xff] }
 0x41b   :  { %v7129_v15 = vmul.f32 0.2, %v10212_v8  ;;  %10219 = vst [vmem:[#allocation49_spill] sm:$0xff] %v7145_v27  ;;  %v10224_v8 = vld [vmem:[#allocation93_spill] sm:$0xff]  ;;  %v7164_v41 = vmul.f32 0.2, %v10226_v50 }
 0x41c   :  { %10207 = vst [vmem:[#allocation159_spill] sm:$0xff] %v7113_v55  ;;  %v10214_v55 = vld [vmem:[#allocation52_spill] sm:$0xff]  ;;  %v7157_v48 = vsel %vm2230_vm6, %v10029_v7, %v10224_v8 }
 0x41d   :  { %10213 = vst [vmem:[#allocation160_spill] sm:$0xff] %v7129_v15  ;;  %v7132_v10 = vmul.f32 0.2, %v10214_v55  ;;  %v10220_v15 = vld [vmem:[#allocation51_spill] sm:$0xff]  ;;  %10225 = vst [vmem:[#allocation93_spill] sm:$0xff] %v7157_v48  ;;  %v10234_v8 = vld [vmem:[#allocation8_spill] sm:$0xff] }
 0x41e   :  { %v7148_v43 = vmul.f32 0.2, %v10220_v15  ;;  %10227 = vst [vmem:[#allocation59_spill] sm:$0xff] %v7164_v41  ;;  %v10232_v15 = vld [vmem:[#allocation94_spill] sm:$0xff]  ;;  %vm2271_vm6 = vcmp.ge.f32.partialorder %v10234_v8, 0.0  ;;  %v10237_v41 = vld [vmem:[#allocation63_spill] sm:$0xff] }
 0x41f   :  { %10215 = vst [vmem:[#allocation161_spill] sm:$0xff] %v7132_v10  ;;  %v10222_v10 = vld [vmem:[#allocation55_spill] sm:$0xff]  ;;  %v7176_v7 = vsel %vm2231_vm7, %v10031_v58, %v10232_v15  ;;  %v7183_v25 = vmul.f32 0.2, %v10237_v41  ;;  %v7195_v58 = vsel %vm2232_vm8, %v10145_v16, %v10243_v45  ;;  %v10254_v16 = vld [vmem:[#allocation97_spill] sm:$0xff]  ;;  %vm10255_vm8 = vcmp.ge.f32.partialorder %v10038_v18, 0.0 }
 0x420   :  { %10221 = vst [vmem:[#allocation162_spill] sm:$0xff] %v7148_v43  ;;  %v7151_v55 = vmul.f32 0.2, %v10222_v10  ;;  %v10228_v43 = vld [vmem:[#allocation54_spill] sm:$0xff]  ;;  %10233 = vst [vmem:[#allocation94_spill] sm:$0xff] %v7176_v7  ;;  %v10245_v15 = vld [vmem:[#allocation15_spill] sm:$0xff] }
 0x421   :  { %v7167_v27 = vmul.f32 0.2, %v10228_v43  ;;  %10238 = vst [vmem:[#allocation8_spill] sm:$0xff] %v7183_v25  ;;  %v10248_v25 = vld [vmem:[#allocation74_spill] sm:$0xff]  ;;  %v10257_v7 = vld [vmem:[#allocation19_spill] sm:$0xff]  ;;  %vm10268_vm7 = vcmp.ge.f32.partialorder %v6212_v60, 0.0 }
 0x422   :  { %10223 = vst [vmem:[#allocation163_spill] sm:$0xff] %v7151_v55  ;;  %v10230_v55 = vld [vmem:[#allocation57_spill] sm:$0xff]  ;;  %v7202_v21 = vmul.f32 0.2, %v10248_v25  ;;  %vm2279_vm12 = vcmp.ge.f32.partialorder %v10257_v7, 0.0  ;;  %vm2316_vm13 = vcmp.ge.f32.partialorder %v10237_v41, 0.0 }
 0x423   :  { %10229 = vst [vmem:[#allocation54_spill] sm:$0xff] %v7167_v27  ;;  %v7170_v10 = vmul.f32 0.2, %v10230_v55  ;;  %v10239_v27 = vld [vmem:[#allocation62_spill] sm:$0xff] }
 0x424   :  { %v7186_v55 = vmul.f32 0.2, %v10239_v27  ;;  %10249 = vst [vmem:[#allocation105_spill] sm:$0xff] %v7202_v21  ;;  %v10259_v21 = vld [vmem:[#allocation24_spill] sm:$0xff] }
 0x425   :  { %10231 = vst [vmem:[#allocation164_spill] sm:$0xff] %v7170_v10  ;;  %v10241_v10 = vld [vmem:[#allocation70_spill] sm:$0xff] }
 0x426   :  { %10240 = vst [vmem:[#allocation63_spill] sm:$0xff] %v7186_v55  ;;  %v7189_v53 = vmul.f32 0.2, %v10241_v10  ;;  %10244 = vst [vmem:[#allocation70_spill] sm:$0xff] %v7195_v58  ;;  %v10250_v55 = vld [vmem:[#allocation68_spill] sm:$0xff]  ;;  %v7217_v58 = vsel %vm10255_vm8, %v10038_v18, %v10254_v16  ;;  %v10264_v16 = vld [vmem:[#allocation61_spill] sm:$0xff] }
 0x427   :  { %v7205_v48 = vmul.f32 0.2, %v10250_v55  ;;  %10256 = vst [vmem:[#allocation68_spill] sm:$0xff] %v7217_v58  ;;  %vm10265_vm8 = vcmp.ge.f32.partialorder %v10045_v5, 0.0 }
 0x428   :  { %10242 = vst [vmem:[#allocation62_spill] sm:$0xff] %v7189_v53  ;;  %v10252_v53 = vld [vmem:[#allocation96_spill] sm:$0xff]  ;;  %v7239_v58 = vsel %vm10265_vm8, %v10045_v5, %v10264_v16  ;;  %vm10274_vm8 = vcmp.ge.f32.partialorder %v6220_v19, 0.0 }
 0x429   :  { %10251 = vst [vmem:[#allocation15_spill] sm:$0xff] %v7205_v48  ;;  %v7211_v45 = vsel %vm2233_vm9, %v10036_v56, %v10252_v53  ;;  %v10260_v48 = vld [vmem:[#allocation53_spill] sm:$0xff]  ;;  %v10261_v53 = vld [vmem:[#allocation58_spill] sm:$0xff]  ;;  %vm10262_vm9 = vcmp.ge.f32.partialorder %v10043_v29, 0.0  ;;  %10266 = vst [vmem:[#allocation97_spill] sm:$0xff] %v7239_v58 }
 0x42a   :  { %10253 = vst [vmem:[#allocation74_spill] sm:$0xff] %v7211_v45  ;;  %v7227_v56 = vsel %vm2235_vm11, %v10041_v51, %v10260_v48  ;;  %v7233_v18 = vsel %vm10262_vm9, %v10043_v29, %v10261_v53  ;;  %v10267_v45 = vld [vmem:[#allocation108_spill] sm:$0xff]  ;;  %vm2283_vm11 = vcmp.ge.f32.partialorder %v10146_v12, 0.0  ;;  %v10270_v51 = vld [vmem:[#allocation26_spill] sm:$0xff]  ;;  %v10273_v53 = vld [vmem:[#allocation109_spill] sm:$0xff]  ;;  %vm10279_vm9 = vcmp.ge.f32.partialorder %v6228_v54, 0.0 }
 0x42b   :  { %10263 = vst [vmem:[#allocation96_spill] sm:$0xff] %v7233_v18  ;;  %v7245_v6 = vsel %vm10268_vm7, %v6212_v60, %v10267_v45  ;;  %v10271_v48 = vld [vmem:[#allocation28_spill] sm:$0xff]  ;;  %v7261_v60 = vsel %vm10274_vm8, %v6220_v19, %v10273_v53  ;;  %v10275_v45 = vld [vmem:[#allocation111_spill] sm:$0xff]  ;;  %vm10276_vm7 = vcmp.ge.f32.partialorder %v6224_v14, 0.0  ;;  %v10282_v19 = vld [vmem:[#allocation29_spill] sm:$0xff]  ;;  %vm10291_vm8 = vcmp.ge.f32.partialorder %v6244_v36, 0.0 }
 0x42c   :  { %10269 = vst [vmem:[#allocation19_spill] sm:$0xff] %v7245_v6  ;;  %v10272_v29 = vld [vmem:[#allocation56_spill] sm:$0xff]  ;;  %v7267_v16 = vsel %vm10276_vm7, %v6224_v14, %v10275_v45  ;;  %v10284_v53 = vld [vmem:[#allocation115_spill] sm:$0xff]  ;;  %vm10285_vm7 = vcmp.ge.f32.partialorder %v6236_v59, 0.0 }
 0x42d   :  { %v7255_v5 = vsel %vm2239_vm14, %v10049_v52, %v10272_v29  ;;  %10277 = vst [vmem:[#allocation22_spill] sm:$0xff] %v7267_v16  ;;  %v10278_v6 = vld [vmem:[#allocation112_spill] sm:$0xff]  ;;  %vm2287_vm14 = vcmp.ge.f32.partialorder %v10156_v23, 0.0  ;;  %v10281_v52 = vld [vmem:[#allocation30_spill] sm:$0xff]  ;;  %v10283_v29 = vld [vmem:[#allocation113_spill] sm:$0xff] }
 0x42e   :  { %v7273_v58 = vsel %vm10279_vm9, %v6228_v54, %v10278_v6  ;;  %v7283_v14 = vsel %vm2243_vm15, %v6232_v46, %v10283_v29  ;;  %v7289_v54 = vsel %vm10285_vm7, %v6236_v59, %v10284_v53  ;;  %v10287_v6 = vld [vmem:[#allocation116_spill] sm:$0xff]  ;;  %vm10288_vm9 = vcmp.ge.f32.partialorder %v6240_v22, 0.0  ;;  %v10293_v46 = vld [vmem:[#allocation31_spill] sm:$0xff]  ;;  %v10295_v59 = vld [vmem:[#allocation33_spill] sm:$0xff] }
 0x42f   :  { %10280 = vst [vmem:[#allocation24_spill] sm:$0xff] %v7273_v58  ;;  %10286 = vst [vmem:[#allocation53_spill] sm:$0xff] %v7289_v54  ;;  %v7295_v45 = vsel %vm10288_vm9, %v6240_v22, %v10287_v6  ;;  %v10290_v58 = vld [vmem:[#allocation117_spill] sm:$0xff]  ;;  %vm2291_vm15 = vcmp.ge.f32.partialorder %v10293_v46, 0.0  ;;  %v10294_v29 = vld [vmem:[#allocation36_spill] sm:$0xff]  ;;  %vm10298_vm9 = vcmp.ge.f32.partialorder %v6252_v9, 0.0 }
 0x430   :  { %10289 = vst [vmem:[#allocation58_spill] sm:$0xff] %v7295_v45  ;;  %v7301_v16 = vsel %vm10291_vm8, %v6244_v36, %v10290_v58  ;;  %v10296_v53 = vld [vmem:[#allocation119_spill] sm:$0xff]  ;;  %v10297_v6 = vld [vmem:[#allocation120_spill] sm:$0xff]  ;;  %v10300_v58 = vld [vmem:[#allocation121_spill] sm:$0xff]  ;;  %vm10301_vm8 = vcmp.ge.f32.partialorder %v6256_v33, 0.0  ;;  %vm10304_vm7 = vcmp.ge.f32.partialorder %v6260_v44, 0.0 }
 0x431   :  { %10292 = vst [vmem:[#allocation61_spill] sm:$0xff] %v7301_v16  ;;  %v7311_v22 = vsel %vm2247_vm0, %v6248_v63, %v10296_v53  ;;  %v7317_v36 = vsel %vm10298_vm9, %v6252_v9, %v10297_v6  ;;  %v7323_v16 = vsel %vm10301_vm8, %v6256_v33, %v10300_v58  ;;  %v10303_v45 = vld [vmem:[#allocation123_spill] sm:$0xff]  ;;  %vm2295_vm0 = vcmp.ge.f32.partialorder %v10178_v31, 0.0  ;;  %v10306_v63 = vld [vmem:[#allocation38_spill] sm:$0xff]  ;;  %v10307_v53 = vld [vmem:[#allocation40_spill] sm:$0xff] }
 0x432   :  { %10299 = vst [vmem:[#allocation108_spill] sm:$0xff] %v7317_v36  ;;  %10302 = vst [vmem:[#allocation26_spill] sm:$0xff] %v7323_v16  ;;  %v7329_v54 = vsel %vm10304_vm7, %v6260_v44, %v10303_v45  ;;  %v10308_v9 = vld [vmem:[#allocation124_spill] sm:$0xff]  ;;  %v10310_v6 = vld [vmem:[#allocation125_spill] sm:$0xff]  ;;  %vm10311_vm8 = vcmp.ge.f32.partialorder %v6268_v13, 0.0  ;;  %vm10314_vm7 = vcmp.ge.f32.partialorder %v6272_v47, 0.0 }
 0x433   :  { %10305 = vst [vmem:[#allocation28_spill] sm:$0xff] %v7329_v54  ;;  %v7339_v33 = vsel %vm2251_vm1, %v6264_v28, %v10308_v9  ;;  %v7345_v44 = vsel %vm10311_vm8, %v6268_v13, %v10310_v6  ;;  %v10313_v45 = vld [vmem:[#allocation127_spill] sm:$0xff]  ;;  %v10316_v54 = vld [vmem:[#allocation128_spill] sm:$0xff]  ;;  %vm10317_vm9 = vcmp.ge.f32.partialorder %v6276_v1, 0.0  ;;  %v10320_v9 = vld [vmem:[#allocation42_spill] sm:$0xff]  ;;  %vm10331_vm8 = vcmp.ge.f32.partialorder %v6292_v38, 0.0 }
 0x434   :  { %10309 = vst [vmem:[#allocation56_spill] sm:$0xff] %v7339_v33  ;;  %10312 = vst [vmem:[#allocation109_spill] sm:$0xff] %v7345_v44  ;;  %v7351_v58 = vsel %vm10314_vm7, %v6272_v47, %v10313_v45  ;;  %v7357_v16 = vsel %vm10317_vm9, %v6276_v1, %v10316_v54  ;;  %v10319_v28 = vld [vmem:[#allocation39_spill] sm:$0xff]  ;;  %v10321_v13 = vld [vmem:[#allocation41_spill] sm:$0xff]  ;;  %vm10325_vm7 = vcmp.ge.f32.partialorder %v6284_v0, 0.0  ;;  %vm10328_vm9 = vcmp.ge.f32.partialorder %v6288_v3, 0.0 }
 0x435   :  { %10315 = vst [vmem:[#allocation111_spill] sm:$0xff] %v7351_v58  ;;  %10318 = vst [vmem:[#allocation112_spill] sm:$0xff] %v7357_v16  ;;  %vm2299_vm1 = vcmp.ge.f32.partialorder %v10319_v28, 0.0  ;;  %v10322_v6 = vld [vmem:[#allocation129_spill] sm:$0xff]  ;;  %v10324_v45 = vld [vmem:[#allocation131_spill] sm:$0xff] }
 0x436   :  { %v7367_v47 = vsel %vm2255_vm2, %v6280_v11, %v10322_v6  ;;  %v7373_v1 = vsel %vm10325_vm7, %v6284_v0, %v10324_v45  ;;  %v10327_v54 = vld [vmem:[#allocation132_spill] sm:$0xff]  ;;  %v10330_v58 = vld [vmem:[#allocation133_spill] sm:$0xff]  ;;  %v10333_v11 = vld [vmem:[#allocation43_spill] sm:$0xff]  ;;  %vm10345_vm7 = vcmp.ge.f32.partialorder %v10087_v32, 0.0 }
 0x437   :  { %10323 = vst [vmem:[#allocation30_spill] sm:$0xff] %v7367_v47  ;;  %10326 = vst [vmem:[#allocation29_spill] sm:$0xff] %v7373_v1  ;;  %v7379_v16 = vsel %vm10328_vm9, %v6288_v3, %v10327_v54  ;;  %v7385_v44 = vsel %vm10331_vm8, %v6292_v38, %v10330_v58  ;;  %vm2303_vm2 = vcmp.ge.f32.partialorder %v10333_v11, 0.0  ;;  %v10334_v6 = vld [vmem:[#allocation48_spill] sm:$0xff]  ;;  %v10335_v0 = vld [vmem:[#allocation45_spill] sm:$0xff]  ;;  %vm10339_vm9 = vcmp.ge.f32.partialorder %v10081_v4, 0.0 }
 0x438   :  { %10329 = vst [vmem:[#allocation113_spill] sm:$0xff] %v7379_v16  ;;  %10332 = vst [vmem:[#allocation115_spill] sm:$0xff] %v7385_v44  ;;  %v10336_v45 = vld [vmem:[#allocation66_spill] sm:$0xff]  ;;  %v10338_v54 = vld [vmem:[#allocation60_spill] sm:$0xff]  ;;  %vm10342_vm8 = vcmp.ge.f32.partialorder %v10083_v2, 0.0 }
 0x439   :  { %v7395_v3 = vsel %vm2259_vm3, %v10079_v57, %v10336_v45  ;;  %v7401_v38 = vsel %vm10339_vm9, %v10081_v4, %v10338_v54  ;;  %v10341_v58 = vld [vmem:[#allocation98_spill] sm:$0xff]  ;;  %v10344_v16 = vld [vmem:[#allocation84_spill] sm:$0xff]  ;;  %vm2307_vm3 = vcmp.ge.f32.partialorder %v10210_v30, 0.0  ;;  %v10351_v54 = vld [vmem:[#allocation81_spill] sm:$0xff]  ;;  %vm10358_vm9 = vcmp.ge.f32.partialorder %v10098_v17, 0.0 }
 0x43a   :  { %10337 = vst [vmem:[#allocation116_spill] sm:$0xff] %v7395_v3  ;;  %10340 = vst [vmem:[#allocation117_spill] sm:$0xff] %v7401_v38  ;;  %v7407_v44 = vsel %vm10342_vm8, %v10083_v2, %v10341_v58  ;;  %v7413_v1 = vsel %vm10345_vm7, %v10087_v32, %v10344_v16  ;;  %v10347_v57 = vld [vmem:[#allocation50_spill] sm:$0xff]  ;;  %v10348_v45 = vld [vmem:[#allocation52_spill] sm:$0xff]  ;;  %vm10352_vm8 = vcmp.ge.f32.partialorder %v10091_v61, 0.0  ;;  %vm10355_vm7 = vcmp.ge.f32.partialorder %v10096_v42, 0.0 }
 0x43b   :  { %10343 = vst [vmem:[#allocation31_spill] sm:$0xff] %v7407_v44  ;;  %10346 = vst [vmem:[#allocation36_spill] sm:$0xff] %v7413_v1  ;;  %v10349_v4 = vld [vmem:[#allocation76_spill] sm:$0xff]  ;;  %v7429_v32 = vsel %vm10352_vm8, %v10091_v61, %v10351_v54  ;;  %v10354_v16 = vld [vmem:[#allocation83_spill] sm:$0xff] }
 0x43c   :  { %v7423_v2 = vsel %vm2263_vm4, %v10089_v39, %v10349_v4  ;;  %10353 = vst [vmem:[#allocation119_spill] sm:$0xff] %v7429_v32  ;;  %v7435_v58 = vsel %vm10355_vm7, %v10096_v42, %v10354_v16  ;;  %v10357_v1 = vld [vmem:[#allocation89_spill] sm:$0xff]  ;;  %v10360_v39 = vld [vmem:[#allocation51_spill] sm:$0xff]  ;;  %v10363_v54 = vld [vmem:[#allocation4_spill] sm:$0xff] }
 0x43d   :  { %10350 = vst [vmem:[#allocation33_spill] sm:$0xff] %v7423_v2  ;;  %10356 = vst [vmem:[#allocation120_spill] sm:$0xff] %v7435_v58  ;;  %v7441_v44 = vsel %vm10358_vm9, %v10098_v17, %v10357_v1  ;;  %vm2311_vm4 = vcmp.ge.f32.partialorder %v10360_v39, 0.0  ;;  %v10361_v4 = vld [vmem:[#allocation55_spill] sm:$0xff]  ;;  %v10362_v61 = vld [vmem:[#allocation5_spill] sm:$0xff] }
 0x43e   :  { %10359 = vst [vmem:[#allocation121_spill] sm:$0xff] %v7441_v44  ;;  %v7451_v42 = vsel %vm2267_vm5, %v10363_v54, %v10362_v61  ;;  %v10365_v16 = vld [vmem:[#allocation85_spill] sm:$0xff]  ;;  %v10366_v58 = vld [vmem:[#allocation7_spill] sm:$0xff]  ;;  %v10369_v1 = vld [vmem:[#allocation134_spill] sm:$0xff] }
 0x43f   :  { %10364 = vst [vmem:[#allocation123_spill] sm:$0xff] %v7451_v42  ;;  %vm10367_vm7 = vcmp.ge.f32.partialorder %v10366_v58, 0.0  ;;  %v10370_v44 = vld [vmem:[#allocation10_spill] sm:$0xff]  ;;  %v10373_v2 = vld [vmem:[#allocation135_spill] sm:$0xff]  ;;  %v10377_v61 = vld [vmem:[#allocation57_spill] sm:$0xff] }
 0x440   :  { %v7457_v17 = vsel %vm10367_vm7, %v10366_v58, %v10365_v16  ;;  %vm10371_vm9 = vcmp.ge.f32.partialorder %v10370_v44, 0.0  ;;  %v10374_v38 = vld [vmem:[#allocation6_spill] sm:$0xff]  ;;  %vm2315_vm5 = vcmp.ge.f32.partialorder %v10377_v61, 0.0  ;;  %v10378_v58 = vld [vmem:[#allocation136_spill] sm:$0xff]  ;;  %v10379_v54 = vld [vmem:[#allocation137_spill] sm:$0xff] }
 0x441   :  { %10368 = vst [vmem:[#allocation38_spill] sm:$0xff] %v7457_v17  ;;  %v7463_v32 = vsel %vm10371_vm9, %v10370_v44, %v10369_v1  ;;  %vm10375_vm8 = vcmp.ge.f32.partialorder %v10374_v38, 0.0  ;;  %v7479_v44 = vsel %vm2271_vm6, %v10234_v8, %v10378_v58  ;;  %v10380_v16 = vld [vmem:[#allocation14_spill] sm:$0xff]  ;;  %v10383_v1 = vld [vmem:[#allocation16_spill] sm:$0xff]  ;;  %v10387_v17 = vld [vmem:[#allocation13_spill] sm:$0xff]  ;;  %vm2319_vm6 = vcmp.ge.f32.partialorder %v10248_v25, 0.0 }
 0x442   :  { %10372 = vst [vmem:[#allocation40_spill] sm:$0xff] %v7463_v32  ;;  %v7469_v3 = vsel %vm10375_vm8, %v10374_v38, %v10373_v2  ;;  %vm10381_vm9 = vcmp.ge.f32.partialorder %v10380_v16, 0.0  ;;  %v10382_v2 = vld [vmem:[#allocation138_spill] sm:$0xff]  ;;  %vm10384_vm8 = vcmp.ge.f32.partialorder %v10383_v1, 0.0  ;;  %v10386_v32 = vld [vmem:[#allocation92_spill] sm:$0xff]  ;;  %vm10388_vm7 = vcmp.ge.f32.partialorder %v10387_v17, 0.0 }
 0x443   :  { %10376 = vst [vmem:[#allocation124_spill] sm:$0xff] %v7469_v3  ;;  %v7485_v38 = vsel %vm10381_vm9, %v10380_v16, %v10379_v54  ;;  %v7491_v3 = vsel %vm10384_vm8, %v10383_v1, %v10382_v2  ;;  %v7497_v42 = vsel %vm10388_vm7, %v10387_v17, %v10386_v32  ;;  %v10390_v8 = vld [vmem:[#allocation139_spill] sm:$0xff]  ;;  %vm10391_vm9 = vcmp.ge.f32.partialorder %v10245_v15, 0.0  ;;  %v10392_v54 = vld [vmem:[#allocation18_spill] sm:$0xff]  ;;  %v10394_v2 = vld [vmem:[#allocation140_spill] sm:$0xff] }
 0x444   :  { %10385 = vst [vmem:[#allocation125_spill] sm:$0xff] %v7491_v3  ;;  %10389 = vst [vmem:[#allocation127_spill] sm:$0xff] %v7497_v42  ;;  %v7505_v58 = vsel %vm10391_vm9, %v10245_v15, %v10390_v8  ;;  %vm10393_vm8 = vcmp.ge.f32.partialorder %v10125_v37, 0.0  ;;  %v10395_v1 = vld [vmem:[#allocation20_spill] sm:$0xff]  ;;  %v10397_v17 = vld [vmem:[#allocation141_spill] sm:$0xff]  ;;  %vm10403_vm9 = vcmp.ge.f32.partialorder %v10258_v24, 0.0 }
 0x445   :  { %v7511_v16 = vsel %vm10393_vm8, %v10125_v37, %v10392_v54  ;;  %vm10396_vm7 = vcmp.ge.f32.partialorder %v10395_v1, 0.0  ;;  %v10398_v42 = vld [vmem:[#allocation17_spill] sm:$0xff]  ;;  %v10401_v15 = vld [vmem:[#allocation142_spill] sm:$0xff]  ;;  %v10402_v37 = vld [vmem:[#allocation143_spill] sm:$0xff]  ;;  %vm10405_vm8 = vcmp.ge.f32.partialorder %v10259_v21, 0.0 }
 0x446   :  { %v7517_v32 = vsel %vm10396_vm7, %v10395_v1, %v10394_v2  ;;  %vm10399_vm10 = vcmp.ge.f32.partialorder %v10398_v42, 0.0  ;;  %v7529_v8 = vsel %vm2279_vm12, %v10257_v7, %v10401_v15  ;;  %v7535_v54 = vsel %vm10403_vm9, %v10258_v24, %v10402_v37  ;;  %v10404_v2 = vld [vmem:[#allocation144_spill] sm:$0xff]  ;;  %v10409_v7 = vld [vmem:[#allocation95_spill] sm:$0xff]  ;;  %v10549_v47 = vld [vmem:[#allocation33_spill] sm:$0xff] }
 0x447   :  { %v7523_v3 = vsel %vm10399_vm10, %v10398_v42, %v10397_v17  ;;  %v7541_v1 = vsel %vm10405_vm8, %v10259_v21, %v10404_v2  ;;  %v10406_v42 = vld [vmem:[#allocation145_spill] sm:$0xff]  ;;  %v7553_v15 = vsel %vm2283_vm11, %v10146_v12, %v10409_v7  ;;  %v10410_v24 = vld [vmem:[#allocation23_spill] sm:$0xff]  ;;  %vm10411_vm12 = vcmp.ge.f32.partialorder %v10270_v51, 0.0  ;;  %v10412_v21 = vld [vmem:[#allocation146_spill] sm:$0xff] }
 0x448   :  { %10400 = vst [vmem:[#allocation128_spill] sm:$0xff] %v7523_v3  ;;  %v10407_v17 = vld [vmem:[#allocation21_spill] sm:$0xff]  ;;  %v7559_v37 = vsel %vm10411_vm12, %v10270_v51, %v10410_v24  ;;  %vm10413_vm7 = vcmp.ge.f32.partialorder %v10271_v48, 0.0  ;;  %vm10415_vm9 = vcmp.ge.f32.partialorder %v10154_v62, 0.0  ;;  %v10416_v12 = vld [vmem:[#allocation27_spill] sm:$0xff]  ;;  %vm10418_vm11 = vcmp.ge.f32.partialorder %v10281_v52, 0.0 }
 0x449   :  { %vm10408_vm10 = vcmp.ge.f32.partialorder %v10407_v17, 0.0  ;;  %v7565_v2 = vsel %vm10413_vm7, %v10271_v48, %v10412_v21  ;;  %v7577_v7 = vsel %vm2287_vm14, %v10156_v23, %v10416_v12  ;;  %v10417_v51 = vld [vmem:[#allocation147_spill] sm:$0xff]  ;;  %v10419_v48 = vld [vmem:[#allocation32_spill] sm:$0xff]  ;;  %vm10420_vm8 = vcmp.ge.f32.partialorder %v10162_v20, 0.0  ;;  %v10423_v23 = vld [vmem:[#allocation149_spill] sm:$0xff] }
 0x44a   :  { %v7547_v3 = vsel %vm10408_vm10, %v10407_v17, %v10406_v42  ;;  %v10414_v42 = vld [vmem:[#allocation25_spill] sm:$0xff]  ;;  %v7583_v24 = vsel %vm10418_vm11, %v10281_v52, %v10417_v51  ;;  %v7589_v21 = vsel %vm10420_vm8, %v10162_v20, %v10419_v48  ;;  %vm10422_vm10 = vcmp.ge.f32.partialorder %v10282_v19, 0.0  ;;  %v10424_v52 = vld [vmem:[#allocation34_spill] sm:$0xff]  ;;  %v10550_v36 = vld [vmem:[#allocation119_spill] sm:$0xff] }
 0x44b   :  { %v7571_v17 = vsel %vm10415_vm9, %v10154_v62, %v10414_v42  ;;  %v10421_v62 = vld [vmem:[#allocation148_spill] sm:$0xff]  ;;  %v7601_v12 = vsel %vm2291_vm15, %v10293_v46, %v10423_v23  ;;  %vm10425_vm14 = vcmp.ge.f32.partialorder %v10170_v34, 0.0  ;;  %v10426_v20 = vld [vmem:[#allocation150_spill] sm:$0xff]  ;;  %vm10427_vm12 = vcmp.ge.f32.partialorder %v10294_v29, 0.0  ;;  %v10430_v46 = vld [vmem:[#allocation35_spill] sm:$0xff] }
 0x44c   :  { %v7595_v42 = vsel %vm10422_vm10, %v10282_v19, %v10421_v62  ;;  %v7607_v51 = vsel %vm10425_vm14, %v10170_v34, %v10424_v52  ;;  %v7613_v48 = vsel %vm10427_vm12, %v10294_v29, %v10426_v20  ;;  %v10428_v19 = vld [vmem:[#allocation151_spill] sm:$0xff]  ;;  %vm10429_vm7 = vcmp.ge.f32.partialorder %v10295_v59, 0.0  ;;  %v10431_v34 = vld [vmem:[#allocation152_spill] sm:$0xff]  ;;  %v10433_v29 = vld [vmem:[#allocation153_spill] sm:$0xff] }
 0x44d   :  { %v7619_v62 = vsel %vm10429_vm7, %v10295_v59, %v10428_v19  ;;  %v7625_v23 = vsel %vm2295_vm0, %v10178_v31, %v10430_v46  ;;  %vm10432_vm15 = vcmp.ge.f32.partialorder %v10306_v63, 0.0  ;;  %vm10434_vm9 = vcmp.ge.f32.partialorder %v10307_v53, 0.0  ;;  %v10435_v59 = vld [vmem:[#allocation37_spill] sm:$0xff]  ;;  %v10437_v31 = vld [vmem:[#allocation154_spill] sm:$0xff]  ;;  %v10553_v33 = vld [vmem:[#allocation123_spill] sm:$0xff] }
 0x44e   :  { %v7631_v52 = vsel %vm10432_vm15, %v10306_v63, %v10431_v34  ;;  %v7637_v20 = vsel %vm10434_vm9, %v10307_v53, %v10433_v29  ;;  %vm10436_vm11 = vcmp.ge.f32.partialorder %v10186_v35, 0.0  ;;  %v7649_v46 = vsel %vm2299_vm1, %v10319_v28, %v10437_v31  ;;  %v10438_v63 = vld [vmem:[#allocation155_spill] sm:$0xff]  ;;  %v10440_v53 = vld [vmem:[#allocation44_spill] sm:$0xff]  ;;  %v10444_v28 = vld [vmem:[#allocation157_spill] sm:$0xff] }
 0x44f   :  { %v7643_v19 = vsel %vm10436_vm11, %v10186_v35, %v10435_v59  ;;  %vm10439_vm0 = vcmp.ge.f32.partialorder %v10320_v9, 0.0  ;;  %vm10441_vm8 = vcmp.ge.f32.partialorder %v10194_v40, 0.0  ;;  %v10442_v35 = vld [vmem:[#allocation156_spill] sm:$0xff]  ;;  %vm10443_vm10 = vcmp.ge.f32.partialorder %v10321_v13, 0.0  ;;  %v10554_v18 = vld [vmem:[#allocation38_spill] sm:$0xff] }
 0x450   :  { %v7655_v34 = vsel %vm10439_vm0, %v10320_v9, %v10438_v63  ;;  %v7661_v29 = vsel %vm10441_vm8, %v10194_v40, %v10440_v53  ;;  %v7667_v59 = vsel %vm10443_vm10, %v10321_v13, %v10442_v35  ;;  %v7673_v31 = vsel %vm2303_vm2, %v10333_v11, %v10444_v28  ;;  %v10445_v9 = vld [vmem:[#allocation46_spill] sm:$0xff]  ;;  %v10449_v13 = vld [vmem:[#allocation159_spill] sm:$0xff] }
 0x451   :  { %vm10446_vm1 = vcmp.ge.f32.partialorder %v10202_v26, 0.0  ;;  %v10447_v40 = vld [vmem:[#allocation158_spill] sm:$0xff]  ;;  %vm10448_vm14 = vcmp.ge.f32.partialorder %v10334_v6, 0.0  ;;  %vm10450_vm12 = vcmp.ge.f32.partialorder %v10335_v0, 0.0  ;;  %v10452_v11 = vld [vmem:[#allocation47_spill] sm:$0xff]  ;;  %vm10455_vm2 = vcmp.ge.f32.partialorder %v10347_v57, 0.0 }
 0x452   :  { %v7679_v63 = vsel %vm10446_vm1, %v10202_v26, %v10445_v9  ;;  %v7685_v53 = vsel %vm10448_vm14, %v10334_v6, %v10447_v40  ;;  %v7691_v35 = vsel %vm10450_vm12, %v10335_v0, %v10449_v13  ;;  %v7697_v28 = vsel %vm2307_vm3, %v10210_v30, %v10452_v11  ;;  %v10454_v26 = vld [vmem:[#allocation160_spill] sm:$0xff]  ;;  %v10457_v6 = vld [vmem:[#allocation161_spill] sm:$0xff]  ;;  %v10463_v30 = vld [vmem:[#allocation162_spill] sm:$0xff] }
 0x453   :  { %10451 = vst [vmem:[#allocation39_spill] sm:$0xff] %v7691_v35  ;;  %10453 = vst [vmem:[#allocation42_spill] sm:$0xff] %v7697_v28  ;;  %v7703_v9 = vsel %vm10455_vm2, %v10347_v57, %v10454_v26  ;;  %vm10458_vm7 = vcmp.ge.f32.partialorder %v10348_v45, 0.0  ;;  %v10460_v0 = vld [vmem:[#allocation49_spill] sm:$0xff]  ;;  %vm10461_vm15 = vcmp.ge.f32.partialorder %v10218_v49, 0.0  ;;  %v7721_v11 = vsel %vm2311_vm4, %v10360_v39, %v10463_v30  ;;  %v10465_v57 = vld [vmem:[#allocation163_spill] sm:$0xff] }
 0x454   :  { %10456 = vst [vmem:[#allocation41_spill] sm:$0xff] %v7703_v9  ;;  %v7709_v40 = vsel %vm10458_vm7, %v10348_v45, %v10457_v6  ;;  %v7715_v13 = vsel %vm10461_vm15, %v10218_v49, %v10460_v0  ;;  %10464 = vst [vmem:[#allocation132_spill] sm:$0xff] %v7721_v11  ;;  %vm10466_vm3 = vcmp.ge.f32.partialorder %v10361_v4, 0.0  ;;  %v10468_v45 = vld [vmem:[#allocation59_spill] sm:$0xff]  ;;  %vm10469_vm9 = vcmp.ge.f32.partialorder %v10226_v50, 0.0  ;;  %v10470_v49 = vld [vmem:[#allocation54_spill] sm:$0xff] }
 0x455   :  { %10459 = vst [vmem:[#allocation129_spill] sm:$0xff] %v7709_v40  ;;  %10462 = vst [vmem:[#allocation131_spill] sm:$0xff] %v7715_v13  ;;  %v7727_v26 = vsel %vm10466_vm3, %v10361_v4, %v10465_v57  ;;  %v7733_v6 = vsel %vm10469_vm9, %v10226_v50, %v10468_v45  ;;  %vm10471_vm11 = vcmp.ge.f32.partialorder %v10228_v43, 0.0  ;;  %v10473_v39 = vld [vmem:[#allocation164_spill] sm:$0xff]  ;;  %v10477_v50 = vld [vmem:[#allocation63_spill] sm:$0xff]  ;;  %vm10478_vm4 = vcmp.ge.f32.partialorder %v10239_v27, 0.0 }
 0x456   :  { %10467 = vst [vmem:[#allocation133_spill] sm:$0xff] %v7727_v26  ;;  %v7739_v0 = vsel %vm10471_vm11, %v10228_v43, %v10470_v49  ;;  %v7745_v30 = vsel %vm2315_vm5, %v10377_v61, %v10473_v39  ;;  %v10475_v4 = vld [vmem:[#allocation8_spill] sm:$0xff]  ;;  %v7757_v45 = vsel %vm10478_vm4, %v10239_v27, %v10477_v50  ;;  %v10480_v43 = vld [vmem:[#allocation62_spill] sm:$0xff]  ;;  %vm10481_vm0 = vcmp.ge.f32.partialorder %v10241_v10, 0.0  ;;  %v10483_v61 = vld [vmem:[#allocation105_spill] sm:$0xff] }
 0x457   :  { %10472 = vst [vmem:[#allocation43_spill] sm:$0xff] %v7739_v0  ;;  %10474 = vst [vmem:[#allocation48_spill] sm:$0xff] %v7745_v30  ;;  %v7751_v57 = vsel %vm2316_vm13, %v10237_v41, %v10475_v4  ;;  %v7763_v49 = vsel %vm10481_vm0, %v10241_v10, %v10480_v43  ;;  %v7769_v39 = vsel %vm2319_vm6, %v10248_v25, %v10483_v61  ;;  %v10485_v41 = vld [vmem:[#allocation15_spill] sm:$0xff]  ;;  %vm10486_vm13 = vcmp.ge.f32.partialorder %v10250_v55, 0.0  ;;  %v10522_v10 = vld [vmem:[#allocation90_spill] sm:$0xff] }
 0x458   :  { %10476 = vst [vmem:[#allocation45_spill] sm:$0xff] %v7751_v57  ;;  %10479 = vst [vmem:[#allocation66_spill] sm:$0xff] %v7757_v45  ;;  %v7775_v4 = vsel %vm10486_vm13, %v10250_v55, %v10485_v41  ;;  %v10526_v55 = vld [vmem:[#allocation94_spill] sm:$0xff]  ;;  %v10555_v25 = vld [vmem:[#allocation40_spill] sm:$0xff]  ;;  %v10561_v28 = vmov %v7745_v30  ;;  %v10562_v9 = vmov %v7751_v57  ;;  %vm3089_vm5 = vcmask 125952  }
 0x459   :  { %10482 = vst [vmem:[#allocation60_spill] sm:$0xff] %v7763_v49  ;;  %10484 = vst [vmem:[#allocation98_spill] sm:$0xff] %v7769_v39  ;;  %v10523_v49 = vld [vmem:[#allocation91_spill] sm:$0xff]  ;;  %v10557_v27 = vld [vmem:[#allocation125_spill] sm:$0xff]  ;;  %v3545_v30 = vpack.c.bf16 %v10561_v28, %v10561_v28 }
 0x45a   :  { %10487 = vst [vmem:[#allocation84_spill] sm:$0xff] %v7775_v4  ;;  %v10527_v4 = vld [vmem:[#allocation70_spill] sm:$0xff]  ;;  %v10558_v45 = vld [vmem:[#allocation127_spill] sm:$0xff]  ;;  %v10559_v39 = vld [vmem:[#allocation128_spill] sm:$0xff] }
 0x45b   :  { %v10567_v43 = vld [vmem:[#allocation64_spill] sm:$0xff]  ;;  %v10569_v61 = vld [vmem:[#allocation67_spill] sm:$0xff]  ;;  %3212 = vst.msk [vmem:[%s8933_s4 + $0x1e8] sm:$0xf] %vm3089_vm5, %v3545_v30 }
 0x45c   :  { %v10568_v35 = vpack.c.bf16 %v10567_v43, %v10567_v43  ;;  %v10570_v0 = vpack.c.bf16 %v10569_v61, %v10569_v61  ;;  %v10571_v50 = vld [vmem:[#allocation99_spill] sm:$0xff] }
 0x45d   :  { %v10572_v57 = vpack.c.bf16 %v10571_v50, %v10571_v50  ;;  %v10573_v43 = vld [vmem:[#allocation71_spill] sm:$0xff] }
 0x45e   :  { %3090 = vst.msk [vmem:[%s8933_s4] sm:$0xf] %vm3089_vm5, %v10568_v35  ;;  %3091 = vst.msk [vmem:[%s8933_s4 + $0x4] sm:$0xf] %vm3089_vm5, %v10570_v0  ;;  %v10574_v41 = vpack.c.bf16 %v10573_v43, %v10573_v43  ;;  %v10575_v35 = vld [vmem:[#allocation79_spill] sm:$0xff]  ;;  %v10577_v0 = vld [vmem:[#allocation101_spill] sm:$0xff] }
 0x45f   :  { %v10563_v40 = vld [vmem:[#allocation66_spill] sm:$0xff]  ;;  %3092 = vst.msk [vmem:[%s8933_s4 + $0x8] sm:$0xf] %vm3089_vm5, %v10572_v57  ;;  %v10576_v61 = vpack.c.bf16 %v10575_v35, %v10575_v35  ;;  %v10578_v50 = vpack.c.bf16 %v10577_v0, %v10577_v0 }
 0x460   :  { %v10564_v13 = vld [vmem:[#allocation60_spill] sm:$0xff]  ;;  %v10565_v11 = vld [vmem:[#allocation98_spill] sm:$0xff]  ;;  %3093 = vst.msk [vmem:[%s8933_s4 + $0xc] sm:$0xf] %vm3089_vm5, %v10574_v41  ;;  %v10581_v41 = vld [vmem:[#allocation9_spill] sm:$0xff] }
 0x461   :  { %v10566_v26 = vld [vmem:[#allocation84_spill] sm:$0xff]  ;;  %3094 = vst.msk [vmem:[%s8933_s4 + $0x10] sm:$0xf] %vm3089_vm5, %v10576_v61  ;;  %3095 = vst.msk [vmem:[%s8933_s4 + $0x14] sm:$0xf] %vm3089_vm5, %v10578_v50  ;;  %v10579_v57 = vld [vmem:[#allocation78_spill] sm:$0xff]  ;;  %v10582_v35 = vpack.c.bf16 %v10581_v41, %v10581_v41  ;;  %v10763_v28 = vpack.c.bf16 %v10564_v13, %v10564_v13 }
 0x462   :  { %v10580_v43 = vpack.c.bf16 %v10579_v57, %v10579_v57  ;;  %v10583_v61 = vld [vmem:[#allocation87_spill] sm:$0xff]  ;;  %v10585_v50 = vld [vmem:[#allocation102_spill] sm:$0xff] }
 0x463   :  { %3097 = vst.msk [vmem:[%s8933_s4 + $0x1c] sm:$0xf] %vm3089_vm5, %v10582_v35  ;;  %v10584_v0 = vpack.c.bf16 %v10583_v61, %v10583_v61  ;;  %v10586_v57 = vpack.c.bf16 %v10585_v50, %v10585_v50  ;;  %v10589_v35 = vld [vmem:[#allocation106_spill] sm:$0xff]  ;;  %3215 = vst.msk [vmem:[%s8933_s4 + $0x1f4] sm:$0xf] %vm3089_vm5, %v10763_v28 }
 0x464   :  { %3096 = vst.msk [vmem:[%s8933_s4 + $0x18] sm:$0xf] %vm3089_vm5, %v10580_v43  ;;  %v10587_v43 = vld [vmem:[#allocation104_spill] sm:$0xff]  ;;  %v10590_v61 = vpack.c.bf16 %v10589_v35, %v10589_v35 }
 0x465   :  { %3098 = vst.msk [vmem:[%s8933_s4 + $0x20] sm:$0xf] %vm3089_vm5, %v10584_v0  ;;  %3099 = vst.msk [vmem:[%s8933_s4 + $0x24] sm:$0xf] %vm3089_vm5, %v10586_v57  ;;  %v10588_v41 = vpack.c.bf16 %v10587_v43, %v10587_v43  ;;  %v10591_v0 = vld [vmem:[#allocation107_spill] sm:$0xff]  ;;  %v10593_v57 = vld [vmem:[#allocation110_spill] sm:$0xff] }
 0x466   :  { %3101 = vst.msk [vmem:[%s8933_s4 + $0x2c] sm:$0xf] %vm3089_vm5, %v10590_v61  ;;  %v10592_v50 = vpack.c.bf16 %v10591_v0, %v10591_v0  ;;  %v10594_v43 = vpack.c.bf16 %v10593_v57, %v10593_v57  ;;  %v10597_v61 = vld [vmem:[#allocation118_spill] sm:$0xff] }
 0x467   :  { %3100 = vst.msk [vmem:[%s8933_s4 + $0x28] sm:$0xf] %vm3089_vm5, %v10588_v41  ;;  %v10595_v41 = vld [vmem:[#allocation114_spill] sm:$0xff]  ;;  %v10598_v0 = vpack.c.bf16 %v10597_v61, %v10597_v61 }
 0x468   :  { %3102 = vst.msk [vmem:[%s8933_s4 + $0x30] sm:$0xf] %vm3089_vm5, %v10592_v50  ;;  %3103 = vst.msk [vmem:[%s8933_s4 + $0x34] sm:$0xf] %vm3089_vm5, %v10594_v43  ;;  %v10596_v35 = vpack.c.bf16 %v10595_v41, %v10595_v41  ;;  %v10599_v50 = vld [vmem:[#allocation122_spill] sm:$0xff] }
 0x469   :  { %3105 = vst.msk [vmem:[%s8933_s4 + $0x3c] sm:$0xf] %vm3089_vm5, %v10598_v0  ;;  %v10600_v57 = vpack.c.bf16 %v10599_v50, %v10599_v50  ;;  %v10601_v43 = vld [vmem:[#allocation126_spill] sm:$0xff]  ;;  %v10605_v0 = vld [vmem:[#allocation75_spill] sm:$0xff] }
 0x46a   :  { %3104 = vst.msk [vmem:[%s8933_s4 + $0x38] sm:$0xf] %vm3089_vm5, %v10596_v35  ;;  %v10602_v41 = vpack.c.bf16 %v10601_v43, %v10601_v43  ;;  %v10603_v35 = vld [vmem:[#allocation130_spill] sm:$0xff]  ;;  %v10606_v50 = vpack.c.bf16 %v10605_v0, %v10605_v0 }
 0x46b   :  { %3106 = vst.msk [vmem:[%s8933_s4 + $0x40] sm:$0xf] %vm3089_vm5, %v10600_v57  ;;  %v10604_v61 = vpack.c.bf16 %v10603_v35, %v10603_v35  ;;  %v10607_v57 = vld [vmem:[#allocation73_spill] sm:$0xff] }
 0x46c   :  { %3107 = vst.msk [vmem:[%s8933_s4 + $0x44] sm:$0xf] %vm3089_vm5, %v10602_v41  ;;  %3109 = vst.msk [vmem:[%s8933_s4 + $0x4c] sm:$0xf] %vm3089_vm5, %v10606_v50  ;;  %v10608_v43 = vpack.c.bf16 %v10607_v57, %v10607_v57  ;;  %v10609_v41 = vld [vmem:[#allocation3_spill] sm:$0xff]  ;;  %v10613_v50 = vld [vmem:[#allocation100_spill] sm:$0xff] }
 0x46d   :  { %3108 = vst.msk [vmem:[%s8933_s4 + $0x48] sm:$0xf] %vm3089_vm5, %v10604_v61  ;;  %v10610_v35 = vpack.c.bf16 %v10609_v41, %v10609_v41  ;;  %v10611_v61 = vld [vmem:[#allocation2_spill] sm:$0xff]  ;;  %v10614_v57 = vpack.c.bf16 %v10613_v50, %v10613_v50 }
 0x46e   :  { %3110 = vst.msk [vmem:[%s8933_s4 + $0x50] sm:$0xf] %vm3089_vm5, %v10608_v43  ;;  %v10612_v0 = vpack.c.bf16 %v10611_v61, %v10611_v61  ;;  %v10615_v43 = vld [vmem:[#allocation65_spill] sm:$0xff] }
 0x46f   :  { %3111 = vst.msk [vmem:[%s8933_s4 + $0x54] sm:$0xf] %vm3089_vm5, %v10610_v35  ;;  %3113 = vst.msk [vmem:[%s8933_s4 + $0x5c] sm:$0xf] %vm3089_vm5, %v10614_v57  ;;  %v10616_v41 = vpack.c.bf16 %v10615_v43, %v10615_v43  ;;  %v10617_v35 = vld [vmem:[#allocation69_spill] sm:$0xff]  ;;  %v10621_v57 = vld [vmem:[#allocation82_spill] sm:$0xff] }
 0x470   :  { %3112 = vst.msk [vmem:[%s8933_s4 + $0x58] sm:$0xf] %vm3089_vm5, %v10612_v0  ;;  %v10618_v61 = vpack.c.bf16 %v10617_v35, %v10617_v35  ;;  %v10619_v0 = vld [vmem:[#allocation72_spill] sm:$0xff]  ;;  %v10622_v43 = vpack.c.bf16 %v10621_v57, %v10621_v57 }
 0x471   :  { %3114 = vst.msk [vmem:[%s8933_s4 + $0x60] sm:$0xf] %vm3089_vm5, %v10616_v41  ;;  %v10620_v50 = vpack.c.bf16 %v10619_v0, %v10619_v0  ;;  %v10623_v41 = vld [vmem:[#allocation77_spill] sm:$0xff] }
 0x472   :  { %3115 = vst.msk [vmem:[%s8933_s4 + $0x64] sm:$0xf] %vm3089_vm5, %v10618_v61  ;;  %3117 = vst.msk [vmem:[%s8933_s4 + $0x6c] sm:$0xf] %vm3089_vm5, %v10622_v43  ;;  %v10624_v35 = vpack.c.bf16 %v10623_v41, %v10623_v41  ;;  %v10625_v61 = vld [vmem:[#allocation80_spill] sm:$0xff]  ;;  %v10629_v43 = vld [vmem:[#allocation11_spill] sm:$0xff] }
 0x473   :  { %3116 = vst.msk [vmem:[%s8933_s4 + $0x68] sm:$0xf] %vm3089_vm5, %v10620_v50  ;;  %v10626_v0 = vpack.c.bf16 %v10625_v61, %v10625_v61  ;;  %v10627_v50 = vld [vmem:[#allocation12_spill] sm:$0xff]  ;;  %v10630_v41 = vpack.c.bf16 %v10629_v43, %v10629_v43  ;;  %v10636_v43 = vpack.c.bf16 %v10523_v49, %v10523_v49  ;;  %v10641_v49 = vpack.c.bf16 %v10526_v55, %v10526_v55 }
 0x474   :  { %3118 = vst.msk [vmem:[%s8933_s4 + $0x70] sm:$0xf] %vm3089_vm5, %v10624_v35  ;;  %v10628_v57 = vpack.c.bf16 %v10627_v50, %v10627_v50  ;;  %v10631_v35 = vld [vmem:[#allocation86_spill] sm:$0xff]  ;;  %v10645_v55 = vld [vmem:[#allocation68_spill] sm:$0xff] }
 0x475   :  { %3119 = vst.msk [vmem:[%s8933_s4 + $0x74] sm:$0xf] %vm3089_vm5, %v10626_v0  ;;  %3121 = vst.msk [vmem:[%s8933_s4 + $0x7c] sm:$0xf] %vm3089_vm5, %v10630_v41  ;;  %v10632_v61 = vpack.c.bf16 %v10631_v35, %v10631_v35  ;;  %v10633_v0 = vld [vmem:[#allocation88_spill] sm:$0xff]  ;;  %v10637_v41 = vld [vmem:[#allocation103_spill] sm:$0xff] }
 0x476   :  { %3120 = vst.msk [vmem:[%s8933_s4 + $0x78] sm:$0xf] %vm3089_vm5, %v10628_v57  ;;  %v10634_v50 = vpack.c.bf16 %v10633_v0, %v10633_v0  ;;  %v10635_v57 = vpack.c.bf16 %v10522_v10, %v10522_v10  ;;  %3125 = vst.msk [vmem:[%s8933_s4 + $0x8c] sm:$0xf] %vm3089_vm5, %v10636_v43  ;;  %v10638_v35 = vpack.c.bf16 %v10637_v41, %v10637_v41  ;;  %v10639_v10 = vld [vmem:[#allocation93_spill] sm:$0xff]  ;;  %v10648_v41 = vld [vmem:[#allocation96_spill] sm:$0xff] }
 0x477   :  { %3122 = vst.msk [vmem:[%s8933_s4 + $0x80] sm:$0xf] %vm3089_vm5, %v10632_v61  ;;  %v10640_v61 = vpack.c.bf16 %v10639_v10, %v10639_v10  ;;  %3128 = vst.msk [vmem:[%s8933_s4 + $0x98] sm:$0xf] %vm3089_vm5, %v10641_v49  ;;  %v10642_v0 = vpack.c.bf16 %v10527_v4, %v10527_v4  ;;  %v10646_v43 = vpack.c.bf16 %v10645_v55, %v10645_v55  ;;  %v10650_v10 = vld [vmem:[#allocation97_spill] sm:$0xff] }
 0x478   :  { %3123 = vst.msk [vmem:[%s8933_s4 + $0x84] sm:$0xf] %vm3089_vm5, %v10634_v50  ;;  %3124 = vst.msk [vmem:[%s8933_s4 + $0x88] sm:$0xf] %vm3089_vm5, %v10635_v57  ;;  %v10643_v50 = vld [vmem:[#allocation74_spill] sm:$0xff]  ;;  %v10647_v4 = vpack.c.bf16 %v7227_v56, %v7227_v56  ;;  %v10652_v56 = vld [vmem:[#allocation19_spill] sm:$0xff] }
 0x479   :  { %3126 = vst.msk [vmem:[%s8933_s4 + $0x90] sm:$0xf] %vm3089_vm5, %v10638_v35  ;;  %3127 = vst.msk [vmem:[%s8933_s4 + $0x94] sm:$0xf] %vm3089_vm5, %v10640_v61  ;;  %v10644_v57 = vpack.c.bf16 %v10643_v50, %v10643_v50  ;;  %v10649_v35 = vpack.c.bf16 %v10648_v41, %v10648_v41  ;;  %v10651_v61 = vpack.c.bf16 %v10650_v10, %v10650_v10 }
 0x47a   :  { %3129 = vst.msk [vmem:[%s8933_s4 + $0x9c] sm:$0xf] %vm3089_vm5, %v10642_v0  ;;  %3131 = vst.msk [vmem:[%s8933_s4 + $0xa4] sm:$0xf] %vm3089_vm5, %v10646_v43  ;;  %v10653_v49 = vpack.c.bf16 %v10652_v56, %v10652_v56  ;;  %v10654_v0 = vpack.c.bf16 %v7255_v5, %v7255_v5  ;;  %v10655_v50 = vpack.c.bf16 %v7261_v60, %v7261_v60  ;;  %v10658_v5 = vld [vmem:[#allocation24_spill] sm:$0xff] }
 0x47b   :  { %3130 = vst.msk [vmem:[%s8933_s4 + $0xa0] sm:$0xf] %vm3089_vm5, %v10644_v57  ;;  %3132 = vst.msk [vmem:[%s8933_s4 + $0xa8] sm:$0xf] %vm3089_vm5, %v10647_v4  ;;  %v10656_v57 = vld [vmem:[#allocation22_spill] sm:$0xff]  ;;  %v10659_v43 = vpack.c.bf16 %v10658_v5, %v10658_v5  ;;  %v10660_v60 = vpack.c.bf16 %v7283_v14, %v7283_v14  ;;  %v10661_v4 = vld [vmem:[#allocation53_spill] sm:$0xff]  ;;  %v10667_v56 = vpack.c.bf16 %v7311_v22, %v7311_v22 }
 0x47c   :  { %3133 = vst.msk [vmem:[%s8933_s4 + $0xac] sm:$0xf] %vm3089_vm5, %v10649_v35  ;;  %3134 = vst.msk [vmem:[%s8933_s4 + $0xb0] sm:$0xf] %vm3089_vm5, %v10651_v61  ;;  %v10657_v55 = vpack.c.bf16 %v10656_v57, %v10656_v57  ;;  %v10662_v41 = vpack.c.bf16 %v10661_v4, %v10661_v4  ;;  %v10663_v35 = vld [vmem:[#allocation58_spill] sm:$0xff]  ;;  %v10665_v14 = vld [vmem:[#allocation61_spill] sm:$0xff] }
 0x47d   :  { %3135 = vst.msk [vmem:[%s8933_s4 + $0xb4] sm:$0xf] %vm3089_vm5, %v10653_v49  ;;  %3136 = vst.msk [vmem:[%s8933_s4 + $0xb8] sm:$0xf] %vm3089_vm5, %v10654_v0  ;;  %v10664_v10 = vpack.c.bf16 %v10663_v35, %v10663_v35  ;;  %v10666_v61 = vpack.c.bf16 %v10665_v14, %v10665_v14  ;;  %v10668_v49 = vld [vmem:[#allocation108_spill] sm:$0xff] }
 0x47e   :  { %3137 = vst.msk [vmem:[%s8933_s4 + $0xbc] sm:$0xf] %vm3089_vm5, %v10655_v50  ;;  %3138 = vst.msk [vmem:[%s8933_s4 + $0xc0] sm:$0xf] %vm3089_vm5, %v10657_v55  ;;  %v10669_v0 = vpack.c.bf16 %v10668_v49, %v10668_v49  ;;  %v10670_v50 = vld [vmem:[#allocation26_spill] sm:$0xff]  ;;  %v10672_v22 = vld [vmem:[#allocation28_spill] sm:$0xff] }
 0x47f   :  { %3139 = vst.msk [vmem:[%s8933_s4 + $0xc4] sm:$0xf] %vm3089_vm5, %v10659_v43  ;;  %3140 = vst.msk [vmem:[%s8933_s4 + $0xc8] sm:$0xf] %vm3089_vm5, %v10660_v60  ;;  %v10671_v57 = vpack.c.bf16 %v10670_v50, %v10670_v50  ;;  %v10673_v55 = vpack.c.bf16 %v10672_v22, %v10672_v22  ;;  %v10674_v5 = vld [vmem:[#allocation56_spill] sm:$0xff]  ;;  %v10676_v60 = vld [vmem:[#allocation109_spill] sm:$0xff] }
 0x480   :  { %3141 = vst.msk [vmem:[%s8933_s4 + $0xcc] sm:$0xf] %vm3089_vm5, %v10662_v41  ;;  %3142 = vst.msk [vmem:[%s8933_s4 + $0xd0] sm:$0xf] %vm3089_vm5, %v10664_v10  ;;  %v10675_v43 = vpack.c.bf16 %v10674_v5, %v10674_v5  ;;  %v10677_v4 = vpack.c.bf16 %v10676_v60, %v10676_v60  ;;  %v10678_v41 = vld [vmem:[#allocation111_spill] sm:$0xff]  ;;  %v10680_v10 = vld [vmem:[#allocation112_spill] sm:$0xff] }
 0x481   :  { %3143 = vst.msk [vmem:[%s8933_s4 + $0xd4] sm:$0xf] %vm3089_vm5, %v10666_v61  ;;  %3144 = vst.msk [vmem:[%s8933_s4 + $0xd8] sm:$0xf] %vm3089_vm5, %v10667_v56  ;;  %v10679_v35 = vpack.c.bf16 %v10678_v41, %v10678_v41  ;;  %v10681_v14 = vpack.c.bf16 %v10680_v10, %v10680_v10  ;;  %v10682_v61 = vld [vmem:[#allocation30_spill] sm:$0xff]  ;;  %v10684_v49 = vld [vmem:[#allocation29_spill] sm:$0xff] }
 0x482   :  { %3145 = vst.msk [vmem:[%s8933_s4 + $0xdc] sm:$0xf] %vm3089_vm5, %v10669_v0  ;;  %3146 = vst.msk [vmem:[%s8933_s4 + $0xe0] sm:$0xf] %vm3089_vm5, %v10671_v57  ;;  %v10683_v56 = vpack.c.bf16 %v10682_v61, %v10682_v61  ;;  %v10685_v0 = vpack.c.bf16 %v10684_v49, %v10684_v49  ;;  %v10686_v50 = vld [vmem:[#allocation113_spill] sm:$0xff]  ;;  %v10688_v22 = vld [vmem:[#allocation115_spill] sm:$0xff]  ;;  %v10698_v61 = vpack.c.bf16 %v10549_v47, %v10549_v47 }
 0x483   :  { %3147 = vst.msk [vmem:[%s8933_s4 + $0xe4] sm:$0xf] %vm3089_vm5, %v10673_v55  ;;  %3148 = vst.msk [vmem:[%s8933_s4 + $0xe8] sm:$0xf] %vm3089_vm5, %v10675_v43  ;;  %v10687_v57 = vpack.c.bf16 %v10686_v50, %v10686_v50  ;;  %v10689_v55 = vpack.c.bf16 %v10688_v22, %v10688_v22  ;;  %v10690_v5 = vld [vmem:[#allocation116_spill] sm:$0xff]  ;;  %v10692_v60 = vld [vmem:[#allocation117_spill] sm:$0xff]  ;;  %v10706_v22 = vpack.c.bf16 %v10555_v25, %v10555_v25 }
 0x484   :  { %3149 = vst.msk [vmem:[%s8933_s4 + $0xec] sm:$0xf] %vm3089_vm5, %v10677_v4  ;;  %3150 = vst.msk [vmem:[%s8933_s4 + $0xf0] sm:$0xf] %vm3089_vm5, %v10679_v35  ;;  %v10691_v43 = vpack.c.bf16 %v10690_v5, %v10690_v5  ;;  %v10693_v4 = vpack.c.bf16 %v10692_v60, %v10692_v60  ;;  %v10694_v41 = vld [vmem:[#allocation31_spill] sm:$0xff]  ;;  %v10696_v10 = vld [vmem:[#allocation36_spill] sm:$0xff]  ;;  %v10710_v25 = vpack.c.bf16 %v7485_v38, %v7485_v38 }
 0x485   :  { %3151 = vst.msk [vmem:[%s8933_s4 + $0xf4] sm:$0xf] %vm3089_vm5, %v10681_v14  ;;  %3152 = vst.msk [vmem:[%s8933_s4 + $0xf8] sm:$0xf] %vm3089_vm5, %v10683_v56  ;;  %v10695_v35 = vpack.c.bf16 %v10694_v41, %v10694_v41  ;;  %v10697_v14 = vpack.c.bf16 %v10696_v10, %v10696_v10  ;;  %v10699_v56 = vpack.c.bf16 %v10550_v36, %v10550_v36  ;;  %v10700_v49 = vld [vmem:[#allocation120_spill] sm:$0xff]  ;;  %v10702_v47 = vld [vmem:[#allocation121_spill] sm:$0xff] }
 0x486   :  { %3153 = vst.msk [vmem:[%s8933_s4 + $0xfc] sm:$0xf] %vm3089_vm5, %v10685_v0  ;;  %3154 = vst.msk [vmem:[%s8933_s4 + $0x100] sm:$0xf] %vm3089_vm5, %v10687_v57  ;;  %v10701_v0 = vpack.c.bf16 %v10700_v49, %v10700_v49  ;;  %v10703_v50 = vpack.c.bf16 %v10702_v47, %v10702_v47  ;;  %v10704_v36 = vpack.c.bf16 %v10553_v33, %v10553_v33  ;;  %v10707_v33 = vld [vmem:[#allocation124_spill] sm:$0xff]  ;;  %v10750_v41 = vld [vmem:[#allocation129_spill] sm:$0xff] }
 0x487   :  { %3155 = vst.msk [vmem:[%s8933_s4 + $0x104] sm:$0xf] %vm3089_vm5, %v10689_v55  ;;  %3156 = vst.msk [vmem:[%s8933_s4 + $0x108] sm:$0xf] %vm3089_vm5, %v10691_v43  ;;  %v10705_v57 = vpack.c.bf16 %v10554_v18, %v10554_v18  ;;  %v10708_v55 = vpack.c.bf16 %v10707_v33, %v10707_v33  ;;  %v10709_v18 = vpack.c.bf16 %v7479_v44, %v7479_v44  ;;  %v10752_v10 = vld [vmem:[#allocation131_spill] sm:$0xff]  ;;  %v10756_v49 = vld [vmem:[#allocation133_spill] sm:$0xff] }
 0x488   :  { %3157 = vst.msk [vmem:[%s8933_s4 + $0x10c] sm:$0xf] %vm3089_vm5, %v10693_v4  ;;  %3158 = vst.msk [vmem:[%s8933_s4 + $0x110] sm:$0xf] %vm3089_vm5, %v10695_v35  ;;  %v10711_v5 = vpack.c.bf16 %v10557_v27, %v10557_v27  ;;  %v10712_v44 = vpack.c.bf16 %v10558_v45, %v10558_v45  ;;  %v10713_v38 = vpack.c.bf16 %v7505_v58, %v7505_v58 }
 0x489   :  { %3159 = vst.msk [vmem:[%s8933_s4 + $0x114] sm:$0xf] %vm3089_vm5, %v10697_v14  ;;  %3160 = vst.msk [vmem:[%s8933_s4 + $0x118] sm:$0xf] %vm3089_vm5, %v10698_v61  ;;  %v10714_v27 = vpack.c.bf16 %v7511_v16, %v7511_v16  ;;  %v10715_v45 = vpack.c.bf16 %v7517_v32, %v7517_v32  ;;  %v10716_v58 = vpack.c.bf16 %v10559_v39, %v10559_v39  ;;  %v10754_v61 = vld [vmem:[#allocation132_spill] sm:$0xff] }
 0x48a   :  { %3161 = vst.msk [vmem:[%s8933_s4 + $0x11c] sm:$0xf] %vm3089_vm5, %v10699_v56  ;;  %3162 = vst.msk [vmem:[%s8933_s4 + $0x120] sm:$0xf] %vm3089_vm5, %v10701_v0  ;;  %v10717_v16 = vpack.c.bf16 %v7529_v8, %v7529_v8  ;;  %v10718_v32 = vpack.c.bf16 %v7535_v54, %v7535_v54  ;;  %v10719_v39 = vpack.c.bf16 %v7541_v1, %v7541_v1 }
 0x48b   :  { %3163 = vst.msk [vmem:[%s8933_s4 + $0x124] sm:$0xf] %vm3089_vm5, %v10703_v50  ;;  %3164 = vst.msk [vmem:[%s8933_s4 + $0x128] sm:$0xf] %vm3089_vm5, %v10704_v36  ;;  %v10720_v8 = vpack.c.bf16 %v7547_v3, %v7547_v3  ;;  %v10721_v54 = vpack.c.bf16 %v7553_v15, %v7553_v15  ;;  %v10722_v1 = vpack.c.bf16 %v7559_v37, %v7559_v37  ;;  %v10759_v50 = vld [vmem:[#allocation43_spill] sm:$0xff] }
 0x48c   :  { %3165 = vst.msk [vmem:[%s8933_s4 + $0x12c] sm:$0xf] %vm3089_vm5, %v10705_v57  ;;  %3166 = vst.msk [vmem:[%s8933_s4 + $0x130] sm:$0xf] %vm3089_vm5, %v10706_v22  ;;  %v10723_v3 = vpack.c.bf16 %v7565_v2, %v7565_v2  ;;  %v10724_v15 = vpack.c.bf16 %v7571_v17, %v7571_v17  ;;  %v10725_v37 = vpack.c.bf16 %v7577_v7, %v7577_v7 }
 0x48d   :  { %3167 = vst.msk [vmem:[%s8933_s4 + $0x134] sm:$0xf] %vm3089_vm5, %v10708_v55  ;;  %3168 = vst.msk [vmem:[%s8933_s4 + $0x138] sm:$0xf] %vm3089_vm5, %v10709_v18  ;;  %v10726_v2 = vpack.c.bf16 %v7583_v24, %v7583_v24  ;;  %v10727_v17 = vpack.c.bf16 %v7589_v21, %v7589_v21  ;;  %v10728_v7 = vpack.c.bf16 %v7595_v42, %v7595_v42 }
 0x48e   :  { %3169 = vst.msk [vmem:[%s8933_s4 + $0x13c] sm:$0xf] %vm3089_vm5, %v10710_v25  ;;  %3170 = vst.msk [vmem:[%s8933_s4 + $0x140] sm:$0xf] %vm3089_vm5, %v10711_v5  ;;  %v10729_v24 = vpack.c.bf16 %v7601_v12, %v7601_v12  ;;  %v10730_v21 = vpack.c.bf16 %v7607_v51, %v7607_v51  ;;  %v10731_v42 = vpack.c.bf16 %v7613_v48, %v7613_v48 }
 0x48f   :  { %3171 = vst.msk [vmem:[%s8933_s4 + $0x144] sm:$0xf] %vm3089_vm5, %v10712_v44  ;;  %3172 = vst.msk [vmem:[%s8933_s4 + $0x148] sm:$0xf] %vm3089_vm5, %v10713_v38  ;;  %v10732_v12 = vpack.c.bf16 %v7619_v62, %v7619_v62  ;;  %v10733_v51 = vpack.c.bf16 %v7625_v23, %v7625_v23  ;;  %v10734_v48 = vpack.c.bf16 %v7631_v52, %v7631_v52 }
 0x490   :  { %3173 = vst.msk [vmem:[%s8933_s4 + $0x14c] sm:$0xf] %vm3089_vm5, %v10714_v27  ;;  %3174 = vst.msk [vmem:[%s8933_s4 + $0x150] sm:$0xf] %vm3089_vm5, %v10715_v45  ;;  %v10735_v62 = vpack.c.bf16 %v7637_v20, %v7637_v20  ;;  %v10736_v23 = vpack.c.bf16 %v7643_v19, %v7643_v19  ;;  %v10737_v52 = vpack.c.bf16 %v7649_v46, %v7649_v46 }
 0x491   :  { %3175 = vst.msk [vmem:[%s8933_s4 + $0x154] sm:$0xf] %vm3089_vm5, %v10716_v58  ;;  %3176 = vst.msk [vmem:[%s8933_s4 + $0x158] sm:$0xf] %vm3089_vm5, %v10717_v16  ;;  %v10738_v20 = vpack.c.bf16 %v7655_v34, %v7655_v34  ;;  %v10739_v19 = vpack.c.bf16 %v7661_v29, %v7661_v29  ;;  %v10740_v46 = vpack.c.bf16 %v7667_v59, %v7667_v59 }
 0x492   :  { %3177 = vst.msk [vmem:[%s8933_s4 + $0x15c] sm:$0xf] %vm3089_vm5, %v10718_v32  ;;  %3178 = vst.msk [vmem:[%s8933_s4 + $0x160] sm:$0xf] %vm3089_vm5, %v10719_v39  ;;  %v10741_v34 = vpack.c.bf16 %v7673_v31, %v7673_v31  ;;  %v10742_v29 = vpack.c.bf16 %v7679_v63, %v7679_v63  ;;  %v10743_v59 = vpack.c.bf16 %v7685_v53, %v7685_v53  ;;  %v10744_v31 = vld [vmem:[#allocation39_spill] sm:$0xff]  ;;  %v10746_v63 = vld [vmem:[#allocation42_spill] sm:$0xff] }
 0x493   :  { %3179 = vst.msk [vmem:[%s8933_s4 + $0x164] sm:$0xf] %vm3089_vm5, %v10720_v8  ;;  %3180 = vst.msk [vmem:[%s8933_s4 + $0x168] sm:$0xf] %vm3089_vm5, %v10721_v54  ;;  %v10745_v43 = vpack.c.bf16 %v10744_v31, %v10744_v31  ;;  %v10747_v60 = vpack.c.bf16 %v10746_v63, %v10746_v63  ;;  %v10748_v53 = vld [vmem:[#allocation41_spill] sm:$0xff]  ;;  %v10751_v35 = vpack.c.bf16 %v10750_v41, %v10750_v41 }
 0x494   :  { %3181 = vst.msk [vmem:[%s8933_s4 + $0x16c] sm:$0xf] %vm3089_vm5, %v10722_v1  ;;  %3182 = vst.msk [vmem:[%s8933_s4 + $0x170] sm:$0xf] %vm3089_vm5, %v10723_v3  ;;  %v10749_v4 = vpack.c.bf16 %v10748_v53, %v10748_v53  ;;  %v10753_v14 = vpack.c.bf16 %v10752_v10, %v10752_v10  ;;  %v10755_v56 = vpack.c.bf16 %v10754_v61, %v10754_v61 }
 0x495   :  { %3183 = vst.msk [vmem:[%s8933_s4 + $0x174] sm:$0xf] %vm3089_vm5, %v10724_v15  ;;  %3184 = vst.msk [vmem:[%s8933_s4 + $0x178] sm:$0xf] %vm3089_vm5, %v10725_v37  ;;  %v10757_v0 = vpack.c.bf16 %v10756_v49, %v10756_v49  ;;  %v10758_v47 = vpack.c.bf16 %v7733_v6, %v7733_v6  ;;  %v10760_v36 = vpack.c.bf16 %v10759_v50, %v10759_v50 }
 0x496   :  { %3185 = vst.msk [vmem:[%s8933_s4 + $0x17c] sm:$0xf] %vm3089_vm5, %v10726_v2  ;;  %3186 = vst.msk [vmem:[%s8933_s4 + $0x180] sm:$0xf] %vm3089_vm5, %v10727_v17  ;;  %v10761_v6 = vpack.c.bf16 %v10562_v9, %v10562_v9  ;;  %v10762_v57 = vpack.c.bf16 %v10563_v40, %v10563_v40  ;;  %v10764_v9 = vpack.c.bf16 %v10565_v11, %v10565_v11 }
 0x497   :  { %3187 = vst.msk [vmem:[%s8933_s4 + $0x184] sm:$0xf] %vm3089_vm5, %v10728_v7  ;;  %3188 = vst.msk [vmem:[%s8933_s4 + $0x188] sm:$0xf] %vm3089_vm5, %v10729_v24  ;;  %v10765_v40 = vpack.c.bf16 %v10566_v26, %v10566_v26 }
 0x498   :  { %3189 = vst.msk [vmem:[%s8933_s4 + $0x18c] sm:$0xf] %vm3089_vm5, %v10730_v21  ;;  %3190 = vst.msk [vmem:[%s8933_s4 + $0x190] sm:$0xf] %vm3089_vm5, %v10731_v42 }
 0x499   :  { %3191 = vst.msk [vmem:[%s8933_s4 + $0x194] sm:$0xf] %vm3089_vm5, %v10732_v12  ;;  %3192 = vst.msk [vmem:[%s8933_s4 + $0x198] sm:$0xf] %vm3089_vm5, %v10733_v51 }
 0x49a   :  { %3193 = vst.msk [vmem:[%s8933_s4 + $0x19c] sm:$0xf] %vm3089_vm5, %v10734_v48  ;;  %3194 = vst.msk [vmem:[%s8933_s4 + $0x1a0] sm:$0xf] %vm3089_vm5, %v10735_v62 }
 0x49b   :  { %3195 = vst.msk [vmem:[%s8933_s4 + $0x1a4] sm:$0xf] %vm3089_vm5, %v10736_v23  ;;  %3196 = vst.msk [vmem:[%s8933_s4 + $0x1a8] sm:$0xf] %vm3089_vm5, %v10737_v52 }
 0x49c   :  { %3197 = vst.msk [vmem:[%s8933_s4 + $0x1ac] sm:$0xf] %vm3089_vm5, %v10738_v20  ;;  %3198 = vst.msk [vmem:[%s8933_s4 + $0x1b0] sm:$0xf] %vm3089_vm5, %v10739_v19 }
 0x49d   :  { %3199 = vst.msk [vmem:[%s8933_s4 + $0x1b4] sm:$0xf] %vm3089_vm5, %v10740_v46  ;;  %3200 = vst.msk [vmem:[%s8933_s4 + $0x1b8] sm:$0xf] %vm3089_vm5, %v10741_v34 }
 0x49e   :  { %3201 = vst.msk [vmem:[%s8933_s4 + $0x1bc] sm:$0xf] %vm3089_vm5, %v10742_v29  ;;  %3202 = vst.msk [vmem:[%s8933_s4 + $0x1c0] sm:$0xf] %vm3089_vm5, %v10743_v59 }
 0x49f   :  { %3203 = vst.msk [vmem:[%s8933_s4 + $0x1c4] sm:$0xf] %vm3089_vm5, %v10745_v43  ;;  %3204 = vst.msk [vmem:[%s8933_s4 + $0x1c8] sm:$0xf] %vm3089_vm5, %v10747_v60 }
 0x4a0   :  { %3205 = vst.msk [vmem:[%s8933_s4 + $0x1cc] sm:$0xf] %vm3089_vm5, %v10749_v4  ;;  %3206 = vst.msk [vmem:[%s8933_s4 + $0x1d0] sm:$0xf] %vm3089_vm5, %v10751_v35 }
 0x4a1   :  { %3207 = vst.msk [vmem:[%s8933_s4 + $0x1d4] sm:$0xf] %vm3089_vm5, %v10753_v14  ;;  %3208 = vst.msk [vmem:[%s8933_s4 + $0x1d8] sm:$0xf] %vm3089_vm5, %v10755_v56 }
 0x4a2   :  { %3209 = vst.msk [vmem:[%s8933_s4 + $0x1dc] sm:$0xf] %vm3089_vm5, %v10757_v0  ;;  %3210 = vst.msk [vmem:[%s8933_s4 + $0x1e0] sm:$0xf] %vm3089_vm5, %v10758_v47 }
 0x4a3   :  { %3211 = vst.msk [vmem:[%s8933_s4 + $0x1e4] sm:$0xf] %vm3089_vm5, %v10760_v36  ;;  %3213 = vst.msk [vmem:[%s8933_s4 + $0x1ec] sm:$0xf] %vm3089_vm5, %v10761_v6 }
 0x4a4   :  { %3214 = vst.msk [vmem:[%s8933_s4 + $0x1f0] sm:$0xf] %vm3089_vm5, %v10762_v57  ;;  %3216 = vst.msk [vmem:[%s8933_s4 + $0x1f8] sm:$0xf] %vm3089_vm5, %v10764_v9 }
 0x4a5   :  { %3217 = vst.msk [vmem:[%s8933_s4 + $0x1fc] sm:$0xf] %vm3089_vm5, %v10765_v40 }

// kernel: discriminator_forward.6
= control target key start
LH: loop header
LB: loop body
LE: loop exit
PB: predicated region body
PF: predicated region fallthrough
CT: control target
= control target key end

     0   :  { %vm1302_vm0 = vcmask 523264   ;;  %s2775_s1 = inlined_call_operand.vmem [shape: bf16[1024,64], index: 1, kind: input, shape index: {}]   ;;  %s2776_s0 = inlined_call_operand.vmem [shape: bf16[128,1024], index: 0, kind: input, shape index: {}]   ;;  %s2777_s2 = inlined_call_operand.vmem [shape: f32[1,64], index: 2, kind: input, shape index: {}]   ;;  %s2778_s3 = inlined_call_operand.vmem [shape: f32[1,64], index: 3, kind: input, shape index: {}]   ;;  %s2779_s4 = inlined_call_operand.vmem [shape: bf16[128,64], index: 4, kind: output, shape index: {}]  }
   0x1   :  { %v2010_v0 = vld [vmem:[%s2775_s1 + $0x40] sm:$0xff]   ;;  %v2014_v4 = vld [vmem:[%s2775_s1 + $0x48] sm:$0xff]   ;;  %v2018_v8 = vld [vmem:[%s2775_s1 + $0x50] sm:$0xff]  }
   0x2   :  { %v2011_v1 = vld [vmem:[%s2775_s1 + $0xc0] sm:$0xff]   ;;  %1754 = vmatprep.subr.bf16.mxu0 %v2010_v0  ;;  %v2015_v5 = vld [vmem:[%s2775_s1 + $0xc8] sm:$0xff]   ;;  %v2019_v9 = vld [vmem:[%s2775_s1 + $0xd0] sm:$0xff]  }
   0x3   :  { %v2012_v2 = vld [vmem:[%s2775_s1] sm:$0xff]   ;;  %1818 = vmatprep.subr.bf16.mxu1 %v2011_v1  ;;  %v2016_v6 = vld [vmem:[%s2775_s1 + $0x8] sm:$0xff]   ;;  %v2020_v10 = vld [vmem:[%s2775_s1 + $0x10] sm:$0xff]  }
   0x4   :  { %v2013_v3 = vld [vmem:[%s2775_s1 + $0x80] sm:$0xff]   ;;  %1755 = vmatpush3.bf16.msra.mxu0 %v2012_v2  ;;  %v2017_v7 = vld [vmem:[%s2775_s1 + $0x88] sm:$0xff]   ;;  %v2021_v11 = vld [vmem:[%s2775_s1 + $0x90] sm:$0xff]  }
   0x5   :  { %1819 = vmatpush3.bf16.msra.mxu1 %v2013_v3  ;;  %1756 = vmatprep.subr.bf16.mxu0 %v2014_v4  ;;  %v2022_v12 = vld [vmem:[%s2775_s1 + $0x58] sm:$0xff]   ;;  %v2026_v16 = vld [vmem:[%s2775_s1 + $0x60] sm:$0xff]   ;;  %v2030_v20 = vld [vmem:[%s2775_s1 + $0x68] sm:$0xff]  }
   0x6   :  { %1820 = vmatprep.subr.bf16.mxu1 %v2015_v5  ;;  %v2023_v13 = vld [vmem:[%s2775_s1 + $0xd8] sm:$0xff]   ;;  %v2027_v17 = vld [vmem:[%s2775_s1 + $0xe0] sm:$0xff]   ;;  %v2031_v21 = vld [vmem:[%s2775_s1 + $0xe8] sm:$0xff]  }
   0x7   :  { %v2024_v14 = vld [vmem:[%s2775_s1 + $0x18] sm:$0xff]   ;;  %v2028_v18 = vld [vmem:[%s2775_s1 + $0x20] sm:$0xff]   ;;  %v2032_v22 = vld [vmem:[%s2775_s1 + $0x28] sm:$0xff]  }
   0x8   :  { %1757 = vmatpush3.bf16.msra.mxu0 %v2016_v6  ;;  %v2025_v15 = vld [vmem:[%s2775_s1 + $0x98] sm:$0xff]   ;;  %v2029_v19 = vld [vmem:[%s2775_s1 + $0xa0] sm:$0xff]   ;;  %v2033_v23 = vld [vmem:[%s2775_s1 + $0xa8] sm:$0xff]  }
   0x9   :  { %1821 = vmatpush3.bf16.msra.mxu1 %v2017_v7  ;;  %1758 = vmatprep.subr.bf16.mxu0 %v2018_v8  ;;  %v2034_v24 = vld [vmem:[%s2775_s1 + $0x70] sm:$0xff]   ;;  %v2038_v28 = vld [vmem:[%s2775_s1 + $0x78] sm:$0xff]   ;;  %v18_v32 = vld [vmem:[%s2776_s0] sm:$0xff] }
   0xa   :  { %1822 = vmatprep.subr.bf16.mxu1 %v2019_v9  ;;  %v2035_v25 = vld [vmem:[%s2775_s1 + $0xf0] sm:$0xff]   ;;  %v2039_v29 = vld [vmem:[%s2775_s1 + $0xf8] sm:$0xff]   ;;  %v22_v33 = vld [vmem:[%s2776_s0 + $0x20] sm:$0xff] }
   0xb   :  { %v2036_v26 = vld [vmem:[%s2775_s1 + $0x30] sm:$0xff]   ;;  %v2040_v30 = vld [vmem:[%s2775_s1 + $0x38] sm:$0xff]   ;;  %v19_v34 = vld [vmem:[%s2776_s0 + $0x8] sm:$0xff]  ;;  %v1593_v35 = vcombine.low %v18_v32, %v22_v33  ;;  %v1594_v36 = vcombine.high %v18_v32, %v22_v33 }
   0xc   :  { %1759 = vmatpush3.bf16.msra.mxu0 %v2020_v10  ;;  %v2037_v27 = vld [vmem:[%s2775_s1 + $0xb0] sm:$0xff]   ;;  %v2041_v31 = vld [vmem:[%s2775_s1 + $0xb8] sm:$0xff]   ;;  %v23_v37 = vld [vmem:[%s2776_s0 + $0x28] sm:$0xff] }
   0xd   :  { %1823 = vmatpush3.bf16.msra.mxu1 %v2021_v11  ;;  %1760 = vmatprep.subr.bf16.mxu0 %v2022_v12  ;;  %v1595_v38 = vcombine.low %v19_v34, %v23_v37  ;;  %v1596_v39 = vcombine.high %v19_v34, %v23_v37  ;;  %v2042_v40 = vld [vmem:[%s2775_s1 + $0x140] sm:$0xff]   ;;  %v27_v47 = vld [vmem:[%s2776_s0 + $0x48] sm:$0xff]  ;;  %v2050_v62 = vld [vmem:[%s2775_s1 + $0x150] sm:$0xff]  }
   0xe   :  { %1824 = vmatprep.subr.bf16.mxu1 %v2023_v13  ;;  %946 = vmatprep.mubr.bf16.mxu0 %v1594_v36  ;;  %v2043_v41 = vld [vmem:[%s2775_s1 + $0x100] sm:$0xff]   ;;  %v31_v48 = vld [vmem:[%s2776_s0 + $0x68] sm:$0xff]  ;;  %v2051_v63 = vld [vmem:[%s2775_s1 + $0x110] sm:$0xff]  }
   0xf   :  { %1043 = vmatprep.mubr.bf16.mxu1 %v1596_v39  ;;  %v2044_v42 = vld [vmem:[%s2775_s1 + $0x1c0] sm:$0xff]   ;;  %v1604_v49 = vcombine.high %v27_v47, %v31_v48  ;;  %v2046_v50 = vld [vmem:[%s2775_s1 + $0x148] sm:$0xff]   ;;  %v1603_v53 = vcombine.low %v27_v47, %v31_v48  ;;  %v2052_v0 = vld [vmem:[%s2775_s1 + $0x1d0] sm:$0xff]  }
  0x10   :  { %1761 = vmatpush3.bf16.msra.mxu0 %v2024_v14  ;;  %v2045_v43 = vld [vmem:[%s2775_s1 + $0x180] sm:$0xff]   ;;  %v2047_v52 = vld [vmem:[%s2775_s1 + $0x108] sm:$0xff]   ;;  %v2053_v1 = vld [vmem:[%s2775_s1 + $0x190] sm:$0xff]  }
  0x11   :  { %1825 = vmatpush3.bf16.msra.mxu1 %v2025_v15  ;;  %1762 = vmatprep.subr.bf16.mxu0 %v2026_v16  ;;  %v26_v44 = vld [vmem:[%s2776_s0 + $0x40] sm:$0xff]  ;;  %v2048_v54 = vld [vmem:[%s2775_s1 + $0x1c8] sm:$0xff]   ;;  %v2054_v10 = vld [vmem:[%s2775_s1 + $0x158] sm:$0xff]  }
  0x12   :  { %1826 = vmatprep.subr.bf16.mxu1 %v2027_v17  ;;  %v30_v45 = vld [vmem:[%s2776_s0 + $0x60] sm:$0xff]  ;;  %v2049_v55 = vld [vmem:[%s2775_s1 + $0x188] sm:$0xff]   ;;  %v2055_v11 = vld [vmem:[%s2775_s1 + $0x118] sm:$0xff]  }
  0x13   :  { %v1602_v46 = vcombine.high %v26_v44, %v30_v45  ;;  %v1601_v51 = vcombine.low %v26_v44, %v30_v45  ;;  %v34_v56 = vld [vmem:[%s2776_s0 + $0x80] sm:$0xff]  ;;  %v35_v58 = vld [vmem:[%s2776_s0 + $0x88] sm:$0xff]  ;;  %v2056_v12 = vld [vmem:[%s2775_s1 + $0x1d8] sm:$0xff]  }
  0x14   :  { %1763 = vmatpush3.bf16.msra.mxu0 %v2028_v18  ;;  %v38_v57 = vld [vmem:[%s2776_s0 + $0xa0] sm:$0xff]  ;;  %v39_v59 = vld [vmem:[%s2776_s0 + $0xa8] sm:$0xff]  ;;  %v2057_v13 = vld [vmem:[%s2775_s1 + $0x198] sm:$0xff]  }
  0x15   :  { %1827 = vmatpush3.bf16.msra.mxu1 %v2029_v19  ;;  %1764 = vmatprep.subr.bf16.mxu0 %v2030_v20  ;;  %v1610_v60 = vcombine.high %v34_v56, %v38_v57  ;;  %v1612_v61 = vcombine.high %v35_v58, %v39_v59  ;;  %v1609_v2 = vcombine.low %v34_v56, %v38_v57  ;;  %v42_v3 = vld [vmem:[%s2776_s0 + $0xc0] sm:$0xff]  ;;  %v43_v5 = vld [vmem:[%s2776_s0 + $0xc8] sm:$0xff]  ;;  %v2067_v39 = vld [vmem:[%s2775_s1 + $0x130] sm:$0xff]  }
  0x16   :  { %1828 = vmatprep.subr.bf16.mxu1 %v2031_v21  ;;  %v46_v4 = vld [vmem:[%s2776_s0 + $0xe0] sm:$0xff]  ;;  %v1611_v6 = vcombine.low %v35_v58, %v39_v59  ;;  %v47_v8 = vld [vmem:[%s2776_s0 + $0xe8] sm:$0xff]  ;;  %v2071_v48 = vld [vmem:[%s2775_s1 + $0x138] sm:$0xff]  }
  0x17   :  { %v1618_v7 = vcombine.high %v42_v3, %v46_v4  ;;  %v1620_v9 = vcombine.high %v43_v5, %v47_v8  ;;  %v50_v14 = vld [vmem:[%s2776_s0 + $0x100] sm:$0xff]  ;;  %v51_v16 = vld [vmem:[%s2776_s0 + $0x108] sm:$0xff]  ;;  %v1617_v19 = vcombine.low %v42_v3, %v46_v4  ;;  %v1619_v21 = vcombine.low %v43_v5, %v47_v8  ;;  %v29_v8 = vld [vmem:[%s2776_s0 + $0x58] sm:$0xff] }
  0x18   :  { %1765 = vmatpush3.bf16.msra.mxu0 %v2032_v22  ;;  %v54_v15 = vld [vmem:[%s2776_s0 + $0x120] sm:$0xff]  ;;  %v55_v17 = vld [vmem:[%s2776_s0 + $0x128] sm:$0xff] }
  0x19   :  { %1829 = vmatpush3.bf16.msra.mxu1 %v2033_v23  ;;  %1766 = vmatprep.subr.bf16.mxu0 %v2034_v24  ;;  %v2058_v18 = vld [vmem:[%s2775_s1 + $0x160] sm:$0xff]   ;;  %v1626_v22 = vcombine.high %v50_v14, %v54_v15  ;;  %v1628_v24 = vcombine.high %v51_v16, %v55_v17  ;;  %v2064_v32 = vld [vmem:[%s2775_s1 + $0x1e8] sm:$0xff]   ;;  %v1625_v34 = vcombine.low %v50_v14, %v54_v15  ;;  %v36_v14 = vld [vmem:[%s2776_s0 + $0x90] sm:$0xff] }
  0x1a   :  { %1830 = vmatprep.subr.bf16.mxu1 %v2035_v25  ;;  %v2059_v20 = vld [vmem:[%s2775_s1 + $0x120] sm:$0xff]   ;;  %v2065_v33 = vld [vmem:[%s2775_s1 + $0x1a8] sm:$0xff]   ;;  %v40_v15 = vld [vmem:[%s2776_s0 + $0xb0] sm:$0xff] }
  0x1b   :  { %v2060_v23 = vld [vmem:[%s2775_s1 + $0x1e0] sm:$0xff]   ;;  %v67_v44 = vld [vmem:[%s2776_s0 + $0x188] sm:$0xff] }
  0x1c   :  { %1767 = vmatpush3.bf16.msra.mxu0 %v2036_v26  ;;  %v2061_v25 = vld [vmem:[%s2775_s1 + $0x1a0] sm:$0xff]   ;;  %v71_v45 = vld [vmem:[%s2776_s0 + $0x1a8] sm:$0xff] }
  0x1d   :  { %1831 = vmatpush3.bf16.msra.mxu1 %v2037_v27  ;;  %1768 = vmatprep.subr.bf16.mxu0 %v2038_v28  ;;  %v58_v26 = vld [vmem:[%s2776_s0 + $0x140] sm:$0xff]  ;;  %v2062_v28 = vld [vmem:[%s2775_s1 + $0x168] sm:$0xff]   ;;  %v1643_v59 = vcombine.low %v67_v44, %v71_v45 }
  0x1e   :  { %1832 = vmatprep.subr.bf16.mxu1 %v2039_v29  ;;  %v62_v27 = vld [vmem:[%s2776_s0 + $0x160] sm:$0xff]  ;;  %v59_v29 = vld [vmem:[%s2776_s0 + $0x148] sm:$0xff] }
  0x1f   :  { %v1634_v36 = vcombine.high %v58_v26, %v62_v27  ;;  %v1633_v47 = vcombine.low %v58_v26, %v62_v27  ;;  %v75_v56 = vld [vmem:[%s2776_s0 + $0x1c8] sm:$0xff]  ;;  %v1613_v26 = vcombine.low %v36_v14, %v40_v15 }
  0x20   :  { %1769 = vmatpush3.bf16.msra.mxu0 %v2040_v30  ;;  %v63_v30 = vld [vmem:[%s2776_s0 + $0x168] sm:$0xff] }
  0x21   :  { %1833 = vmatpush3.bf16.msra.mxu1 %v2041_v31  ;;  %1882 = vmatprep.subr.bf16.mxu0 %v2042_v40  ;;  %v2063_v31 = vld [vmem:[%s2775_s1 + $0x128] sm:$0xff]   ;;  %v1636_v37 = vcombine.high %v59_v29, %v63_v30  ;;  %v2068_v40 = vld [vmem:[%s2775_s1 + $0x1f0] sm:$0xff]  }
  0x22   :  { %1946 = vmatprep.subr.bf16.mxu1 %v2044_v42  ;;  %v70_v42 = vld [vmem:[%s2776_s0 + $0x1a0] sm:$0xff]  ;;  %v79_v57 = vld [vmem:[%s2776_s0 + $0x1e8] sm:$0xff] }
  0x23   :  { %947 = vmatmul.mubr.bf16.vlgmr.msra.gmra.mrb[0].mxu0 %v1593_v35  ;;  %v1627_v35 = vcombine.low %v51_v16, %v55_v17  ;;  %v1651_v3 = vcombine.low %v75_v56, %v79_v57  ;;  %v37_v16 = vld [vmem:[%s2776_s0 + $0x98] sm:$0xff] }
  0x24   :  { %1044 = vmatmul.mubr.bf16.vlgmr.msra.gmra.mrb[0].mxu1 %v1595_v38  ;;  %1883 = vmatpush3.bf16.msra.mxu0 %v2043_v41  ;;  %v2066_v38 = vld [vmem:[%s2775_s1 + $0x170] sm:$0xff]   ;;  %v66_v41 = vld [vmem:[%s2776_s0 + $0x180] sm:$0xff]  ;;  %v41_v17 = vld [vmem:[%s2776_s0 + $0xb8] sm:$0xff] }
  0x25   :  { %1947 = vmatpush3.bf16.msra.mxu1 %v2045_v43  ;;  %954 = vmatprep.mubr.bf16.mxu0 %v1602_v46  ;;  %v2069_v43 = vld [vmem:[%s2775_s1 + $0x1b0] sm:$0xff]   ;;  %v2070_v46 = vld [vmem:[%s2775_s1 + $0x178] sm:$0xff]   ;;  %v1641_v58 = vcombine.low %v66_v41, %v70_v42  ;;  %v1615_v27 = vcombine.low %v37_v16, %v41_v17 }
  0x26   :  { %1051 = vmatprep.mubr.bf16.mxu1 %v1604_v49  ;;  %1884 = vmatprep.subr.bf16.mxu0 %v2046_v50  ;;  %v1635_v49 = vcombine.low %v59_v29, %v63_v30  ;;  %v1642_v50 = vcombine.high %v66_v41, %v70_v42  ;;  %v52_v30 = vld [vmem:[%s2776_s0 + $0x110] sm:$0xff]  ;;  %v65_v41 = vld [vmem:[%s2776_s0 + $0x178] sm:$0xff] }
  0x27   :  { %1948 = vmatprep.subr.bf16.mxu1 %v2048_v54  ;;  %v74_v54 = vld [vmem:[%s2776_s0 + $0x1c0] sm:$0xff] }
  0x28   :  { %1885 = vmatpush3.bf16.msra.mxu0 %v2047_v52  ;;  %v1644_v52 = vcombine.high %v67_v44, %v71_v45 }
  0x29   :  { %1949 = vmatpush3.bf16.msra.mxu1 %v2049_v55  ;;  %1886 = vmatprep.subr.bf16.mxu0 %v2050_v62  ;;  %v78_v55 = vld [vmem:[%s2776_s0 + $0x1e0] sm:$0xff]  ;;  %v20_v62 = vld [vmem:[%s2776_s0 + $0x10] sm:$0xff] }
  0x2a   :  { %1950 = vmatprep.subr.bf16.mxu1 %v2052_v0  ;;  %v21_v0 = vld [vmem:[%s2776_s0 + $0x18] sm:$0xff] }
  0x2b   :  { %955 = vmatmul.mubr.bf16.gmra.mrb[4].mxu0 %v1601_v51  ;;  %v2072_v51 = vld [vmem:[%s2775_s1 + $0x1f8] sm:$0xff]  }
  0x2c   :  { %1052 = vmatmul.mubr.bf16.gmra.mrb[4].mxu1 %v1603_v53  ;;  %962 = vmatprep.mubr.bf16.mxu0 %v1610_v60  ;;  %v2073_v53 = vld [vmem:[%s2775_s1 + $0x1b8] sm:$0xff]   ;;  %v1650_v60 = vcombine.high %v74_v54, %v78_v55 }
  0x2d   :  { %1059 = vmatprep.mubr.bf16.mxu1 %v1612_v61  ;;  %1887 = vmatpush3.bf16.msra.mxu0 %v2051_v63  ;;  %v1652_v61 = vcombine.high %v75_v56, %v79_v57  ;;  %v24_v63 = vld [vmem:[%s2776_s0 + $0x30] sm:$0xff]  ;;  %v77_v56 = vld [vmem:[%s2776_s0 + $0x1d8] sm:$0xff] }
  0x2e   :  { %1951 = vmatpush3.bf16.msra.mxu1 %v2053_v1  ;;  %1888 = vmatprep.subr.bf16.mxu0 %v2054_v10  ;;  %v25_v1 = vld [vmem:[%s2776_s0 + $0x38] sm:$0xff]  ;;  %v1598_v4 = vcombine.high %v20_v62, %v24_v63  ;;  %v1597_v10 = vcombine.low %v20_v62, %v24_v63 }
  0x2f   :  { %1952 = vmatprep.subr.bf16.mxu1 %v2056_v12  ;;  %v1600_v5 = vcombine.high %v21_v0, %v25_v1  ;;  %v81_v57 = vld [vmem:[%s2776_s0 + $0x1f8] sm:$0xff] }
  0x30   :  { %v1655_v63 = vcombine.low %v77_v56, %v81_v57 }
  0x31   :  { %1889 = vmatpush3.bf16.msra.mxu0 %v2055_v11  ;;  %v1599_v11 = vcombine.low %v21_v0, %v25_v1 }
  0x32   :  { %1953 = vmatpush3.bf16.msra.mxu1 %v2057_v13  ;;  %1890 = vmatprep.subr.bf16.mxu0 %v2058_v18 }
  0x33   :  { %963 = vmatmul.mubr.bf16.gmra.mrb[8].mxu0 %v1609_v2  ;;  %1954 = vmatprep.subr.bf16.mxu1 %v2060_v23  ;;  %v1649_v2 = vcombine.low %v74_v54, %v78_v55  ;;  %v48_v23 = vld [vmem:[%s2776_s0 + $0xf0] sm:$0xff] }
  0x34   :  { %1060 = vmatmul.mubr.bf16.gmra.mrb[8].mxu1 %v1611_v6  ;;  %970 = vmatprep.mubr.bf16.mxu0 %v1618_v7  ;;  %v28_v6 = vld [vmem:[%s2776_s0 + $0x50] sm:$0xff] }
  0x35   :  { %1067 = vmatprep.mubr.bf16.mxu1 %v1620_v9  ;;  %1891 = vmatpush3.bf16.msra.mxu0 %v2059_v20  ;;  %v32_v7 = vld [vmem:[%s2776_s0 + $0x70] sm:$0xff]  ;;  %v33_v9 = vld [vmem:[%s2776_s0 + $0x78] sm:$0xff]  ;;  %v1614_v20 = vcombine.high %v36_v14, %v40_v15 }
  0x36   :  { %1955 = vmatpush3.bf16.msra.mxu1 %v2061_v25  ;;  %1892 = vmatprep.subr.bf16.mxu0 %v2062_v28  ;;  %v1606_v12 = vcombine.high %v28_v6, %v32_v7  ;;  %v1608_v13 = vcombine.high %v29_v8, %v33_v9  ;;  %v1605_v18 = vcombine.low %v28_v6, %v32_v7  ;;  %v49_v25 = vld [vmem:[%s2776_s0 + $0xf8] sm:$0xff]  ;;  %v76_v54 = vld [vmem:[%s2776_s0 + $0x1d0] sm:$0xff] }
  0x37   :  { %1956 = vmatprep.subr.bf16.mxu1 %v2064_v32  ;;  %v53_v32 = vld [vmem:[%s2776_s0 + $0x118] sm:$0xff]  ;;  %v80_v55 = vld [vmem:[%s2776_s0 + $0x1f0] sm:$0xff] }
  0x38   :  { %v1653_v62 = vcombine.low %v76_v54, %v80_v55 }
  0x39   :  { %1893 = vmatpush3.bf16.msra.mxu0 %v2063_v31  ;;  %v56_v31 = vld [vmem:[%s2776_s0 + $0x130] sm:$0xff] }
  0x3a   :  { %1957 = vmatpush3.bf16.msra.mxu1 %v2065_v33  ;;  %1894 = vmatprep.subr.bf16.mxu0 %v2066_v38  ;;  %v57_v33 = vld [vmem:[%s2776_s0 + $0x138] sm:$0xff]  ;;  %v60_v38 = vld [vmem:[%s2776_s0 + $0x150] sm:$0xff]  ;;  %v1629_v42 = vcombine.low %v52_v30, %v56_v31 }
  0x3b   :  { %971 = vmatmul.mubr.bf16.gmra.mrb[12].mxu0 %v1617_v19  ;;  %1958 = vmatprep.subr.bf16.mxu1 %v2068_v40  ;;  %v1607_v19 = vcombine.low %v29_v8, %v33_v9  ;;  %v61_v40 = vld [vmem:[%s2776_s0 + $0x158] sm:$0xff] }
  0x3c   :  { %1068 = vmatmul.mubr.bf16.gmra.mrb[12].mxu1 %v1619_v21  ;;  %978 = vmatprep.mubr.bf16.mxu0 %v1626_v22  ;;  %v1616_v21 = vcombine.high %v37_v16, %v41_v17  ;;  %v44_v22 = vld [vmem:[%s2776_s0 + $0xd0] sm:$0xff]  ;;  %v1640_v45 = vcombine.high %v61_v40, %v65_v41 }
  0x3d   :  { %1075 = vmatprep.mubr.bf16.mxu1 %v1628_v24  ;;  %1895 = vmatpush3.bf16.msra.mxu0 %v2067_v39  ;;  %v45_v24 = vld [vmem:[%s2776_s0 + $0xd8] sm:$0xff]  ;;  %v1622_v28 = vcombine.high %v44_v22, %v48_v23  ;;  %v64_v39 = vld [vmem:[%s2776_s0 + $0x170] sm:$0xff] }
  0x3e   :  { %1959 = vmatpush3.bf16.msra.mxu1 %v2069_v43  ;;  %1896 = vmatprep.subr.bf16.mxu0 %v2070_v46  ;;  %v1624_v29 = vcombine.high %v45_v24, %v49_v25  ;;  %v1631_v43 = vcombine.low %v53_v32, %v57_v33  ;;  %v1638_v44 = vcombine.high %v60_v38, %v64_v39  ;;  %v68_v46 = vld [vmem:[%s2776_s0 + $0x190] sm:$0xff] }
  0x3f   :  { %1960 = vmatprep.subr.bf16.mxu1 %v2072_v51  ;;  %v1639_v51 = vcombine.low %v61_v40, %v65_v41 }
  0x41   :  { %1897 = vmatpush3.bf16.msra.mxu0 %v2071_v48  ;;  %v69_v48 = vld [vmem:[%s2776_s0 + $0x198] sm:$0xff] }
  0x42   :  { %1961 = vmatpush3.bf16.msra.mxu1 %v2073_v53 }
  0x43   :  { %979 = vmatmul.mubr.bf16.gmra.mrb[16].mxu0 %v1625_v34  ;;  %v1621_v34 = vcombine.low %v44_v22, %v48_v23 }
  0x44   :  { %1076 = vmatmul.mubr.bf16.gmra.mrb[16].mxu1 %v1627_v35  ;;  %986 = vmatprep.mubr.bf16.mxu0 %v1634_v36  ;;  %v1623_v35 = vcombine.low %v45_v24, %v49_v25  ;;  %v1630_v36 = vcombine.high %v52_v30, %v56_v31 }
  0x45   :  { %1083 = vmatprep.mubr.bf16.mxu1 %v1636_v37  ;;  %v1632_v37 = vcombine.high %v53_v32, %v57_v33 }
  0x4b   :  { %987 = vmatmul.mubr.bf16.gmra.mrb[20].mxu0 %v1633_v47  ;;  %v72_v47 = vld [vmem:[%s2776_s0 + $0x1b0] sm:$0xff] }
  0x4c   :  { %1084 = vmatmul.mubr.bf16.gmra.mrb[20].mxu1 %v1635_v49  ;;  %994 = vmatprep.mubr.bf16.mxu0 %v1642_v50  ;;  %v73_v49 = vld [vmem:[%s2776_s0 + $0x1b8] sm:$0xff]  ;;  %v1637_v50 = vcombine.low %v60_v38, %v64_v39 }
  0x4d   :  { %1091 = vmatprep.mubr.bf16.mxu1 %v1644_v52  ;;  %v1646_v52 = vcombine.high %v68_v46, %v72_v47  ;;  %v1648_v53 = vcombine.high %v69_v48, %v73_v49 }
  0x53   :  { %995 = vmatmul.mubr.bf16.gmra.mrb[24].mxu0 %v1641_v58  ;;  %v1645_v58 = vcombine.low %v68_v46, %v72_v47 }
  0x54   :  { %1092 = vmatmul.mubr.bf16.gmra.mrb[24].mxu1 %v1643_v59  ;;  %1002 = vmatprep.mubr.bf16.mxu0 %v1650_v60  ;;  %v1647_v59 = vcombine.low %v69_v48, %v73_v49  ;;  %v1654_v60 = vcombine.high %v76_v54, %v80_v55 }
  0x55   :  { %1099 = vmatprep.mubr.bf16.mxu1 %v1652_v61  ;;  %v1656_v61 = vcombine.high %v77_v56, %v81_v57 }
  0x5b   :  { %1003 = vmatmul.mubr.bf16.gmra.mrb[28].mxu0 %v1649_v2 }
  0x5c   :  { %1100 = vmatmul.mubr.bf16.gmra.mrb[28].mxu1 %v1651_v3  ;;  %1140 = vmatprep.mubr.bf16.mxu0 %v1598_v4 }
  0x5d   :  { %1237 = vmatprep.mubr.bf16.mxu1 %v1600_v5 }
  0x63   :  { %1141 = vmatmul.mubr.bf16.vlgmr.msra.gmra.mrb[32].mxu0 %v1597_v10 }
  0x64   :  { %1238 = vmatmul.mubr.bf16.vlgmr.msra.gmra.mrb[32].mxu1 %v1599_v11  ;;  %1148 = vmatprep.mubr.bf16.mxu0 %v1606_v12 }
  0x65   :  { %1245 = vmatprep.mubr.bf16.mxu1 %v1608_v13 }
  0x6b   :  { %1149 = vmatmul.mubr.bf16.gmra.mrb[36].mxu0 %v1605_v18 }
  0x6c   :  { %1246 = vmatmul.mubr.bf16.gmra.mrb[36].mxu1 %v1607_v19  ;;  %1156 = vmatprep.mubr.bf16.mxu0 %v1614_v20 }
  0x6d   :  { %1253 = vmatprep.mubr.bf16.mxu1 %v1616_v21 }
  0x73   :  { %1157 = vmatmul.mubr.bf16.gmra.mrb[40].mxu0 %v1613_v26 }
  0x74   :  { %1254 = vmatmul.mubr.bf16.gmra.mrb[40].mxu1 %v1615_v27  ;;  %1164 = vmatprep.mubr.bf16.mxu0 %v1622_v28 }
  0x75   :  { %1261 = vmatprep.mubr.bf16.mxu1 %v1624_v29 }
  0x7b   :  { %1165 = vmatmul.mubr.bf16.gmra.mrb[44].mxu0 %v1621_v34 }
  0x7c   :  { %1262 = vmatmul.mubr.bf16.gmra.mrb[44].mxu1 %v1623_v35  ;;  %1172 = vmatprep.mubr.bf16.mxu0 %v1630_v36 }
  0x7d   :  { %1269 = vmatprep.mubr.bf16.mxu1 %v1632_v37 }
  0x83   :  { %1173 = vmatmul.mubr.bf16.gmra.mrb[48].mxu0 %v1629_v42 }
  0x84   :  { %1270 = vmatmul.mubr.bf16.gmra.mrb[48].mxu1 %v1631_v43  ;;  %1180 = vmatprep.mubr.bf16.mxu0 %v1638_v44 }
  0x85   :  { %1277 = vmatprep.mubr.bf16.mxu1 %v1640_v45 }
  0x8b   :  { %1181 = vmatmul.mubr.bf16.gmra.mrb[52].mxu0 %v1637_v50 }
  0x8c   :  { %1278 = vmatmul.mubr.bf16.gmra.mrb[52].mxu1 %v1639_v51  ;;  %1188 = vmatprep.mubr.bf16.mxu0 %v1646_v52 }
  0x8d   :  { %1285 = vmatprep.mubr.bf16.mxu1 %v1648_v53 }
  0x93   :  { %1189 = vmatmul.mubr.bf16.gmra.mrb[56].mxu0 %v1645_v58 }
  0x94   :  { %1286 = vmatmul.mubr.bf16.gmra.mrb[56].mxu1 %v1647_v59  ;;  %1196 = vmatprep.mubr.bf16.mxu0 %v1654_v60 }
  0x95   :  { %1293 = vmatprep.mubr.bf16.mxu1 %v1656_v61 }
  0x9b   :  { %1197 = vmatmul.mubr.bf16.gmra.mrb[60].mxu0 %v1653_v62 }
  0x9c   :  { %1294 = vmatmul.mubr.bf16.gmra.mrb[60].mxu1 %v1655_v63 }
  0xf6   :  { %v1770_v0 = vpop.f32.mrb[0].mxu0 }
  0xf7   :  { %v1834_v1 = vpop.f32.mrb[0].mxu1  ;;  %v1771_v2 = vpop.f32.mrb[1].mxu0 }
  0xf8   :  { %v1772_v3 = vadd.f32 %v1771_v2, %v1770_v0  ;;  %v1835_v4 = vpop.f32.mrb[1].mxu1  ;;  %v1773_v5 = vpop.f32.mrb[2].mxu0 }
  0xf9   :  { %v1836_v6 = vadd.f32 %v1835_v4, %v1834_v1  ;;  %v1837_v7 = vpop.f32.mrb[2].mxu1  ;;  %v1774_v8 = vpop.f32.mrb[3].mxu0 }
  0xfa   :  { %v1775_v9 = vadd.f32 %v1774_v8, %v1773_v5  ;;  %v1838_v10 = vpop.f32.mrb[3].mxu1 }
  0xfb   :  { %v2485_v11 = vadd.f32 %v1836_v6, %v1772_v3  ;;  %v1839_v12 = vadd.f32 %v1838_v10, %v1837_v7 }
  0xfd   :  { %v2487_v13 = vadd.f32 %v1839_v12, %v1775_v9 }
  0xfe   :  { %v1776_v14 = vpop.f32.mrb[4].mxu0 }
  0xff   :  { %v1840_v15 = vpop.f32.mrb[4].mxu1  ;;  %v1777_v16 = vpop.f32.mrb[5].mxu0 }
 0x100   :  { %v1778_v17 = vadd.f32 %v1777_v16, %v1776_v14  ;;  %v1841_v18 = vpop.f32.mrb[5].mxu1  ;;  %v1779_v19 = vpop.f32.mrb[6].mxu0 }
 0x101   :  { %v1842_v20 = vadd.f32 %v1841_v18, %v1840_v15  ;;  %v1843_v21 = vpop.f32.mrb[6].mxu1  ;;  %v1780_v22 = vpop.f32.mrb[7].mxu0 }
 0x102   :  { %v1781_v23 = vadd.f32 %v1780_v22, %v1779_v19  ;;  %v1844_v24 = vpop.f32.mrb[7].mxu1 }
 0x103   :  { %v2489_v25 = vadd.f32 %v1842_v20, %v1778_v17  ;;  %v1845_v26 = vadd.f32 %v1844_v24, %v1843_v21 }
 0x105   :  { %v2491_v27 = vadd.f32 %v1845_v26, %v1781_v23 }
 0x106   :  { %v1782_v28 = vpop.f32.mrb[8].mxu0 }
 0x107   :  { %v1846_v29 = vpop.f32.mrb[8].mxu1  ;;  %v1783_v30 = vpop.f32.mrb[9].mxu0 }
 0x108   :  { %v1784_v31 = vadd.f32 %v1783_v30, %v1782_v28  ;;  %v1847_v32 = vpop.f32.mrb[9].mxu1  ;;  %v1785_v33 = vpop.f32.mrb[10].mxu0 }
 0x109   :  { %v1848_v34 = vadd.f32 %v1847_v32, %v1846_v29  ;;  %v1849_v35 = vpop.f32.mrb[10].mxu1  ;;  %v1786_v36 = vpop.f32.mrb[11].mxu0 }
 0x10a   :  { %v1787_v37 = vadd.f32 %v1786_v36, %v1785_v33  ;;  %v1850_v38 = vpop.f32.mrb[11].mxu1 }
 0x10b   :  { %v2493_v39 = vadd.f32 %v1848_v34, %v1784_v31  ;;  %v1851_v40 = vadd.f32 %v1850_v38, %v1849_v35 }
 0x10d   :  { %v2495_v41 = vadd.f32 %v1851_v40, %v1787_v37 }
 0x10e   :  { %v1788_v42 = vpop.f32.mrb[12].mxu0 }
 0x10f   :  { %v1852_v43 = vpop.f32.mrb[12].mxu1  ;;  %v1789_v44 = vpop.f32.mrb[13].mxu0 }
 0x110   :  { %v1790_v45 = vadd.f32 %v1789_v44, %v1788_v42  ;;  %v1853_v46 = vpop.f32.mrb[13].mxu1  ;;  %v1791_v47 = vpop.f32.mrb[14].mxu0 }
 0x111   :  { %v1854_v48 = vadd.f32 %v1853_v46, %v1852_v43  ;;  %v1855_v49 = vpop.f32.mrb[14].mxu1  ;;  %v1792_v50 = vpop.f32.mrb[15].mxu0 }
 0x112   :  { %v1793_v51 = vadd.f32 %v1792_v50, %v1791_v47  ;;  %v1856_v52 = vpop.f32.mrb[15].mxu1 }
 0x113   :  { %v2497_v53 = vadd.f32 %v1854_v48, %v1790_v45  ;;  %v1857_v54 = vadd.f32 %v1856_v52, %v1855_v49 }
 0x115   :  { %v2499_v55 = vadd.f32 %v1857_v54, %v1793_v51 }
 0x116   :  { %v1794_v56 = vpop.f32.mrb[16].mxu0 }
 0x117   :  { %v1858_v57 = vpop.f32.mrb[16].mxu1  ;;  %v1795_v58 = vpop.f32.mrb[17].mxu0 }
 0x118   :  { %v1796_v59 = vadd.f32 %v1795_v58, %v1794_v56  ;;  %v1859_v60 = vpop.f32.mrb[17].mxu1  ;;  %v1797_v61 = vpop.f32.mrb[18].mxu0 }
 0x119   :  { %v1860_v62 = vadd.f32 %v1859_v60, %v1858_v57  ;;  %v1861_v63 = vpop.f32.mrb[18].mxu1  ;;  %v1798_v0 = vpop.f32.mrb[19].mxu0 }
 0x11a   :  { %v1799_v1 = vadd.f32 %v1798_v0, %v1797_v61  ;;  %v1862_v2 = vpop.f32.mrb[19].mxu1 }
 0x11b   :  { %v2501_v3 = vadd.f32 %v1860_v62, %v1796_v59  ;;  %v1863_v4 = vadd.f32 %v1862_v2, %v1861_v63 }
 0x11d   :  { %v2503_v5 = vadd.f32 %v1863_v4, %v1799_v1 }
 0x11e   :  { %v1800_v6 = vpop.f32.mrb[20].mxu0 }
 0x11f   :  { %v1864_v7 = vpop.f32.mrb[20].mxu1  ;;  %v1801_v8 = vpop.f32.mrb[21].mxu0 }
 0x120   :  { %v1802_v9 = vadd.f32 %v1801_v8, %v1800_v6  ;;  %v1865_v10 = vpop.f32.mrb[21].mxu1  ;;  %v1803_v12 = vpop.f32.mrb[22].mxu0 }
 0x121   :  { %v1866_v14 = vadd.f32 %v1865_v10, %v1864_v7  ;;  %v1867_v15 = vpop.f32.mrb[22].mxu1  ;;  %v1804_v16 = vpop.f32.mrb[23].mxu0 }
 0x122   :  { %v1805_v17 = vadd.f32 %v1804_v16, %v1803_v12  ;;  %v1868_v18 = vpop.f32.mrb[23].mxu1 }
 0x123   :  { %v2505_v19 = vadd.f32 %v1866_v14, %v1802_v9  ;;  %v1869_v20 = vadd.f32 %v1868_v18, %v1867_v15 }
 0x125   :  { %v2507_v21 = vadd.f32 %v1869_v20, %v1805_v17 }
 0x126   :  { %v1806_v22 = vpop.f32.mrb[24].mxu0 }
 0x127   :  { %v1870_v23 = vpop.f32.mrb[24].mxu1  ;;  %v1807_v24 = vpop.f32.mrb[25].mxu0 }
 0x128   :  { %v1808_v26 = vadd.f32 %v1807_v24, %v1806_v22  ;;  %v1871_v28 = vpop.f32.mrb[25].mxu1  ;;  %v1809_v29 = vpop.f32.mrb[26].mxu0 }
 0x129   :  { %v1872_v30 = vadd.f32 %v1871_v28, %v1870_v23  ;;  %v1873_v31 = vpop.f32.mrb[26].mxu1  ;;  %v1810_v32 = vpop.f32.mrb[27].mxu0 }
 0x12a   :  { %v1811_v33 = vadd.f32 %v1810_v32, %v1809_v29  ;;  %v1874_v34 = vpop.f32.mrb[27].mxu1 }
 0x12b   :  { %v2509_v35 = vadd.f32 %v1872_v30, %v1808_v26  ;;  %v1875_v36 = vadd.f32 %v1874_v34, %v1873_v31 }
 0x12d   :  { %v2511_v37 = vadd.f32 %v1875_v36, %v1811_v33 }
 0x12e   :  { %v1812_v38 = vpop.f32.mrb[28].mxu0 }
 0x12f   :  { %v1876_v40 = vpop.f32.mrb[28].mxu1  ;;  %v1813_v42 = vpop.f32.mrb[29].mxu0 }
 0x130   :  { %v1814_v43 = vadd.f32 %v1813_v42, %v1812_v38  ;;  %v1877_v44 = vpop.f32.mrb[29].mxu1  ;;  %v1815_v45 = vpop.f32.mrb[30].mxu0 }
 0x131   :  { %v1878_v46 = vadd.f32 %v1877_v44, %v1876_v40  ;;  %v1879_v47 = vpop.f32.mrb[30].mxu1  ;;  %v1816_v48 = vpop.f32.mrb[31].mxu0 }
 0x132   :  { %v1817_v49 = vadd.f32 %v1816_v48, %v1815_v45  ;;  %v1880_v50 = vpop.f32.mrb[31].mxu1 }
 0x133   :  { %v2513_v51 = vadd.f32 %v1878_v46, %v1814_v43  ;;  %v1881_v52 = vadd.f32 %v1880_v50, %v1879_v47 }
 0x135   :  { %v2515_v54 = vadd.f32 %v1881_v52, %v1817_v49 }
 0x136   :  { %v1898_v56 = vpop.f32.mrb[32].mxu0 }
 0x137   :  { %v1962_v57 = vpop.f32.mrb[32].mxu1  ;;  %v1899_v58 = vpop.f32.mrb[33].mxu0 }
 0x138   :  { %v1900_v59 = vadd.f32 %v1899_v58, %v1898_v56  ;;  %v1963_v60 = vpop.f32.mrb[33].mxu1  ;;  %v1901_v61 = vpop.f32.mrb[34].mxu0 }
 0x139   :  { %v1964_v62 = vadd.f32 %v1963_v60, %v1962_v57  ;;  %v1965_v63 = vpop.f32.mrb[34].mxu1  ;;  %v1902_v0 = vpop.f32.mrb[35].mxu0 }
 0x13a   :  { %v1143_v1 = vadd.f32 %v1900_v59, %v2485_v11  ;;  %v1903_v2 = vadd.f32 %v1902_v0, %v1901_v61  ;;  %v1966_v4 = vpop.f32.mrb[35].mxu1 }
 0x13b   :  { %v1967_v6 = vadd.f32 %v1966_v4, %v1965_v63 }
 0x13c   :  { %v2518_v7 = vadd.f32 %v1964_v62, %v1143_v1  ;;  %v1146_v8 = vadd.f32 %v1903_v2, %v2487_v13 }
 0x13e   :  { %v2521_v9 = vadd.f32 %v1967_v6, %v1146_v8  ;;  %v1904_v10 = vpop.f32.mrb[36].mxu0  ;;  %v1303_v15 = vsel %vm1302_vm0, %v2518_v7, 0.0 }
 0x13f   :  { %v1968_v12 = vpop.f32.mrb[36].mxu1  ;;  %v1905_v14 = vpop.f32.mrb[37].mxu0 }
 0x140   :  { %v1304_v16 = vsel %vm1302_vm0, %v2521_v9, 0.0  ;;  %v1906_v11 = vadd.f32 %v1905_v14, %v1904_v10  ;;  %v1969_v17 = vpop.f32.mrb[37].mxu1  ;;  %v1907_v18 = vpop.f32.mrb[38].mxu0 }
 0x141   :  { %v1305_v20 = vadd.f32 %v1304_v16, %v1303_v15  ;;  %v1970_v22 = vadd.f32 %v1969_v17, %v1968_v12  ;;  %v1971_v23 = vpop.f32.mrb[38].mxu1  ;;  %v1908_v24 = vpop.f32.mrb[39].mxu0 }
 0x142   :  { %v1151_v13 = vadd.f32 %v1906_v11, %v2489_v25  ;;  %v1909_v26 = vadd.f32 %v1908_v24, %v1907_v18  ;;  %v1972_v28 = vpop.f32.mrb[39].mxu1 }
 0x143   :  { %v1973_v29 = vadd.f32 %v1972_v28, %v1971_v23 }
 0x144   :  { %v2528_v30 = vadd.f32 %v1970_v22, %v1151_v13  ;;  %v1154_v31 = vadd.f32 %v1909_v26, %v2491_v27 }
 0x146   :  { %v1306_v32 = vsel %vm1302_vm0, %v2528_v30, 0.0  ;;  %v2533_v33 = vadd.f32 %v1973_v29, %v1154_v31  ;;  %v1910_v34 = vpop.f32.mrb[40].mxu0 }
 0x147   :  { %v1307_v36 = vadd.f32 %v1306_v32, %v1305_v20  ;;  %v1974_v38 = vpop.f32.mrb[40].mxu1  ;;  %v1911_v40 = vpop.f32.mrb[41].mxu0 }
 0x148   :  { %v1308_v42 = vsel %vm1302_vm0, %v2533_v33, 0.0  ;;  %v1912_v25 = vadd.f32 %v1911_v40, %v1910_v34  ;;  %v1975_v43 = vpop.f32.mrb[41].mxu1  ;;  %v1913_v44 = vpop.f32.mrb[42].mxu0 }
 0x149   :  { %v1309_v45 = vadd.f32 %v1308_v42, %v1307_v36  ;;  %v1976_v46 = vadd.f32 %v1975_v43, %v1974_v38  ;;  %v1977_v47 = vpop.f32.mrb[42].mxu1  ;;  %v1914_v48 = vpop.f32.mrb[43].mxu0 }
 0x14a   :  { %v1159_v27 = vadd.f32 %v1912_v25, %v2493_v39  ;;  %v1915_v49 = vadd.f32 %v1914_v48, %v1913_v44  ;;  %v1978_v50 = vpop.f32.mrb[43].mxu1 }
 0x14b   :  { %v1979_v52 = vadd.f32 %v1978_v50, %v1977_v47 }
 0x14c   :  { %v2538_v56 = vadd.f32 %v1976_v46, %v1159_v27  ;;  %v1162_v57 = vadd.f32 %v1915_v49, %v2495_v41 }
 0x14e   :  { %v1310_v58 = vsel %vm1302_vm0, %v2538_v56, 0.0  ;;  %v2543_v59 = vadd.f32 %v1979_v52, %v1162_v57  ;;  %v1916_v60 = vpop.f32.mrb[44].mxu0 }
 0x14f   :  { %v1311_v61 = vadd.f32 %v1310_v58, %v1309_v45  ;;  %v1980_v62 = vpop.f32.mrb[44].mxu1  ;;  %v1917_v63 = vpop.f32.mrb[45].mxu0 }
 0x150   :  { %v1312_v0 = vsel %vm1302_vm0, %v2543_v59, 0.0  ;;  %v1918_v39 = vadd.f32 %v1917_v63, %v1916_v60  ;;  %v1981_v1 = vpop.f32.mrb[45].mxu1  ;;  %v1919_v2 = vpop.f32.mrb[46].mxu0 }
 0x151   :  { %v1313_v4 = vadd.f32 %v1312_v0, %v1311_v61  ;;  %v1982_v6 = vadd.f32 %v1981_v1, %v1980_v62  ;;  %v1983_v8 = vpop.f32.mrb[46].mxu1  ;;  %v1920_v10 = vpop.f32.mrb[47].mxu0 }
 0x152   :  { %v1167_v41 = vadd.f32 %v1918_v39, %v2497_v53  ;;  %v1921_v12 = vadd.f32 %v1920_v10, %v1919_v2  ;;  %v1984_v14 = vpop.f32.mrb[47].mxu1 }
 0x153   :  { %v1985_v15 = vadd.f32 %v1984_v14, %v1983_v8 }
 0x154   :  { %v2548_v16 = vadd.f32 %v1982_v6, %v1167_v41  ;;  %v1170_v11 = vadd.f32 %v1921_v12, %v2499_v55 }
 0x156   :  { %v1314_v17 = vsel %vm1302_vm0, %v2548_v16, 0.0  ;;  %v2553_v18 = vadd.f32 %v1985_v15, %v1170_v11  ;;  %v1922_v20 = vpop.f32.mrb[48].mxu0 }
 0x157   :  { %v1315_v22 = vadd.f32 %v1314_v17, %v1313_v4  ;;  %v1986_v23 = vpop.f32.mrb[48].mxu1  ;;  %v1923_v24 = vpop.f32.mrb[49].mxu0 }
 0x158   :  { %v1316_v13 = vsel %vm1302_vm0, %v2553_v18, 0.0  ;;  %v1924_v53 = vadd.f32 %v1923_v24, %v1922_v20  ;;  %v1987_v26 = vpop.f32.mrb[49].mxu1  ;;  %v1925_v28 = vpop.f32.mrb[50].mxu0 }
 0x159   :  { %v1317_v29 = vadd.f32 %v1316_v13, %v1315_v22  ;;  %v1988_v31 = vadd.f32 %v1987_v26, %v1986_v23  ;;  %v1989_v32 = vpop.f32.mrb[50].mxu1  ;;  %v1926_v34 = vpop.f32.mrb[51].mxu0 }
 0x15a   :  { %v1175_v55 = vadd.f32 %v1924_v53, %v2501_v3  ;;  %v1927_v36 = vadd.f32 %v1926_v34, %v1925_v28  ;;  %v1990_v38 = vpop.f32.mrb[51].mxu1 }
 0x15b   :  { %v1991_v40 = vadd.f32 %v1990_v38, %v1989_v32 }
 0x15c   :  { %v2558_v42 = vadd.f32 %v1988_v31, %v1175_v55  ;;  %v1178_v25 = vadd.f32 %v1927_v36, %v2503_v5 }
 0x15e   :  { %v1318_v43 = vsel %vm1302_vm0, %v2558_v42, 0.0  ;;  %v2563_v44 = vadd.f32 %v1991_v40, %v1178_v25  ;;  %v1928_v45 = vpop.f32.mrb[52].mxu0 }
 0x15f   :  { %v1319_v46 = vadd.f32 %v1318_v43, %v1317_v29  ;;  %v1992_v47 = vpop.f32.mrb[52].mxu1  ;;  %v1929_v48 = vpop.f32.mrb[53].mxu0 }
 0x160   :  { %v1320_v27 = vsel %vm1302_vm0, %v2563_v44, 0.0  ;;  %v1930_v3 = vadd.f32 %v1929_v48, %v1928_v45  ;;  %v1993_v49 = vpop.f32.mrb[53].mxu1  ;;  %v1931_v50 = vpop.f32.mrb[54].mxu0 }
 0x161   :  { %v1321_v52 = vadd.f32 %v1320_v27, %v1319_v46  ;;  %v1994_v57 = vadd.f32 %v1993_v49, %v1992_v47  ;;  %v1995_v58 = vpop.f32.mrb[54].mxu1  ;;  %v1932_v60 = vpop.f32.mrb[55].mxu0 }
 0x162   :  { %v1183_v5 = vadd.f32 %v1930_v3, %v2505_v19  ;;  %v1933_v61 = vadd.f32 %v1932_v60, %v1931_v50  ;;  %v1996_v62 = vpop.f32.mrb[55].mxu1 }
 0x163   :  { %v1997_v63 = vadd.f32 %v1996_v62, %v1995_v58 }
 0x164   :  { %v2568_v0 = vadd.f32 %v1994_v57, %v1183_v5  ;;  %v1186_v39 = vadd.f32 %v1933_v61, %v2507_v21 }
 0x166   :  { %v1322_v1 = vsel %vm1302_vm0, %v2568_v0, 0.0  ;;  %v1283_v2 = vadd.f32 %v1997_v63, %v1186_v39  ;;  %v1934_v4 = vpop.f32.mrb[56].mxu0 }
 0x167   :  { %v1323_v6 = vadd.f32 %v1322_v1, %v1321_v52  ;;  %v1998_v8 = vpop.f32.mrb[56].mxu1  ;;  %v1935_v10 = vpop.f32.mrb[57].mxu0 }
 0x168   :  { %v1324_v41 = vsel %vm1302_vm0, %v1283_v2, 0.0  ;;  %v1936_v12 = vadd.f32 %v1935_v10, %v1934_v4  ;;  %v1999_v14 = vpop.f32.mrb[57].mxu1  ;;  %v1937_v19 = vpop.f32.mrb[58].mxu0 }
 0x169   :  { %v1325_v15 = vadd.f32 %v1324_v41, %v1323_v6  ;;  %v2000_v11 = vadd.f32 %v1999_v14, %v1998_v8  ;;  %v2001_v17 = vpop.f32.mrb[58].mxu1  ;;  %v1938_v20 = vpop.f32.mrb[59].mxu0 }
 0x16a   :  { %v1191_v22 = vadd.f32 %v1936_v12, %v2509_v35  ;;  %v1939_v21 = vadd.f32 %v1938_v20, %v1937_v19  ;;  %v2002_v23 = vpop.f32.mrb[59].mxu1 }
 0x16b   :  { %v2003_v24 = vadd.f32 %v2002_v23, %v2001_v17 }
 0x16c   :  { %v1288_v13 = vadd.f32 %v2000_v11, %v1191_v22  ;;  %v1194_v53 = vadd.f32 %v1939_v21, %v2511_v37 }
 0x16e   :  { %v1326_v26 = vsel %vm1302_vm0, %v1288_v13, 0.0  ;;  %v1291_v28 = vadd.f32 %v2003_v24, %v1194_v53  ;;  %v1940_v29 = vpop.f32.mrb[60].mxu0 }
 0x16f   :  { %v1327_v31 = vadd.f32 %v1326_v26, %v1325_v15  ;;  %v2004_v32 = vpop.f32.mrb[60].mxu1  ;;  %v1941_v34 = vpop.f32.mrb[61].mxu0 }
 0x170   :  { %v1328_v55 = vsel %vm1302_vm0, %v1291_v28, 0.0  ;;  %v1942_v36 = vadd.f32 %v1941_v34, %v1940_v29  ;;  %v2005_v38 = vpop.f32.mrb[61].mxu1  ;;  %v1943_v40 = vpop.f32.mrb[62].mxu0 }
 0x171   :  { %v1329_v25 = vadd.f32 %v1328_v55, %v1327_v31  ;;  %v2006_v35 = vadd.f32 %v2005_v38, %v2004_v32  ;;  %v2007_v43 = vpop.f32.mrb[62].mxu1  ;;  %v1944_v45 = vpop.f32.mrb[63].mxu0 }
 0x172   :  { %v1199_v46 = vadd.f32 %v1942_v36, %v2513_v51  ;;  %v1945_v47 = vadd.f32 %v1944_v45, %v1943_v40  ;;  %v2008_v37 = vpop.f32.mrb[63].mxu1 }
 0x173   :  { %v2009_v48 = vadd.f32 %v2008_v37, %v2007_v43 }
 0x174   :  { %v1296_v27 = vadd.f32 %v2006_v35, %v1199_v46  ;;  %v1202_v3 = vadd.f32 %v1945_v47, %v2515_v54 }
 0x176   :  { %v1330_v49 = vsel %vm1302_vm0, %v1296_v27, 0.0  ;;  %v1299_v50 = vadd.f32 %v2009_v48, %v1202_v3 }
 0x177   :  { %v1331_v52 = vadd.f32 %v1330_v49, %v1329_v25 }
 0x178   :  { %v1332_v57 = vsel %vm1302_vm0, %v1299_v50, 0.0 }
 0x179   :  { %v1333_v58 = vadd.f32 %v1332_v57, %v1331_v52 }
 0x17b   :  { %v1334_v60 = vrot.slane %v1333_v58, 4 }
 0x17d   :  { %v1335_v5 = vadd.f32 %v1334_v60, %v1333_v58 }
 0x17f   :  { %v1336_v61 = vrot.slane %v1335_v5, 2 }
 0x181   :  { %v1337_v62 = vadd.f32 %v1336_v61, %v1335_v5 }
 0x183   :  { %v1338_v63 = vrot.slane %v1337_v62, 1 }
 0x185   :  { %v1339_v39 = vadd.f32 %v1338_v63, %v1337_v62 }
 0x187   :  { %v1340_v51 = vmul.f32 0.0078125, %v1339_v39 }
 0x189   :  { %v2583_v1 = vsub.f32 %v2518_v7, %v1340_v51  ;;  %v2586_v4 = vsub.f32 %v2521_v9, %v1340_v51  ;;  %v2589_v54 = vsub.f32 %v2528_v30, %v1340_v51  ;;  %v2592_v6 = vsub.f32 %v2533_v33, %v1340_v51 }
 0x18a   :  { %v2595_v8 = vsub.f32 %v2538_v56, %v1340_v51  ;;  %v2598_v10 = vsub.f32 %v2543_v59, %v1340_v51  ;;  %v2601_v41 = vsub.f32 %v2548_v16, %v1340_v51  ;;  %v2604_v7 = vsub.f32 %v2553_v18, %v1340_v51 }
 0x18b   :  { %v2607_v9 = vsub.f32 %v2558_v42, %v1340_v51  ;;  %v2610_v30 = vsub.f32 %v2563_v44, %v1340_v51  ;;  %v2613_v33 = vsub.f32 %v2568_v0, %v1340_v51  ;;  %v2615_v56 = vsub.f32 %v1283_v2, %v1340_v51 }
 0x18c   :  { %v2617_v12 = vsub.f32 %v1288_v13, %v1340_v51  ;;  %v2619_v59 = vsub.f32 %v1291_v28, %v1340_v51  ;;  %v2621_v16 = vsub.f32 %v1296_v27, %v1340_v51  ;;  %v2623_v14 = vsub.f32 %v1299_v50, %v1340_v51 }
 0x18d   :  { %v1357_v18 = vmul.f32 %v2583_v1, %v2583_v1  ;;  %v1358_v42 = vmul.f32 %v2586_v4, %v2586_v4  ;;  %v1359_v44 = vmul.f32 %v2589_v54, %v2589_v54  ;;  %v1360_v0 = vmul.f32 %v2592_v6, %v2592_v6 }
 0x18e   :  { %v1361_v11 = vmul.f32 %v2595_v8, %v2595_v8  ;;  %v1362_v22 = vmul.f32 %v2598_v10, %v2598_v10  ;;  %v1363_v24 = vmul.f32 %v2601_v41, %v2601_v41  ;;  %v1364_v26 = vmul.f32 %v2604_v7, %v2604_v7 }
 0x18f   :  { %v1373_v2 = vsel %vm1302_vm0, %v1357_v18, 0.0  ;;  %v1374_v19 = vsel %vm1302_vm0, %v1358_v42, 0.0  ;;  %v1376_v17 = vsel %vm1302_vm0, %v1359_v44, 0.0  ;;  %v1378_v21 = vsel %vm1302_vm0, %v1360_v0, 0.0 }
 0x190   :  { %v1375_v15 = vadd.f32 %v1374_v19, %v1373_v2  ;;  %v1380_v13 = vsel %vm1302_vm0, %v1361_v11, 0.0  ;;  %v1382_v28 = vsel %vm1302_vm0, %v1362_v22, 0.0  ;;  %v1365_v31 = vmul.f32 %v2607_v9, %v2607_v9 }
 0x191   :  { %v1384_v32 = vsel %vm1302_vm0, %v1363_v24, 0.0  ;;  %v1366_v55 = vmul.f32 %v2610_v30, %v2610_v30  ;;  %v1386_v36 = vsel %vm1302_vm0, %v1364_v26, 0.0  ;;  %v1367_v40 = vmul.f32 %v2613_v33, %v2613_v33 }
 0x192   :  { %v1377_v20 = vadd.f32 %v1376_v17, %v1375_v15  ;;  %v1388_v25 = vsel %vm1302_vm0, %v1365_v31, 0.0  ;;  %v1368_v43 = vmul.f32 %v2615_v56, %v2615_v56  ;;  %v1369_v47 = vmul.f32 %v2617_v12, %v2617_v12 }
 0x193   :  { %v1390_v45 = vsel %vm1302_vm0, %v1366_v55, 0.0  ;;  %v1392_v37 = vsel %vm1302_vm0, %v1367_v40, 0.0  ;;  %v1370_v27 = vmul.f32 %v2619_v59, %v2619_v59  ;;  %v1371_v50 = vmul.f32 %v2621_v16, %v2621_v16  ;;  %v1721_v55 = vld [vmem:[%s2778_s3] ss:$0 sm:$0xff] }
 0x194   :  { %v1379_v23 = vadd.f32 %v1378_v21, %v1377_v20  ;;  %v1394_v3 = vsel %vm1302_vm0, %v1368_v43, 0.0  ;;  %v1396_v52 = vsel %vm1302_vm0, %v1369_v47, 0.0  ;;  %v1372_v58 = vmul.f32 %v2623_v14, %v2623_v14  ;;  %v1411_v20 = vld [vmem:[%s2777_s2] sm:$0x1] }
 0x195   :  { %v1398_v60 = vsel %vm1302_vm0, %v1370_v27, 0.0  ;;  %v1400_v61 = vsel %vm1302_vm0, %v1371_v50, 0.0  ;;  %v1416_v11 = vlaneseq }
 0x196   :  { %v1381_v53 = vadd.f32 %v1380_v13, %v1379_v23  ;;  %v1402_v63 = vsel %vm1302_vm0, %v1372_v58, 0.0 }
 0x197   :  { %v1417_v17 = vshrl.u32 %v1416_v11, 7 }
 0x198   :  { %v1383_v29 = vadd.f32 %v1382_v28, %v1381_v53 }
 0x199   :  { %v1418_v22 = vsub.s32 0, %v1417_v17 }
 0x19a   :  { %v1385_v34 = vadd.f32 %v1384_v32, %v1383_v29 }
 0x19c   :  { %v1387_v38 = vadd.f32 %v1386_v36, %v1385_v34 }
 0x19e   :  { %v1389_v35 = vadd.f32 %v1388_v25, %v1387_v38 }
 0x1a0   :  { %v1391_v46 = vadd.f32 %v1390_v45, %v1389_v35 }
 0x1a2   :  { %v1393_v48 = vadd.f32 %v1392_v37, %v1391_v46 }
 0x1a4   :  { %v1395_v49 = vadd.f32 %v1394_v3, %v1393_v48 }
 0x1a6   :  { %v1397_v57 = vadd.f32 %v1396_v52, %v1395_v49 }
 0x1a8   :  { %v1399_v5 = vadd.f32 %v1398_v60, %v1397_v57 }
 0x1aa   :  { %v1401_v62 = vadd.f32 %v1400_v61, %v1399_v5 }
 0x1ac   :  { %v1403_v39 = vadd.f32 %v1402_v63, %v1401_v62 }
 0x1ae   :  { %v1404_v51 = vrot.slane %v1403_v39, 4 }
 0x1b0   :  { %v1405_v18 = vadd.f32 %v1404_v51, %v1403_v39 }
 0x1b2   :  { %v1406_v42 = vrot.slane %v1405_v18, 2 }
 0x1b4   :  { %v1407_v44 = vadd.f32 %v1406_v42, %v1405_v18 }
 0x1b6   :  { %v1408_v0 = vrot.slane %v1407_v44, 1 }
 0x1b8   :  { %v1409_v2 = vadd.f32 %v1408_v0, %v1407_v44 }
 0x1ba   :  { %v1410_v19 = vmul.f32 0.0078125, %v1409_v2 }
 0x1bc   :  { %v1412_v15 = vadd.f32 1e-05, %v1410_v19 }
 0x1be   :  { %2074 = vrsqrt.f32 %v1412_v15 }
 0x1c8   :  { %v2075_v21 = vpop.eup %2074 }
 0x1c9   :  { %v1414_v23 = vmul.f32 %v2075_v21, %v1411_v20 }
 0x1cb   :  { %v1419_v24 = vrot.slane %v1414_v23, %v1418_v22 }
 0x1cd   :  { %v1421_v13 = vmul.f32 %v1419_v24, %v2583_v1  ;;  %v1422_v53 = vmul.f32 %v1419_v24, %v2586_v4  ;;  %v1423_v26 = vmul.f32 %v1419_v24, %v2589_v54  ;;  %v1424_v28 = vmul.f32 %v1419_v24, %v2592_v6 }
 0x1ce   :  { %v1425_v29 = vmul.f32 %v1419_v24, %v2595_v8  ;;  %v1426_v31 = vmul.f32 %v1419_v24, %v2598_v10  ;;  %v1427_v32 = vmul.f32 %v1419_v24, %v2601_v41  ;;  %v1428_v34 = vmul.f32 %v1419_v24, %v2604_v7 }
 0x1cf   :  { %v1429_v1 = vmul.f32 %v1419_v24, %v2607_v9  ;;  %v1430_v4 = vmul.f32 %v1419_v24, %v2610_v30  ;;  %v1431_v54 = vmul.f32 %v1419_v24, %v2613_v33  ;;  %v1432_v6 = vmul.f32 %v1419_v24, %v2615_v56 }
 0x1d0   :  { %v1433_v8 = vmul.f32 %v1419_v24, %v2617_v12  ;;  %v1434_v10 = vmul.f32 %v1419_v24, %v2619_v59  ;;  %v1435_v41 = vmul.f32 %v1419_v24, %v2621_v16  ;;  %v1436_v7 = vmul.f32 %v1419_v24, %v2623_v14 }
 0x1d1   :  { %v1444_v36 = vadd.f32 %v1721_v55, %v1421_v13  ;;  %v1445_v38 = vadd.f32 %v1721_v55, %v1422_v53  ;;  %v1446_v40 = vadd.f32 %v1721_v55, %v1423_v26  ;;  %v1447_v25 = vadd.f32 %v1721_v55, %v1424_v28 }
 0x1d2   :  { %v1448_v35 = vadd.f32 %v1721_v55, %v1425_v29  ;;  %v1449_v9 = vadd.f32 %v1721_v55, %v1426_v31  ;;  %v1450_v43 = vadd.f32 %v1721_v55, %v1427_v32  ;;  %v1451_v30 = vadd.f32 %v1721_v55, %v1428_v34 }
 0x1d3   :  { %v1452_v45 = vadd.f32 %v1721_v55, %v1429_v1  ;;  %v1453_v33 = vadd.f32 %v1721_v55, %v1430_v4  ;;  %v1454_v46 = vadd.f32 %v1721_v55, %v1431_v54  ;;  %v1455_v56 = vadd.f32 %v1721_v55, %v1432_v6 }
 0x1d4   :  { %v1456_v47 = vadd.f32 %v1721_v55, %v1433_v8  ;;  %v1457_v12 = vadd.f32 %v1721_v55, %v1434_v10  ;;  %v1458_v37 = vadd.f32 %v1721_v55, %v1435_v41  ;;  %v1459_v59 = vadd.f32 %v1721_v55, %v1436_v7 }
 0x1d5   :  { %vm1461_vm2 = vcmp.ge.f32.partialorder %v1445_v38, 0.0  ;;  %vm1462_vm3 = vcmp.ge.f32.partialorder %v1446_v40, 0.0  ;;  %vm1463_vm4 = vcmp.ge.f32.partialorder %v1447_v25, 0.0  ;;  %vm1464_vm5 = vcmp.ge.f32.partialorder %v1448_v35, 0.0 }
 0x1d6   :  { %vm1465_vm6 = vcmp.ge.f32.partialorder %v1449_v9, 0.0  ;;  %vm1467_vm8 = vcmp.ge.f32.partialorder %v1451_v30, 0.0  ;;  %vm1468_vm9 = vcmp.ge.f32.partialorder %v1452_v45, 0.0  ;;  %vm1469_vm10 = vcmp.ge.f32.partialorder %v1453_v33, 0.0 }
 0x1d7   :  { %vm1470_vm11 = vcmp.ge.f32.partialorder %v1454_v46, 0.0  ;;  %vm1471_vm12 = vcmp.ge.f32.partialorder %v1455_v56, 0.0  ;;  %vm1472_vm13 = vcmp.ge.f32.partialorder %v1456_v47, 0.0  ;;  %vm1473_vm14 = vcmp.ge.f32.partialorder %v1457_v12, 0.0 }
 0x1d8   :  { %vm1474_vm15 = vcmp.ge.f32.partialorder %v1458_v37, 0.0  ;;  %vm1475_vm0 = vcmp.ge.f32.partialorder %v1459_v59, 0.0  ;;  %v1476_v16 = vmul.f32 0.2, %v1444_v36  ;;  %v1477_v14 = vmul.f32 0.2, %v1445_v38 }
 0x1d9   :  { %v1478_v48 = vmul.f32 0.2, %v1446_v40  ;;  %v1479_v27 = vmul.f32 0.2, %v1447_v25  ;;  %v1480_v3 = vmul.f32 0.2, %v1448_v35 }
 0x1da   :  { %v1481_v49 = vmul.f32 0.2, %v1449_v9  ;;  %v1482_v50 = vmul.f32 0.2, %v1450_v43  ;;  %v1483_v52 = vmul.f32 0.2, %v1451_v30  ;;  %v1493_v62 = vsel %vm1461_vm2, %v1445_v38, %v1477_v14 }
 0x1db   :  { %v1484_v57 = vmul.f32 0.2, %v1452_v45  ;;  %vm2780_vm7 = vcmp.ge.f32.partialorder %v1444_v36, 0.0  ;;  %v1485_v60 = vmul.f32 0.2, %v1453_v33  ;;  %v1494_v18 = vsel %vm1462_vm3, %v1446_v40, %v1478_v48 }
 0x1dc   :  { %v1492_v58 = vsel %vm2780_vm7, %v1444_v36, %v1476_v16  ;;  %v1486_v5 = vmul.f32 0.2, %v1454_v46  ;;  %v1487_v61 = vmul.f32 0.2, %v1455_v56  ;;  %v1488_v63 = vmul.f32 0.2, %v1456_v47 }
 0x1dd   :  { %v1489_v39 = vmul.f32 0.2, %v1457_v12  ;;  %v1490_v51 = vmul.f32 0.2, %v1458_v37  ;;  %v1491_v42 = vmul.f32 0.2, %v1459_v59  ;;  %v1495_v44 = vsel %vm1463_vm4, %v1447_v25, %v1479_v27 }
 0x1de   :  { %v1496_v0 = vsel %vm1464_vm5, %v1448_v35, %v1480_v3  ;;  %v1497_v2 = vsel %vm1465_vm6, %v1449_v9, %v1481_v49  ;;  %vm2781_vm1 = vcmp.ge.f32.partialorder %v1450_v43, 0.0  ;;  %v1499_v15 = vsel %vm1467_vm8, %v1451_v30, %v1483_v52 }
 0x1df   :  { %v1498_v19 = vsel %vm2781_vm1, %v1450_v43, %v1482_v50  ;;  %v1500_v11 = vsel %vm1468_vm9, %v1452_v45, %v1484_v57  ;;  %v1501_v17 = vsel %vm1469_vm10, %v1453_v33, %v1485_v60  ;;  %v1502_v20 = vsel %vm1470_vm11, %v1454_v46, %v1486_v5 }
 0x1e0   :  { %v1503_v22 = vsel %vm1471_vm12, %v1455_v56, %v1487_v61  ;;  %v1504_v21 = vsel %vm1472_vm13, %v1456_v47, %v1488_v63  ;;  %v1505_v23 = vsel %vm1473_vm14, %v1457_v12, %v1489_v39  ;;  %v1506_v24 = vsel %vm1474_vm15, %v1458_v37, %v1490_v51 }
 0x1e1   :  { %v1507_v13 = vsel %vm1475_vm0, %v1459_v59, %v1491_v42  ;;  %v1738_v53 = vpack.c.bf16 %v1492_v58, %v1492_v58  ;;  %v1739_v26 = vpack.c.bf16 %v1493_v62, %v1493_v62  ;;  %v1740_v28 = vpack.c.bf16 %v1494_v18, %v1494_v18 }
 0x1e2   :  { %v1741_v29 = vpack.c.bf16 %v1495_v44, %v1495_v44  ;;  %v1742_v31 = vpack.c.bf16 %v1496_v0, %v1496_v0  ;;  %v1743_v32 = vpack.c.bf16 %v1497_v2, %v1497_v2  ;;  %v1744_v34 = vpack.c.bf16 %v1498_v19, %v1498_v19 }
 0x1e3   :  { %v1745_v55 = vpack.c.bf16 %v1499_v15, %v1499_v15  ;;  %v1746_v1 = vpack.c.bf16 %v1500_v11, %v1500_v11  ;;  %v1747_v4 = vpack.c.bf16 %v1501_v17, %v1501_v17  ;;  %vm2782_vm1 = vcmask 519168  }
 0x1e4   :  { %1573 = vst.msk [vmem:[%s2779_s4] sm:$0xf] %vm2782_vm1, %v1738_v53  ;;  %vm2783_vm2 = vmmov %vm2782_vm1  ;;  %v1748_v54 = vpack.c.bf16 %v1502_v20, %v1502_v20  ;;  %v1749_v6 = vpack.c.bf16 %v1503_v22, %v1503_v22  ;;  %v1750_v8 = vpack.c.bf16 %v1504_v21, %v1504_v21  ;;  %v1751_v10 = vpack.c.bf16 %v1505_v23, %v1505_v23 }
 0x1e5   :  { %1574 = vst.msk [vmem:[%s2779_s4 + $0x4] sm:$0xf] %vm2783_vm2, %v1739_v26  ;;  %vm2784_vm3 = vmmov %vm2782_vm1  ;;  %v1752_v41 = vpack.c.bf16 %v1506_v24, %v1506_v24  ;;  %v1753_v7 = vpack.c.bf16 %v1507_v13, %v1507_v13 }
 0x1e6   :  { %1575 = vst.msk [vmem:[%s2779_s4 + $0x8] sm:$0xf] %vm2784_vm3, %v1740_v28  ;;  %vm2785_vm4 = vmmov %vm2782_vm1 }
 0x1e7   :  { %1576 = vst.msk [vmem:[%s2779_s4 + $0xc] sm:$0xf] %vm2785_vm4, %v1741_v29  ;;  %vm2786_vm5 = vmmov %vm2782_vm1 }
 0x1e8   :  { %1577 = vst.msk [vmem:[%s2779_s4 + $0x10] sm:$0xf] %vm2786_vm5, %v1742_v31  ;;  %vm2787_vm6 = vmmov %vm2782_vm1 }
 0x1e9   :  { %1578 = vst.msk [vmem:[%s2779_s4 + $0x14] sm:$0xf] %vm2787_vm6, %v1743_v32  ;;  %vm2788_vm7 = vmmov %vm2782_vm1 }
 0x1ea   :  { %1579 = vst.msk [vmem:[%s2779_s4 + $0x18] sm:$0xf] %vm2788_vm7, %v1744_v34  ;;  %vm2789_vm8 = vmmov %vm2782_vm1 }
 0x1eb   :  { %1580 = vst.msk [vmem:[%s2779_s4 + $0x1c] sm:$0xf] %vm2789_vm8, %v1745_v55  ;;  %vm2790_vm9 = vmmov %vm2782_vm1 }
 0x1ec   :  { %1581 = vst.msk [vmem:[%s2779_s4 + $0x20] sm:$0xf] %vm2790_vm9, %v1746_v1  ;;  %vm2791_vm10 = vmmov %vm2782_vm1 }
 0x1ed   :  { %1582 = vst.msk [vmem:[%s2779_s4 + $0x24] sm:$0xf] %vm2791_vm10, %v1747_v4  ;;  %vm2792_vm11 = vmmov %vm2782_vm1 }
 0x1ee   :  { %1583 = vst.msk [vmem:[%s2779_s4 + $0x28] sm:$0xf] %vm2792_vm11, %v1748_v54  ;;  %vm2793_vm12 = vmmov %vm2782_vm1 }
 0x1ef   :  { %1584 = vst.msk [vmem:[%s2779_s4 + $0x2c] sm:$0xf] %vm2793_vm12, %v1749_v6  ;;  %vm2794_vm13 = vmmov %vm2782_vm1 }
 0x1f0   :  { %1585 = vst.msk [vmem:[%s2779_s4 + $0x30] sm:$0xf] %vm2794_vm13, %v1750_v8  ;;  %vm2795_vm14 = vmmov %vm2782_vm1 }
 0x1f1   :  { %1586 = vst.msk [vmem:[%s2779_s4 + $0x34] sm:$0xf] %vm2795_vm14, %v1751_v10  ;;  %vm2796_vm15 = vmmov %vm2782_vm1 }
 0x1f2   :  { %1587 = vst.msk [vmem:[%s2779_s4 + $0x38] sm:$0xf] %vm2796_vm15, %v1752_v41  ;;  %vm2797_vm0 = vmmov %vm2782_vm1 }
 0x1f3   :  { %1588 = vst.msk [vmem:[%s2779_s4 + $0x3c] sm:$0xf] %vm2797_vm0, %v1753_v7 }

// kernel: discriminator_forward.7
= control target key start
LH: loop header
LB: loop body
LE: loop exit
PB: predicated region body
PF: predicated region fallthrough
CT: control target
= control target key end

     0   :  { %s4781_s1 = inlined_call_operand.vmem [shape: bf16[4096,128], index: 1, kind: input, shape index: {}]   ;;  %s4782_s0 = inlined_call_operand.vmem [shape: bf16[16,4096], index: 0, kind: input, shape index: {}]   ;;  %s4783_s2 = inlined_call_operand.vmem [shape: f32[1,128], index: 2, kind: input, shape index: {}]   ;;  %s4784_s3 = inlined_call_operand.vmem [shape: f32[1,128], index: 3, kind: input, shape index: {}]   ;;  %s4785_s4 = inlined_call_operand.vmem [shape: bf16[16,128], index: 4, kind: output, shape index: {}]  }
   0x1   :  { %v3625_v0 = vld [vmem:[%s4781_s1 + $0x40] sm:$0xff]   ;;  %v3629_v4 = vld [vmem:[%s4781_s1 + $0x48] sm:$0xff]   ;;  %v3633_v8 = vld [vmem:[%s4781_s1 + $0x50] sm:$0xff]  }
   0x2   :  { %v3626_v1 = vld [vmem:[%s4781_s1 + $0xc0] sm:$0xff]   ;;  %3273 = vmatprep.subr.bf16.mxu0 %v3625_v0  ;;  %v3630_v5 = vld [vmem:[%s4781_s1 + $0xc8] sm:$0xff]   ;;  %v3634_v9 = vld [vmem:[%s4781_s1 + $0xd0] sm:$0xff]  }
   0x3   :  { %v3627_v2 = vld [vmem:[%s4781_s1] sm:$0xff]   ;;  %3295 = vmatprep.subr.bf16.mxu1 %v3626_v1  ;;  %v3631_v6 = vld [vmem:[%s4781_s1 + $0x8] sm:$0xff]   ;;  %v3635_v10 = vld [vmem:[%s4781_s1 + $0x10] sm:$0xff]  }
   0x4   :  { %v3628_v3 = vld [vmem:[%s4781_s1 + $0x80] sm:$0xff]   ;;  %3274 = vmatpush3.bf16.msra.mxu0 %v3627_v2  ;;  %v3632_v7 = vld [vmem:[%s4781_s1 + $0x88] sm:$0xff]   ;;  %v3636_v11 = vld [vmem:[%s4781_s1 + $0x90] sm:$0xff]  }
   0x5   :  { %3296 = vmatpush3.bf16.msra.mxu1 %v3628_v3  ;;  %3275 = vmatprep.subr.bf16.mxu0 %v3629_v4  ;;  %v3637_v12 = vld [vmem:[%s4781_s1 + $0x58] sm:$0xff]   ;;  %v3641_v16 = vld [vmem:[%s4781_s1 + $0x60] sm:$0xff]   ;;  %v3645_v20 = vld [vmem:[%s4781_s1 + $0x68] sm:$0xff]  }
   0x6   :  { %3297 = vmatprep.subr.bf16.mxu1 %v3630_v5  ;;  %v3638_v13 = vld [vmem:[%s4781_s1 + $0xd8] sm:$0xff]   ;;  %v3642_v17 = vld [vmem:[%s4781_s1 + $0xe0] sm:$0xff]   ;;  %v3646_v21 = vld [vmem:[%s4781_s1 + $0xe8] sm:$0xff]  }
   0x7   :  { %v3639_v14 = vld [vmem:[%s4781_s1 + $0x18] sm:$0xff]   ;;  %v3643_v18 = vld [vmem:[%s4781_s1 + $0x20] sm:$0xff]   ;;  %v3647_v22 = vld [vmem:[%s4781_s1 + $0x28] sm:$0xff]  }
   0x8   :  { %3276 = vmatpush3.bf16.msra.mxu0 %v3631_v6  ;;  %v3640_v15 = vld [vmem:[%s4781_s1 + $0x98] sm:$0xff]   ;;  %v3644_v19 = vld [vmem:[%s4781_s1 + $0xa0] sm:$0xff]   ;;  %v3648_v23 = vld [vmem:[%s4781_s1 + $0xa8] sm:$0xff]  }
   0x9   :  { %3298 = vmatpush3.bf16.msra.mxu1 %v3632_v7  ;;  %3277 = vmatprep.subr.bf16.mxu0 %v3633_v8  ;;  %v3649_v24 = vld [vmem:[%s4781_s1 + $0x70] sm:$0xff]   ;;  %v3653_v28 = vld [vmem:[%s4781_s1 + $0x78] sm:$0xff]   ;;  %v18_v32 = vld [vmem:[%s4782_s0] sm:$0xff] }
   0xa   :  { %3299 = vmatprep.subr.bf16.mxu1 %v3634_v9  ;;  %v3650_v25 = vld [vmem:[%s4781_s1 + $0xf0] sm:$0xff]   ;;  %v3654_v29 = vld [vmem:[%s4781_s1 + $0xf8] sm:$0xff]   ;;  %v34_v33 = vld [vmem:[%s4782_s0 + $0x80] sm:$0xff] }
   0xb   :  { %v3651_v26 = vld [vmem:[%s4781_s1 + $0x30] sm:$0xff]   ;;  %v3655_v30 = vld [vmem:[%s4781_s1 + $0x38] sm:$0xff]   ;;  %v19_v34 = vld [vmem:[%s4782_s0 + $0x8] sm:$0xff]  ;;  %v2975_v35 = vcombine.low %v18_v32, %v34_v33  ;;  %v2976_v36 = vcombine.high %v18_v32, %v34_v33 }
   0xc   :  { %3278 = vmatpush3.bf16.msra.mxu0 %v3635_v10  ;;  %v3652_v27 = vld [vmem:[%s4781_s1 + $0xb0] sm:$0xff]   ;;  %v3656_v31 = vld [vmem:[%s4781_s1 + $0xb8] sm:$0xff]   ;;  %v35_v37 = vld [vmem:[%s4782_s0 + $0x88] sm:$0xff] }
   0xd   :  { %3300 = vmatpush3.bf16.msra.mxu1 %v3636_v11  ;;  %3279 = vmatprep.subr.bf16.mxu0 %v3637_v12  ;;  %v2977_v38 = vcombine.low %v19_v34, %v35_v37  ;;  %v2978_v39 = vcombine.high %v19_v34, %v35_v37  ;;  %v3657_v40 = vld [vmem:[%s4781_s1 + $0x140] sm:$0xff]   ;;  %v3661_v44 = vld [vmem:[%s4781_s1 + $0x148] sm:$0xff]   ;;  %v3665_v48 = vld [vmem:[%s4781_s1 + $0x150] sm:$0xff]  }
   0xe   :  { %3301 = vmatprep.subr.bf16.mxu1 %v3638_v13  ;;  %2290 = vmatprep.mubr.bf16.mxu0 %v2976_v36  ;;  %v3658_v41 = vld [vmem:[%s4781_s1 + $0x1c0] sm:$0xff]   ;;  %v3662_v45 = vld [vmem:[%s4781_s1 + $0x1c8] sm:$0xff]   ;;  %v3666_v49 = vld [vmem:[%s4781_s1 + $0x1d0] sm:$0xff]  }
   0xf   :  { %2331 = vmatprep.mubr.bf16.mxu1 %v2978_v39  ;;  %v3659_v42 = vld [vmem:[%s4781_s1 + $0x100] sm:$0xff]   ;;  %v3663_v46 = vld [vmem:[%s4781_s1 + $0x108] sm:$0xff]   ;;  %v3667_v50 = vld [vmem:[%s4781_s1 + $0x110] sm:$0xff]  }
  0x10   :  { %3280 = vmatpush3.bf16.msra.mxu0 %v3639_v14  ;;  %v3660_v43 = vld [vmem:[%s4781_s1 + $0x180] sm:$0xff]   ;;  %v3664_v47 = vld [vmem:[%s4781_s1 + $0x188] sm:$0xff]   ;;  %v3668_v51 = vld [vmem:[%s4781_s1 + $0x190] sm:$0xff]  }
  0x11   :  { %3302 = vmatpush3.bf16.msra.mxu1 %v3640_v15  ;;  %3281 = vmatprep.subr.bf16.mxu0 %v3641_v16  ;;  %v3669_v52 = vld [vmem:[%s4781_s1 + $0x158] sm:$0xff]   ;;  %v3673_v56 = vld [vmem:[%s4781_s1 + $0x160] sm:$0xff]   ;;  %v3677_v60 = vld [vmem:[%s4781_s1 + $0x168] sm:$0xff]  }
  0x12   :  { %3303 = vmatprep.subr.bf16.mxu1 %v3642_v17  ;;  %v3670_v53 = vld [vmem:[%s4781_s1 + $0x1d8] sm:$0xff]   ;;  %v3674_v57 = vld [vmem:[%s4781_s1 + $0x1e0] sm:$0xff]   ;;  %v3678_v61 = vld [vmem:[%s4781_s1 + $0x1e8] sm:$0xff]  }
  0x13   :  { %v3671_v54 = vld [vmem:[%s4781_s1 + $0x118] sm:$0xff]   ;;  %v3675_v58 = vld [vmem:[%s4781_s1 + $0x120] sm:$0xff]   ;;  %v3679_v62 = vld [vmem:[%s4781_s1 + $0x128] sm:$0xff]  }
  0x14   :  { %3282 = vmatpush3.bf16.msra.mxu0 %v3643_v18  ;;  %v3672_v55 = vld [vmem:[%s4781_s1 + $0x198] sm:$0xff]   ;;  %v3676_v59 = vld [vmem:[%s4781_s1 + $0x1a0] sm:$0xff]   ;;  %v3680_v63 = vld [vmem:[%s4781_s1 + $0x1a8] sm:$0xff]  }
  0x15   :  { %3304 = vmatpush3.bf16.msra.mxu1 %v3644_v19  ;;  %3283 = vmatprep.subr.bf16.mxu0 %v3645_v20  ;;  %v3681_v0 = vld [vmem:[%s4781_s1 + $0x170] sm:$0xff]   ;;  %v3685_v4 = vld [vmem:[%s4781_s1 + $0x178] sm:$0xff]   ;;  %v3689_v16 = vld [vmem:[%s4781_s1 + $0x240] sm:$0xff]  }
  0x16   :  { %3305 = vmatprep.subr.bf16.mxu1 %v3646_v21  ;;  %v3682_v1 = vld [vmem:[%s4781_s1 + $0x1f0] sm:$0xff]   ;;  %v3686_v5 = vld [vmem:[%s4781_s1 + $0x1f8] sm:$0xff]   ;;  %v3690_v17 = vld [vmem:[%s4781_s1 + $0x2c0] sm:$0xff]  }
  0x17   :  { %v3683_v2 = vld [vmem:[%s4781_s1 + $0x130] sm:$0xff]   ;;  %v3687_v6 = vld [vmem:[%s4781_s1 + $0x138] sm:$0xff]   ;;  %v3691_v18 = vld [vmem:[%s4781_s1 + $0x200] sm:$0xff]  }
  0x18   :  { %3284 = vmatpush3.bf16.msra.mxu0 %v3647_v22  ;;  %v3684_v3 = vld [vmem:[%s4781_s1 + $0x1b0] sm:$0xff]   ;;  %v3688_v7 = vld [vmem:[%s4781_s1 + $0x1b8] sm:$0xff]   ;;  %v3692_v19 = vld [vmem:[%s4781_s1 + $0x280] sm:$0xff]  }
  0x19   :  { %3306 = vmatpush3.bf16.msra.mxu1 %v3648_v23  ;;  %3285 = vmatprep.subr.bf16.mxu0 %v3649_v24  ;;  %v20_v8 = vld [vmem:[%s4782_s0 + $0x10] sm:$0xff]  ;;  %v21_v12 = vld [vmem:[%s4782_s0 + $0x18] sm:$0xff]  ;;  %v3693_v20 = vld [vmem:[%s4781_s1 + $0x248] sm:$0xff]  }
  0x1a   :  { %3307 = vmatprep.subr.bf16.mxu1 %v3650_v25  ;;  %v36_v9 = vld [vmem:[%s4782_s0 + $0x90] sm:$0xff]  ;;  %v37_v13 = vld [vmem:[%s4782_s0 + $0x98] sm:$0xff]  ;;  %v3694_v21 = vld [vmem:[%s4781_s1 + $0x2c8] sm:$0xff]  }
  0x1b   :  { %v2979_v10 = vcombine.low %v20_v8, %v36_v9  ;;  %v2980_v11 = vcombine.high %v20_v8, %v36_v9  ;;  %v2981_v14 = vcombine.low %v21_v12, %v37_v13  ;;  %v2982_v15 = vcombine.high %v21_v12, %v37_v13  ;;  %v3695_v22 = vld [vmem:[%s4781_s1 + $0x208] sm:$0xff]   ;;  %v3697_v24 = vld [vmem:[%s4781_s1 + $0x250] sm:$0xff]   ;;  %v3705_v32 = vld [vmem:[%s4781_s1 + $0x260] sm:$0xff]  }
  0x1c   :  { %3286 = vmatpush3.bf16.msra.mxu0 %v3651_v26  ;;  %v3696_v23 = vld [vmem:[%s4781_s1 + $0x288] sm:$0xff]   ;;  %v3698_v25 = vld [vmem:[%s4781_s1 + $0x2d0] sm:$0xff]   ;;  %v3706_v33 = vld [vmem:[%s4781_s1 + $0x2e0] sm:$0xff]  }
  0x1d   :  { %3308 = vmatpush3.bf16.msra.mxu1 %v3652_v27  ;;  %3287 = vmatprep.subr.bf16.mxu0 %v3653_v28  ;;  %v3699_v26 = vld [vmem:[%s4781_s1 + $0x210] sm:$0xff]   ;;  %v3701_v28 = vld [vmem:[%s4781_s1 + $0x258] sm:$0xff]   ;;  %v3707_v34 = vld [vmem:[%s4781_s1 + $0x220] sm:$0xff]  }
  0x1e   :  { %3309 = vmatprep.subr.bf16.mxu1 %v3654_v29  ;;  %v3700_v27 = vld [vmem:[%s4781_s1 + $0x290] sm:$0xff]   ;;  %v3702_v29 = vld [vmem:[%s4781_s1 + $0x2d8] sm:$0xff]   ;;  %v3709_v36 = vld [vmem:[%s4781_s1 + $0x268] sm:$0xff]  }
  0x1f   :  { %v3710_v37 = vld [vmem:[%s4781_s1 + $0x2e8] sm:$0xff]   ;;  %v3737_v8 = vld [vmem:[%s4781_s1 + $0x360] sm:$0xff]  }
  0x20   :  { %3288 = vmatpush3.bf16.msra.mxu0 %v3655_v30  ;;  %v3703_v30 = vld [vmem:[%s4781_s1 + $0x218] sm:$0xff]   ;;  %v3712_v39 = vld [vmem:[%s4781_s1 + $0x2a8] sm:$0xff]   ;;  %v3738_v9 = vld [vmem:[%s4781_s1 + $0x3e0] sm:$0xff]  }
  0x21   :  { %3310 = vmatpush3.bf16.msra.mxu1 %v3656_v31  ;;  %3317 = vmatprep.subr.bf16.mxu0 %v3657_v40  ;;  %v3704_v31 = vld [vmem:[%s4781_s1 + $0x298] sm:$0xff]   ;;  %v3713_v40 = vld [vmem:[%s4781_s1 + $0x270] sm:$0xff]   ;;  %v3741_v12 = vld [vmem:[%s4781_s1 + $0x368] sm:$0xff]  }
  0x22   :  { %3339 = vmatprep.subr.bf16.mxu1 %v3658_v41  ;;  %v3714_v41 = vld [vmem:[%s4781_s1 + $0x2f0] sm:$0xff]   ;;  %v3742_v13 = vld [vmem:[%s4781_s1 + $0x3e8] sm:$0xff]  }
  0x23   :  { %2291 = vmatmul.mubr.bf16.vlgmr.msra.gmra.mrb[0].mxu0 %v2975_v35  ;;  %v3708_v35 = vld [vmem:[%s4781_s1 + $0x2a0] sm:$0xff]  }
  0x24   :  { %2332 = vmatmul.mubr.bf16.vlgmr.msra.gmra.mrb[0].mxu1 %v2977_v38  ;;  %3318 = vmatpush3.bf16.msra.mxu0 %v3659_v42  ;;  %v3711_v38 = vld [vmem:[%s4781_s1 + $0x228] sm:$0xff]   ;;  %v3715_v42 = vld [vmem:[%s4781_s1 + $0x230] sm:$0xff]  }
  0x25   :  { %3340 = vmatpush3.bf16.msra.mxu1 %v3660_v43  ;;  %3319 = vmatprep.subr.bf16.mxu0 %v3661_v44  ;;  %v3716_v43 = vld [vmem:[%s4781_s1 + $0x2b0] sm:$0xff]   ;;  %v3717_v44 = vld [vmem:[%s4781_s1 + $0x278] sm:$0xff]  }
  0x26   :  { %3341 = vmatprep.subr.bf16.mxu1 %v3662_v45  ;;  %2372 = vmatprep.mubr.bf16.mxu0 %v2980_v11  ;;  %v3718_v45 = vld [vmem:[%s4781_s1 + $0x2f8] sm:$0xff]   ;;  %v3740_v11 = vld [vmem:[%s4781_s1 + $0x3a0] sm:$0xff]  }
  0x27   :  { %2413 = vmatprep.mubr.bf16.mxu1 %v2982_v15  ;;  %v3744_v15 = vld [vmem:[%s4781_s1 + $0x3a8] sm:$0xff]  }
  0x28   :  { %3320 = vmatpush3.bf16.msra.mxu0 %v3663_v46  ;;  %v3719_v46 = vld [vmem:[%s4781_s1 + $0x238] sm:$0xff]  }
  0x29   :  { %3342 = vmatpush3.bf16.msra.mxu1 %v3664_v47  ;;  %3321 = vmatprep.subr.bf16.mxu0 %v3665_v48  ;;  %v3720_v47 = vld [vmem:[%s4781_s1 + $0x2b8] sm:$0xff]   ;;  %v22_v48 = vld [vmem:[%s4782_s0 + $0x20] sm:$0xff] }
  0x2a   :  { %3343 = vmatprep.subr.bf16.mxu1 %v3666_v49  ;;  %v38_v49 = vld [vmem:[%s4782_s0 + $0xa0] sm:$0xff] }
  0x2c   :  { %3322 = vmatpush3.bf16.msra.mxu0 %v3667_v50  ;;  %v23_v50 = vld [vmem:[%s4782_s0 + $0x28] sm:$0xff] }
  0x2d   :  { %3344 = vmatpush3.bf16.msra.mxu1 %v3668_v51  ;;  %3323 = vmatprep.subr.bf16.mxu0 %v3669_v52  ;;  %v39_v51 = vld [vmem:[%s4782_s0 + $0xa8] sm:$0xff]  ;;  %v2983_v52 = vcombine.low %v22_v48, %v38_v49 }
  0x2e   :  { %3345 = vmatprep.subr.bf16.mxu1 %v3670_v53  ;;  %v2984_v53 = vcombine.high %v22_v48, %v38_v49  ;;  %v3769_v48 = vld [vmem:[%s4781_s1 + $0x460] sm:$0xff]  }
  0x2f   :  { %v3770_v49 = vld [vmem:[%s4781_s1 + $0x4e0] sm:$0xff]  }
  0x30   :  { %3324 = vmatpush3.bf16.msra.mxu0 %v3671_v54  ;;  %v2985_v54 = vcombine.low %v23_v50, %v39_v51 }
  0x31   :  { %3346 = vmatpush3.bf16.msra.mxu1 %v3672_v55  ;;  %3325 = vmatprep.subr.bf16.mxu0 %v3673_v56  ;;  %v2986_v55 = vcombine.high %v23_v50, %v39_v51  ;;  %v3721_v56 = vld [vmem:[%s4781_s1 + $0x340] sm:$0xff]  }
  0x32   :  { %3347 = vmatprep.subr.bf16.mxu1 %v3674_v57  ;;  %v3722_v57 = vld [vmem:[%s4781_s1 + $0x3c0] sm:$0xff]  }
  0x33   :  { %v3771_v50 = vld [vmem:[%s4781_s1 + $0x420] sm:$0xff]  }
  0x34   :  { %3326 = vmatpush3.bf16.msra.mxu0 %v3675_v58  ;;  %v3723_v58 = vld [vmem:[%s4781_s1 + $0x300] sm:$0xff]  }
  0x35   :  { %3348 = vmatpush3.bf16.msra.mxu1 %v3676_v59  ;;  %3327 = vmatprep.subr.bf16.mxu0 %v3677_v60  ;;  %v3724_v59 = vld [vmem:[%s4781_s1 + $0x380] sm:$0xff]   ;;  %v3725_v60 = vld [vmem:[%s4781_s1 + $0x348] sm:$0xff]  }
  0x36   :  { %3349 = vmatprep.subr.bf16.mxu1 %v3678_v61  ;;  %v3726_v61 = vld [vmem:[%s4781_s1 + $0x3c8] sm:$0xff]   ;;  %v3772_v51 = vld [vmem:[%s4781_s1 + $0x4a0] sm:$0xff]  }
  0x38   :  { %3328 = vmatpush3.bf16.msra.mxu0 %v3679_v62  ;;  %v3727_v62 = vld [vmem:[%s4781_s1 + $0x308] sm:$0xff]  }
  0x39   :  { %3350 = vmatpush3.bf16.msra.mxu1 %v3680_v63  ;;  %3329 = vmatprep.subr.bf16.mxu0 %v3681_v0  ;;  %v3728_v63 = vld [vmem:[%s4781_s1 + $0x388] sm:$0xff]   ;;  %v3729_v0 = vld [vmem:[%s4781_s1 + $0x350] sm:$0xff]  }
  0x3a   :  { %3351 = vmatprep.subr.bf16.mxu1 %v3682_v1  ;;  %v3730_v1 = vld [vmem:[%s4781_s1 + $0x3d0] sm:$0xff]  }
  0x3c   :  { %3330 = vmatpush3.bf16.msra.mxu0 %v3683_v2  ;;  %v3731_v2 = vld [vmem:[%s4781_s1 + $0x310] sm:$0xff]  }
  0x3d   :  { %3352 = vmatpush3.bf16.msra.mxu1 %v3684_v3  ;;  %3331 = vmatprep.subr.bf16.mxu0 %v3685_v4  ;;  %v3732_v3 = vld [vmem:[%s4781_s1 + $0x390] sm:$0xff]   ;;  %v3733_v4 = vld [vmem:[%s4781_s1 + $0x358] sm:$0xff]  }
  0x3e   :  { %3353 = vmatprep.subr.bf16.mxu1 %v3686_v5  ;;  %v3734_v5 = vld [vmem:[%s4781_s1 + $0x3d8] sm:$0xff]  }
  0x40   :  { %3332 = vmatpush3.bf16.msra.mxu0 %v3687_v6  ;;  %v3735_v6 = vld [vmem:[%s4781_s1 + $0x318] sm:$0xff]  }
  0x41   :  { %3354 = vmatpush3.bf16.msra.mxu1 %v3688_v7  ;;  %3361 = vmatprep.subr.bf16.mxu0 %v3689_v16  ;;  %v3736_v7 = vld [vmem:[%s4781_s1 + $0x398] sm:$0xff]   ;;  %v3745_v16 = vld [vmem:[%s4781_s1 + $0x370] sm:$0xff]  }
  0x42   :  { %3383 = vmatprep.subr.bf16.mxu1 %v3690_v17  ;;  %v3746_v17 = vld [vmem:[%s4781_s1 + $0x3f0] sm:$0xff]  }
  0x43   :  { %2373 = vmatmul.mubr.bf16.vlgmr.msra.gmra.mrb[4].mxu0 %v2979_v10  ;;  %v3739_v10 = vld [vmem:[%s4781_s1 + $0x320] sm:$0xff]  }
  0x44   :  { %2414 = vmatmul.mubr.bf16.vlgmr.msra.gmra.mrb[4].mxu1 %v2981_v14  ;;  %3362 = vmatpush3.bf16.msra.mxu0 %v3691_v18  ;;  %v3743_v14 = vld [vmem:[%s4781_s1 + $0x328] sm:$0xff]   ;;  %v3747_v18 = vld [vmem:[%s4781_s1 + $0x330] sm:$0xff]  }
  0x45   :  { %3384 = vmatpush3.bf16.msra.mxu1 %v3692_v19  ;;  %3363 = vmatprep.subr.bf16.mxu0 %v3693_v20  ;;  %v3748_v19 = vld [vmem:[%s4781_s1 + $0x3b0] sm:$0xff]   ;;  %v3749_v20 = vld [vmem:[%s4781_s1 + $0x378] sm:$0xff]  }
  0x46   :  { %3385 = vmatprep.subr.bf16.mxu1 %v3694_v21  ;;  %2454 = vmatprep.mubr.bf16.mxu0 %v2984_v53  ;;  %v3750_v21 = vld [vmem:[%s4781_s1 + $0x3f8] sm:$0xff]   ;;  %v3774_v53 = vld [vmem:[%s4781_s1 + $0x4e8] sm:$0xff]  }
  0x47   :  { %2495 = vmatprep.mubr.bf16.mxu1 %v2986_v55  ;;  %v3776_v55 = vld [vmem:[%s4781_s1 + $0x4a8] sm:$0xff]  }
  0x48   :  { %3364 = vmatpush3.bf16.msra.mxu0 %v3695_v22  ;;  %v3751_v22 = vld [vmem:[%s4781_s1 + $0x338] sm:$0xff]  }
  0x49   :  { %3386 = vmatpush3.bf16.msra.mxu1 %v3696_v23  ;;  %3365 = vmatprep.subr.bf16.mxu0 %v3697_v24  ;;  %v3752_v23 = vld [vmem:[%s4781_s1 + $0x3b8] sm:$0xff]   ;;  %v24_v24 = vld [vmem:[%s4782_s0 + $0x30] sm:$0xff] }
  0x4a   :  { %3387 = vmatprep.subr.bf16.mxu1 %v3698_v25  ;;  %v40_v25 = vld [vmem:[%s4782_s0 + $0xb0] sm:$0xff] }
  0x4c   :  { %3366 = vmatpush3.bf16.msra.mxu0 %v3699_v26  ;;  %v25_v26 = vld [vmem:[%s4782_s0 + $0x38] sm:$0xff] }
  0x4d   :  { %3388 = vmatpush3.bf16.msra.mxu1 %v3700_v27  ;;  %3367 = vmatprep.subr.bf16.mxu0 %v3701_v28  ;;  %v2987_v27 = vcombine.low %v24_v24, %v40_v25  ;;  %v2988_v28 = vcombine.high %v24_v24, %v40_v25  ;;  %v3801_v24 = vld [vmem:[%s4781_s1 + $0x560] sm:$0xff]  }
  0x4e   :  { %3389 = vmatprep.subr.bf16.mxu1 %v3702_v29  ;;  %v41_v29 = vld [vmem:[%s4782_s0 + $0xb8] sm:$0xff]  ;;  %v3802_v25 = vld [vmem:[%s4781_s1 + $0x5e0] sm:$0xff]  }
  0x50   :  { %3368 = vmatpush3.bf16.msra.mxu0 %v3703_v30  ;;  %v2989_v30 = vcombine.low %v25_v26, %v41_v29 }
  0x51   :  { %3390 = vmatpush3.bf16.msra.mxu1 %v3704_v31  ;;  %3369 = vmatprep.subr.bf16.mxu0 %v3705_v32  ;;  %v2990_v31 = vcombine.high %v25_v26, %v41_v29  ;;  %v3753_v32 = vld [vmem:[%s4781_s1 + $0x440] sm:$0xff]   ;;  %v3806_v29 = vld [vmem:[%s4781_s1 + $0x5e8] sm:$0xff]  }
  0x52   :  { %3391 = vmatprep.subr.bf16.mxu1 %v3706_v33  ;;  %v3754_v33 = vld [vmem:[%s4781_s1 + $0x4c0] sm:$0xff]  }
  0x53   :  { %v3803_v26 = vld [vmem:[%s4781_s1 + $0x520] sm:$0xff]  }
  0x54   :  { %3370 = vmatpush3.bf16.msra.mxu0 %v3707_v34  ;;  %v3755_v34 = vld [vmem:[%s4781_s1 + $0x400] sm:$0xff]  }
  0x55   :  { %3392 = vmatpush3.bf16.msra.mxu1 %v3708_v35  ;;  %3371 = vmatprep.subr.bf16.mxu0 %v3709_v36  ;;  %v3756_v35 = vld [vmem:[%s4781_s1 + $0x480] sm:$0xff]   ;;  %v3757_v36 = vld [vmem:[%s4781_s1 + $0x448] sm:$0xff]  }
  0x56   :  { %3393 = vmatprep.subr.bf16.mxu1 %v3710_v37  ;;  %v3758_v37 = vld [vmem:[%s4781_s1 + $0x4c8] sm:$0xff]  }
  0x58   :  { %3372 = vmatpush3.bf16.msra.mxu0 %v3711_v38  ;;  %v3759_v38 = vld [vmem:[%s4781_s1 + $0x408] sm:$0xff]  }
  0x59   :  { %3394 = vmatpush3.bf16.msra.mxu1 %v3712_v39  ;;  %3373 = vmatprep.subr.bf16.mxu0 %v3713_v40  ;;  %v3760_v39 = vld [vmem:[%s4781_s1 + $0x488] sm:$0xff]   ;;  %v3761_v40 = vld [vmem:[%s4781_s1 + $0x450] sm:$0xff]  }
  0x5a   :  { %3395 = vmatprep.subr.bf16.mxu1 %v3714_v41  ;;  %v3762_v41 = vld [vmem:[%s4781_s1 + $0x4d0] sm:$0xff]  }
  0x5c   :  { %3374 = vmatpush3.bf16.msra.mxu0 %v3715_v42  ;;  %v3763_v42 = vld [vmem:[%s4781_s1 + $0x410] sm:$0xff]  }
  0x5d   :  { %3396 = vmatpush3.bf16.msra.mxu1 %v3716_v43  ;;  %3375 = vmatprep.subr.bf16.mxu0 %v3717_v44  ;;  %v3764_v43 = vld [vmem:[%s4781_s1 + $0x490] sm:$0xff]   ;;  %v3765_v44 = vld [vmem:[%s4781_s1 + $0x458] sm:$0xff]  }
  0x5e   :  { %3397 = vmatprep.subr.bf16.mxu1 %v3718_v45  ;;  %v3766_v45 = vld [vmem:[%s4781_s1 + $0x4d8] sm:$0xff]  }
  0x60   :  { %3376 = vmatpush3.bf16.msra.mxu0 %v3719_v46  ;;  %v3767_v46 = vld [vmem:[%s4781_s1 + $0x418] sm:$0xff]  }
  0x61   :  { %3398 = vmatpush3.bf16.msra.mxu1 %v3720_v47  ;;  %3405 = vmatprep.subr.bf16.mxu0 %v3721_v56  ;;  %v3768_v47 = vld [vmem:[%s4781_s1 + $0x498] sm:$0xff]   ;;  %v3777_v56 = vld [vmem:[%s4781_s1 + $0x470] sm:$0xff]  }
  0x62   :  { %3427 = vmatprep.subr.bf16.mxu1 %v3722_v57  ;;  %v3778_v57 = vld [vmem:[%s4781_s1 + $0x4f0] sm:$0xff]  }
  0x63   :  { %2455 = vmatmul.mubr.bf16.vlgmr.msra.gmra.mrb[8].mxu0 %v2983_v52  ;;  %v3773_v52 = vld [vmem:[%s4781_s1 + $0x468] sm:$0xff]  }
  0x64   :  { %2496 = vmatmul.mubr.bf16.vlgmr.msra.gmra.mrb[8].mxu1 %v2985_v54  ;;  %3406 = vmatpush3.bf16.msra.mxu0 %v3723_v58  ;;  %v3775_v54 = vld [vmem:[%s4781_s1 + $0x428] sm:$0xff]   ;;  %v3779_v58 = vld [vmem:[%s4781_s1 + $0x430] sm:$0xff]  }
  0x65   :  { %3428 = vmatpush3.bf16.msra.mxu1 %v3724_v59  ;;  %3407 = vmatprep.subr.bf16.mxu0 %v3725_v60  ;;  %v3780_v59 = vld [vmem:[%s4781_s1 + $0x4b0] sm:$0xff]   ;;  %v3781_v60 = vld [vmem:[%s4781_s1 + $0x478] sm:$0xff]  }
  0x66   :  { %3429 = vmatprep.subr.bf16.mxu1 %v3726_v61  ;;  %2536 = vmatprep.mubr.bf16.mxu0 %v2988_v28  ;;  %v3782_v61 = vld [vmem:[%s4781_s1 + $0x4f8] sm:$0xff]   ;;  %v3805_v28 = vld [vmem:[%s4781_s1 + $0x568] sm:$0xff]  }
  0x67   :  { %2577 = vmatprep.mubr.bf16.mxu1 %v2990_v31  ;;  %v3808_v31 = vld [vmem:[%s4781_s1 + $0x5a8] sm:$0xff]  }
  0x68   :  { %3408 = vmatpush3.bf16.msra.mxu0 %v3727_v62  ;;  %v3783_v62 = vld [vmem:[%s4781_s1 + $0x438] sm:$0xff]  }
  0x69   :  { %3430 = vmatpush3.bf16.msra.mxu1 %v3728_v63  ;;  %3409 = vmatprep.subr.bf16.mxu0 %v3729_v0  ;;  %v3784_v63 = vld [vmem:[%s4781_s1 + $0x4b8] sm:$0xff]   ;;  %v26_v0 = vld [vmem:[%s4782_s0 + $0x40] sm:$0xff] }
  0x6a   :  { %3431 = vmatprep.subr.bf16.mxu1 %v3730_v1  ;;  %v42_v1 = vld [vmem:[%s4782_s0 + $0xc0] sm:$0xff] }
  0x6c   :  { %3410 = vmatpush3.bf16.msra.mxu0 %v3731_v2  ;;  %v2991_v2 = vcombine.low %v26_v0, %v42_v1 }
  0x6d   :  { %3432 = vmatpush3.bf16.msra.mxu1 %v3732_v3  ;;  %3411 = vmatprep.subr.bf16.mxu0 %v3733_v4  ;;  %v2992_v3 = vcombine.high %v26_v0, %v42_v1  ;;  %v27_v4 = vld [vmem:[%s4782_s0 + $0x48] sm:$0xff]  ;;  %v3833_v0 = vld [vmem:[%s4781_s1 + $0x660] sm:$0xff]  }
  0x6e   :  { %3433 = vmatprep.subr.bf16.mxu1 %v3734_v5  ;;  %v43_v5 = vld [vmem:[%s4782_s0 + $0xc8] sm:$0xff]  ;;  %v3834_v1 = vld [vmem:[%s4781_s1 + $0x6e0] sm:$0xff]  }
  0x70   :  { %3412 = vmatpush3.bf16.msra.mxu0 %v3735_v6  ;;  %v2993_v6 = vcombine.low %v27_v4, %v43_v5 }
  0x71   :  { %3434 = vmatpush3.bf16.msra.mxu1 %v3736_v7  ;;  %3413 = vmatprep.subr.bf16.mxu0 %v3737_v8  ;;  %v2994_v7 = vcombine.high %v27_v4, %v43_v5  ;;  %v3785_v8 = vld [vmem:[%s4781_s1 + $0x540] sm:$0xff]   ;;  %v3837_v4 = vld [vmem:[%s4781_s1 + $0x668] sm:$0xff]  }
  0x72   :  { %3435 = vmatprep.subr.bf16.mxu1 %v3738_v9  ;;  %v3786_v9 = vld [vmem:[%s4781_s1 + $0x5c0] sm:$0xff]   ;;  %v3838_v5 = vld [vmem:[%s4781_s1 + $0x6e8] sm:$0xff]  }
  0x74   :  { %3414 = vmatpush3.bf16.msra.mxu0 %v3739_v10  ;;  %v3787_v10 = vld [vmem:[%s4781_s1 + $0x500] sm:$0xff]  }
  0x75   :  { %3436 = vmatpush3.bf16.msra.mxu1 %v3740_v11  ;;  %3415 = vmatprep.subr.bf16.mxu0 %v3741_v12  ;;  %v3788_v11 = vld [vmem:[%s4781_s1 + $0x580] sm:$0xff]   ;;  %v3789_v12 = vld [vmem:[%s4781_s1 + $0x548] sm:$0xff]  }
  0x76   :  { %3437 = vmatprep.subr.bf16.mxu1 %v3742_v13  ;;  %v3790_v13 = vld [vmem:[%s4781_s1 + $0x5c8] sm:$0xff]  }
  0x78   :  { %3416 = vmatpush3.bf16.msra.mxu0 %v3743_v14  ;;  %v3791_v14 = vld [vmem:[%s4781_s1 + $0x508] sm:$0xff]  }
  0x79   :  { %3438 = vmatpush3.bf16.msra.mxu1 %v3744_v15  ;;  %3417 = vmatprep.subr.bf16.mxu0 %v3745_v16  ;;  %v3792_v15 = vld [vmem:[%s4781_s1 + $0x588] sm:$0xff]   ;;  %v3793_v16 = vld [vmem:[%s4781_s1 + $0x550] sm:$0xff]  }
  0x7a   :  { %3439 = vmatprep.subr.bf16.mxu1 %v3746_v17  ;;  %v3794_v17 = vld [vmem:[%s4781_s1 + $0x5d0] sm:$0xff]  }
  0x7c   :  { %3418 = vmatpush3.bf16.msra.mxu0 %v3747_v18  ;;  %v3795_v18 = vld [vmem:[%s4781_s1 + $0x510] sm:$0xff]  }
  0x7d   :  { %3440 = vmatpush3.bf16.msra.mxu1 %v3748_v19  ;;  %3419 = vmatprep.subr.bf16.mxu0 %v3749_v20  ;;  %v3796_v19 = vld [vmem:[%s4781_s1 + $0x590] sm:$0xff]   ;;  %v3797_v20 = vld [vmem:[%s4781_s1 + $0x558] sm:$0xff]  }
  0x7e   :  { %3441 = vmatprep.subr.bf16.mxu1 %v3750_v21  ;;  %v3798_v21 = vld [vmem:[%s4781_s1 + $0x5d8] sm:$0xff]  }
  0x80   :  { %3420 = vmatpush3.bf16.msra.mxu0 %v3751_v22  ;;  %v3799_v22 = vld [vmem:[%s4781_s1 + $0x518] sm:$0xff]  }
  0x81   :  { %3442 = vmatpush3.bf16.msra.mxu1 %v3752_v23  ;;  %3449 = vmatprep.subr.bf16.mxu0 %v3753_v32  ;;  %v3800_v23 = vld [vmem:[%s4781_s1 + $0x598] sm:$0xff]   ;;  %v3809_v32 = vld [vmem:[%s4781_s1 + $0x570] sm:$0xff]  }
  0x82   :  { %3471 = vmatprep.subr.bf16.mxu1 %v3754_v33  ;;  %v3810_v33 = vld [vmem:[%s4781_s1 + $0x5f0] sm:$0xff]  }
  0x83   :  { %2537 = vmatmul.mubr.bf16.vlgmr.msra.gmra.mrb[12].mxu0 %v2987_v27  ;;  %v3804_v27 = vld [vmem:[%s4781_s1 + $0x5a0] sm:$0xff]  }
  0x84   :  { %2578 = vmatmul.mubr.bf16.vlgmr.msra.gmra.mrb[12].mxu1 %v2989_v30  ;;  %3450 = vmatpush3.bf16.msra.mxu0 %v3755_v34  ;;  %v3807_v30 = vld [vmem:[%s4781_s1 + $0x528] sm:$0xff]   ;;  %v3811_v34 = vld [vmem:[%s4781_s1 + $0x530] sm:$0xff]  }
  0x85   :  { %3472 = vmatpush3.bf16.msra.mxu1 %v3756_v35  ;;  %3451 = vmatprep.subr.bf16.mxu0 %v3757_v36  ;;  %v3812_v35 = vld [vmem:[%s4781_s1 + $0x5b0] sm:$0xff]   ;;  %v3813_v36 = vld [vmem:[%s4781_s1 + $0x578] sm:$0xff]  }
  0x86   :  { %3473 = vmatprep.subr.bf16.mxu1 %v3758_v37  ;;  %2618 = vmatprep.mubr.bf16.mxu0 %v2992_v3  ;;  %v3814_v37 = vld [vmem:[%s4781_s1 + $0x5f8] sm:$0xff]   ;;  %v3836_v3 = vld [vmem:[%s4781_s1 + $0x6a0] sm:$0xff]  }
  0x87   :  { %2659 = vmatprep.mubr.bf16.mxu1 %v2994_v7  ;;  %v3840_v7 = vld [vmem:[%s4781_s1 + $0x6a8] sm:$0xff]  }
  0x88   :  { %3452 = vmatpush3.bf16.msra.mxu0 %v3759_v38  ;;  %v3815_v38 = vld [vmem:[%s4781_s1 + $0x538] sm:$0xff]  }
  0x89   :  { %3474 = vmatpush3.bf16.msra.mxu1 %v3760_v39  ;;  %3453 = vmatprep.subr.bf16.mxu0 %v3761_v40  ;;  %v3816_v39 = vld [vmem:[%s4781_s1 + $0x5b8] sm:$0xff]   ;;  %v28_v40 = vld [vmem:[%s4782_s0 + $0x50] sm:$0xff] }
  0x8a   :  { %3475 = vmatprep.subr.bf16.mxu1 %v3762_v41  ;;  %v44_v41 = vld [vmem:[%s4782_s0 + $0xd0] sm:$0xff] }
  0x8c   :  { %3454 = vmatpush3.bf16.msra.mxu0 %v3763_v42  ;;  %v29_v42 = vld [vmem:[%s4782_s0 + $0x58] sm:$0xff] }
  0x8d   :  { %3476 = vmatpush3.bf16.msra.mxu1 %v3764_v43  ;;  %3455 = vmatprep.subr.bf16.mxu0 %v3765_v44  ;;  %v45_v43 = vld [vmem:[%s4782_s0 + $0xd8] sm:$0xff]  ;;  %v2995_v44 = vcombine.low %v28_v40, %v44_v41 }
  0x8e   :  { %3477 = vmatprep.subr.bf16.mxu1 %v3766_v45  ;;  %v2996_v45 = vcombine.high %v28_v40, %v44_v41  ;;  %v3864_v41 = vld [vmem:[%s4781_s1 + $0x798] sm:$0xff]  }
  0x90   :  { %3456 = vmatpush3.bf16.msra.mxu0 %v3767_v46  ;;  %v2997_v46 = vcombine.low %v29_v42, %v45_v43 }
  0x91   :  { %3478 = vmatpush3.bf16.msra.mxu1 %v3768_v47  ;;  %3457 = vmatprep.subr.bf16.mxu0 %v3769_v48  ;;  %v2998_v47 = vcombine.high %v29_v42, %v45_v43  ;;  %v3817_v48 = vld [vmem:[%s4781_s1 + $0x640] sm:$0xff]  }
  0x92   :  { %3479 = vmatprep.subr.bf16.mxu1 %v3770_v49  ;;  %v3818_v49 = vld [vmem:[%s4781_s1 + $0x6c0] sm:$0xff]  }
  0x93   :  { %v3865_v43 = vld [vmem:[%s4781_s1 + $0x760] sm:$0xff]  }
  0x94   :  { %3458 = vmatpush3.bf16.msra.mxu0 %v3771_v50  ;;  %v3819_v50 = vld [vmem:[%s4781_s1 + $0x600] sm:$0xff]  }
  0x95   :  { %3480 = vmatpush3.bf16.msra.mxu1 %v3772_v51  ;;  %3459 = vmatprep.subr.bf16.mxu0 %v3773_v52  ;;  %v3820_v51 = vld [vmem:[%s4781_s1 + $0x680] sm:$0xff]   ;;  %v3821_v52 = vld [vmem:[%s4781_s1 + $0x648] sm:$0xff]  }
  0x96   :  { %3481 = vmatprep.subr.bf16.mxu1 %v3774_v53  ;;  %v3822_v53 = vld [vmem:[%s4781_s1 + $0x6c8] sm:$0xff]  }
  0x98   :  { %3460 = vmatpush3.bf16.msra.mxu0 %v3775_v54  ;;  %v3823_v54 = vld [vmem:[%s4781_s1 + $0x608] sm:$0xff]  }
  0x99   :  { %3482 = vmatpush3.bf16.msra.mxu1 %v3776_v55  ;;  %3461 = vmatprep.subr.bf16.mxu0 %v3777_v56  ;;  %v3824_v55 = vld [vmem:[%s4781_s1 + $0x688] sm:$0xff]   ;;  %v3825_v56 = vld [vmem:[%s4781_s1 + $0x650] sm:$0xff]  }
  0x9a   :  { %3483 = vmatprep.subr.bf16.mxu1 %v3778_v57  ;;  %v3826_v57 = vld [vmem:[%s4781_s1 + $0x6d0] sm:$0xff]  }
  0x9c   :  { %3462 = vmatpush3.bf16.msra.mxu0 %v3779_v58  ;;  %v3827_v58 = vld [vmem:[%s4781_s1 + $0x610] sm:$0xff]  }
  0x9d   :  { %3484 = vmatpush3.bf16.msra.mxu1 %v3780_v59  ;;  %3463 = vmatprep.subr.bf16.mxu0 %v3781_v60  ;;  %v3828_v59 = vld [vmem:[%s4781_s1 + $0x690] sm:$0xff]   ;;  %v3829_v60 = vld [vmem:[%s4781_s1 + $0x658] sm:$0xff]  }
  0x9e   :  { %3485 = vmatprep.subr.bf16.mxu1 %v3782_v61  ;;  %v3830_v61 = vld [vmem:[%s4781_s1 + $0x6d8] sm:$0xff]  }
  0xa0   :  { %3464 = vmatpush3.bf16.msra.mxu0 %v3783_v62  ;;  %v3831_v62 = vld [vmem:[%s4781_s1 + $0x618] sm:$0xff]  }
  0xa1   :  { %3486 = vmatpush3.bf16.msra.mxu1 %v3784_v63  ;;  %3493 = vmatprep.subr.bf16.mxu0 %v3785_v8  ;;  %v3832_v63 = vld [vmem:[%s4781_s1 + $0x698] sm:$0xff]   ;;  %v3841_v8 = vld [vmem:[%s4781_s1 + $0x670] sm:$0xff]  }
  0xa2   :  { %3515 = vmatprep.subr.bf16.mxu1 %v3786_v9  ;;  %v3842_v9 = vld [vmem:[%s4781_s1 + $0x6f0] sm:$0xff]  }
  0xa3   :  { %2619 = vmatmul.mubr.bf16.vlgmr.msra.gmra.mrb[16].mxu0 %v2991_v2  ;;  %v3835_v2 = vld [vmem:[%s4781_s1 + $0x620] sm:$0xff]  }
  0xa4   :  { %2660 = vmatmul.mubr.bf16.vlgmr.msra.gmra.mrb[16].mxu1 %v2993_v6  ;;  %3494 = vmatpush3.bf16.msra.mxu0 %v3787_v10  ;;  %v3839_v6 = vld [vmem:[%s4781_s1 + $0x628] sm:$0xff]   ;;  %v3843_v10 = vld [vmem:[%s4781_s1 + $0x630] sm:$0xff]  }
  0xa5   :  { %3516 = vmatpush3.bf16.msra.mxu1 %v3788_v11  ;;  %3495 = vmatprep.subr.bf16.mxu0 %v3789_v12  ;;  %v3844_v11 = vld [vmem:[%s4781_s1 + $0x6b0] sm:$0xff]   ;;  %v3845_v12 = vld [vmem:[%s4781_s1 + $0x678] sm:$0xff]  }
  0xa6   :  { %3517 = vmatprep.subr.bf16.mxu1 %v3790_v13  ;;  %2700 = vmatprep.mubr.bf16.mxu0 %v2996_v45  ;;  %v3846_v13 = vld [vmem:[%s4781_s1 + $0x6f8] sm:$0xff]  }
  0xa7   :  { %2741 = vmatprep.mubr.bf16.mxu1 %v2998_v47 }
  0xa8   :  { %3496 = vmatpush3.bf16.msra.mxu0 %v3791_v14  ;;  %v3847_v14 = vld [vmem:[%s4781_s1 + $0x638] sm:$0xff]  }
  0xa9   :  { %3518 = vmatpush3.bf16.msra.mxu1 %v3792_v15  ;;  %3497 = vmatprep.subr.bf16.mxu0 %v3793_v16  ;;  %v3848_v15 = vld [vmem:[%s4781_s1 + $0x6b8] sm:$0xff]   ;;  %v30_v16 = vld [vmem:[%s4782_s0 + $0x60] sm:$0xff] }
  0xaa   :  { %3519 = vmatprep.subr.bf16.mxu1 %v3794_v17  ;;  %v46_v17 = vld [vmem:[%s4782_s0 + $0xe0] sm:$0xff] }
  0xac   :  { %3498 = vmatpush3.bf16.msra.mxu0 %v3795_v18  ;;  %v31_v18 = vld [vmem:[%s4782_s0 + $0x68] sm:$0xff] }
  0xad   :  { %3520 = vmatpush3.bf16.msra.mxu1 %v3796_v19  ;;  %3499 = vmatprep.subr.bf16.mxu0 %v3797_v20  ;;  %v2999_v19 = vcombine.low %v30_v16, %v46_v17  ;;  %v3000_v20 = vcombine.high %v30_v16, %v46_v17 }
  0xae   :  { %3521 = vmatprep.subr.bf16.mxu1 %v3798_v21  ;;  %v47_v21 = vld [vmem:[%s4782_s0 + $0xe8] sm:$0xff] }
  0xb0   :  { %3500 = vmatpush3.bf16.msra.mxu0 %v3799_v22  ;;  %v3001_v22 = vcombine.low %v31_v18, %v47_v21 }
  0xb1   :  { %3522 = vmatpush3.bf16.msra.mxu1 %v3800_v23  ;;  %3501 = vmatprep.subr.bf16.mxu0 %v3801_v24  ;;  %v3002_v23 = vcombine.high %v31_v18, %v47_v21  ;;  %v3849_v24 = vld [vmem:[%s4781_s1 + $0x740] sm:$0xff]  }
  0xb2   :  { %3523 = vmatprep.subr.bf16.mxu1 %v3802_v25  ;;  %v3850_v25 = vld [vmem:[%s4781_s1 + $0x7c0] sm:$0xff]  }
  0xb4   :  { %3502 = vmatpush3.bf16.msra.mxu0 %v3803_v26  ;;  %v3851_v26 = vld [vmem:[%s4781_s1 + $0x700] sm:$0xff]  }
  0xb5   :  { %3524 = vmatpush3.bf16.msra.mxu1 %v3804_v27  ;;  %3503 = vmatprep.subr.bf16.mxu0 %v3805_v28  ;;  %v3852_v27 = vld [vmem:[%s4781_s1 + $0x780] sm:$0xff]   ;;  %v3853_v28 = vld [vmem:[%s4781_s1 + $0x748] sm:$0xff]  }
  0xb6   :  { %3525 = vmatprep.subr.bf16.mxu1 %v3806_v29  ;;  %v3854_v29 = vld [vmem:[%s4781_s1 + $0x7c8] sm:$0xff]  }
  0xb8   :  { %3504 = vmatpush3.bf16.msra.mxu0 %v3807_v30  ;;  %v3855_v30 = vld [vmem:[%s4781_s1 + $0x708] sm:$0xff]  }
  0xb9   :  { %3526 = vmatpush3.bf16.msra.mxu1 %v3808_v31  ;;  %3505 = vmatprep.subr.bf16.mxu0 %v3809_v32  ;;  %v3856_v31 = vld [vmem:[%s4781_s1 + $0x788] sm:$0xff]   ;;  %v3857_v32 = vld [vmem:[%s4781_s1 + $0x750] sm:$0xff]  }
  0xba   :  { %3527 = vmatprep.subr.bf16.mxu1 %v3810_v33  ;;  %v3858_v33 = vld [vmem:[%s4781_s1 + $0x7d0] sm:$0xff]  }
  0xbc   :  { %3506 = vmatpush3.bf16.msra.mxu0 %v3811_v34  ;;  %v3859_v34 = vld [vmem:[%s4781_s1 + $0x710] sm:$0xff]  }
  0xbd   :  { %3528 = vmatpush3.bf16.msra.mxu1 %v3812_v35  ;;  %3507 = vmatprep.subr.bf16.mxu0 %v3813_v36  ;;  %v3860_v35 = vld [vmem:[%s4781_s1 + $0x790] sm:$0xff]   ;;  %v3861_v36 = vld [vmem:[%s4781_s1 + $0x758] sm:$0xff]  }
  0xbe   :  { %3529 = vmatprep.subr.bf16.mxu1 %v3814_v37  ;;  %v3862_v37 = vld [vmem:[%s4781_s1 + $0x7d8] sm:$0xff]  }
  0xc0   :  { %3508 = vmatpush3.bf16.msra.mxu0 %v3815_v38 }
  0xc1   :  { %3530 = vmatpush3.bf16.msra.mxu1 %v3816_v39  ;;  %3537 = vmatprep.subr.bf16.mxu0 %v3817_v48  ;;  %v3863_v39 = vld [vmem:[%s4781_s1 + $0x718] sm:$0xff]  }
  0xc2   :  { %3559 = vmatprep.subr.bf16.mxu1 %v3818_v49  ;;  %v3867_v49 = vld [vmem:[%s4781_s1 + $0x720] sm:$0xff]  }
  0xc3   :  { %2701 = vmatmul.mubr.bf16.vlgmr.msra.gmra.mrb[20].mxu0 %v2995_v44 }
  0xc4   :  { %2742 = vmatmul.mubr.bf16.vlgmr.msra.gmra.mrb[20].mxu1 %v2997_v46  ;;  %3538 = vmatpush3.bf16.msra.mxu0 %v3819_v50  ;;  %v3866_v46 = vld [vmem:[%s4781_s1 + $0x7e0] sm:$0xff]  }
  0xc5   :  { %3560 = vmatpush3.bf16.msra.mxu1 %v3820_v51  ;;  %3539 = vmatprep.subr.bf16.mxu0 %v3821_v52  ;;  %v3868_v51 = vld [vmem:[%s4781_s1 + $0x7a0] sm:$0xff]  }
  0xc6   :  { %3561 = vmatprep.subr.bf16.mxu1 %v3822_v53  ;;  %2782 = vmatprep.mubr.bf16.mxu0 %v3000_v20 }
  0xc7   :  { %2823 = vmatprep.mubr.bf16.mxu1 %v3002_v23 }
  0xc8   :  { %3540 = vmatpush3.bf16.msra.mxu0 %v3823_v54  ;;  %v3869_v54 = vld [vmem:[%s4781_s1 + $0x768] sm:$0xff]  }
  0xc9   :  { %3562 = vmatpush3.bf16.msra.mxu1 %v3824_v55  ;;  %3541 = vmatprep.subr.bf16.mxu0 %v3825_v56 }
  0xca   :  { %3563 = vmatprep.subr.bf16.mxu1 %v3826_v57  ;;  %v3870_v57 = vld [vmem:[%s4781_s1 + $0x7e8] sm:$0xff]  }
  0xcc   :  { %3542 = vmatpush3.bf16.msra.mxu0 %v3827_v58 }
  0xcd   :  { %3564 = vmatpush3.bf16.msra.mxu1 %v3828_v59  ;;  %3543 = vmatprep.subr.bf16.mxu0 %v3829_v60  ;;  %v3871_v59 = vld [vmem:[%s4781_s1 + $0x728] sm:$0xff]  }
  0xce   :  { %3565 = vmatprep.subr.bf16.mxu1 %v3830_v61  ;;  %v3872_v60 = vld [vmem:[%s4781_s1 + $0x7a8] sm:$0xff]  }
  0xd0   :  { %3544 = vmatpush3.bf16.msra.mxu0 %v3831_v62  ;;  %v3873_v62 = vld [vmem:[%s4781_s1 + $0x770] sm:$0xff]  }
  0xd1   :  { %3566 = vmatpush3.bf16.msra.mxu1 %v3832_v63  ;;  %3545 = vmatprep.subr.bf16.mxu0 %v3833_v0  ;;  %v3874_v63 = vld [vmem:[%s4781_s1 + $0x7f0] sm:$0xff]  }
  0xd2   :  { %3567 = vmatprep.subr.bf16.mxu1 %v3834_v1  ;;  %v3875_v0 = vld [vmem:[%s4781_s1 + $0x730] sm:$0xff]  }
  0xd3   :  { %v3876_v1 = vld [vmem:[%s4781_s1 + $0x7b0] sm:$0xff]  }
  0xd4   :  { %3546 = vmatpush3.bf16.msra.mxu0 %v3835_v2  ;;  %v3877_v2 = vld [vmem:[%s4781_s1 + $0x778] sm:$0xff]  }
  0xd5   :  { %3568 = vmatpush3.bf16.msra.mxu1 %v3836_v3  ;;  %3547 = vmatprep.subr.bf16.mxu0 %v3837_v4  ;;  %v3878_v3 = vld [vmem:[%s4781_s1 + $0x7f8] sm:$0xff]  }
  0xd6   :  { %3569 = vmatprep.subr.bf16.mxu1 %v3838_v5  ;;  %v3879_v4 = vld [vmem:[%s4781_s1 + $0x738] sm:$0xff]  }
  0xd7   :  { %v3880_v5 = vld [vmem:[%s4781_s1 + $0x7b8] sm:$0xff]  }
  0xd8   :  { %3548 = vmatpush3.bf16.msra.mxu0 %v3839_v6  ;;  %v32_v6 = vld [vmem:[%s4782_s0 + $0x70] sm:$0xff] }
  0xd9   :  { %3570 = vmatpush3.bf16.msra.mxu1 %v3840_v7  ;;  %3549 = vmatprep.subr.bf16.mxu0 %v3841_v8  ;;  %v48_v7 = vld [vmem:[%s4782_s0 + $0xf0] sm:$0xff] }
  0xda   :  { %3571 = vmatprep.subr.bf16.mxu1 %v3842_v9  ;;  %v3003_v8 = vcombine.low %v32_v6, %v48_v7  ;;  %v3004_v9 = vcombine.high %v32_v6, %v48_v7 }
  0xdc   :  { %3550 = vmatpush3.bf16.msra.mxu0 %v3843_v10  ;;  %v33_v10 = vld [vmem:[%s4782_s0 + $0x78] sm:$0xff] }
  0xdd   :  { %3572 = vmatpush3.bf16.msra.mxu1 %v3844_v11  ;;  %3551 = vmatprep.subr.bf16.mxu0 %v3845_v12  ;;  %v49_v11 = vld [vmem:[%s4782_s0 + $0xf8] sm:$0xff] }
  0xde   :  { %3573 = vmatprep.subr.bf16.mxu1 %v3846_v13  ;;  %v3005_v12 = vcombine.low %v33_v10, %v49_v11  ;;  %v3006_v13 = vcombine.high %v33_v10, %v49_v11 }
  0xe0   :  { %3552 = vmatpush3.bf16.msra.mxu0 %v3847_v14 }
  0xe1   :  { %3574 = vmatpush3.bf16.msra.mxu1 %v3848_v15  ;;  %3581 = vmatprep.subr.bf16.mxu0 %v3849_v24 }
  0xe2   :  { %3603 = vmatprep.subr.bf16.mxu1 %v3850_v25 }
  0xe3   :  { %2783 = vmatmul.mubr.bf16.vlgmr.msra.gmra.mrb[24].mxu0 %v2999_v19 }
  0xe4   :  { %2824 = vmatmul.mubr.bf16.vlgmr.msra.gmra.mrb[24].mxu1 %v3001_v22  ;;  %3582 = vmatpush3.bf16.msra.mxu0 %v3851_v26 }
  0xe5   :  { %3604 = vmatpush3.bf16.msra.mxu1 %v3852_v27  ;;  %3583 = vmatprep.subr.bf16.mxu0 %v3853_v28 }
  0xe6   :  { %3605 = vmatprep.subr.bf16.mxu1 %v3854_v29  ;;  %2864 = vmatprep.mubr.bf16.mxu0 %v3004_v9 }
  0xe7   :  { %2905 = vmatprep.mubr.bf16.mxu1 %v3006_v13 }
  0xe8   :  { %3584 = vmatpush3.bf16.msra.mxu0 %v3855_v30 }
  0xe9   :  { %3606 = vmatpush3.bf16.msra.mxu1 %v3856_v31  ;;  %3585 = vmatprep.subr.bf16.mxu0 %v3857_v32 }
  0xea   :  { %3607 = vmatprep.subr.bf16.mxu1 %v3858_v33 }
  0xec   :  { %3586 = vmatpush3.bf16.msra.mxu0 %v3859_v34 }
  0xed   :  { %3608 = vmatpush3.bf16.msra.mxu1 %v3860_v35  ;;  %3587 = vmatprep.subr.bf16.mxu0 %v3861_v36 }
  0xee   :  { %3609 = vmatprep.subr.bf16.mxu1 %v3862_v37 }
  0xf0   :  { %3588 = vmatpush3.bf16.msra.mxu0 %v3863_v39 }
  0xf1   :  { %3610 = vmatpush3.bf16.msra.mxu1 %v3864_v41  ;;  %3589 = vmatprep.subr.bf16.mxu0 %v3865_v43 }
  0xf2   :  { %3611 = vmatprep.subr.bf16.mxu1 %v3866_v46 }
  0xf4   :  { %3590 = vmatpush3.bf16.msra.mxu0 %v3867_v49 }
  0xf5   :  { %3612 = vmatpush3.bf16.msra.mxu1 %v3868_v51  ;;  %3591 = vmatprep.subr.bf16.mxu0 %v3869_v54 }
  0xf6   :  { %v3289_v38 = vpop.f32.mrb[0].mxu0  ;;  %3613 = vmatprep.subr.bf16.mxu1 %v3870_v57 }
  0xf7   :  { %v3311_v40 = vpop.f32.mrb[0].mxu1  ;;  %v3290_v42 = vpop.f32.mrb[1].mxu0 }
  0xf8   :  { %v3291_v44 = vadd.f32 %v3290_v42, %v3289_v38  ;;  %v3312_v45 = vpop.f32.mrb[1].mxu1  ;;  %v3292_v48 = vpop.f32.mrb[2].mxu0  ;;  %3592 = vmatpush3.bf16.msra.mxu0 %v3871_v59 }
  0xf9   :  { %v3313_v47 = vadd.f32 %v3312_v45, %v3311_v40  ;;  %v3314_v50 = vpop.f32.mrb[2].mxu1  ;;  %v3293_v53 = vpop.f32.mrb[3].mxu0  ;;  %3614 = vmatpush3.bf16.msra.mxu1 %v3872_v60  ;;  %3593 = vmatprep.subr.bf16.mxu0 %v3873_v62 }
  0xfa   :  { %v3294_v55 = vadd.f32 %v3293_v53, %v3292_v48  ;;  %v3315_v56 = vpop.f32.mrb[3].mxu1  ;;  %3615 = vmatprep.subr.bf16.mxu1 %v3874_v63 }
  0xfb   :  { %v2334_v52 = vadd.f32 %v3313_v47, %v3291_v44  ;;  %v3316_v58 = vadd.f32 %v3315_v56, %v3314_v50 }
  0xfc   :  { %3594 = vmatpush3.bf16.msra.mxu0 %v3875_v0 }
  0xfd   :  { %v2337_v61 = vadd.f32 %v3316_v58, %v3294_v55  ;;  %3616 = vmatpush3.bf16.msra.mxu1 %v3876_v1  ;;  %3595 = vmatprep.subr.bf16.mxu0 %v3877_v2 }
  0xfe   :  { %3617 = vmatprep.subr.bf16.mxu1 %v3878_v3 }
 0x100   :  { %3596 = vmatpush3.bf16.msra.mxu0 %v3879_v4 }
 0x101   :  { %3618 = vmatpush3.bf16.msra.mxu1 %v3880_v5 }
 0x103   :  { %2865 = vmatmul.mubr.bf16.vlgmr.msra.gmra.mrb[28].mxu0 %v3003_v8 }
 0x104   :  { %2906 = vmatmul.mubr.bf16.vlgmr.msra.gmra.mrb[28].mxu1 %v3005_v12 }
 0x116   :  { %v3333_v14 = vpop.f32.mrb[4].mxu0 }
 0x117   :  { %v3355_v15 = vpop.f32.mrb[4].mxu1  ;;  %v3334_v16 = vpop.f32.mrb[5].mxu0 }
 0x118   :  { %v3335_v17 = vadd.f32 %v3334_v16, %v3333_v14  ;;  %v3356_v18 = vpop.f32.mrb[5].mxu1  ;;  %v3336_v19 = vpop.f32.mrb[6].mxu0 }
 0x119   :  { %v3357_v20 = vadd.f32 %v3356_v18, %v3355_v15  ;;  %v3358_v21 = vpop.f32.mrb[6].mxu1  ;;  %v3337_v22 = vpop.f32.mrb[7].mxu0 }
 0x11a   :  { %v2375_v23 = vadd.f32 %v3335_v17, %v2334_v52  ;;  %v3338_v24 = vadd.f32 %v3337_v22, %v3336_v19  ;;  %v3359_v25 = vpop.f32.mrb[7].mxu1 }
 0x11b   :  { %v3360_v26 = vadd.f32 %v3359_v25, %v3358_v21 }
 0x11c   :  { %v2416_v27 = vadd.f32 %v3357_v20, %v2375_v23  ;;  %v2378_v28 = vadd.f32 %v3338_v24, %v2337_v61 }
 0x11e   :  { %v2419_v29 = vadd.f32 %v3360_v26, %v2378_v28 }
 0x136   :  { %v3377_v30 = vpop.f32.mrb[8].mxu0 }
 0x137   :  { %v3399_v31 = vpop.f32.mrb[8].mxu1  ;;  %v3378_v32 = vpop.f32.mrb[9].mxu0 }
 0x138   :  { %v3400_v33 = vpop.f32.mrb[9].mxu1  ;;  %v3379_v34 = vadd.f32 %v3378_v32, %v3377_v30  ;;  %v3380_v36 = vpop.f32.mrb[10].mxu0 }
 0x139   :  { %v3401_v35 = vadd.f32 %v3400_v33, %v3399_v31  ;;  %v3402_v37 = vpop.f32.mrb[10].mxu1  ;;  %v3381_v38 = vpop.f32.mrb[11].mxu0 }
 0x13a   :  { %v3403_v39 = vpop.f32.mrb[11].mxu1  ;;  %v2457_v40 = vadd.f32 %v3379_v34, %v2416_v27  ;;  %v3382_v41 = vadd.f32 %v3381_v38, %v3380_v36 }
 0x13b   :  { %v3404_v42 = vadd.f32 %v3403_v39, %v3402_v37 }
 0x13c   :  { %v2498_v43 = vadd.f32 %v3401_v35, %v2457_v40  ;;  %v2460_v44 = vadd.f32 %v3382_v41, %v2419_v29 }
 0x13e   :  { %v2501_v45 = vadd.f32 %v3404_v42, %v2460_v44 }
 0x156   :  { %v3421_v46 = vpop.f32.mrb[12].mxu0 }
 0x157   :  { %v3443_v47 = vpop.f32.mrb[12].mxu1  ;;  %v3422_v48 = vpop.f32.mrb[13].mxu0 }
 0x158   :  { %v3423_v49 = vadd.f32 %v3422_v48, %v3421_v46  ;;  %v3444_v50 = vpop.f32.mrb[13].mxu1  ;;  %v3424_v51 = vpop.f32.mrb[14].mxu0 }
 0x159   :  { %v3445_v52 = vadd.f32 %v3444_v50, %v3443_v47  ;;  %v3446_v53 = vpop.f32.mrb[14].mxu1  ;;  %v3425_v54 = vpop.f32.mrb[15].mxu0 }
 0x15a   :  { %v2539_v55 = vadd.f32 %v3423_v49, %v2498_v43  ;;  %v3426_v56 = vadd.f32 %v3425_v54, %v3424_v51  ;;  %v3447_v57 = vpop.f32.mrb[15].mxu1 }
 0x15b   :  { %v3448_v58 = vadd.f32 %v3447_v57, %v3446_v53 }
 0x15c   :  { %v2580_v59 = vadd.f32 %v3445_v52, %v2539_v55  ;;  %v2542_v60 = vadd.f32 %v3426_v56, %v2501_v45 }
 0x15e   :  { %v2583_v61 = vadd.f32 %v3448_v58, %v2542_v60 }
 0x176   :  { %v3465_v62 = vpop.f32.mrb[16].mxu0 }
 0x177   :  { %v3487_v63 = vpop.f32.mrb[16].mxu1  ;;  %v3466_v0 = vpop.f32.mrb[17].mxu0 }
 0x178   :  { %v3467_v1 = vadd.f32 %v3466_v0, %v3465_v62  ;;  %v3488_v2 = vpop.f32.mrb[17].mxu1  ;;  %v3468_v3 = vpop.f32.mrb[18].mxu0 }
 0x179   :  { %v3489_v4 = vadd.f32 %v3488_v2, %v3487_v63  ;;  %v3490_v5 = vpop.f32.mrb[18].mxu1  ;;  %v3469_v6 = vpop.f32.mrb[19].mxu0 }
 0x17a   :  { %v2621_v7 = vadd.f32 %v3467_v1, %v2580_v59  ;;  %v3470_v8 = vadd.f32 %v3469_v6, %v3468_v3  ;;  %v3491_v9 = vpop.f32.mrb[19].mxu1 }
 0x17b   :  { %v3492_v10 = vadd.f32 %v3491_v9, %v3490_v5 }
 0x17c   :  { %v2662_v11 = vadd.f32 %v3489_v4, %v2621_v7  ;;  %v2624_v12 = vadd.f32 %v3470_v8, %v2583_v61 }
 0x17e   :  { %v2665_v13 = vadd.f32 %v3492_v10, %v2624_v12 }
 0x196   :  { %v3509_v14 = vpop.f32.mrb[20].mxu0 }
 0x197   :  { %v3531_v15 = vpop.f32.mrb[20].mxu1  ;;  %v3510_v16 = vpop.f32.mrb[21].mxu0 }
 0x198   :  { %v3532_v17 = vpop.f32.mrb[21].mxu1  ;;  %v3511_v18 = vadd.f32 %v3510_v16, %v3509_v14  ;;  %v3512_v20 = vpop.f32.mrb[22].mxu0 }
 0x199   :  { %v3533_v19 = vadd.f32 %v3532_v17, %v3531_v15  ;;  %v3534_v21 = vpop.f32.mrb[22].mxu1  ;;  %v3513_v22 = vpop.f32.mrb[23].mxu0 }
 0x19a   :  { %v3535_v23 = vpop.f32.mrb[23].mxu1  ;;  %v2703_v24 = vadd.f32 %v3511_v18, %v2662_v11  ;;  %v3514_v25 = vadd.f32 %v3513_v22, %v3512_v20 }
 0x19b   :  { %v3536_v26 = vadd.f32 %v3535_v23, %v3534_v21  ;;  %v2934_v21 = vld [vmem:[%s4783_s2] sm:$0x1] }
 0x19c   :  { %v2744_v27 = vadd.f32 %v3533_v19, %v2703_v24  ;;  %v2706_v28 = vadd.f32 %v3514_v25, %v2665_v13  ;;  %v2939_v19 = vlaneseq }
 0x19e   :  { %v2747_v29 = vadd.f32 %v3536_v26, %v2706_v28  ;;  %v2940_v20 = vshrl.u32 %v2939_v19, 7  ;;  %v3263_v26 = vld [vmem:[%s4784_s3] ss:$0 sm:$0xff] }
 0x1a0   :  { %v2941_v22 = vsub.s32 0, %v2940_v20 }
 0x1b6   :  { %v3553_v30 = vpop.f32.mrb[24].mxu0 }
 0x1b7   :  { %v3575_v31 = vpop.f32.mrb[24].mxu1  ;;  %v3554_v32 = vpop.f32.mrb[25].mxu0 }
 0x1b8   :  { %v3555_v33 = vadd.f32 %v3554_v32, %v3553_v30  ;;  %v3576_v34 = vpop.f32.mrb[25].mxu1  ;;  %v3556_v35 = vpop.f32.mrb[26].mxu0 }
 0x1b9   :  { %v3577_v36 = vadd.f32 %v3576_v34, %v3575_v31  ;;  %v3578_v37 = vpop.f32.mrb[26].mxu1  ;;  %v3557_v38 = vpop.f32.mrb[27].mxu0 }
 0x1ba   :  { %v2785_v39 = vadd.f32 %v3555_v33, %v2744_v27  ;;  %v3558_v40 = vadd.f32 %v3557_v38, %v3556_v35  ;;  %v3579_v41 = vpop.f32.mrb[27].mxu1 }
 0x1bb   :  { %v3580_v42 = vadd.f32 %v3579_v41, %v3578_v37 }
 0x1bc   :  { %v2826_v43 = vadd.f32 %v3577_v36, %v2785_v39  ;;  %v2788_v44 = vadd.f32 %v3558_v40, %v2747_v29 }
 0x1be   :  { %v2829_v45 = vadd.f32 %v3580_v42, %v2788_v44 }
 0x1d6   :  { %v3597_v46 = vpop.f32.mrb[28].mxu0 }
 0x1d7   :  { %v3619_v47 = vpop.f32.mrb[28].mxu1  ;;  %v3598_v48 = vpop.f32.mrb[29].mxu0 }
 0x1d8   :  { %v3599_v49 = vadd.f32 %v3598_v48, %v3597_v46  ;;  %v3620_v50 = vpop.f32.mrb[29].mxu1  ;;  %v3600_v51 = vpop.f32.mrb[30].mxu0 }
 0x1d9   :  { %v3621_v52 = vadd.f32 %v3620_v50, %v3619_v47  ;;  %v3622_v53 = vpop.f32.mrb[30].mxu1  ;;  %v3601_v54 = vpop.f32.mrb[31].mxu0 }
 0x1da   :  { %v2867_v55 = vadd.f32 %v3599_v49, %v2826_v43  ;;  %v3602_v56 = vadd.f32 %v3601_v54, %v3600_v51  ;;  %v3623_v57 = vpop.f32.mrb[31].mxu1 }
 0x1db   :  { %v3624_v58 = vadd.f32 %v3623_v57, %v3622_v53 }
 0x1dc   :  { %v2908_v59 = vadd.f32 %v3621_v52, %v2867_v55  ;;  %v2870_v60 = vadd.f32 %v3602_v56, %v2829_v45 }
 0x1de   :  { %v2911_v61 = vadd.f32 %v3624_v58, %v2870_v60 }
 0x1e0   :  { %v2914_v62 = vadd.f32 %v2911_v61, %v2908_v59 }
 0x1e2   :  { %v2915_v63 = vrot.slane %v2914_v62, 4 }
 0x1e4   :  { %v2916_v0 = vadd.f32 %v2915_v63, %v2914_v62 }
 0x1e6   :  { %v2917_v1 = vrot.slane %v2916_v0, 2 }
 0x1e8   :  { %v2918_v2 = vadd.f32 %v2917_v1, %v2916_v0 }
 0x1ea   :  { %v2919_v3 = vrot.slane %v2918_v2, 1 }
 0x1ec   :  { %v2920_v4 = vadd.f32 %v2919_v3, %v2918_v2 }
 0x1ee   :  { %v2921_v5 = vmul.f32 0.0625, %v2920_v4 }
 0x1f0   :  { %v2922_v6 = vsub.f32 %v2908_v59, %v2921_v5  ;;  %v2923_v7 = vsub.f32 %v2911_v61, %v2921_v5 }
 0x1f2   :  { %v2924_v8 = vmul.f32 %v2922_v6, %v2922_v6  ;;  %v2925_v9 = vmul.f32 %v2923_v7, %v2923_v7 }
 0x1f4   :  { %v2926_v10 = vadd.f32 %v2925_v9, %v2924_v8 }
 0x1f6   :  { %v2927_v11 = vrot.slane %v2926_v10, 4 }
 0x1f8   :  { %v2928_v12 = vadd.f32 %v2927_v11, %v2926_v10 }
 0x1fa   :  { %v2929_v13 = vrot.slane %v2928_v12, 2 }
 0x1fc   :  { %v2930_v14 = vadd.f32 %v2929_v13, %v2928_v12 }
 0x1fe   :  { %v2931_v15 = vrot.slane %v2930_v14, 1 }
 0x200   :  { %v2932_v16 = vadd.f32 %v2931_v15, %v2930_v14 }
 0x202   :  { %v2933_v17 = vmul.f32 0.0625, %v2932_v16 }
 0x204   :  { %v2935_v18 = vadd.f32 1e-05, %v2933_v17 }
 0x206   :  { %3881 = vrsqrt.f32 %v2935_v18 }
 0x210   :  { %v3882_v23 = vpop.eup %3881 }
 0x211   :  { %v2937_v24 = vmul.f32 %v3882_v23, %v2934_v21 }
 0x213   :  { %v2942_v25 = vrot.slane %v2937_v24, %v2941_v22 }
 0x215   :  { %v2944_v27 = vmul.f32 %v2942_v25, %v2922_v6  ;;  %v2945_v28 = vmul.f32 %v2942_v25, %v2923_v7 }
 0x217   :  { %v2953_v29 = vadd.f32 %v3263_v26, %v2944_v27  ;;  %v2954_v30 = vadd.f32 %v3263_v26, %v2945_v28 }
 0x219   :  { %vm2955_vm0 = vcmp.ge.f32.partialorder %v2953_v29, 0.0  ;;  %vm2956_vm1 = vcmp.ge.f32.partialorder %v2954_v30, 0.0  ;;  %v2957_v31 = vmul.f32 0.2, %v2953_v29  ;;  %v2958_v32 = vmul.f32 0.2, %v2954_v30 }
 0x21b   :  { %v2959_v33 = vsel %vm2955_vm0, %v2953_v29, %v2957_v31  ;;  %v2960_v34 = vsel %vm2956_vm1, %v2954_v30, %v2958_v32 }
 0x21c   :  { %v3271_v35 = vpack.c.bf16 %v2960_v34, %v2959_v33 }
 0x21e   :  { %3272 = vst [vmem:[%s4785_s4] sm:$0xff] %v3271_v35  }

// kernel: discriminator_forward.9
= control target key start
LH: loop header
LB: loop body
LE: loop exit
PB: predicated region body
PF: predicated region fallthrough
CT: control target
= control target key end

     0   :  { %v51_v1 = vlaneseq  ;;  %v953_v36 = vmov 1983009808   ;;  %vm821_vm0 = vcmask 1041408   ;;  %vm943_vm1 = vcmask 1024   ;;  %s1428_s2 = inlined_call_operand.<no memory space> [shape: f32[1,1], index: 2, kind: input, shape index: {}]   ;;  %s1429_s1 = inlined_call_operand.vmem [shape: f32[1,6912], index: 1, kind: input, shape index: {}]   ;;  %s1430_s0 = inlined_call_operand.vmem [shape: bf16[2,6912], index: 0, kind: input, shape index: {}]   ;;  %s1431_s3 = inlined_call_operand.vmem [shape: f32[2,1], index: 3, kind: output, shape index: {}]  }
   0x1   :  { %v8_v0 = vstv %s1428_s2  ;;  %v980_v3 = vld [vmem:[%s1429_s1 + $0x20] sm:$0xff]  ;;  %v993_v8 = vld [vmem:[%s1429_s1 + $0x28] sm:$0xff]  ;;  %v1014_v17 = vld [vmem:[%s1429_s1 + $0x30] sm:$0x3f]  ;;  %v270_v37 = vunpack.c.l.s4 %v953_v36 }
   0x2   :  { %9 = vst [vmem:[#allocation2] sm:$0x1] %v8_v0  ;;  %v52_v2 = vshrl.u32 %v51_v1, 7  ;;  %v1055_v38 = vld [vmem:[%s1430_s0] sm:$0xff]  ;;  %v1065_v40 = vld [vmem:[%s1430_s0 + $0x28] sm:$0xff] }
   0x3   :  { %v1060_v39 = vld [vmem:[%s1430_s0 + $0x20] sm:$0xff]  ;;  %v1070_v41 = vld [vmem:[%s1430_s0 + $0x30] sm:$0x3f]  ;;  %v271_v43 = vunpack.c.0.s8 %v270_v37  ;;  %v33_v47 = vunpack.c.l.bf16 %v1065_v40  ;;  %v34_v48 = vunpack.c.h.bf16 %v1065_v40  ;;  %v1084_v50 = vld [vmem:[%s1429_s1 + $0x8] sm:$0xff] }
   0x4   :  { %v982_v4 = vsub.s32 0, %v52_v2  ;;  %v984_v5 = vsub.s32 1, %v52_v2  ;;  %v986_v6 = vsub.s32 2, %v52_v2  ;;  %v988_v7 = vsub.s32 3, %v52_v2  ;;  %v37_v42 = vld [vmem:[%s1429_s1] sm:$0xff] }
   0x5   :  { %v995_v9 = vsub.s32 4, %v52_v2  ;;  %v997_v10 = vsub.s32 5, %v52_v2  ;;  %v999_v11 = vsub.s32 6, %v52_v2  ;;  %v1001_v12 = vsub.s32 7, %v52_v2 }
   0x6   :  { %1434 = vst [vmem:[#allocation3_spill] sm:$0xff] %v988_v7  ;;  %v182_v13 = vrot.slane %v980_v3, %v982_v4  ;;  %v186_v14 = vrot.slane %v980_v3, %v984_v5  ;;  %v190_v15 = vrot.slane %v980_v3, %v986_v6  ;;  %v194_v16 = vrot.slane %v980_v3, %v988_v7 }
   0x7   :  { %v198_v18 = vrot.slane %v980_v3, %v995_v9  ;;  %v202_v19 = vrot.slane %v980_v3, %v997_v10  ;;  %v206_v20 = vrot.slane %v980_v3, %v999_v11  ;;  %v210_v21 = vrot.slane %v980_v3, %v1001_v12 }
   0x8   :  { %v214_v22 = vrot.slane %v993_v8, %v982_v4  ;;  %v218_v23 = vrot.slane %v993_v8, %v984_v5  ;;  %v222_v24 = vrot.slane %v993_v8, %v986_v6  ;;  %v226_v25 = vrot.slane %v993_v8, %v988_v7 }
   0x9   :  { %v230_v26 = vrot.slane %v993_v8, %v995_v9  ;;  %v234_v27 = vrot.slane %v993_v8, %v997_v10  ;;  %v238_v28 = vrot.slane %v993_v8, %v999_v11  ;;  %v242_v29 = vrot.slane %v993_v8, %v1001_v12 }
   0xa   :  { %v246_v30 = vrot.slane %v1014_v17, %v982_v4  ;;  %v250_v31 = vrot.slane %v1014_v17, %v984_v5  ;;  %v254_v32 = vrot.slane %v1014_v17, %v986_v6  ;;  %v258_v33 = vrot.slane %v1014_v17, %v988_v7 }
   0xb   :  { %v262_v34 = vrot.slane %v1014_v17, %v995_v9  ;;  %v266_v35 = vrot.slane %v1014_v17, %v997_v10  ;;  %v31_v45 = vunpack.c.l.bf16 %v1060_v39  ;;  %v32_v46 = vunpack.c.h.bf16 %v1060_v39 }
   0xc   :  { %v54_v51 = vrot.slane %v37_v42, %v982_v4  ;;  %v58_v52 = vrot.slane %v37_v42, %v984_v5  ;;  %v36_v53 = vunpack.c.h.bf16 %v1070_v41  ;;  %v62_v54 = vrot.slane %v37_v42, %v986_v6 }
   0xd   :  { %v66_v55 = vrot.slane %v37_v42, %v988_v7  ;;  %v70_v56 = vrot.slane %v37_v42, %v995_v9  ;;  %v74_v57 = vrot.slane %v37_v42, %v997_v10  ;;  %v78_v58 = vrot.slane %v37_v42, %v999_v11 }
   0xe   :  { %v1094_v59 = vsub.s32 %v271_v43, %v52_v2  ;;  %v403_v60 = vcombine.low %v182_v13, %v186_v14  ;;  %v82_v61 = vrot.slane %v37_v42, %v1001_v12  ;;  %v86_v62 = vrot.slane %v1084_v50, %v982_v4 }
   0xf   :  { %v90_v63 = vrot.slane %v1084_v50, %v984_v5  ;;  %v94_v0 = vrot.slane %v1084_v50, %v986_v6  ;;  %v98_v1 = vrot.slane %v1084_v50, %v988_v7  ;;  %v267_v3 = vcombine.low %v54_v51, %v58_v52 }
  0x10   :  { %v404_v8 = vcombine.low %v190_v15, %v194_v16  ;;  %v411_v2 = vrot.slane %v403_v60, %v1094_v59  ;;  %v268_v17 = vcombine.low %v62_v54, %v66_v55  ;;  %v420_v13 = vcombine.low %v198_v18, %v202_v19 }
  0x11   :  { %v421_v14 = vcombine.low %v206_v20, %v210_v21  ;;  %v437_v36 = vcombine.low %v214_v22, %v218_v23  ;;  %v284_v37 = vcombine.low %v70_v56, %v74_v57  ;;  %v438_v40 = vcombine.low %v222_v24, %v226_v25 }
  0x12   :  { %v418_v39 = vrot.slane %v404_v8, %v1094_v59  ;;  %v454_v42 = vcombine.low %v230_v26, %v234_v27  ;;  %v428_v43 = vrot.slane %v420_v13, %v1094_v59  ;;  %v455_v7 = vcombine.low %v238_v28, %v242_v29 }
  0x13   :  { %v435_v44 = vrot.slane %v421_v14, %v1094_v59  ;;  %v445_v49 = vrot.slane %v437_v36, %v1094_v59  ;;  %v452_v15 = vrot.slane %v438_v40, %v1094_v59  ;;  %v471_v18 = vcombine.low %v246_v30, %v250_v31 }
  0x14   :  { %v419_v51 = vcombine.low %v411_v2, %v418_v39  ;;  %v462_v16 = vrot.slane %v454_v42, %v1094_v59  ;;  %v469_v20 = vrot.slane %v455_v7, %v1094_v59  ;;  %v472_v21 = vcombine.low %v254_v32, %v258_v33 }
  0x15   :  { %v436_v19 = vcombine.low %v428_v43, %v435_v44  ;;  %v488_v22 = vcombine.low %v262_v34, %v266_v35  ;;  %v275_v23 = vrot.slane %v267_v3, %v1094_v59  ;;  %v285_v24 = vcombine.low %v78_v58, %v82_v61 }
  0x16   :  { %v453_v25 = vcombine.low %v445_v49, %v452_v15  ;;  %v479_v26 = vrot.slane %v471_v18, %v1094_v59  ;;  %v282_v27 = vrot.slane %v268_v17, %v1094_v59  ;;  %v470_v28 = vcombine.low %v462_v16, %v469_v20  ;;  %v1437_v17 = vld [vmem:[#allocation3_spill] sm:$0xff] }
  0x17   :  { %v486_v29 = vrot.slane %v472_v21, %v1094_v59  ;;  %v495_v52 = vrot.slane %v488_v22, %v1094_v59  ;;  %v102_v30 = vrot.slane %v1084_v50, %v995_v9  ;;  %v106_v7 = vrot.slane %v1084_v50, %v997_v10 }
  0x18   :  { %v110_v31 = vrot.slane %v1084_v50, %v999_v11  ;;  %v114_v32 = vrot.slane %v1084_v50, %v1001_v12  ;;  %v301_v33 = vcombine.low %v86_v62, %v90_v63  ;;  %v518_v35 = vmul.f32 %v419_v51, %v31_v45  ;;  %v1133_v50 = vld [vmem:[%s1429_s1 + $0x10] sm:$0xff] }
  0x19   :  { %v487_v34 = vcombine.low %v479_v26, %v486_v29  ;;  %v519_v44 = vmul.f32 %v436_v19, %v32_v46  ;;  %v302_v49 = vcombine.low %v94_v0, %v98_v1  ;;  %v520_v54 = vmul.f32 %v453_v25, %v33_v47  ;;  %v17_v46 = vld [vmem:[%s1430_s0 + $0x8] sm:$0xff] }
  0x1a   :  { %v521_v55 = vmul.f32 %v470_v28, %v34_v48  ;;  %v523_v56 = vmul.f32 %v495_v52, %v36_v53  ;;  %v283_v57 = vcombine.low %v275_v23, %v282_v27  ;;  %v292_v58 = vrot.slane %v284_v37, %v1094_v59 }
  0x1b   :  { %v299_v60 = vrot.slane %v285_v24, %v1094_v59  ;;  %v1435_v61 = vunpack.c.l.bf16 %v1070_v41  ;;  %v318_v62 = vcombine.low %v102_v30, %v106_v7  ;;  %v319_v45 = vcombine.low %v110_v31, %v114_v32 }
  0x1c   :  { %v24_v47 = vunpack.c.h.bf16 %v1055_v38  ;;  %v309_v48 = vrot.slane %v301_v33, %v1094_v59  ;;  %v316_v53 = vrot.slane %v302_v49, %v1094_v59  ;;  %v118_v41 = vrot.slane %v1133_v50, %v982_v4 }
  0x1d   :  { %v522_v3 = vmul.f32 %v487_v34, %v1435_v61  ;;  %v122_v63 = vrot.slane %v1133_v50, %v984_v5  ;;  %v300_v0 = vcombine.low %v292_v58, %v299_v60  ;;  %v1436_v1 = vunpack.c.l.bf16 %v1055_v38  ;;  %v1197_v61 = vld [vmem:[%s1430_s0 + $0x10] sm:$0xff] }
  0x1e   :  { %v126_v2 = vrot.slane %v1133_v50, %v986_v6  ;;  %v130_v13 = vrot.slane %v1133_v50, %v1437_v17  ;;  %v326_v14 = vrot.slane %v318_v62, %v1094_v59  ;;  %v333_v36 = vrot.slane %v319_v45, %v1094_v59 }
  0x1f   :  { %v510_v8 = vmul.f32 %v283_v57, %v1436_v1  ;;  %v25_v37 = vunpack.c.l.bf16 %v17_v46  ;;  %v26_v39 = vunpack.c.h.bf16 %v17_v46  ;;  %v134_v42 = vrot.slane %v1133_v50, %v995_v9 }
  0x20   :  { %v138_v38 = vrot.slane %v1133_v50, %v997_v10  ;;  %v142_v43 = vrot.slane %v1133_v50, %v999_v11  ;;  %v317_v51 = vcombine.low %v309_v48, %v316_v53  ;;  %v146_v15 = vrot.slane %v1133_v50, %v1001_v12 }
  0x21   :  { %v538_v40 = vcombine.high %v510_v8, %v510_v8  ;;  %v511_v16 = vmul.f32 %v300_v0, %v24_v47  ;;  %v545_v18 = vrot.slane %v510_v8, %v1094_v59  ;;  %v674_v19 = vcombine.high %v518_v35, %v518_v35 }
  0x22   :  { %v334_v20 = vcombine.low %v326_v14, %v333_v36  ;;  %v335_v21 = vcombine.low %v118_v41, %v122_v63  ;;  %v336_v22 = vcombine.low %v126_v2, %v130_v13  ;;  %v1163_v23 = vrot.slane %v518_v35, %v1094_v59 }
  0x23   :  { %v552_v24 = vrot.slane %v538_v40, %v1094_v59  ;;  %v1167_v25 = vrot.slane %v674_v19, %v1094_v59  ;;  %v691_v26 = vcombine.high %v519_v44, %v519_v44  ;;  %v1170_v27 = vrot.slane %v519_v44, %v1094_v59 }
  0x24   :  { %v512_v28 = vmul.f32 %v317_v51, %v25_v37  ;;  %v555_v29 = vcombine.high %v511_v16, %v511_v16  ;;  %v708_v52 = vcombine.high %v520_v54, %v520_v54  ;;  %v1173_v30 = vrot.slane %v520_v54, %v1094_v59 }
  0x25   :  { %v553_v7 = vcombine.high %v545_v18, %v545_v18  ;;  %v562_v31 = vrot.slane %v511_v16, %v1094_v59  ;;  %v1177_v32 = vrot.slane %v691_v26, %v1094_v59  ;;  %v725_v33 = vcombine.high %v521_v55, %v521_v55 }
  0x26   :  { %v572_v34 = vcombine.high %v512_v28, %v512_v28  ;;  %v1180_v35 = vrot.slane %v708_v52, %v1094_v59  ;;  %v1183_v44 = vrot.slane %v521_v55, %v1094_v59  ;;  %v742_v49 = vcombine.high %v522_v3, %v522_v3  ;;  %v1202_v55 = vld [vmem:[%s1429_s1 + $0x18] sm:$0xff] }
  0x27   :  { %v554_v57 = vcombine.high %v552_v24, %v552_v24  ;;  %v1186_v58 = vrot.slane %v725_v33, %v1094_v59  ;;  %v1189_v54 = vrot.slane %v522_v3, %v1094_v59  ;;  %v1192_v60 = vrot.slane %v523_v56, %v1094_v59 }
  0x28   :  { %v343_v50 = vrot.slane %v335_v21, %v1094_v59  ;;  %v350_v62 = vrot.slane %v336_v22, %v1094_v59  ;;  %v1207_v3 = vrot.slane %v742_v49, %v1094_v59  ;;  %v822_v56 = vsel %vm821_vm0, %v545_v18, 0.0 }
  0x29   :  { %v1210_v45 = vmul.f32 %v334_v20, %v26_v39  ;;  %v579_v46 = vrot.slane %v512_v28, %v1094_v59  ;;  %v823_v47 = vsel %vm821_vm0, %v553_v7, 0.0  ;;  %v569_v48 = vrot.slane %v555_v29, %v1094_v59 }
  0x2a   :  { %v1216_v53 = vrot.slane %v572_v34, %v1094_v59  ;;  %v824_v41 = vadd.f32 %v823_v47, %v822_v56  ;;  %v825_v63 = vsel %vm821_vm0, %v552_v24, 0.0  ;;  %v27_v0 = vunpack.c.l.bf16 %v1197_v61 }
  0x2b   :  { %v150_v1 = vrot.slane %v1202_v55, %v982_v4  ;;  %v570_v8 = vcombine.high %v562_v31, %v562_v31  ;;  %v827_v2 = vsel %vm821_vm0, %v554_v57, 0.0  ;;  %v351_v13 = vcombine.low %v343_v50, %v350_v62 }
  0x2c   :  { %v1223_v14 = vcombine.low %v134_v42, %v138_v38  ;;  %v1225_v36 = vcombine.low %v142_v43, %v146_v15  ;;  %v826_v37 = vadd.f32 %v825_v63, %v824_v41  ;;  %v587_v39 = vcombine.high %v579_v46, %v579_v46 }
  0x2d   :  { %v589_v40 = vcombine.high %v1210_v45, %v1210_v45  ;;  %v1231_v51 = vrot.slane %v1210_v45, %v1094_v59  ;;  %v829_v16 = vsel %vm821_vm0, %v562_v31, 0.0  ;;  %v571_v18 = vcombine.high %v569_v48, %v569_v48 }
  0x2e   :  { %v588_v19 = vcombine.high %v1216_v53, %v1216_v53  ;;  %v689_v42 = vcombine.high %v1163_v23, %v1163_v23  ;;  %v828_v38 = vadd.f32 %v827_v2, %v826_v37  ;;  %v690_v43 = vcombine.high %v1167_v25, %v1167_v25 }
  0x2f   :  { %v706_v15 = vcombine.high %v1170_v27, %v1170_v27  ;;  %v723_v20 = vcombine.high %v1173_v30, %v1173_v30  ;;  %v831_v21 = vsel %vm821_vm0, %v570_v8, 0.0  ;;  %v707_v22 = vcombine.high %v1177_v32, %v1177_v32 }
  0x30   :  { %v724_v24 = vcombine.high %v1180_v35, %v1180_v35  ;;  %v740_v26 = vcombine.high %v1183_v44, %v1183_v44  ;;  %v830_v28 = vadd.f32 %v829_v16, %v828_v38  ;;  %v741_v29 = vcombine.high %v1186_v58, %v1186_v58 }
  0x31   :  { %v757_v52 = vcombine.high %v1189_v54, %v1189_v54  ;;  %v766_v7 = vcombine.high %v1192_v60, %v1192_v60  ;;  %v833_v31 = vsel %vm821_vm0, %v569_v48, 0.0  ;;  %v758_v33 = vcombine.high %v1207_v3, %v1207_v3 }
  0x32   :  { %v832_v34 = vadd.f32 %v831_v21, %v830_v28  ;;  %v835_v49 = vsel %vm821_vm0, %v571_v18, 0.0  ;;  %v837_v57 = vsel %vm821_vm0, %v579_v46, 0.0  ;;  %v839_v50 = vsel %vm821_vm0, %v587_v39, 0.0 }
  0x33   :  { %v1264_v62 = vsel %vm821_vm0, %v689_v42, 0.0  ;;  %v1268_v56 = vsel %vm821_vm0, %v1167_v25, 0.0  ;;  %v1271_v45 = vsel %vm821_vm0, %v690_v43, 0.0  ;;  %v1275_v48 = vsel %vm821_vm0, %v1170_v27, 0.0 }
  0x34   :  { %v834_v47 = vadd.f32 %v833_v31, %v832_v34  ;;  %v1278_v41 = vsel %vm821_vm0, %v706_v15, 0.0  ;;  %v1282_v46 = vsel %vm821_vm0, %v1177_v32, 0.0  ;;  %v1285_v63 = vsel %vm821_vm0, %v707_v22, 0.0 }
  0x35   :  { %v1289_v25 = vsel %vm821_vm0, %v1173_v30, 0.0  ;;  %v1292_v8 = vsel %vm821_vm0, %v723_v20, 0.0  ;;  %v1296_v27 = vsel %vm821_vm0, %v1180_v35, 0.0  ;;  %v1299_v37 = vsel %vm821_vm0, %v724_v24, 0.0 }
  0x36   :  { %v836_v2 = vadd.f32 %v835_v49, %v834_v47  ;;  %v1303_v32 = vsel %vm821_vm0, %v1183_v44, 0.0  ;;  %v1306_v39 = vsel %vm821_vm0, %v740_v26, 0.0  ;;  %v1310_v30 = vsel %vm821_vm0, %v1186_v58, 0.0 }
  0x37   :  { %v1313_v16 = vsel %vm821_vm0, %v741_v29, 0.0  ;;  %v1317_v35 = vsel %vm821_vm0, %v1189_v54, 0.0  ;;  %v1320_v18 = vsel %vm821_vm0, %v757_v52, 0.0  ;;  %v1324_v44 = vsel %vm821_vm0, %v1207_v3, 0.0 }
  0x38   :  { %v838_v42 = vadd.f32 %v837_v57, %v836_v2  ;;  %v1327_v38 = vsel %vm821_vm0, %v758_v33, 0.0  ;;  %v1331_v58 = vsel %vm821_vm0, %v1192_v60, 0.0  ;;  %v154_v43 = vrot.slane %v1202_v55, %v984_v5 }
  0x39   :  { %v158_v54 = vrot.slane %v1202_v55, %v986_v6  ;;  %v841_v15 = vsel %vm821_vm0, %v1216_v53, 0.0  ;;  %v1340_v20 = vsel %vm821_vm0, %v766_v7, 0.0  ;;  %v162_v3 = vrot.slane %v1202_v55, %v1437_v17 }
  0x3a   :  { %v360_v21 = vrot.slane %v1223_v14, %v1094_v59  ;;  %v367_v60 = vrot.slane %v1225_v36, %v1094_v59  ;;  %v840_v22 = vadd.f32 %v839_v50, %v838_v42  ;;  %v514_v5 = vmul.f32 %v351_v13, %v27_v0 }
  0x3b   :  { %v603_v6 = vrot.slane %v589_v40, %v1094_v59  ;;  %v604_v53 = vcombine.high %v1231_v51, %v1231_v51  ;;  %v843_v24 = vsel %vm821_vm0, %v588_v19, 0.0  ;;  %v28_v17 = vunpack.c.h.bf16 %v1197_v61 }
  0x3c   :  { %v842_v26 = vadd.f32 %v841_v15, %v840_v22  ;;  %v845_v14 = vsel %vm821_vm0, %v1231_v51, 0.0  ;;  %v368_v28 = vcombine.low %v360_v21, %v367_v60  ;;  %v369_v36 = vcombine.low %v150_v1, %v154_v43  ;;  %v19_v1 = vld [vmem:[%s1430_s0 + $0x18] sm:$0xff] }
  0x3d   :  { %v370_v29 = vcombine.low %v158_v54, %v162_v3  ;;  %v605_v13 = vcombine.high %v603_v6, %v603_v6  ;;  %v606_v40 = vcombine.high %v514_v5, %v514_v5  ;;  %v613_v52 = vrot.slane %v514_v5, %v1094_v59 }
  0x3e   :  { %v844_v0 = vadd.f32 %v843_v24, %v842_v26  ;;  %v847_v7 = vsel %vm821_vm0, %v604_v53, 0.0  ;;  %v166_v61 = vrot.slane %v1202_v55, %v995_v9  ;;  %v170_v51 = vrot.slane %v1202_v55, %v997_v10 }
  0x3f   :  { %v174_v31 = vrot.slane %v1202_v55, %v999_v11  ;;  %v849_v4 = vsel %vm821_vm0, %v603_v6, 0.0  ;;  %v178_v33 = vrot.slane %v1202_v55, %v1001_v12  ;;  %v377_v34 = vrot.slane %v369_v36, %v1094_v59 }
  0x40   :  { %v846_v19 = vadd.f32 %v845_v14, %v844_v0  ;;  %v384_v49 = vrot.slane %v370_v29, %v1094_v59  ;;  %v515_v57 = vmul.f32 %v368_v28, %v28_v17  ;;  %v620_v10 = vrot.slane %v606_v40, %v1094_v59 }
  0x41   :  { %v621_v50 = vcombine.high %v613_v52, %v613_v52  ;;  %v851_v11 = vsel %vm821_vm0, %v605_v13, 0.0  ;;  %v29_v2 = vunpack.c.l.bf16 %v19_v1  ;;  %v853_v42 = vsel %vm821_vm0, %v613_v52, 0.0 }
  0x42   :  { %v848_v9 = vadd.f32 %v847_v7, %v846_v19  ;;  %v385_v43 = vcombine.low %v377_v34, %v384_v49  ;;  %v386_v54 = vcombine.low %v166_v61, %v170_v51  ;;  %v387_v15 = vcombine.low %v174_v31, %v178_v33 }
  0x43   :  { %v622_v12 = vcombine.high %v620_v10, %v620_v10  ;;  %v623_v55 = vcombine.high %v515_v57, %v515_v57  ;;  %v630_v21 = vrot.slane %v515_v57, %v1094_v59  ;;  %v855_v60 = vsel %vm821_vm0, %v621_v50, 0.0 }
  0x44   :  { %v850_v47 = vadd.f32 %v849_v4, %v848_v9  ;;  %v857_v5 = vsel %vm821_vm0, %v620_v10, 0.0  ;;  %v394_v6 = vrot.slane %v386_v54, %v1094_v59  ;;  %v401_v53 = vrot.slane %v387_v15, %v1094_v59 }
  0x45   :  { %v516_v26 = vmul.f32 %v385_v43, %v29_v2  ;;  %v637_v17 = vrot.slane %v623_v55, %v1094_v59  ;;  %v638_v14 = vcombine.high %v630_v21, %v630_v21  ;;  %v859_v28 = vsel %vm821_vm0, %v622_v12, 0.0 }
  0x46   :  { %v852_v3 = vadd.f32 %v851_v11, %v850_v47  ;;  %v861_v29 = vsel %vm821_vm0, %v630_v21, 0.0  ;;  %v30_v0 = vunpack.c.h.bf16 %v19_v1  ;;  %v402_v13 = vcombine.low %v394_v6, %v401_v53 }
  0x47   :  { %v639_v52 = vcombine.high %v637_v17, %v637_v17  ;;  %v640_v7 = vcombine.high %v516_v26, %v516_v26  ;;  %v647_v19 = vrot.slane %v516_v26, %v1094_v59  ;;  %v863_v61 = vsel %vm821_vm0, %v638_v14, 0.0 }
  0x48   :  { %v854_v22 = vadd.f32 %v853_v42, %v852_v3  ;;  %v865_v31 = vsel %vm821_vm0, %v637_v17, 0.0  ;;  %v517_v33 = vmul.f32 %v402_v13, %v30_v0 }
  0x49   :  { %v654_v34 = vrot.slane %v640_v7, %v1094_v59  ;;  %v655_v49 = vcombine.high %v647_v19, %v647_v19  ;;  %v867_v9 = vsel %vm821_vm0, %v639_v52, 0.0  ;;  %v869_v1 = vsel %vm821_vm0, %v647_v19, 0.0 }
  0x4a   :  { %v856_v24 = vadd.f32 %v855_v60, %v854_v22  ;;  %v657_v11 = vcombine.high %v517_v33, %v517_v33  ;;  %v664_v47 = vrot.slane %v517_v33, %v1094_v59 }
  0x4b   :  { %v656_v50 = vcombine.high %v654_v34, %v654_v34  ;;  %v871_v2 = vsel %vm821_vm0, %v655_v49, 0.0  ;;  %v873_v43 = vsel %vm821_vm0, %v654_v34, 0.0 }
  0x4c   :  { %v858_v36 = vadd.f32 %v857_v5, %v856_v24  ;;  %v671_v15 = vrot.slane %v657_v11, %v1094_v59  ;;  %v672_v3 = vcombine.high %v664_v47, %v664_v47  ;;  %v877_v21 = vsel %vm821_vm0, %v664_v47, 0.0 }
  0x4d   :  { %v875_v12 = vsel %vm821_vm0, %v656_v50, 0.0  ;;  %v885_v59 = vsel %vm821_vm0, %v1163_v23, 0.0 }
  0x4e   :  { %v860_v40 = vadd.f32 %v859_v28, %v858_v36  ;;  %v673_v22 = vcombine.high %v671_v15, %v671_v15  ;;  %v879_v5 = vsel %vm821_vm0, %v672_v3, 0.0  ;;  %v881_v53 = vsel %vm821_vm0, %v671_v15, 0.0 }
  0x50   :  { %v862_v51 = vadd.f32 %v861_v29, %v860_v40  ;;  %v883_v26 = vsel %vm821_vm0, %v673_v22, 0.0 }
  0x52   :  { %v864_v4 = vadd.f32 %v863_v61, %v862_v51 }
  0x54   :  { %v866_v57 = vadd.f32 %v865_v31, %v864_v4 }
  0x56   :  { %v868_v10 = vadd.f32 %v867_v9, %v866_v57 }
  0x58   :  { %v870_v42 = vadd.f32 %v869_v1, %v868_v10 }
  0x5a   :  { %v872_v54 = vadd.f32 %v871_v2, %v870_v42 }
  0x5c   :  { %v874_v55 = vadd.f32 %v873_v43, %v872_v54 }
  0x5e   :  { %v876_v60 = vadd.f32 %v875_v12, %v874_v55 }
  0x60   :  { %v878_v6 = vadd.f32 %v877_v21, %v876_v60 }
  0x62   :  { %v880_v24 = vadd.f32 %v879_v5, %v878_v6 }
  0x64   :  { %v882_v17 = vadd.f32 %v881_v53, %v880_v24 }
  0x66   :  { %v884_v14 = vadd.f32 %v883_v26, %v882_v17 }
  0x68   :  { %v886_v28 = vadd.f32 %v885_v59, %v884_v14 }
  0x6a   :  { %v888_v36 = vadd.f32 %v1264_v62, %v886_v28 }
  0x6c   :  { %v890_v29 = vadd.f32 %v1268_v56, %v888_v36 }
  0x6e   :  { %v892_v0 = vadd.f32 %v1271_v45, %v890_v29 }
  0x70   :  { %v894_v13 = vadd.f32 %v1275_v48, %v892_v0 }
  0x72   :  { %v896_v40 = vadd.f32 %v1278_v41, %v894_v13 }
  0x74   :  { %v898_v52 = vadd.f32 %v1282_v46, %v896_v40 }
  0x76   :  { %v900_v7 = vadd.f32 %v1285_v63, %v898_v52 }
  0x78   :  { %v902_v19 = vadd.f32 %v1289_v25, %v900_v7 }
  0x7a   :  { %v904_v23 = vadd.f32 %v1292_v8, %v902_v19 }
  0x7c   :  { %v906_v61 = vadd.f32 %v1296_v27, %v904_v23 }
  0x7e   :  { %v908_v62 = vadd.f32 %v1299_v37, %v906_v61 }
  0x80   :  { %v910_v56 = vadd.f32 %v1303_v32, %v908_v62  ;;  %v949_v32 = vld [vmem:[#allocation2] ss:$0 sm:$0xff] }
  0x82   :  { %v912_v45 = vadd.f32 %v1306_v39, %v910_v56 }
  0x84   :  { %v914_v48 = vadd.f32 %v1310_v30, %v912_v45 }
  0x86   :  { %v916_v41 = vadd.f32 %v1313_v16, %v914_v48 }
  0x88   :  { %v918_v46 = vadd.f32 %v1317_v35, %v916_v41 }
  0x8a   :  { %v920_v63 = vadd.f32 %v1320_v18, %v918_v46 }
  0x8c   :  { %v922_v25 = vadd.f32 %v1324_v44, %v920_v63 }
  0x8e   :  { %v924_v8 = vadd.f32 %v1327_v38, %v922_v25 }
  0x90   :  { %v926_v27 = vadd.f32 %v1331_v58, %v924_v8 }
  0x92   :  { %v928_v37 = vadd.f32 %v1340_v20, %v926_v27 }
  0x94   :  { %929 = vadd.xlane.f32.xlu0 %v928_v37 }
 0x121   :  { %v930_v51 = vpop.xlane.xlu0 %929 }
 0x122   :  { %v938_v39 = vadd.f32 %v949_v32, %v930_v51 }
 0x124   :  { %v939_v31 = vmul.f32 0.5, %v938_v39 }
 0x126   :  { %951 = vtanh.f32 %v939_v31 }
 0x130   :  { %v952_v30 = vpop.eup %951 }
 0x131   :  { %v941_v16 = vadd.f32 1.0, %v952_v30 }
 0x133   :  { %v942_v35 = vmul.f32 0.5, %v941_v16 }
 0x135   :  { %944 = vst.msk [vmem:[%s1431_s3] sm:$0x3] %vm943_vm1, %v942_v35 }

// kernel: discriminator_forward.8
= control target key start
LH: loop header
LB: loop body
LE: loop exit
PB: predicated region body
PF: predicated region fallthrough
CT: control target
= control target key end

     0   :  { %v4652_v38 = vmov 1966171168   ;;  %v462_v40 = vlaneseq  ;;  %vm3389_vm0 = vcmask 1041408   ;;  %s6127_s1 = inlined_call_operand.vmem [shape: bf16[3456,256], index: 1, kind: input, shape index: {}]   ;;  %s6128_s0 = inlined_call_operand.vmem [shape: bf16[2,3456], index: 0, kind: input, shape index: {}]   ;;  %s6129_s2 = inlined_call_operand.vmem [shape: f32[1,256], index: 2, kind: input, shape index: {}]   ;;  %s6130_s3 = inlined_call_operand.vmem [shape: f32[1,256], index: 3, kind: input, shape index: {}]   ;;  %s6131_s4 = inlined_call_operand.vmem [shape: bf16[2,256], index: 4, kind: output, shape index: {}]  }
   0x1   :  { %v3995_v0 = vld [vmem:[%s6127_s1 + $0x4] ss:$8 sps:$4 sm:$0xff]   ;;  %v3999_v2 = vld [vmem:[%s6127_s1] ss:$8 sps:$4 sm:$0xff]   ;;  %v4001_v4 = vld [vmem:[%s6127_s1 + $0x14] ss:$8 sps:$4 sm:$0xff]   ;;  %v460_v39 = vunpack.c.l.s4 %v4652_v38 }
   0x2   :  { %v3997_v1 = vld [vmem:[%s6127_s1 + $0x704] ss:$8 sps:$4 sm:$0xff]   ;;  %2815 = vmatprep.subr.bf16.mxu1 %v3995_v0  ;;  %v4000_v3 = vld [vmem:[%s6127_s1 + $0x700] ss:$8 sps:$4 sm:$0xff]   ;;  %v4003_v5 = vld [vmem:[%s6127_s1 + $0x714] ss:$8 sps:$4 sm:$0xff]  }
   0x3   :  { %3102 = vmatprep.subr.bf16.mxu0 %v3997_v1  ;;  %2816 = vmatpush1.bf16.msra.mxu1 %v3999_v2  ;;  %v4005_v6 = vld [vmem:[%s6127_s1 + $0x10] ss:$8 sps:$4 sm:$0xff]   ;;  %v4007_v8 = vld [vmem:[%s6127_s1 + $0x24] ss:$8 sps:$4 sm:$0xff]   ;;  %v4011_v10 = vld [vmem:[%s6127_s1 + $0x20] ss:$8 sps:$4 sm:$0xff]   ;;  %v461_v45 = vunpack.c.0.s8 %v460_v39 }
   0x4   :  { %3103 = vmatpush1.bf16.msra.mxu0 %v4000_v3  ;;  %2817 = vmatprep.subr.bf16.mxu1 %v4001_v4  ;;  %v4006_v7 = vld [vmem:[%s6127_s1 + $0x710] ss:$8 sps:$4 sm:$0xff]   ;;  %v4009_v9 = vld [vmem:[%s6127_s1 + $0x724] ss:$8 sps:$4 sm:$0xff]   ;;  %v4012_v11 = vld [vmem:[%s6127_s1 + $0x720] ss:$8 sps:$4 sm:$0xff]  }
   0x5   :  { %3104 = vmatprep.subr.bf16.mxu0 %v4003_v5  ;;  %v4013_v12 = vld [vmem:[%s6127_s1 + $0x34] ss:$8 sps:$4 sm:$0xff]   ;;  %v4017_v14 = vld [vmem:[%s6127_s1 + $0x30] ss:$8 sps:$4 sm:$0xff]   ;;  %v4019_v16 = vld [vmem:[%s6127_s1 + $0x44] ss:$8 sps:$4 sm:$0xff]  }
   0x6   :  { %v4015_v13 = vld [vmem:[%s6127_s1 + $0x734] ss:$8 sps:$4 sm:$0xff]   ;;  %v4018_v15 = vld [vmem:[%s6127_s1 + $0x730] ss:$8 sps:$4 sm:$0xff]   ;;  %v4021_v17 = vld [vmem:[%s6127_s1 + $0x744] ss:$8 sps:$4 sm:$0xff]  }
   0x7   :  { %2818 = vmatpush1.bf16.msra.mxu1 %v4005_v6  ;;  %v4023_v18 = vld [vmem:[%s6127_s1 + $0x40] ss:$8 sps:$4 sm:$0xff]   ;;  %v4025_v20 = vld [vmem:[%s6127_s1 + $0x54] ss:$8 sps:$4 sm:$0xff]   ;;  %v4029_v22 = vld [vmem:[%s6127_s1 + $0x50] ss:$8 sps:$4 sm:$0xff]  }
   0x8   :  { %3105 = vmatpush1.bf16.msra.mxu0 %v4006_v7  ;;  %2819 = vmatprep.subr.bf16.mxu1 %v4007_v8  ;;  %v4024_v19 = vld [vmem:[%s6127_s1 + $0x740] ss:$8 sps:$4 sm:$0xff]   ;;  %v4027_v21 = vld [vmem:[%s6127_s1 + $0x754] ss:$8 sps:$4 sm:$0xff]   ;;  %v4030_v23 = vld [vmem:[%s6127_s1 + $0x750] ss:$8 sps:$4 sm:$0xff]  }
   0x9   :  { %3106 = vmatprep.subr.bf16.mxu0 %v4009_v9  ;;  %v4031_v24 = vld [vmem:[%s6127_s1 + $0x64] ss:$8 sps:$4 sm:$0xff]   ;;  %v4035_v26 = vld [vmem:[%s6127_s1 + $0x60] ss:$8 sps:$4 sm:$0xff]   ;;  %v4037_v28 = vld [vmem:[%s6127_s1 + $0x74] ss:$8 sps:$4 sm:$0xff]  }
   0xa   :  { %v4033_v25 = vld [vmem:[%s6127_s1 + $0x764] ss:$8 sps:$4 sm:$0xff]   ;;  %v4036_v27 = vld [vmem:[%s6127_s1 + $0x760] ss:$8 sps:$4 sm:$0xff]   ;;  %v4039_v29 = vld [vmem:[%s6127_s1 + $0x774] ss:$8 sps:$4 sm:$0xff]  }
   0xb   :  { %2820 = vmatpush1.bf16.msra.mxu1 %v4011_v10  ;;  %v4041_v30 = vld [vmem:[%s6127_s1 + $0x70] ss:$8 sps:$4 sm:$0xff]   ;;  %v4043_v32 = vld [vmem:[%s6127_s1 + $0x84] ss:$8 sps:$4 sm:$0xff]   ;;  %v4047_v34 = vld [vmem:[%s6127_s1 + $0x80] ss:$8 sps:$4 sm:$0xff]  }
   0xc   :  { %3107 = vmatpush1.bf16.msra.mxu0 %v4012_v11  ;;  %2821 = vmatprep.subr.bf16.mxu1 %v4013_v12  ;;  %v4042_v31 = vld [vmem:[%s6127_s1 + $0x770] ss:$8 sps:$4 sm:$0xff]   ;;  %v4045_v33 = vld [vmem:[%s6127_s1 + $0x784] ss:$8 sps:$4 sm:$0xff]   ;;  %v4048_v35 = vld [vmem:[%s6127_s1 + $0x780] ss:$8 sps:$4 sm:$0xff]  }
   0xd   :  { %3108 = vmatprep.subr.bf16.mxu0 %v4015_v13  ;;  %v4049_v36 = vld [vmem:[%s6127_s1 + $0x94] ss:$8 sps:$4 sm:$0xff]   ;;  %v4053_v41 = vld [vmem:[%s6127_s1 + $0x90] ss:$8 sps:$4 sm:$0xff]   ;;  %v4055_v43 = vld [vmem:[%s6127_s1 + $0xa4] ss:$8 sps:$4 sm:$0xff]  }
   0xe   :  { %v4051_v37 = vld [vmem:[%s6127_s1 + $0x794] ss:$8 sps:$4 sm:$0xff]   ;;  %v4054_v42 = vld [vmem:[%s6127_s1 + $0x790] ss:$8 sps:$4 sm:$0xff]   ;;  %v4057_v44 = vld [vmem:[%s6127_s1 + $0x7a4] ss:$8 sps:$4 sm:$0xff]  }
   0xf   :  { %2822 = vmatpush1.bf16.msra.mxu1 %v4017_v14  ;;  %v4805_v46 = vshrl.u32 %v462_v40, 7  ;;  %v4059_v47 = vld [vmem:[%s6127_s1 + $0xa0] ss:$8 sps:$4 sm:$0xff]   ;;  %v4061_v49 = vld [vmem:[%s6127_s1 + $0xb4] ss:$8 sps:$4 sm:$0xff]  }
  0x10   :  { %3109 = vmatpush1.bf16.msra.mxu0 %v4018_v15  ;;  %2823 = vmatprep.subr.bf16.mxu1 %v4019_v16  ;;  %v4060_v48 = vld [vmem:[%s6127_s1 + $0x7a0] ss:$8 sps:$4 sm:$0xff]   ;;  %v4063_v50 = vld [vmem:[%s6127_s1 + $0x7b4] ss:$8 sps:$4 sm:$0xff]   ;;  %v4065_v53 = vld [vmem:[%s6127_s1 + $0xb0] ss:$8 sps:$4 sm:$0xff]  }
  0x11   :  { %3110 = vmatprep.subr.bf16.mxu0 %v4021_v17  ;;  %v4820_v51 = vsub.s32 %v461_v45, %v4805_v46  ;;  %v4825_v52 = vld [vmem:[%s6128_s0] sm:$0xff]  ;;  %v4066_v55 = vld [vmem:[%s6127_s1 + $0x7b0] ss:$8 sps:$4 sm:$0xff]   ;;  %v19_v56 = vld [vmem:[%s6128_s0 + $0x8] sm:$0xff] }
  0x12   :  { %v4067_v57 = vld [vmem:[%s6127_s1 + $0xc4] ss:$8 sps:$4 sm:$0xff]   ;;  %v507_v60 = vcombine.high %v19_v56, %v19_v56  ;;  %v4071_v63 = vld [vmem:[%s6127_s1 + $0xc0] ss:$8 sps:$4 sm:$0xff]   ;;  %v4073_v1 = vld [vmem:[%s6127_s1 + $0xd4] ss:$8 sps:$4 sm:$0xff]  }
  0x13   :  { %2824 = vmatpush1.bf16.msra.mxu1 %v4023_v18  ;;  %v465_v54 = vrot.slane %v4825_v52, %v4820_v51  ;;  %v4069_v58 = vld [vmem:[%s6127_s1 + $0x7c4] ss:$8 sps:$4 sm:$0xff]   ;;  %v4072_v0 = vld [vmem:[%s6127_s1 + $0x7c0] ss:$8 sps:$4 sm:$0xff]   ;;  %v4075_v2 = vld [vmem:[%s6127_s1 + $0x7d4] ss:$8 sps:$4 sm:$0xff]  }
  0x14   :  { %3111 = vmatpush1.bf16.msra.mxu0 %v4024_v19  ;;  %2825 = vmatprep.subr.bf16.mxu1 %v4025_v20  ;;  %v521_v62 = vrot.slane %v507_v60, %v4820_v51  ;;  %v4077_v5 = vld [vmem:[%s6127_s1 + $0xd0] ss:$8 sps:$4 sm:$0xff]   ;;  %v4079_v7 = vld [vmem:[%s6127_s1 + $0xe4] ss:$8 sps:$4 sm:$0xff]   ;;  %v4083_v10 = vld [vmem:[%s6127_s1 + $0xe0] ss:$8 sps:$4 sm:$0xff]  }
  0x15   :  { %3112 = vmatprep.subr.bf16.mxu0 %v4027_v21  ;;  %v473_v59 = vcombine.high %v465_v54, %v465_v54  ;;  %v4078_v6 = vld [vmem:[%s6127_s1 + $0x7d0] ss:$8 sps:$4 sm:$0xff]   ;;  %v4081_v8 = vld [vmem:[%s6127_s1 + $0x7e4] ss:$8 sps:$4 sm:$0xff]   ;;  %v4084_v11 = vld [vmem:[%s6127_s1 + $0x7e0] ss:$8 sps:$4 sm:$0xff]   ;;  %v4903_v19 = vrot.slane %v465_v54, %v4820_v51 }
  0x16   :  { %v523_v3 = vcombine.high %v521_v62, %v521_v62  ;;  %v4085_v12 = vld [vmem:[%s6127_s1 + $0xf4] ss:$8 sps:$4 sm:$0xff]   ;;  %v4888_v14 = vrot.slane %v521_v62, %v4820_v51  ;;  %v4089_v15 = vld [vmem:[%s6127_s1 + $0xf0] ss:$8 sps:$4 sm:$0xff]   ;;  %v4094_v17 = vld [vmem:[%s6127_s1 + $0x104] ss:$8 sps:$4 sm:$0xff]  }
  0x17   :  { %2826 = vmatpush1.bf16.msra.mxu1 %v4029_v22  ;;  %v495_v61 = vrot.slane %v473_v59, %v4820_v51  ;;  %v4087_v13 = vld [vmem:[%s6127_s1 + $0x7f4] ss:$8 sps:$4 sm:$0xff]   ;;  %v4090_v16 = vld [vmem:[%s6127_s1 + $0x7f0] ss:$8 sps:$4 sm:$0xff]   ;;  %v4098_v18 = vld [vmem:[%s6127_s1 + $0x804] ss:$8 sps:$4 sm:$0xff]  }
  0x18   :  { %3113 = vmatpush1.bf16.msra.mxu0 %v4030_v23  ;;  %2827 = vmatprep.subr.bf16.mxu1 %v4031_v24  ;;  %v4859_v4 = vrot.slane %v523_v3, %v4820_v51  ;;  %v553_v20 = vcombine.high %v4888_v14, %v4888_v14  ;;  %v4092_v21 = vld [vmem:[%s6127_s1 + $0x100] ss:$8 sps:$4 sm:$0xff]   ;;  %v4101_v23 = vld [vmem:[%s6127_s1 + $0x114] ss:$8 sps:$4 sm:$0xff]   ;;  %v4134_v45 = vld [vmem:[%s6127_s1 + $0x864] ss:$8 sps:$4 sm:$0xff]  }
  0x19   :  { %3114 = vmatprep.subr.bf16.mxu0 %v4033_v25  ;;  %2847 = vmatprep.mubr.bf16.mxu1 %v495_v61  ;;  %v4096_v22 = vld [vmem:[%s6127_s1 + $0x800] ss:$8 sps:$4 sm:$0xff]   ;;  %v4104_v24 = vld [vmem:[%s6127_s1 + $0x814] ss:$8 sps:$4 sm:$0xff]   ;;  %v505_v25 = vcombine.high %v495_v61, %v495_v61  ;;  %v4135_v56 = vld [vmem:[%s6127_s1 + $0x170] ss:$8 sps:$4 sm:$0xff]  }
  0x1a   :  { %v555_v9 = vcombine.high %v4859_v4, %v4859_v4  ;;  %v4117_v38 = vld [vmem:[%s6127_s1 + $0x140] ss:$8 sps:$4 sm:$0xff]   ;;  %v4125_v40 = vld [vmem:[%s6127_s1 + $0x154] ss:$8 sps:$4 sm:$0xff]   ;;  %v4146_v60 = vld [vmem:[%s6127_s1 + $0x884] ss:$8 sps:$4 sm:$0xff]  }
  0x1b   :  { %2828 = vmatpush1.bf16.msra.mxu1 %v4035_v26  ;;  %v4099_v26 = vld [vmem:[%s6127_s1 + $0x110] ss:$8 sps:$4 sm:$0xff]   ;;  %v4120_v39 = vld [vmem:[%s6127_s1 + $0x840] ss:$8 sps:$4 sm:$0xff]   ;;  %v4140_v54 = vld [vmem:[%s6127_s1 + $0x874] ss:$8 sps:$4 sm:$0xff]  }
  0x1c   :  { %3115 = vmatpush1.bf16.msra.mxu0 %v4036_v27  ;;  %2829 = vmatprep.subr.bf16.mxu1 %v4037_v28  ;;  %v4102_v27 = vld [vmem:[%s6127_s1 + $0x810] ss:$8 sps:$4 sm:$0xff]   ;;  %v4107_v28 = vld [vmem:[%s6127_s1 + $0x124] ss:$8 sps:$4 sm:$0xff]   ;;  %v4141_v61 = vld [vmem:[%s6127_s1 + $0x180] ss:$8 sps:$4 sm:$0xff]  }
  0x1d   :  { %3116 = vmatprep.subr.bf16.mxu0 %v4039_v29  ;;  %3134 = vmatprep.mubr.bf16.mxu0 %v555_v9  ;;  %v4110_v29 = vld [vmem:[%s6127_s1 + $0x824] ss:$8 sps:$4 sm:$0xff]   ;;  %v4144_v62 = vld [vmem:[%s6127_s1 + $0x880] ss:$8 sps:$4 sm:$0xff]   ;;  %v4164_v9 = vld [vmem:[%s6127_s1 + $0x8b4] ss:$8 sps:$4 sm:$0xff]  }
  0x1e   :  { %v4155_v3 = vld [vmem:[%s6127_s1 + $0x1a4] ss:$8 sps:$4 sm:$0xff]  }
  0x1f   :  { %2830 = vmatpush1.bf16.msra.mxu1 %v4041_v30  ;;  %v4105_v30 = vld [vmem:[%s6127_s1 + $0x120] ss:$8 sps:$4 sm:$0xff]  }
  0x20   :  { %3117 = vmatpush1.bf16.msra.mxu0 %v4042_v31  ;;  %2831 = vmatprep.subr.bf16.mxu1 %v4043_v32  ;;  %v4108_v31 = vld [vmem:[%s6127_s1 + $0x820] ss:$8 sps:$4 sm:$0xff]   ;;  %v4113_v32 = vld [vmem:[%s6127_s1 + $0x134] ss:$8 sps:$4 sm:$0xff]  }
  0x21   :  { %3118 = vmatprep.subr.bf16.mxu0 %v4045_v33  ;;  %v4116_v33 = vld [vmem:[%s6127_s1 + $0x834] ss:$8 sps:$4 sm:$0xff]  }
  0x23   :  { %2832 = vmatpush1.bf16.msra.mxu1 %v4047_v34  ;;  %v4111_v34 = vld [vmem:[%s6127_s1 + $0x130] ss:$8 sps:$4 sm:$0xff]  }
  0x24   :  { %3119 = vmatpush1.bf16.msra.mxu0 %v4048_v35  ;;  %2833 = vmatprep.subr.bf16.mxu1 %v4049_v36  ;;  %v4114_v35 = vld [vmem:[%s6127_s1 + $0x830] ss:$8 sps:$4 sm:$0xff]   ;;  %v4119_v36 = vld [vmem:[%s6127_s1 + $0x144] ss:$8 sps:$4 sm:$0xff]  }
  0x25   :  { %3120 = vmatprep.subr.bf16.mxu0 %v4051_v37  ;;  %v4122_v37 = vld [vmem:[%s6127_s1 + $0x844] ss:$8 sps:$4 sm:$0xff]  }
  0x27   :  { %2834 = vmatpush1.bf16.msra.mxu1 %v4053_v41  ;;  %v4128_v41 = vld [vmem:[%s6127_s1 + $0x854] ss:$8 sps:$4 sm:$0xff]  }
  0x28   :  { %3121 = vmatpush1.bf16.msra.mxu0 %v4054_v42  ;;  %2835 = vmatprep.subr.bf16.mxu1 %v4055_v43  ;;  %v4123_v42 = vld [vmem:[%s6127_s1 + $0x150] ss:$8 sps:$4 sm:$0xff]  }
  0x29   :  { %3122 = vmatprep.subr.bf16.mxu0 %v4057_v44  ;;  %v4126_v43 = vld [vmem:[%s6127_s1 + $0x850] ss:$8 sps:$4 sm:$0xff]   ;;  %v4131_v44 = vld [vmem:[%s6127_s1 + $0x164] ss:$8 sps:$4 sm:$0xff]  }
  0x2b   :  { %2836 = vmatpush1.bf16.msra.mxu1 %v4059_v47  ;;  %v4129_v47 = vld [vmem:[%s6127_s1 + $0x160] ss:$8 sps:$4 sm:$0xff]  }
  0x2c   :  { %3123 = vmatpush1.bf16.msra.mxu0 %v4060_v48  ;;  %2837 = vmatprep.subr.bf16.mxu1 %v4061_v49  ;;  %v4986_v48 = vld [vmem:[%s6128_s0 + $0x10] sm:$0xff]  ;;  %v4132_v49 = vld [vmem:[%s6127_s1 + $0x860] ss:$8 sps:$4 sm:$0xff]  }
  0x2d   :  { %3124 = vmatprep.subr.bf16.mxu0 %v4063_v50  ;;  %v4137_v50 = vld [vmem:[%s6127_s1 + $0x174] ss:$8 sps:$4 sm:$0xff]  }
  0x2f   :  { %2838 = vmatpush1.bf16.msra.mxu1 %v4065_v53  ;;  %v4996_v53 = vrot.slane %v4986_v48, %v4820_v51 }
  0x30   :  { %3125 = vmatpush1.bf16.msra.mxu0 %v4066_v55  ;;  %2839 = vmatprep.subr.bf16.mxu1 %v4067_v57  ;;  %v4138_v57 = vld [vmem:[%s6127_s1 + $0x870] ss:$8 sps:$4 sm:$0xff]  }
  0x31   :  { %3126 = vmatprep.subr.bf16.mxu0 %v4069_v58  ;;  %v571_v55 = vcombine.high %v4996_v53, %v4996_v53  ;;  %v4143_v58 = vld [vmem:[%s6127_s1 + $0x184] ss:$8 sps:$4 sm:$0xff]  }
  0x33   :  { %2840 = vmatpush1.bf16.msra.mxu1 %v4071_v63  ;;  %v5013_v59 = vrot.slane %v571_v55, %v4820_v51  ;;  %v4149_v63 = vld [vmem:[%s6127_s1 + $0x194] ss:$8 sps:$4 sm:$0xff]   ;;  %v4215_v55 = vld [vmem:[%s6127_s1 + $0x244] ss:$8 sps:$4 sm:$0xff]  }
  0x34   :  { %3127 = vmatpush1.bf16.msra.mxu0 %v4072_v0  ;;  %2841 = vmatprep.subr.bf16.mxu1 %v4073_v1  ;;  %v4152_v0 = vld [vmem:[%s6127_s1 + $0x894] ss:$8 sps:$4 sm:$0xff]   ;;  %v4147_v1 = vld [vmem:[%s6127_s1 + $0x190] ss:$8 sps:$4 sm:$0xff]  }
  0x35   :  { %3128 = vmatprep.subr.bf16.mxu0 %v4075_v2  ;;  %v4150_v2 = vld [vmem:[%s6127_s1 + $0x890] ss:$8 sps:$4 sm:$0xff]  }
  0x37   :  { %2842 = vmatpush1.bf16.msra.mxu1 %v4077_v5  ;;  %v4158_v5 = vld [vmem:[%s6127_s1 + $0x8a4] ss:$8 sps:$4 sm:$0xff]  }
  0x38   :  { %3129 = vmatpush1.bf16.msra.mxu0 %v4078_v6  ;;  %2843 = vmatprep.subr.bf16.mxu1 %v4079_v7  ;;  %v4153_v6 = vld [vmem:[%s6127_s1 + $0x1a0] ss:$8 sps:$4 sm:$0xff]  }
  0x39   :  { %3130 = vmatprep.subr.bf16.mxu0 %v4081_v8  ;;  %v4156_v7 = vld [vmem:[%s6127_s1 + $0x8a0] ss:$8 sps:$4 sm:$0xff]   ;;  %v4161_v8 = vld [vmem:[%s6127_s1 + $0x1b4] ss:$8 sps:$4 sm:$0xff]  }
  0x3b   :  { %2844 = vmatpush1.bf16.msra.mxu1 %v4083_v10  ;;  %v4159_v10 = vld [vmem:[%s6127_s1 + $0x1b0] ss:$8 sps:$4 sm:$0xff]  }
  0x3c   :  { %3131 = vmatpush1.bf16.msra.mxu0 %v4084_v11  ;;  %2845 = vmatprep.subr.bf16.mxu1 %v4085_v12  ;;  %v4162_v11 = vld [vmem:[%s6127_s1 + $0x8b0] ss:$8 sps:$4 sm:$0xff]   ;;  %v4167_v12 = vld [vmem:[%s6127_s1 + $0x1c4] ss:$8 sps:$4 sm:$0xff]  }
  0x3d   :  { %3132 = vmatprep.subr.bf16.mxu0 %v4087_v13  ;;  %v4170_v13 = vld [vmem:[%s6127_s1 + $0x8c4] ss:$8 sps:$4 sm:$0xff]  }
  0x3f   :  { %2846 = vmatpush1.bf16.msra.mxu1 %v4089_v15  ;;  %v4165_v15 = vld [vmem:[%s6127_s1 + $0x1c0] ss:$8 sps:$4 sm:$0xff]  }
  0x40   :  { %3133 = vmatpush1.bf16.msra.mxu0 %v4090_v16  ;;  %2856 = vmatprep.subr.bf16.mxu1 %v4094_v17  ;;  %v4168_v16 = vld [vmem:[%s6127_s1 + $0x8c0] ss:$8 sps:$4 sm:$0xff]   ;;  %v4173_v17 = vld [vmem:[%s6127_s1 + $0x1d4] ss:$8 sps:$4 sm:$0xff]  }
  0x41   :  { %3143 = vmatprep.subr.bf16.mxu0 %v4098_v18  ;;  %v4176_v18 = vld [vmem:[%s6127_s1 + $0x8d4] ss:$8 sps:$4 sm:$0xff]  }
  0x42   :  { %2848 = vmatmul.mubr.bf16.vlgmr.msra.gmra.mrb[0].mxu1 %v4903_v19 }
  0x43   :  { %3135 = vmatmul.mubr.bf16.vlgmr.msra.gmra.mrb[0].mxu0 %v553_v20  ;;  %2857 = vmatpush1.bf16.msra.mxu1 %v4092_v21  ;;  %v4171_v20 = vld [vmem:[%s6127_s1 + $0x1d0] ss:$8 sps:$4 sm:$0xff]  }
  0x44   :  { %3144 = vmatpush1.bf16.msra.mxu0 %v4096_v22  ;;  %2858 = vmatprep.subr.bf16.mxu1 %v4101_v23  ;;  %v4174_v21 = vld [vmem:[%s6127_s1 + $0x8d0] ss:$8 sps:$4 sm:$0xff]   ;;  %v4179_v22 = vld [vmem:[%s6127_s1 + $0x1e4] ss:$8 sps:$4 sm:$0xff]  }
  0x45   :  { %3145 = vmatprep.subr.bf16.mxu0 %v4104_v24  ;;  %2888 = vmatprep.mubr.bf16.mxu1 %v505_v25  ;;  %v4182_v23 = vld [vmem:[%s6127_s1 + $0x8e4] ss:$8 sps:$4 sm:$0xff]   ;;  %v458_v24 = vcombine.high %v4825_v52, %v4825_v52  ;;  %v4177_v25 = vld [vmem:[%s6127_s1 + $0x1e0] ss:$8 sps:$4 sm:$0xff]   ;;  %v4188_v52 = vld [vmem:[%s6127_s1 + $0x8f4] ss:$8 sps:$4 sm:$0xff]  }
  0x46   :  { %3175 = vmatprep.mubr.bf16.mxu0 %v5013_v59 }
  0x47   :  { %2859 = vmatpush1.bf16.msra.mxu1 %v4099_v26  ;;  %v4180_v26 = vld [vmem:[%s6127_s1 + $0x8e0] ss:$8 sps:$4 sm:$0xff]  }
  0x48   :  { %3146 = vmatpush1.bf16.msra.mxu0 %v4102_v27  ;;  %2860 = vmatprep.subr.bf16.mxu1 %v4107_v28  ;;  %v4185_v27 = vld [vmem:[%s6127_s1 + $0x1f4] ss:$8 sps:$4 sm:$0xff]   ;;  %v5106_v28 = vrot.slane %v458_v24, %v4820_v51  ;;  %v4255_v24 = vld [vmem:[%s6127_s1 + $0x2b0] ss:$8 sps:$4 sm:$0xff]  }
  0x49   :  { %3147 = vmatprep.subr.bf16.mxu0 %v4110_v29  ;;  %v4183_v29 = vld [vmem:[%s6127_s1 + $0x1f0] ss:$8 sps:$4 sm:$0xff]  }
  0x4b   :  { %2861 = vmatpush1.bf16.msra.mxu1 %v4105_v30  ;;  %v4186_v30 = vld [vmem:[%s6127_s1 + $0x8f0] ss:$8 sps:$4 sm:$0xff]  }
  0x4c   :  { %3148 = vmatpush1.bf16.msra.mxu0 %v4108_v31  ;;  %2862 = vmatprep.subr.bf16.mxu1 %v4113_v32  ;;  %v4191_v31 = vld [vmem:[%s6127_s1 + $0x204] ss:$8 sps:$4 sm:$0xff]  }
  0x4d   :  { %3149 = vmatprep.subr.bf16.mxu0 %v4116_v33  ;;  %v4194_v32 = vld [vmem:[%s6127_s1 + $0x904] ss:$8 sps:$4 sm:$0xff]   ;;  %v474_v33 = vcombine.high %v5106_v28, %v5106_v28 }
  0x4f   :  { %2863 = vmatpush1.bf16.msra.mxu1 %v4111_v34  ;;  %v503_v34 = vcombine.high %v4903_v19, %v4903_v19  ;;  %v4200_v19 = vld [vmem:[%s6127_s1 + $0x914] ss:$8 sps:$4 sm:$0xff]  }
  0x50   :  { %3150 = vmatpush1.bf16.msra.mxu0 %v4114_v35  ;;  %2864 = vmatprep.subr.bf16.mxu1 %v4119_v36  ;;  %v4189_v35 = vld [vmem:[%s6127_s1 + $0x200] ss:$8 sps:$4 sm:$0xff]   ;;  %v5129_v36 = vrot.slane %v4996_v53, %v4820_v51  ;;  %v4207_v53 = vld [vmem:[%s6127_s1 + $0x230] ss:$8 sps:$4 sm:$0xff]  }
  0x51   :  { %3151 = vmatprep.subr.bf16.mxu0 %v4122_v37  ;;  %v4192_v37 = vld [vmem:[%s6127_s1 + $0x900] ss:$8 sps:$4 sm:$0xff]  }
  0x53   :  { %2865 = vmatpush1.bf16.msra.mxu1 %v4117_v38  ;;  %v4197_v38 = vld [vmem:[%s6127_s1 + $0x214] ss:$8 sps:$4 sm:$0xff]  }
  0x54   :  { %3152 = vmatpush1.bf16.msra.mxu0 %v4120_v39  ;;  %2866 = vmatprep.subr.bf16.mxu1 %v4125_v40  ;;  %v5141_v39 = vrot.slane %v474_v33, %v4820_v51  ;;  %v603_v40 = vcombine.high %v5013_v59, %v5013_v59  ;;  %v4221_v59 = vld [vmem:[%s6127_s1 + $0x254] ss:$8 sps:$4 sm:$0xff]   ;;  %v4270_v33 = vld [vmem:[%s6127_s1 + $0x9d0] ss:$8 sps:$4 sm:$0xff]  }
  0x55   :  { %3153 = vmatprep.subr.bf16.mxu0 %v4128_v41  ;;  %v4195_v41 = vld [vmem:[%s6127_s1 + $0x210] ss:$8 sps:$4 sm:$0xff]  }
  0x57   :  { %2867 = vmatpush1.bf16.msra.mxu1 %v4123_v42  ;;  %v4198_v42 = vld [vmem:[%s6127_s1 + $0x910] ss:$8 sps:$4 sm:$0xff]  }
  0x58   :  { %3154 = vmatpush1.bf16.msra.mxu0 %v4126_v43  ;;  %2868 = vmatprep.subr.bf16.mxu1 %v4131_v44  ;;  %v4203_v43 = vld [vmem:[%s6127_s1 + $0x224] ss:$8 sps:$4 sm:$0xff]  }
  0x59   :  { %3155 = vmatprep.subr.bf16.mxu0 %v4134_v45  ;;  %v4206_v44 = vld [vmem:[%s6127_s1 + $0x924] ss:$8 sps:$4 sm:$0xff]   ;;  %v4201_v45 = vld [vmem:[%s6127_s1 + $0x220] ss:$8 sps:$4 sm:$0xff]  }
  0x5b   :  { %2869 = vmatpush1.bf16.msra.mxu1 %v4129_v47  ;;  %v4204_v47 = vld [vmem:[%s6127_s1 + $0x920] ss:$8 sps:$4 sm:$0xff]  }
  0x5c   :  { %3156 = vmatpush1.bf16.msra.mxu0 %v4132_v49  ;;  %2870 = vmatprep.subr.bf16.mxu1 %v4137_v50  ;;  %v4209_v49 = vld [vmem:[%s6127_s1 + $0x234] ss:$8 sps:$4 sm:$0xff]  }
  0x5d   :  { %3157 = vmatprep.subr.bf16.mxu0 %v4140_v54  ;;  %v4212_v50 = vld [vmem:[%s6127_s1 + $0x934] ss:$8 sps:$4 sm:$0xff]   ;;  %v4210_v54 = vld [vmem:[%s6127_s1 + $0x930] ss:$8 sps:$4 sm:$0xff]  }
  0x5f   :  { %2871 = vmatpush1.bf16.msra.mxu1 %v4135_v56  ;;  %v4218_v56 = vld [vmem:[%s6127_s1 + $0x944] ss:$8 sps:$4 sm:$0xff]  }
  0x60   :  { %3158 = vmatpush1.bf16.msra.mxu0 %v4138_v57  ;;  %2872 = vmatprep.subr.bf16.mxu1 %v4143_v58  ;;  %v4213_v57 = vld [vmem:[%s6127_s1 + $0x240] ss:$8 sps:$4 sm:$0xff]  }
  0x61   :  { %3159 = vmatprep.subr.bf16.mxu0 %v4146_v60  ;;  %v4216_v58 = vld [vmem:[%s6127_s1 + $0x940] ss:$8 sps:$4 sm:$0xff]   ;;  %v4224_v60 = vld [vmem:[%s6127_s1 + $0x954] ss:$8 sps:$4 sm:$0xff]  }
  0x63   :  { %2873 = vmatpush1.bf16.msra.mxu1 %v4141_v61  ;;  %v4219_v61 = vld [vmem:[%s6127_s1 + $0x250] ss:$8 sps:$4 sm:$0xff]  }
  0x64   :  { %3160 = vmatpush1.bf16.msra.mxu0 %v4144_v62  ;;  %2874 = vmatprep.subr.bf16.mxu1 %v4149_v63  ;;  %v4222_v62 = vld [vmem:[%s6127_s1 + $0x950] ss:$8 sps:$4 sm:$0xff]   ;;  %v4227_v63 = vld [vmem:[%s6127_s1 + $0x264] ss:$8 sps:$4 sm:$0xff]  }
  0x65   :  { %3161 = vmatprep.subr.bf16.mxu0 %v4152_v0  ;;  %v4230_v0 = vld [vmem:[%s6127_s1 + $0x964] ss:$8 sps:$4 sm:$0xff]  }
  0x67   :  { %2875 = vmatpush1.bf16.msra.mxu1 %v4147_v1  ;;  %v4225_v1 = vld [vmem:[%s6127_s1 + $0x260] ss:$8 sps:$4 sm:$0xff]  }
  0x68   :  { %3162 = vmatpush1.bf16.msra.mxu0 %v4150_v2  ;;  %2876 = vmatprep.subr.bf16.mxu1 %v4155_v3  ;;  %v4228_v2 = vld [vmem:[%s6127_s1 + $0x960] ss:$8 sps:$4 sm:$0xff]   ;;  %v4233_v3 = vld [vmem:[%s6127_s1 + $0x274] ss:$8 sps:$4 sm:$0xff]  }
  0x69   :  { %3163 = vmatprep.subr.bf16.mxu0 %v4158_v5  ;;  %v4236_v5 = vld [vmem:[%s6127_s1 + $0x974] ss:$8 sps:$4 sm:$0xff]  }
  0x6b   :  { %2877 = vmatpush1.bf16.msra.mxu1 %v4153_v6  ;;  %v4231_v6 = vld [vmem:[%s6127_s1 + $0x270] ss:$8 sps:$4 sm:$0xff]  }
  0x6c   :  { %3164 = vmatpush1.bf16.msra.mxu0 %v4156_v7  ;;  %2878 = vmatprep.subr.bf16.mxu1 %v4161_v8  ;;  %v4234_v7 = vld [vmem:[%s6127_s1 + $0x970] ss:$8 sps:$4 sm:$0xff]   ;;  %v4239_v8 = vld [vmem:[%s6127_s1 + $0x284] ss:$8 sps:$4 sm:$0xff]  }
  0x6d   :  { %3165 = vmatprep.subr.bf16.mxu0 %v4164_v9  ;;  %v4242_v9 = vld [vmem:[%s6127_s1 + $0x984] ss:$8 sps:$4 sm:$0xff]  }
  0x6f   :  { %2879 = vmatpush1.bf16.msra.mxu1 %v4159_v10  ;;  %v4237_v10 = vld [vmem:[%s6127_s1 + $0x280] ss:$8 sps:$4 sm:$0xff]  }
  0x70   :  { %3166 = vmatpush1.bf16.msra.mxu0 %v4162_v11  ;;  %2880 = vmatprep.subr.bf16.mxu1 %v4167_v12  ;;  %v4240_v11 = vld [vmem:[%s6127_s1 + $0x980] ss:$8 sps:$4 sm:$0xff]   ;;  %v4245_v12 = vld [vmem:[%s6127_s1 + $0x294] ss:$8 sps:$4 sm:$0xff]  }
  0x71   :  { %3167 = vmatprep.subr.bf16.mxu0 %v4170_v13  ;;  %v4248_v13 = vld [vmem:[%s6127_s1 + $0x994] ss:$8 sps:$4 sm:$0xff]  }
  0x73   :  { %2881 = vmatpush1.bf16.msra.mxu1 %v4165_v15  ;;  %v4243_v15 = vld [vmem:[%s6127_s1 + $0x290] ss:$8 sps:$4 sm:$0xff]  }
  0x74   :  { %3168 = vmatpush1.bf16.msra.mxu0 %v4168_v16  ;;  %2882 = vmatprep.subr.bf16.mxu1 %v4173_v17  ;;  %v4246_v16 = vld [vmem:[%s6127_s1 + $0x990] ss:$8 sps:$4 sm:$0xff]   ;;  %v4251_v17 = vld [vmem:[%s6127_s1 + $0x2a4] ss:$8 sps:$4 sm:$0xff]  }
  0x75   :  { %3169 = vmatprep.subr.bf16.mxu0 %v4176_v18  ;;  %v4254_v18 = vld [vmem:[%s6127_s1 + $0x9a4] ss:$8 sps:$4 sm:$0xff]  }
  0x77   :  { %2883 = vmatpush1.bf16.msra.mxu1 %v4171_v20  ;;  %v4249_v20 = vld [vmem:[%s6127_s1 + $0x2a0] ss:$8 sps:$4 sm:$0xff]  }
  0x78   :  { %3170 = vmatpush1.bf16.msra.mxu0 %v4174_v21  ;;  %2884 = vmatprep.subr.bf16.mxu1 %v4179_v22  ;;  %v4252_v21 = vld [vmem:[%s6127_s1 + $0x9a0] ss:$8 sps:$4 sm:$0xff]   ;;  %v4257_v22 = vld [vmem:[%s6127_s1 + $0x2b4] ss:$8 sps:$4 sm:$0xff]  }
  0x79   :  { %3171 = vmatprep.subr.bf16.mxu0 %v4182_v23  ;;  %v4260_v23 = vld [vmem:[%s6127_s1 + $0x9b4] ss:$8 sps:$4 sm:$0xff]  }
  0x7b   :  { %2885 = vmatpush1.bf16.msra.mxu1 %v4177_v25  ;;  %v4258_v25 = vld [vmem:[%s6127_s1 + $0x9b0] ss:$8 sps:$4 sm:$0xff]  }
  0x7c   :  { %3172 = vmatpush1.bf16.msra.mxu0 %v4180_v26  ;;  %2886 = vmatprep.subr.bf16.mxu1 %v4185_v27  ;;  %v4263_v26 = vld [vmem:[%s6127_s1 + $0x2c4] ss:$8 sps:$4 sm:$0xff]  }
  0x7d   :  { %3173 = vmatprep.subr.bf16.mxu0 %v4188_v52  ;;  %v4266_v27 = vld [vmem:[%s6127_s1 + $0x9c4] ss:$8 sps:$4 sm:$0xff]   ;;  %v4261_v52 = vld [vmem:[%s6127_s1 + $0x2c0] ss:$8 sps:$4 sm:$0xff]  }
  0x7f   :  { %2887 = vmatpush1.bf16.msra.mxu1 %v4183_v29  ;;  %v4264_v29 = vld [vmem:[%s6127_s1 + $0x9c0] ss:$8 sps:$4 sm:$0xff]  }
  0x80   :  { %3174 = vmatpush1.bf16.msra.mxu0 %v4186_v30  ;;  %2897 = vmatprep.subr.bf16.mxu1 %v4191_v31  ;;  %v4269_v30 = vld [vmem:[%s6127_s1 + $0x2d4] ss:$8 sps:$4 sm:$0xff]  }
  0x81   :  { %3184 = vmatprep.subr.bf16.mxu0 %v4194_v32  ;;  %v4272_v31 = vld [vmem:[%s6127_s1 + $0x9d4] ss:$8 sps:$4 sm:$0xff]   ;;  %v4267_v32 = vld [vmem:[%s6127_s1 + $0x2d0] ss:$8 sps:$4 sm:$0xff]  }
  0x82   :  { %2889 = vmatmul.mubr.bf16.vlgmr.msra.gmra.mrb[0].mxu1 %v503_v34  ;;  %v4275_v34 = vld [vmem:[%s6127_s1 + $0x2e4] ss:$8 sps:$4 sm:$0xff]  }
  0x83   :  { %3176 = vmatmul.mubr.bf16.vlgmr.msra.gmra.mrb[0].mxu0 %v5129_v36  ;;  %2898 = vmatpush1.bf16.msra.mxu1 %v4189_v35  ;;  %v4278_v35 = vld [vmem:[%s6127_s1 + $0x9e4] ss:$8 sps:$4 sm:$0xff]  }
  0x84   :  { %3185 = vmatpush1.bf16.msra.mxu0 %v4192_v37  ;;  %2899 = vmatprep.subr.bf16.mxu1 %v4197_v38  ;;  %v556_v37 = vcombine.high %v4986_v48, %v4986_v48  ;;  %v4273_v38 = vld [vmem:[%s6127_s1 + $0x2e0] ss:$8 sps:$4 sm:$0xff]   ;;  %v4284_v48 = vld [vmem:[%s6127_s1 + $0x9f4] ss:$8 sps:$4 sm:$0xff]  }
  0x85   :  { %3186 = vmatprep.subr.bf16.mxu0 %v4200_v19  ;;  %2929 = vmatprep.mubr.bf16.mxu1 %v5141_v39  ;;  %v4276_v19 = vld [vmem:[%s6127_s1 + $0x9e0] ss:$8 sps:$4 sm:$0xff]  }
  0x86   :  { %3216 = vmatprep.mubr.bf16.mxu0 %v603_v40  ;;  %v4281_v40 = vld [vmem:[%s6127_s1 + $0x2f4] ss:$8 sps:$4 sm:$0xff]  }
  0x87   :  { %2900 = vmatpush1.bf16.msra.mxu1 %v4195_v41  ;;  %v5318_v41 = vrot.slane %v556_v37, %v4820_v51  ;;  %v4354_v37 = vld [vmem:[%s6127_s1 + $0xab0] ss:$8 sps:$4 sm:$0xff]  }
  0x88   :  { %3187 = vmatpush1.bf16.msra.mxu0 %v4198_v42  ;;  %2901 = vmatprep.subr.bf16.mxu1 %v4203_v43  ;;  %v4279_v42 = vld [vmem:[%s6127_s1 + $0x2f0] ss:$8 sps:$4 sm:$0xff]  }
  0x89   :  { %3188 = vmatprep.subr.bf16.mxu0 %v4206_v44  ;;  %v4282_v43 = vld [vmem:[%s6127_s1 + $0x9f0] ss:$8 sps:$4 sm:$0xff]   ;;  %v4287_v44 = vld [vmem:[%s6127_s1 + $0x304] ss:$8 sps:$4 sm:$0xff]  }
  0x8b   :  { %2902 = vmatpush1.bf16.msra.mxu1 %v4201_v45  ;;  %v4290_v45 = vld [vmem:[%s6127_s1 + $0xa04] ss:$8 sps:$4 sm:$0xff]  }
  0x8c   :  { %3189 = vmatpush1.bf16.msra.mxu0 %v4204_v47  ;;  %2903 = vmatprep.subr.bf16.mxu1 %v4209_v49  ;;  %v572_v47 = vcombine.high %v5318_v41, %v5318_v41  ;;  %v4285_v49 = vld [vmem:[%s6127_s1 + $0x300] ss:$8 sps:$4 sm:$0xff]  }
  0x8d   :  { %3190 = vmatprep.subr.bf16.mxu0 %v4212_v50  ;;  %v5339_v50 = vrot.slane %v5106_v28, %v4820_v51  ;;  %v4296_v28 = vld [vmem:[%s6127_s1 + $0xa14] ss:$8 sps:$4 sm:$0xff]  }
  0x8f   :  { %2904 = vmatpush1.bf16.msra.mxu1 %v4207_v53  ;;  %v601_v53 = vcombine.high %v5129_v36, %v5129_v36  ;;  %v5355_v36 = vrot.slane %v572_v47, %v4820_v51  ;;  %v4371_v47 = vld [vmem:[%s6127_s1 + $0x3e4] ss:$8 sps:$4 sm:$0xff]  }
  0x90   :  { %3191 = vmatpush1.bf16.msra.mxu0 %v4210_v54  ;;  %2905 = vmatprep.subr.bf16.mxu1 %v4215_v55  ;;  %v4288_v54 = vld [vmem:[%s6127_s1 + $0xa00] ss:$8 sps:$4 sm:$0xff]   ;;  %v4293_v55 = vld [vmem:[%s6127_s1 + $0x314] ss:$8 sps:$4 sm:$0xff]  }
  0x91   :  { %3192 = vmatprep.subr.bf16.mxu0 %v4218_v56  ;;  %v506_v56 = vcombine.high %v5141_v39, %v5141_v39  ;;  %v4299_v39 = vld [vmem:[%s6127_s1 + $0x324] ss:$8 sps:$4 sm:$0xff]  }
  0x93   :  { %2906 = vmatpush1.bf16.msra.mxu1 %v4213_v57  ;;  %v4291_v57 = vld [vmem:[%s6127_s1 + $0x310] ss:$8 sps:$4 sm:$0xff]  }
  0x94   :  { %3193 = vmatpush1.bf16.msra.mxu0 %v4216_v58  ;;  %2907 = vmatprep.subr.bf16.mxu1 %v4221_v59  ;;  %v4294_v58 = vld [vmem:[%s6127_s1 + $0xa10] ss:$8 sps:$4 sm:$0xff]   ;;  %v4302_v59 = vld [vmem:[%s6127_s1 + $0xa24] ss:$8 sps:$4 sm:$0xff]  }
  0x95   :  { %3194 = vmatprep.subr.bf16.mxu0 %v4224_v60  ;;  %v4297_v60 = vld [vmem:[%s6127_s1 + $0x320] ss:$8 sps:$4 sm:$0xff]  }
  0x97   :  { %2908 = vmatpush1.bf16.msra.mxu1 %v4219_v61  ;;  %v4300_v61 = vld [vmem:[%s6127_s1 + $0xa20] ss:$8 sps:$4 sm:$0xff]  }
  0x98   :  { %3195 = vmatpush1.bf16.msra.mxu0 %v4222_v62  ;;  %2909 = vmatprep.subr.bf16.mxu1 %v4227_v63  ;;  %v4305_v62 = vld [vmem:[%s6127_s1 + $0x334] ss:$8 sps:$4 sm:$0xff]  }
  0x99   :  { %3196 = vmatprep.subr.bf16.mxu0 %v4230_v0  ;;  %v4308_v63 = vld [vmem:[%s6127_s1 + $0xa34] ss:$8 sps:$4 sm:$0xff]   ;;  %v4303_v0 = vld [vmem:[%s6127_s1 + $0x330] ss:$8 sps:$4 sm:$0xff]  }
  0x9b   :  { %2910 = vmatpush1.bf16.msra.mxu1 %v4225_v1  ;;  %v4306_v1 = vld [vmem:[%s6127_s1 + $0xa30] ss:$8 sps:$4 sm:$0xff]  }
  0x9c   :  { %3197 = vmatpush1.bf16.msra.mxu0 %v4228_v2  ;;  %2911 = vmatprep.subr.bf16.mxu1 %v4233_v3  ;;  %v4311_v2 = vld [vmem:[%s6127_s1 + $0x344] ss:$8 sps:$4 sm:$0xff]  }
  0x9d   :  { %3198 = vmatprep.subr.bf16.mxu0 %v4236_v5  ;;  %v4314_v3 = vld [vmem:[%s6127_s1 + $0xa44] ss:$8 sps:$4 sm:$0xff]   ;;  %v4309_v5 = vld [vmem:[%s6127_s1 + $0x340] ss:$8 sps:$4 sm:$0xff]  }
  0x9f   :  { %2912 = vmatpush1.bf16.msra.mxu1 %v4231_v6  ;;  %v4312_v6 = vld [vmem:[%s6127_s1 + $0xa40] ss:$8 sps:$4 sm:$0xff]  }
  0xa0   :  { %3199 = vmatpush1.bf16.msra.mxu0 %v4234_v7  ;;  %2913 = vmatprep.subr.bf16.mxu1 %v4239_v8  ;;  %v4317_v7 = vld [vmem:[%s6127_s1 + $0x354] ss:$8 sps:$4 sm:$0xff]  }
  0xa1   :  { %3200 = vmatprep.subr.bf16.mxu0 %v4242_v9  ;;  %v4320_v8 = vld [vmem:[%s6127_s1 + $0xa54] ss:$8 sps:$4 sm:$0xff]   ;;  %v4315_v9 = vld [vmem:[%s6127_s1 + $0x350] ss:$8 sps:$4 sm:$0xff]  }
  0xa3   :  { %2914 = vmatpush1.bf16.msra.mxu1 %v4237_v10  ;;  %v4318_v10 = vld [vmem:[%s6127_s1 + $0xa50] ss:$8 sps:$4 sm:$0xff]  }
  0xa4   :  { %3201 = vmatpush1.bf16.msra.mxu0 %v4240_v11  ;;  %2915 = vmatprep.subr.bf16.mxu1 %v4245_v12  ;;  %v4323_v11 = vld [vmem:[%s6127_s1 + $0x364] ss:$8 sps:$4 sm:$0xff]  }
  0xa5   :  { %3202 = vmatprep.subr.bf16.mxu0 %v4248_v13  ;;  %v4326_v12 = vld [vmem:[%s6127_s1 + $0xa64] ss:$8 sps:$4 sm:$0xff]   ;;  %v4321_v13 = vld [vmem:[%s6127_s1 + $0x360] ss:$8 sps:$4 sm:$0xff]  }
  0xa7   :  { %2916 = vmatpush1.bf16.msra.mxu1 %v4243_v15  ;;  %v4324_v15 = vld [vmem:[%s6127_s1 + $0xa60] ss:$8 sps:$4 sm:$0xff]  }
  0xa8   :  { %3203 = vmatpush1.bf16.msra.mxu0 %v4246_v16  ;;  %2917 = vmatprep.subr.bf16.mxu1 %v4251_v17  ;;  %v4329_v16 = vld [vmem:[%s6127_s1 + $0x374] ss:$8 sps:$4 sm:$0xff]  }
  0xa9   :  { %3204 = vmatprep.subr.bf16.mxu0 %v4254_v18  ;;  %v4332_v17 = vld [vmem:[%s6127_s1 + $0xa74] ss:$8 sps:$4 sm:$0xff]   ;;  %v4327_v18 = vld [vmem:[%s6127_s1 + $0x370] ss:$8 sps:$4 sm:$0xff]  }
  0xab   :  { %2918 = vmatpush1.bf16.msra.mxu1 %v4249_v20  ;;  %v4330_v20 = vld [vmem:[%s6127_s1 + $0xa70] ss:$8 sps:$4 sm:$0xff]  }
  0xac   :  { %3205 = vmatpush1.bf16.msra.mxu0 %v4252_v21  ;;  %2919 = vmatprep.subr.bf16.mxu1 %v4257_v22  ;;  %v4335_v21 = vld [vmem:[%s6127_s1 + $0x384] ss:$8 sps:$4 sm:$0xff]  }
  0xad   :  { %3206 = vmatprep.subr.bf16.mxu0 %v4260_v23  ;;  %v4338_v22 = vld [vmem:[%s6127_s1 + $0xa84] ss:$8 sps:$4 sm:$0xff]   ;;  %v4333_v23 = vld [vmem:[%s6127_s1 + $0x380] ss:$8 sps:$4 sm:$0xff]  }
  0xaf   :  { %2920 = vmatpush1.bf16.msra.mxu1 %v4255_v24  ;;  %v4336_v24 = vld [vmem:[%s6127_s1 + $0xa80] ss:$8 sps:$4 sm:$0xff]  }
  0xb0   :  { %3207 = vmatpush1.bf16.msra.mxu0 %v4258_v25  ;;  %2921 = vmatprep.subr.bf16.mxu1 %v4263_v26  ;;  %v4341_v25 = vld [vmem:[%s6127_s1 + $0x394] ss:$8 sps:$4 sm:$0xff]  }
  0xb1   :  { %3208 = vmatprep.subr.bf16.mxu0 %v4266_v27  ;;  %v4344_v26 = vld [vmem:[%s6127_s1 + $0xa94] ss:$8 sps:$4 sm:$0xff]   ;;  %v4339_v27 = vld [vmem:[%s6127_s1 + $0x390] ss:$8 sps:$4 sm:$0xff]  }
  0xb3   :  { %2922 = vmatpush1.bf16.msra.mxu1 %v4261_v52  ;;  %v4342_v52 = vld [vmem:[%s6127_s1 + $0xa90] ss:$8 sps:$4 sm:$0xff]  }
  0xb4   :  { %3209 = vmatpush1.bf16.msra.mxu0 %v4264_v29  ;;  %2923 = vmatprep.subr.bf16.mxu1 %v4269_v30  ;;  %v4347_v29 = vld [vmem:[%s6127_s1 + $0x3a4] ss:$8 sps:$4 sm:$0xff]  }
  0xb5   :  { %3210 = vmatprep.subr.bf16.mxu0 %v4272_v31  ;;  %v4350_v30 = vld [vmem:[%s6127_s1 + $0xaa4] ss:$8 sps:$4 sm:$0xff]   ;;  %v4345_v31 = vld [vmem:[%s6127_s1 + $0x3a0] ss:$8 sps:$4 sm:$0xff]  }
  0xb7   :  { %2924 = vmatpush1.bf16.msra.mxu1 %v4267_v32  ;;  %v4348_v32 = vld [vmem:[%s6127_s1 + $0xaa0] ss:$8 sps:$4 sm:$0xff]  }
  0xb8   :  { %3211 = vmatpush1.bf16.msra.mxu0 %v4270_v33  ;;  %2925 = vmatprep.subr.bf16.mxu1 %v4275_v34  ;;  %v4353_v33 = vld [vmem:[%s6127_s1 + $0x3b4] ss:$8 sps:$4 sm:$0xff]  }
  0xb9   :  { %3212 = vmatprep.subr.bf16.mxu0 %v4278_v35  ;;  %v4356_v34 = vld [vmem:[%s6127_s1 + $0xab4] ss:$8 sps:$4 sm:$0xff]   ;;  %v4351_v35 = vld [vmem:[%s6127_s1 + $0x3b0] ss:$8 sps:$4 sm:$0xff]  }
  0xbb   :  { %2926 = vmatpush1.bf16.msra.mxu1 %v4273_v38  ;;  %v4359_v38 = vld [vmem:[%s6127_s1 + $0x3c4] ss:$8 sps:$4 sm:$0xff]  }
  0xbc   :  { %3213 = vmatpush1.bf16.msra.mxu0 %v4276_v19  ;;  %2927 = vmatprep.subr.bf16.mxu1 %v4281_v40  ;;  %v4362_v19 = vld [vmem:[%s6127_s1 + $0xac4] ss:$8 sps:$4 sm:$0xff]   ;;  %v4357_v40 = vld [vmem:[%s6127_s1 + $0x3c0] ss:$8 sps:$4 sm:$0xff]  }
  0xbd   :  { %3214 = vmatprep.subr.bf16.mxu0 %v4284_v48  ;;  %v4360_v48 = vld [vmem:[%s6127_s1 + $0xac0] ss:$8 sps:$4 sm:$0xff]  }
  0xbf   :  { %2928 = vmatpush1.bf16.msra.mxu1 %v4279_v42  ;;  %v4365_v42 = vld [vmem:[%s6127_s1 + $0x3d4] ss:$8 sps:$4 sm:$0xff]  }
  0xc0   :  { %3215 = vmatpush1.bf16.msra.mxu0 %v4282_v43  ;;  %2938 = vmatprep.subr.bf16.mxu1 %v4287_v44  ;;  %v4368_v43 = vld [vmem:[%s6127_s1 + $0xad4] ss:$8 sps:$4 sm:$0xff]   ;;  %v4363_v44 = vld [vmem:[%s6127_s1 + $0x3d0] ss:$8 sps:$4 sm:$0xff]  }
  0xc1   :  { %3225 = vmatprep.subr.bf16.mxu0 %v4290_v45  ;;  %v4366_v45 = vld [vmem:[%s6127_s1 + $0xad0] ss:$8 sps:$4 sm:$0xff]  }
  0xc2   :  { %2930 = vmatmul.mubr.bf16.vlgmr.msra.gmra.mrb[0].mxu1 %v5339_v50 }
  0xc3   :  { %3217 = vmatmul.mubr.bf16.vlgmr.msra.gmra.mrb[0].mxu0 %v601_v53  ;;  %2939 = vmatpush1.bf16.msra.mxu1 %v4285_v49  ;;  %v4374_v49 = vld [vmem:[%s6127_s1 + $0xae4] ss:$8 sps:$4 sm:$0xff]   ;;  %v4369_v53 = vld [vmem:[%s6127_s1 + $0x3e0] ss:$8 sps:$4 sm:$0xff]  }
  0xc4   :  { %3226 = vmatpush1.bf16.msra.mxu0 %v4288_v54  ;;  %2940 = vmatprep.subr.bf16.mxu1 %v4293_v55  ;;  %v4372_v54 = vld [vmem:[%s6127_s1 + $0xae0] ss:$8 sps:$4 sm:$0xff]   ;;  %v4377_v55 = vld [vmem:[%s6127_s1 + $0x3f4] ss:$8 sps:$4 sm:$0xff]  }
  0xc5   :  { %3227 = vmatprep.subr.bf16.mxu0 %v4296_v28  ;;  %2970 = vmatprep.mubr.bf16.mxu1 %v506_v56  ;;  %v4380_v28 = vld [vmem:[%s6127_s1 + $0xaf4] ss:$8 sps:$4 sm:$0xff]   ;;  %v5530_v56 = vld.sshfl [vmem:[%s6128_s0 + $0x8] sm:$0xff pattern:$0x75316420] }
  0xc6   :  { %3257 = vmatprep.mubr.bf16.mxu0 %v5355_v36 }
  0xc7   :  { %2941 = vmatpush1.bf16.msra.mxu1 %v4291_v57  ;;  %v4375_v57 = vld [vmem:[%s6127_s1 + $0x3f0] ss:$8 sps:$4 sm:$0xff]  }
  0xc8   :  { %3228 = vmatpush1.bf16.msra.mxu0 %v4294_v58  ;;  %2942 = vmatprep.subr.bf16.mxu1 %v4299_v39  ;;  %v4378_v58 = vld [vmem:[%s6127_s1 + $0xaf0] ss:$8 sps:$4 sm:$0xff]   ;;  %v4383_v39 = vld [vmem:[%s6127_s1 + $0x404] ss:$8 sps:$4 sm:$0xff]  }
  0xc9   :  { %3229 = vmatprep.subr.bf16.mxu0 %v4302_v59  ;;  %v4387_v59 = vld [vmem:[%s6127_s1 + $0xb04] ss:$8 sps:$4 sm:$0xff]  }
  0xcb   :  { %2943 = vmatpush1.bf16.msra.mxu1 %v4297_v60  ;;  %v522_v60 = vcombine.high %v5530_v56, %v5530_v56 }
  0xcc   :  { %3230 = vmatpush1.bf16.msra.mxu0 %v4300_v61  ;;  %2944 = vmatprep.subr.bf16.mxu1 %v4305_v62  ;;  %v4381_v61 = vld [vmem:[%s6127_s1 + $0x400] ss:$8 sps:$4 sm:$0xff]   ;;  %v504_v62 = vcombine.high %v5339_v50, %v5339_v50  ;;  %v4393_v50 = vld [vmem:[%s6127_s1 + $0xb14] ss:$8 sps:$4 sm:$0xff]  }
  0xcd   :  { %3231 = vmatprep.subr.bf16.mxu0 %v4308_v63  ;;  %v5553_v63 = vrot.slane %v5318_v41, %v4820_v51  ;;  %v604_v41 = vcombine.high %v5355_v36, %v5355_v36  ;;  %v4399_v36 = vld [vmem:[%s6127_s1 + $0xb24] ss:$8 sps:$4 sm:$0xff]  }
  0xcf   :  { %2945 = vmatpush1.bf16.msra.mxu1 %v4303_v0  ;;  %v4385_v0 = vld [vmem:[%s6127_s1 + $0xb00] ss:$8 sps:$4 sm:$0xff]  }
  0xd0   :  { %3232 = vmatpush1.bf16.msra.mxu0 %v4306_v1  ;;  %2946 = vmatprep.subr.bf16.mxu1 %v4311_v2  ;;  %v4390_v1 = vld [vmem:[%s6127_s1 + $0x414] ss:$8 sps:$4 sm:$0xff]   ;;  %v5565_v2 = vrot.slane %v522_v60, %v4820_v51  ;;  %v4468_v60 = vld [vmem:[%s6127_s1 + $0x4e4] ss:$8 sps:$4 sm:$0xff]  }
  0xd1   :  { %3233 = vmatprep.subr.bf16.mxu0 %v4314_v3  ;;  %v4388_v3 = vld [vmem:[%s6127_s1 + $0x410] ss:$8 sps:$4 sm:$0xff]  }
  0xd3   :  { %2947 = vmatpush1.bf16.msra.mxu1 %v4309_v5  ;;  %v4391_v5 = vld [vmem:[%s6127_s1 + $0xb10] ss:$8 sps:$4 sm:$0xff]  }
  0xd4   :  { %3234 = vmatpush1.bf16.msra.mxu0 %v4312_v6  ;;  %2948 = vmatprep.subr.bf16.mxu1 %v4317_v7  ;;  %v4396_v6 = vld [vmem:[%s6127_s1 + $0x424] ss:$8 sps:$4 sm:$0xff]   ;;  %v4394_v7 = vld [vmem:[%s6127_s1 + $0x420] ss:$8 sps:$4 sm:$0xff]  }
  0xd5   :  { %3235 = vmatprep.subr.bf16.mxu0 %v4320_v8  ;;  %v4397_v8 = vld [vmem:[%s6127_s1 + $0xb20] ss:$8 sps:$4 sm:$0xff]  }
  0xd7   :  { %2949 = vmatpush1.bf16.msra.mxu1 %v4315_v9  ;;  %v4402_v9 = vld [vmem:[%s6127_s1 + $0x434] ss:$8 sps:$4 sm:$0xff]  }
  0xd8   :  { %3236 = vmatpush1.bf16.msra.mxu0 %v4318_v10  ;;  %2950 = vmatprep.subr.bf16.mxu1 %v4323_v11  ;;  %v4405_v10 = vld [vmem:[%s6127_s1 + $0xb34] ss:$8 sps:$4 sm:$0xff]   ;;  %v4400_v11 = vld [vmem:[%s6127_s1 + $0x430] ss:$8 sps:$4 sm:$0xff]  }
  0xd9   :  { %3237 = vmatprep.subr.bf16.mxu0 %v4326_v12  ;;  %v4403_v12 = vld [vmem:[%s6127_s1 + $0xb30] ss:$8 sps:$4 sm:$0xff]  }
  0xdb   :  { %2951 = vmatpush1.bf16.msra.mxu1 %v4321_v13  ;;  %v4408_v13 = vld [vmem:[%s6127_s1 + $0x444] ss:$8 sps:$4 sm:$0xff]  }
  0xdc   :  { %3238 = vmatpush1.bf16.msra.mxu0 %v4324_v15  ;;  %2952 = vmatprep.subr.bf16.mxu1 %v4329_v16  ;;  %v4411_v15 = vld [vmem:[%s6127_s1 + $0xb44] ss:$8 sps:$4 sm:$0xff]   ;;  %v4406_v16 = vld [vmem:[%s6127_s1 + $0x440] ss:$8 sps:$4 sm:$0xff]  }
  0xdd   :  { %3239 = vmatprep.subr.bf16.mxu0 %v4332_v17  ;;  %v4409_v17 = vld [vmem:[%s6127_s1 + $0xb40] ss:$8 sps:$4 sm:$0xff]  }
  0xdf   :  { %2953 = vmatpush1.bf16.msra.mxu1 %v4327_v18  ;;  %v4414_v18 = vld [vmem:[%s6127_s1 + $0x454] ss:$8 sps:$4 sm:$0xff]  }
  0xe0   :  { %3240 = vmatpush1.bf16.msra.mxu0 %v4330_v20  ;;  %2954 = vmatprep.subr.bf16.mxu1 %v4335_v21  ;;  %v4417_v20 = vld [vmem:[%s6127_s1 + $0xb54] ss:$8 sps:$4 sm:$0xff]   ;;  %v4412_v21 = vld [vmem:[%s6127_s1 + $0x450] ss:$8 sps:$4 sm:$0xff]  }
  0xe1   :  { %3241 = vmatprep.subr.bf16.mxu0 %v4338_v22  ;;  %v4415_v22 = vld [vmem:[%s6127_s1 + $0xb50] ss:$8 sps:$4 sm:$0xff]  }
  0xe3   :  { %2955 = vmatpush1.bf16.msra.mxu1 %v4333_v23  ;;  %v4420_v23 = vld [vmem:[%s6127_s1 + $0x464] ss:$8 sps:$4 sm:$0xff]  }
  0xe4   :  { %3242 = vmatpush1.bf16.msra.mxu0 %v4336_v24  ;;  %2956 = vmatprep.subr.bf16.mxu1 %v4341_v25  ;;  %v4423_v24 = vld [vmem:[%s6127_s1 + $0xb64] ss:$8 sps:$4 sm:$0xff]   ;;  %v4418_v25 = vld [vmem:[%s6127_s1 + $0x460] ss:$8 sps:$4 sm:$0xff]  }
  0xe5   :  { %3243 = vmatprep.subr.bf16.mxu0 %v4344_v26  ;;  %v4421_v26 = vld [vmem:[%s6127_s1 + $0xb60] ss:$8 sps:$4 sm:$0xff]  }
  0xe7   :  { %2957 = vmatpush1.bf16.msra.mxu1 %v4339_v27  ;;  %v4426_v27 = vld [vmem:[%s6127_s1 + $0x474] ss:$8 sps:$4 sm:$0xff]  }
  0xe8   :  { %3244 = vmatpush1.bf16.msra.mxu0 %v4342_v52  ;;  %2958 = vmatprep.subr.bf16.mxu1 %v4347_v29  ;;  %v4429_v52 = vld [vmem:[%s6127_s1 + $0xb74] ss:$8 sps:$4 sm:$0xff]   ;;  %v4424_v29 = vld [vmem:[%s6127_s1 + $0x470] ss:$8 sps:$4 sm:$0xff]  }
  0xe9   :  { %3245 = vmatprep.subr.bf16.mxu0 %v4350_v30  ;;  %v4427_v30 = vld [vmem:[%s6127_s1 + $0xb70] ss:$8 sps:$4 sm:$0xff]  }
  0xeb   :  { %2959 = vmatpush1.bf16.msra.mxu1 %v4345_v31  ;;  %v4432_v31 = vld [vmem:[%s6127_s1 + $0x484] ss:$8 sps:$4 sm:$0xff]  }
  0xec   :  { %3246 = vmatpush1.bf16.msra.mxu0 %v4348_v32  ;;  %2960 = vmatprep.subr.bf16.mxu1 %v4353_v33  ;;  %v4435_v32 = vld [vmem:[%s6127_s1 + $0xb84] ss:$8 sps:$4 sm:$0xff]   ;;  %v4430_v33 = vld [vmem:[%s6127_s1 + $0x480] ss:$8 sps:$4 sm:$0xff]  }
  0xed   :  { %3247 = vmatprep.subr.bf16.mxu0 %v4356_v34  ;;  %v4433_v34 = vld [vmem:[%s6127_s1 + $0xb80] ss:$8 sps:$4 sm:$0xff]  }
  0xef   :  { %2961 = vmatpush1.bf16.msra.mxu1 %v4351_v35  ;;  %v4438_v35 = vld [vmem:[%s6127_s1 + $0x494] ss:$8 sps:$4 sm:$0xff]  }
  0xf0   :  { %3248 = vmatpush1.bf16.msra.mxu0 %v4354_v37  ;;  %2962 = vmatprep.subr.bf16.mxu1 %v4359_v38  ;;  %v4441_v37 = vld [vmem:[%s6127_s1 + $0xb94] ss:$8 sps:$4 sm:$0xff]   ;;  %v4436_v38 = vld [vmem:[%s6127_s1 + $0x490] ss:$8 sps:$4 sm:$0xff]  }
  0xf1   :  { %3249 = vmatprep.subr.bf16.mxu0 %v4362_v19  ;;  %v4439_v19 = vld [vmem:[%s6127_s1 + $0xb90] ss:$8 sps:$4 sm:$0xff]  }
  0xf3   :  { %2963 = vmatpush1.bf16.msra.mxu1 %v4357_v40  ;;  %v4444_v40 = vld [vmem:[%s6127_s1 + $0x4a4] ss:$8 sps:$4 sm:$0xff]  }
  0xf4   :  { %3250 = vmatpush1.bf16.msra.mxu0 %v4360_v48  ;;  %2964 = vmatprep.subr.bf16.mxu1 %v4365_v42  ;;  %v4447_v48 = vld [vmem:[%s6127_s1 + $0xba4] ss:$8 sps:$4 sm:$0xff]   ;;  %v4442_v42 = vld [vmem:[%s6127_s1 + $0x4a0] ss:$8 sps:$4 sm:$0xff]  }
  0xf5   :  { %3251 = vmatprep.subr.bf16.mxu0 %v4368_v43  ;;  %v4445_v43 = vld [vmem:[%s6127_s1 + $0xba0] ss:$8 sps:$4 sm:$0xff]  }
  0xf7   :  { %2965 = vmatpush1.bf16.msra.mxu1 %v4363_v44  ;;  %v4450_v44 = vld [vmem:[%s6127_s1 + $0x4b4] ss:$8 sps:$4 sm:$0xff]  }
  0xf8   :  { %3252 = vmatpush1.bf16.msra.mxu0 %v4366_v45  ;;  %2966 = vmatprep.subr.bf16.mxu1 %v4371_v47  ;;  %v4453_v45 = vld [vmem:[%s6127_s1 + $0xbb4] ss:$8 sps:$4 sm:$0xff]   ;;  %v4448_v47 = vld [vmem:[%s6127_s1 + $0x4b0] ss:$8 sps:$4 sm:$0xff]  }
  0xf9   :  { %3253 = vmatprep.subr.bf16.mxu0 %v4374_v49  ;;  %v4451_v49 = vld [vmem:[%s6127_s1 + $0xbb0] ss:$8 sps:$4 sm:$0xff]  }
  0xfb   :  { %2967 = vmatpush1.bf16.msra.mxu1 %v4369_v53  ;;  %v4456_v53 = vld [vmem:[%s6127_s1 + $0x4c4] ss:$8 sps:$4 sm:$0xff]  }
  0xfc   :  { %3254 = vmatpush1.bf16.msra.mxu0 %v4372_v54  ;;  %2968 = vmatprep.subr.bf16.mxu1 %v4377_v55  ;;  %v4459_v54 = vld [vmem:[%s6127_s1 + $0xbc4] ss:$8 sps:$4 sm:$0xff]   ;;  %v4454_v55 = vld [vmem:[%s6127_s1 + $0x4c0] ss:$8 sps:$4 sm:$0xff]  }
  0xfd   :  { %3255 = vmatprep.subr.bf16.mxu0 %v4380_v28  ;;  %v4457_v28 = vld [vmem:[%s6127_s1 + $0xbc0] ss:$8 sps:$4 sm:$0xff]  }
  0xff   :  { %2969 = vmatpush1.bf16.msra.mxu1 %v4375_v57  ;;  %v4462_v57 = vld [vmem:[%s6127_s1 + $0x4d4] ss:$8 sps:$4 sm:$0xff]  }
 0x100   :  { %3256 = vmatpush1.bf16.msra.mxu0 %v4378_v58  ;;  %2979 = vmatprep.subr.bf16.mxu1 %v4383_v39  ;;  %v4465_v58 = vld [vmem:[%s6127_s1 + $0xbd4] ss:$8 sps:$4 sm:$0xff]   ;;  %v4460_v39 = vld [vmem:[%s6127_s1 + $0x4d0] ss:$8 sps:$4 sm:$0xff]  }
 0x101   :  { %3266 = vmatprep.subr.bf16.mxu0 %v4387_v59  ;;  %v4463_v59 = vld [vmem:[%s6127_s1 + $0xbd0] ss:$8 sps:$4 sm:$0xff]  }
 0x102   :  { %2971 = vmatmul.mubr.bf16.vlgmr.msra.gmra.mrb[0].mxu1 %v504_v62  ;;  %v4466_v62 = vld [vmem:[%s6127_s1 + $0x4e0] ss:$8 sps:$4 sm:$0xff]  }
 0x103   :  { %3258 = vmatmul.mubr.bf16.vlgmr.msra.gmra.mrb[0].mxu0 %v5553_v63  ;;  %2980 = vmatpush1.bf16.msra.mxu1 %v4381_v61  ;;  %v4471_v61 = vld [vmem:[%s6127_s1 + $0xbe4] ss:$8 sps:$4 sm:$0xff]  }
 0x104   :  { %3267 = vmatpush1.bf16.msra.mxu0 %v4385_v0  ;;  %2981 = vmatprep.subr.bf16.mxu1 %v4390_v1  ;;  %v4469_v0 = vld [vmem:[%s6127_s1 + $0xbe0] ss:$8 sps:$4 sm:$0xff]   ;;  %v4474_v1 = vld [vmem:[%s6127_s1 + $0x4f4] ss:$8 sps:$4 sm:$0xff]  }
 0x105   :  { %3268 = vmatprep.subr.bf16.mxu0 %v4393_v50  ;;  %3011 = vmatprep.mubr.bf16.mxu1 %v5565_v2  ;;  %v4477_v50 = vld [vmem:[%s6127_s1 + $0xbf4] ss:$8 sps:$4 sm:$0xff]  }
 0x106   :  { %3298 = vmatprep.mubr.bf16.mxu0 %v604_v41  ;;  %v5742_v41 = vld.sshfl [vmem:[%s6128_s0 + $0x18] sm:$0x13 pattern:$0x75316420] }
 0x107   :  { %2982 = vmatpush1.bf16.msra.mxu1 %v4388_v3  ;;  %v4472_v3 = vld [vmem:[%s6127_s1 + $0x4f0] ss:$8 sps:$4 sm:$0xff]  }
 0x108   :  { %3269 = vmatpush1.bf16.msra.mxu0 %v4391_v5  ;;  %2983 = vmatprep.subr.bf16.mxu1 %v4396_v6  ;;  %v4475_v5 = vld [vmem:[%s6127_s1 + $0xbf0] ss:$8 sps:$4 sm:$0xff]   ;;  %v4480_v6 = vld [vmem:[%s6127_s1 + $0x504] ss:$8 sps:$4 sm:$0xff]  }
 0x109   :  { %3270 = vmatprep.subr.bf16.mxu0 %v4399_v36  ;;  %v4483_v36 = vld [vmem:[%s6127_s1 + $0xc04] ss:$8 sps:$4 sm:$0xff]  }
 0x10b   :  { %2984 = vmatpush1.bf16.msra.mxu1 %v4394_v7  ;;  %v612_v7 = vcombine.high %v5742_v41, %v5742_v41 }
 0x10c   :  { %3271 = vmatpush1.bf16.msra.mxu0 %v4397_v8  ;;  %2985 = vmatprep.subr.bf16.mxu1 %v4402_v9  ;;  %v5760_v8 = vrot.slane %v5530_v56, %v4820_v51  ;;  %v602_v9 = vcombine.high %v5553_v63, %v5553_v63  ;;  %v4486_v56 = vld [vmem:[%s6127_s1 + $0x514] ss:$8 sps:$4 sm:$0xff]  }
 0x10d   :  { %3272 = vmatprep.subr.bf16.mxu0 %v4405_v10  ;;  %v4478_v10 = vld [vmem:[%s6127_s1 + $0x500] ss:$8 sps:$4 sm:$0xff]   ;;  %v4489_v63 = vld [vmem:[%s6127_s1 + $0xc14] ss:$8 sps:$4 sm:$0xff]  }
 0x10f   :  { %2986 = vmatpush1.bf16.msra.mxu1 %v4400_v11  ;;  %v4481_v11 = vld [vmem:[%s6127_s1 + $0xc00] ss:$8 sps:$4 sm:$0xff]  }
 0x110   :  { %3273 = vmatpush1.bf16.msra.mxu0 %v4403_v12  ;;  %2987 = vmatprep.subr.bf16.mxu1 %v4408_v13  ;;  %v554_v12 = vcombine.high %v5565_v2, %v5565_v2  ;;  %v626_v13 = vrot.slane %v612_v7, %v4820_v51  ;;  %v4492_v2 = vld [vmem:[%s6127_s1 + $0x524] ss:$8 sps:$4 sm:$0xff]  }
 0x111   :  { %3274 = vmatprep.subr.bf16.mxu0 %v4411_v15  ;;  %v4484_v15 = vld [vmem:[%s6127_s1 + $0x510] ss:$8 sps:$4 sm:$0xff]   ;;  %v4564_v7 = vld [vmem:[%s6127_s1 + $0x5e4] ss:$8 sps:$4 sm:$0xff]  }
 0x113   :  { %2988 = vmatpush1.bf16.msra.mxu1 %v4406_v16  ;;  %v4487_v16 = vld [vmem:[%s6127_s1 + $0xc10] ss:$8 sps:$4 sm:$0xff]  }
 0x114   :  { %3275 = vmatpush1.bf16.msra.mxu0 %v4409_v17  ;;  %2989 = vmatprep.subr.bf16.mxu1 %v4414_v18  ;;  %v4495_v17 = vld [vmem:[%s6127_s1 + $0xc24] ss:$8 sps:$4 sm:$0xff]   ;;  %v4490_v18 = vld [vmem:[%s6127_s1 + $0x520] ss:$8 sps:$4 sm:$0xff]  }
 0x115   :  { %3276 = vmatprep.subr.bf16.mxu0 %v4417_v20  ;;  %v4493_v20 = vld [vmem:[%s6127_s1 + $0xc20] ss:$8 sps:$4 sm:$0xff]  }
 0x117   :  { %2990 = vmatpush1.bf16.msra.mxu1 %v4412_v21  ;;  %v4498_v21 = vld [vmem:[%s6127_s1 + $0x534] ss:$8 sps:$4 sm:$0xff]  }
 0x118   :  { %3277 = vmatpush1.bf16.msra.mxu0 %v4415_v22  ;;  %2991 = vmatprep.subr.bf16.mxu1 %v4420_v23  ;;  %v4501_v22 = vld [vmem:[%s6127_s1 + $0xc34] ss:$8 sps:$4 sm:$0xff]   ;;  %v4496_v23 = vld [vmem:[%s6127_s1 + $0x530] ss:$8 sps:$4 sm:$0xff]  }
 0x119   :  { %3278 = vmatprep.subr.bf16.mxu0 %v4423_v24  ;;  %v4499_v24 = vld [vmem:[%s6127_s1 + $0xc30] ss:$8 sps:$4 sm:$0xff]  }
 0x11b   :  { %2992 = vmatpush1.bf16.msra.mxu1 %v4418_v25  ;;  %v4504_v25 = vld [vmem:[%s6127_s1 + $0x544] ss:$8 sps:$4 sm:$0xff]  }
 0x11c   :  { %3279 = vmatpush1.bf16.msra.mxu0 %v4421_v26  ;;  %2993 = vmatprep.subr.bf16.mxu1 %v4426_v27  ;;  %v4507_v26 = vld [vmem:[%s6127_s1 + $0xc44] ss:$8 sps:$4 sm:$0xff]   ;;  %v4502_v27 = vld [vmem:[%s6127_s1 + $0x540] ss:$8 sps:$4 sm:$0xff]  }
 0x11d   :  { %3280 = vmatprep.subr.bf16.mxu0 %v4429_v52  ;;  %v4505_v52 = vld [vmem:[%s6127_s1 + $0xc40] ss:$8 sps:$4 sm:$0xff]  }
 0x11f   :  { %2994 = vmatpush1.bf16.msra.mxu1 %v4424_v29  ;;  %v4510_v29 = vld [vmem:[%s6127_s1 + $0x554] ss:$8 sps:$4 sm:$0xff]  }
 0x120   :  { %3281 = vmatpush1.bf16.msra.mxu0 %v4427_v30  ;;  %2995 = vmatprep.subr.bf16.mxu1 %v4432_v31  ;;  %v4513_v30 = vld [vmem:[%s6127_s1 + $0xc54] ss:$8 sps:$4 sm:$0xff]   ;;  %v4508_v31 = vld [vmem:[%s6127_s1 + $0x550] ss:$8 sps:$4 sm:$0xff]  }
 0x121   :  { %3282 = vmatprep.subr.bf16.mxu0 %v4435_v32  ;;  %v4511_v32 = vld [vmem:[%s6127_s1 + $0xc50] ss:$8 sps:$4 sm:$0xff]  }
 0x123   :  { %2996 = vmatpush1.bf16.msra.mxu1 %v4430_v33  ;;  %v4516_v33 = vld [vmem:[%s6127_s1 + $0x564] ss:$8 sps:$4 sm:$0xff]  }
 0x124   :  { %3283 = vmatpush1.bf16.msra.mxu0 %v4433_v34  ;;  %2997 = vmatprep.subr.bf16.mxu1 %v4438_v35  ;;  %v4519_v34 = vld [vmem:[%s6127_s1 + $0xc64] ss:$8 sps:$4 sm:$0xff]   ;;  %v4514_v35 = vld [vmem:[%s6127_s1 + $0x560] ss:$8 sps:$4 sm:$0xff]  }
 0x125   :  { %3284 = vmatprep.subr.bf16.mxu0 %v4441_v37  ;;  %v4517_v37 = vld [vmem:[%s6127_s1 + $0xc60] ss:$8 sps:$4 sm:$0xff]  }
 0x127   :  { %2998 = vmatpush1.bf16.msra.mxu1 %v4436_v38  ;;  %v4522_v38 = vld [vmem:[%s6127_s1 + $0x574] ss:$8 sps:$4 sm:$0xff]  }
 0x128   :  { %3285 = vmatpush1.bf16.msra.mxu0 %v4439_v19  ;;  %2999 = vmatprep.subr.bf16.mxu1 %v4444_v40  ;;  %v4525_v19 = vld [vmem:[%s6127_s1 + $0xc74] ss:$8 sps:$4 sm:$0xff]   ;;  %v4520_v40 = vld [vmem:[%s6127_s1 + $0x570] ss:$8 sps:$4 sm:$0xff]  }
 0x129   :  { %3286 = vmatprep.subr.bf16.mxu0 %v4447_v48  ;;  %v4523_v48 = vld [vmem:[%s6127_s1 + $0xc70] ss:$8 sps:$4 sm:$0xff]  }
 0x12b   :  { %3000 = vmatpush1.bf16.msra.mxu1 %v4442_v42  ;;  %v4528_v42 = vld [vmem:[%s6127_s1 + $0x584] ss:$8 sps:$4 sm:$0xff]  }
 0x12c   :  { %3287 = vmatpush1.bf16.msra.mxu0 %v4445_v43  ;;  %3001 = vmatprep.subr.bf16.mxu1 %v4450_v44  ;;  %v4531_v43 = vld [vmem:[%s6127_s1 + $0xc84] ss:$8 sps:$4 sm:$0xff]   ;;  %v4526_v44 = vld [vmem:[%s6127_s1 + $0x580] ss:$8 sps:$4 sm:$0xff]  }
 0x12d   :  { %3288 = vmatprep.subr.bf16.mxu0 %v4453_v45  ;;  %v4529_v45 = vld [vmem:[%s6127_s1 + $0xc80] ss:$8 sps:$4 sm:$0xff]  }
 0x12f   :  { %3002 = vmatpush1.bf16.msra.mxu1 %v4448_v47  ;;  %v4534_v47 = vld [vmem:[%s6127_s1 + $0x594] ss:$8 sps:$4 sm:$0xff]  }
 0x130   :  { %3289 = vmatpush1.bf16.msra.mxu0 %v4451_v49  ;;  %3003 = vmatprep.subr.bf16.mxu1 %v4456_v53  ;;  %v4537_v49 = vld [vmem:[%s6127_s1 + $0xc94] ss:$8 sps:$4 sm:$0xff]   ;;  %v4532_v53 = vld [vmem:[%s6127_s1 + $0x590] ss:$8 sps:$4 sm:$0xff]  }
 0x131   :  { %3290 = vmatprep.subr.bf16.mxu0 %v4459_v54  ;;  %v4535_v54 = vld [vmem:[%s6127_s1 + $0xc90] ss:$8 sps:$4 sm:$0xff]  }
 0x133   :  { %3004 = vmatpush1.bf16.msra.mxu1 %v4454_v55  ;;  %v4540_v55 = vld [vmem:[%s6127_s1 + $0x5a4] ss:$8 sps:$4 sm:$0xff]  }
 0x134   :  { %3291 = vmatpush1.bf16.msra.mxu0 %v4457_v28  ;;  %3005 = vmatprep.subr.bf16.mxu1 %v4462_v57  ;;  %v4543_v28 = vld [vmem:[%s6127_s1 + $0xca4] ss:$8 sps:$4 sm:$0xff]   ;;  %v4538_v57 = vld [vmem:[%s6127_s1 + $0x5a0] ss:$8 sps:$4 sm:$0xff]  }
 0x135   :  { %3292 = vmatprep.subr.bf16.mxu0 %v4465_v58  ;;  %v4541_v58 = vld [vmem:[%s6127_s1 + $0xca0] ss:$8 sps:$4 sm:$0xff]  }
 0x137   :  { %3006 = vmatpush1.bf16.msra.mxu1 %v4460_v39  ;;  %v4546_v39 = vld [vmem:[%s6127_s1 + $0x5b4] ss:$8 sps:$4 sm:$0xff]  }
 0x138   :  { %3293 = vmatpush1.bf16.msra.mxu0 %v4463_v59  ;;  %3007 = vmatprep.subr.bf16.mxu1 %v4468_v60  ;;  %v4549_v59 = vld [vmem:[%s6127_s1 + $0xcb4] ss:$8 sps:$4 sm:$0xff]   ;;  %v4544_v60 = vld [vmem:[%s6127_s1 + $0x5b0] ss:$8 sps:$4 sm:$0xff]  }
 0x139   :  { %3294 = vmatprep.subr.bf16.mxu0 %v4471_v61  ;;  %v4547_v61 = vld [vmem:[%s6127_s1 + $0xcb0] ss:$8 sps:$4 sm:$0xff]  }
 0x13b   :  { %3008 = vmatpush1.bf16.msra.mxu1 %v4466_v62  ;;  %v4552_v62 = vld [vmem:[%s6127_s1 + $0x5c4] ss:$8 sps:$4 sm:$0xff]  }
 0x13c   :  { %3295 = vmatpush1.bf16.msra.mxu0 %v4469_v0  ;;  %3009 = vmatprep.subr.bf16.mxu1 %v4474_v1  ;;  %v4555_v0 = vld [vmem:[%s6127_s1 + $0xcc4] ss:$8 sps:$4 sm:$0xff]   ;;  %v4550_v1 = vld [vmem:[%s6127_s1 + $0x5c0] ss:$8 sps:$4 sm:$0xff]  }
 0x13d   :  { %3296 = vmatprep.subr.bf16.mxu0 %v4477_v50  ;;  %v4553_v50 = vld [vmem:[%s6127_s1 + $0xcc0] ss:$8 sps:$4 sm:$0xff]  }
 0x13f   :  { %3010 = vmatpush1.bf16.msra.mxu1 %v4472_v3  ;;  %v4558_v3 = vld [vmem:[%s6127_s1 + $0x5d4] ss:$8 sps:$4 sm:$0xff]  }
 0x140   :  { %3297 = vmatpush1.bf16.msra.mxu0 %v4475_v5  ;;  %3020 = vmatprep.subr.bf16.mxu1 %v4480_v6  ;;  %v4561_v5 = vld [vmem:[%s6127_s1 + $0xcd4] ss:$8 sps:$4 sm:$0xff]   ;;  %v4556_v6 = vld [vmem:[%s6127_s1 + $0x5d0] ss:$8 sps:$4 sm:$0xff]  }
 0x141   :  { %3307 = vmatprep.subr.bf16.mxu0 %v4483_v36  ;;  %v4559_v36 = vld [vmem:[%s6127_s1 + $0xcd0] ss:$8 sps:$4 sm:$0xff]  }
 0x142   :  { %3012 = vmatmul.mubr.bf16.vlgmr.msra.gmra.mrb[0].mxu1 %v5760_v8 }
 0x143   :  { %3299 = vmatmul.mubr.bf16.vlgmr.msra.gmra.mrb[0].mxu0 %v602_v9  ;;  %3021 = vmatpush1.bf16.msra.mxu1 %v4478_v10  ;;  %v4567_v9 = vld [vmem:[%s6127_s1 + $0xce4] ss:$8 sps:$4 sm:$0xff]   ;;  %v4562_v10 = vld [vmem:[%s6127_s1 + $0x5e0] ss:$8 sps:$4 sm:$0xff]  }
 0x144   :  { %3308 = vmatpush1.bf16.msra.mxu0 %v4481_v11  ;;  %3022 = vmatprep.subr.bf16.mxu1 %v4486_v56  ;;  %v4565_v11 = vld [vmem:[%s6127_s1 + $0xce0] ss:$8 sps:$4 sm:$0xff]   ;;  %v4570_v56 = vld [vmem:[%s6127_s1 + $0x5f4] ss:$8 sps:$4 sm:$0xff]  }
 0x145   :  { %3309 = vmatprep.subr.bf16.mxu0 %v4489_v63  ;;  %3052 = vmatprep.mubr.bf16.mxu1 %v554_v12  ;;  %v4573_v63 = vld [vmem:[%s6127_s1 + $0xcf4] ss:$8 sps:$4 sm:$0xff]   ;;  %v4568_v12 = vld [vmem:[%s6127_s1 + $0x5f0] ss:$8 sps:$4 sm:$0xff]  }
 0x146   :  { %3339 = vmatprep.mubr.bf16.mxu0 %v626_v13  ;;  %v4571_v13 = vld [vmem:[%s6127_s1 + $0xcf0] ss:$8 sps:$4 sm:$0xff]  }
 0x147   :  { %3023 = vmatpush1.bf16.msra.mxu1 %v4484_v15  ;;  %v4576_v15 = vld [vmem:[%s6127_s1 + $0x604] ss:$8 sps:$4 sm:$0xff]  }
 0x148   :  { %3310 = vmatpush1.bf16.msra.mxu0 %v4487_v16  ;;  %3024 = vmatprep.subr.bf16.mxu1 %v4492_v2  ;;  %v4579_v16 = vld [vmem:[%s6127_s1 + $0xd04] ss:$8 sps:$4 sm:$0xff]   ;;  %v552_v2 = vcombine.high %v5760_v8, %v5760_v8  ;;  %v4582_v8 = vld [vmem:[%s6127_s1 + $0x614] ss:$8 sps:$4 sm:$0xff]  }
 0x149   :  { %3311 = vmatprep.subr.bf16.mxu0 %v4495_v17  ;;  %v5964_v17 = vrot.slane %v5742_v41, %v4820_v51  ;;  %v4585_v41 = vld [vmem:[%s6127_s1 + $0xd14] ss:$8 sps:$4 sm:$0xff]  }
 0x14b   :  { %3025 = vmatpush1.bf16.msra.mxu1 %v4490_v18  ;;  %v4574_v18 = vld [vmem:[%s6127_s1 + $0x600] ss:$8 sps:$4 sm:$0xff]  }
 0x14c   :  { %3312 = vmatpush1.bf16.msra.mxu0 %v4493_v20  ;;  %3026 = vmatprep.subr.bf16.mxu1 %v4498_v21  ;;  %v4577_v20 = vld [vmem:[%s6127_s1 + $0xd00] ss:$8 sps:$4 sm:$0xff]   ;;  %v4580_v21 = vld [vmem:[%s6127_s1 + $0x610] ss:$8 sps:$4 sm:$0xff]  }
 0x14d   :  { %3313 = vmatprep.subr.bf16.mxu0 %v4501_v22  ;;  %v4583_v22 = vld [vmem:[%s6127_s1 + $0xd10] ss:$8 sps:$4 sm:$0xff]  }
 0x14f   :  { %3027 = vmatpush1.bf16.msra.mxu1 %v4496_v23  ;;  %v4588_v23 = vld [vmem:[%s6127_s1 + $0x624] ss:$8 sps:$4 sm:$0xff]  }
 0x150   :  { %3314 = vmatpush1.bf16.msra.mxu0 %v4499_v24  ;;  %3028 = vmatprep.subr.bf16.mxu1 %v4504_v25  ;;  %v4591_v24 = vld [vmem:[%s6127_s1 + $0xd24] ss:$8 sps:$4 sm:$0xff]   ;;  %v4653_v25 = vmov 0  }
 0x151   :  { %3315 = vmatprep.subr.bf16.mxu0 %v4507_v26  ;;  %v4586_v26 = vld [vmem:[%s6127_s1 + $0x620] ss:$8 sps:$4 sm:$0xff]  }
 0x153   :  { %3029 = vmatpush1.bf16.msra.mxu1 %v4502_v27  ;;  %v4589_v27 = vld [vmem:[%s6127_s1 + $0xd20] ss:$8 sps:$4 sm:$0xff]  }
 0x154   :  { %3316 = vmatpush1.bf16.msra.mxu0 %v4505_v52  ;;  %3030 = vmatprep.subr.bf16.mxu1 %v4510_v29  ;;  %v4594_v52 = vld [vmem:[%s6127_s1 + $0x634] ss:$8 sps:$4 sm:$0xff]   ;;  %v4592_v29 = vld [vmem:[%s6127_s1 + $0x630] ss:$8 sps:$4 sm:$0xff]  }
 0x155   :  { %3317 = vmatprep.subr.bf16.mxu0 %v4513_v30  ;;  %v4595_v30 = vld [vmem:[%s6127_s1 + $0xd30] ss:$8 sps:$4 sm:$0xff]  }
 0x157   :  { %3031 = vmatpush1.bf16.msra.mxu1 %v4508_v31  ;;  %v4600_v31 = vld [vmem:[%s6127_s1 + $0x644] ss:$8 sps:$4 sm:$0xff]  }
 0x158   :  { %3318 = vmatpush1.bf16.msra.mxu0 %v4511_v32  ;;  %3032 = vmatprep.subr.bf16.mxu1 %v4516_v33  ;;  %v4603_v32 = vld [vmem:[%s6127_s1 + $0xd44] ss:$8 sps:$4 sm:$0xff]   ;;  %v4598_v33 = vld [vmem:[%s6127_s1 + $0x640] ss:$8 sps:$4 sm:$0xff]  }
 0x159   :  { %3319 = vmatprep.subr.bf16.mxu0 %v4519_v34  ;;  %v4601_v34 = vld [vmem:[%s6127_s1 + $0xd40] ss:$8 sps:$4 sm:$0xff]  }
 0x15b   :  { %3033 = vmatpush1.bf16.msra.mxu1 %v4514_v35  ;;  %v4606_v35 = vld [vmem:[%s6127_s1 + $0x654] ss:$8 sps:$4 sm:$0xff]  }
 0x15c   :  { %3320 = vmatpush1.bf16.msra.mxu0 %v4517_v37  ;;  %3034 = vmatprep.subr.bf16.mxu1 %v4522_v38  ;;  %v4609_v37 = vld [vmem:[%s6127_s1 + $0xd54] ss:$8 sps:$4 sm:$0xff]   ;;  %v4604_v38 = vld [vmem:[%s6127_s1 + $0x650] ss:$8 sps:$4 sm:$0xff]  }
 0x15d   :  { %3321 = vmatprep.subr.bf16.mxu0 %v4525_v19  ;;  %v4607_v19 = vld [vmem:[%s6127_s1 + $0xd50] ss:$8 sps:$4 sm:$0xff]  }
 0x15f   :  { %3035 = vmatpush1.bf16.msra.mxu1 %v4520_v40  ;;  %v4612_v40 = vld [vmem:[%s6127_s1 + $0x664] ss:$8 sps:$4 sm:$0xff]  }
 0x160   :  { %3322 = vmatpush1.bf16.msra.mxu0 %v4523_v48  ;;  %3036 = vmatprep.subr.bf16.mxu1 %v4528_v42  ;;  %v4615_v48 = vld [vmem:[%s6127_s1 + $0xd64] ss:$8 sps:$4 sm:$0xff]   ;;  %v4610_v42 = vld [vmem:[%s6127_s1 + $0x660] ss:$8 sps:$4 sm:$0xff]  }
 0x161   :  { %3323 = vmatprep.subr.bf16.mxu0 %v4531_v43  ;;  %v4613_v43 = vld [vmem:[%s6127_s1 + $0xd60] ss:$8 sps:$4 sm:$0xff]  }
 0x163   :  { %3037 = vmatpush1.bf16.msra.mxu1 %v4526_v44  ;;  %v4618_v44 = vld [vmem:[%s6127_s1 + $0x674] ss:$8 sps:$4 sm:$0xff]  }
 0x164   :  { %3324 = vmatpush1.bf16.msra.mxu0 %v4529_v45  ;;  %3038 = vmatprep.subr.bf16.mxu1 %v4534_v47  ;;  %v4621_v45 = vld [vmem:[%s6127_s1 + $0xd74] ss:$8 sps:$4 sm:$0xff]   ;;  %v4616_v47 = vld [vmem:[%s6127_s1 + $0x670] ss:$8 sps:$4 sm:$0xff]  }
 0x165   :  { %3325 = vmatprep.subr.bf16.mxu0 %v4537_v49  ;;  %v4619_v49 = vld [vmem:[%s6127_s1 + $0xd70] ss:$8 sps:$4 sm:$0xff]  }
 0x167   :  { %3039 = vmatpush1.bf16.msra.mxu1 %v4532_v53  ;;  %v4624_v53 = vld [vmem:[%s6127_s1 + $0x684] ss:$8 sps:$4 sm:$0xff]  }
 0x168   :  { %3326 = vmatpush1.bf16.msra.mxu0 %v4535_v54  ;;  %3040 = vmatprep.subr.bf16.mxu1 %v4540_v55  ;;  %v627_v54 = vcombine.high %v5964_v17, %v5964_v17  ;;  %v4622_v55 = vld [vmem:[%s6127_s1 + $0x680] ss:$8 sps:$4 sm:$0xff]  }
 0x169   :  { %3327 = vmatprep.subr.bf16.mxu0 %v4543_v28  ;;  %v4627_v28 = vld [vmem:[%s6127_s1 + $0x694] ss:$8 sps:$4 sm:$0xff]  }
 0x16b   :  { %3041 = vmatpush1.bf16.msra.mxu1 %v4538_v57  ;;  %v4625_v57 = vld [vmem:[%s6127_s1 + $0x690] ss:$8 sps:$4 sm:$0xff]  }
 0x16c   :  { %3328 = vmatpush1.bf16.msra.mxu0 %v4541_v58  ;;  %3042 = vmatprep.subr.bf16.mxu1 %v4546_v39  ;;  %v4630_v58 = vld [vmem:[%s6127_s1 + $0x6a4] ss:$8 sps:$4 sm:$0xff]   ;;  %v4628_v39 = vld [vmem:[%s6127_s1 + $0x6a0] ss:$8 sps:$4 sm:$0xff]  }
 0x16d   :  { %3329 = vmatprep.subr.bf16.mxu0 %v4549_v59  ;;  %v4633_v59 = vld [vmem:[%s6127_s1 + $0x6b4] ss:$8 sps:$4 sm:$0xff]  }
 0x16f   :  { %3043 = vmatpush1.bf16.msra.mxu1 %v4544_v60  ;;  %v4631_v60 = vld [vmem:[%s6127_s1 + $0x6b0] ss:$8 sps:$4 sm:$0xff]  }
 0x170   :  { %3330 = vmatpush1.bf16.msra.mxu0 %v4547_v61  ;;  %3044 = vmatprep.subr.bf16.mxu1 %v4552_v62  ;;  %v4636_v61 = vld [vmem:[%s6127_s1 + $0x6c4] ss:$8 sps:$4 sm:$0xff]   ;;  %v4634_v62 = vld [vmem:[%s6127_s1 + $0x6c0] ss:$8 sps:$4 sm:$0xff]  }
 0x171   :  { %3331 = vmatprep.subr.bf16.mxu0 %v4555_v0  ;;  %v4639_v0 = vld [vmem:[%s6127_s1 + $0x6d4] ss:$8 sps:$4 sm:$0xff]  }
 0x173   :  { %3045 = vmatpush1.bf16.msra.mxu1 %v4550_v1  ;;  %v4637_v1 = vld [vmem:[%s6127_s1 + $0x6d0] ss:$8 sps:$4 sm:$0xff]  }
 0x174   :  { %3332 = vmatpush1.bf16.msra.mxu0 %v4553_v50  ;;  %3046 = vmatprep.subr.bf16.mxu1 %v4558_v3  ;;  %v4642_v50 = vld [vmem:[%s6127_s1 + $0x6e4] ss:$8 sps:$4 sm:$0xff]   ;;  %v4640_v3 = vld [vmem:[%s6127_s1 + $0x6e0] ss:$8 sps:$4 sm:$0xff]  }
 0x175   :  { %3333 = vmatprep.subr.bf16.mxu0 %v4561_v5  ;;  %v4645_v5 = vld [vmem:[%s6127_s1 + $0x6f4] ss:$8 sps:$4 sm:$0xff]  }
 0x177   :  { %3047 = vmatpush1.bf16.msra.mxu1 %v4556_v6  ;;  %v4643_v6 = vld [vmem:[%s6127_s1 + $0x6f0] ss:$8 sps:$4 sm:$0xff]  }
 0x178   :  { %3334 = vmatpush1.bf16.msra.mxu0 %v4559_v36  ;;  %3048 = vmatprep.subr.bf16.mxu1 %v4564_v7 }
 0x179   :  { %3335 = vmatprep.subr.bf16.mxu0 %v4567_v9 }
 0x17b   :  { %3049 = vmatpush1.bf16.msra.mxu1 %v4562_v10 }
 0x17c   :  { %3336 = vmatpush1.bf16.msra.mxu0 %v4565_v11  ;;  %3050 = vmatprep.subr.bf16.mxu1 %v4570_v56 }
 0x17d   :  { %3337 = vmatprep.subr.bf16.mxu0 %v4573_v63 }
 0x17f   :  { %3051 = vmatpush1.bf16.msra.mxu1 %v4568_v12 }
 0x180   :  { %3338 = vmatpush1.bf16.msra.mxu0 %v4571_v13  ;;  %3061 = vmatprep.subr.bf16.mxu1 %v4576_v15 }
 0x181   :  { %3348 = vmatprep.subr.bf16.mxu0 %v4579_v16 }
 0x182   :  { %3053 = vmatmul.mubr.bf16.vlgmr.msra.gmra.mrb[0].mxu1 %v552_v2 }
 0x183   :  { %3340 = vmatmul.mubr.bf16.vlgmr.msra.gmra.mrb[0].mxu0 %v5964_v17  ;;  %3062 = vmatpush1.bf16.msra.mxu1 %v4574_v18 }
 0x184   :  { %3349 = vmatpush1.bf16.msra.mxu0 %v4577_v20  ;;  %3063 = vmatprep.subr.bf16.mxu1 %v4582_v8 }
 0x185   :  { %3350 = vmatprep.subr.bf16.mxu0 %v4585_v41  ;;  %3380 = vmatprep.mubr.bf16.mxu0 %v4653_v25 }
 0x186   :  { %3093 = vmatprep.mubr.bf16.mxu1 %v4859_v4  ;;  %v4597_v4 = vld [vmem:[%s6127_s1 + $0xd34] ss:$8 sps:$4 sm:$0xff]  }
 0x187   :  { %3064 = vmatpush1.bf16.msra.mxu1 %v4580_v21 }
 0x188   :  { %3351 = vmatpush1.bf16.msra.mxu0 %v4583_v22  ;;  %3065 = vmatprep.subr.bf16.mxu1 %v4588_v23 }
 0x189   :  { %3352 = vmatprep.subr.bf16.mxu0 %v4591_v24 }
 0x18b   :  { %3066 = vmatpush1.bf16.msra.mxu1 %v4586_v26 }
 0x18c   :  { %3353 = vmatpush1.bf16.msra.mxu0 %v4589_v27  ;;  %3067 = vmatprep.subr.bf16.mxu1 %v4594_v52 }
 0x18d   :  { %3354 = vmatprep.subr.bf16.mxu0 %v4597_v4 }
 0x18f   :  { %3068 = vmatpush1.bf16.msra.mxu1 %v4592_v29 }
 0x190   :  { %3355 = vmatpush1.bf16.msra.mxu0 %v4595_v30  ;;  %3069 = vmatprep.subr.bf16.mxu1 %v4600_v31 }
 0x191   :  { %3356 = vmatprep.subr.bf16.mxu0 %v4603_v32 }
 0x193   :  { %3070 = vmatpush1.bf16.msra.mxu1 %v4598_v33 }
 0x194   :  { %3357 = vmatpush1.bf16.msra.mxu0 %v4601_v34  ;;  %3071 = vmatprep.subr.bf16.mxu1 %v4606_v35 }
 0x195   :  { %3358 = vmatprep.subr.bf16.mxu0 %v4609_v37 }
 0x197   :  { %3072 = vmatpush1.bf16.msra.mxu1 %v4604_v38 }
 0x198   :  { %3359 = vmatpush1.bf16.msra.mxu0 %v4607_v19  ;;  %3073 = vmatprep.subr.bf16.mxu1 %v4612_v40 }
 0x199   :  { %3360 = vmatprep.subr.bf16.mxu0 %v4615_v48 }
 0x19b   :  { %3074 = vmatpush1.bf16.msra.mxu1 %v4610_v42 }
 0x19c   :  { %3361 = vmatpush1.bf16.msra.mxu0 %v4613_v43  ;;  %3075 = vmatprep.subr.bf16.mxu1 %v4618_v44 }
 0x19d   :  { %3362 = vmatprep.subr.bf16.mxu0 %v4621_v45 }
 0x19f   :  { %3076 = vmatpush1.bf16.msra.mxu1 %v4616_v47 }
 0x1a0   :  { %3363 = vmatpush1.bf16.msra.mxu0 %v4619_v49  ;;  %3077 = vmatprep.subr.bf16.mxu1 %v4624_v53 }
 0x1a3   :  { %3381 = vmatmul.mubr.bf16.vlgmr.msra.gmra.mrb[0].mxu0 %v627_v54  ;;  %3078 = vmatpush1.bf16.msra.mxu1 %v4622_v55 }
 0x1a4   :  { %3079 = vmatprep.subr.bf16.mxu1 %v4627_v28 }
 0x1a7   :  { %3080 = vmatpush1.bf16.msra.mxu1 %v4625_v57 }
 0x1a8   :  { %3081 = vmatprep.subr.bf16.mxu1 %v4630_v58 }
 0x1ab   :  { %3082 = vmatpush1.bf16.msra.mxu1 %v4628_v39 }
 0x1ac   :  { %3083 = vmatprep.subr.bf16.mxu1 %v4633_v59  ;;  %v3426_v59 = vld [vmem:[%s6129_s2] sm:$0x3] }
 0x1af   :  { %3084 = vmatpush1.bf16.msra.mxu1 %v4631_v60 }
 0x1b0   :  { %3085 = vmatprep.subr.bf16.mxu1 %v4636_v61  ;;  %v3453_v61 = vsub.s32 0, %v4805_v46 }
 0x1b3   :  { %3086 = vmatpush1.bf16.msra.mxu1 %v4634_v62  ;;  %v3457_v62 = vsub.s32 1, %v4805_v46 }
 0x1b4   :  { %3087 = vmatprep.subr.bf16.mxu1 %v4639_v0  ;;  %v3463_v0 = vld [vmem:[%s6130_s3] sm:$0x3] }
 0x1b7   :  { %3088 = vmatpush1.bf16.msra.mxu1 %v4637_v1 }
 0x1b8   :  { %3089 = vmatprep.subr.bf16.mxu1 %v4642_v50 }
 0x1bb   :  { %3090 = vmatpush1.bf16.msra.mxu1 %v4640_v3 }
 0x1bc   :  { %3091 = vmatprep.subr.bf16.mxu1 %v4645_v5  ;;  %v3468_v5 = vrot.slane %v3463_v0, %v3453_v61 }
 0x1bf   :  { %3092 = vmatpush1.bf16.msra.mxu1 %v4643_v6  ;;  %v3472_v6 = vrot.slane %v3463_v0, %v3457_v62 }
 0x1c2   :  { %3094 = vmatmul.mubr.bf16.vlgmr.msra.gmra.mrb[0].mxu1 %v4888_v14 }
 0x276   :  { %v3382_v36 = vpop.f32.mrb[0].mxu0 }
 0x277   :  { %v3384_v7 = vpop.f32.mrb[1].mxu0 }
 0x278   :  { %v3386_v9 = vpop.f32.mrb[2].mxu0 }
 0x279   :  { %v3387_v10 = vpop.f32.mrb[3].mxu0 }
 0x295   :  { %v3095_v11 = vpop.f32.mrb[0].mxu1 }
 0x296   :  { %v3943_v56 = vadd.f32 %v3382_v36, %v3095_v11  ;;  %v3097_v63 = vpop.f32.mrb[1].mxu1 }
 0x297   :  { %v3944_v12 = vadd.f32 %v3384_v7, %v3097_v63  ;;  %v3099_v13 = vpop.f32.mrb[2].mxu1 }
 0x298   :  { %v3390_v15 = vsel %vm3389_vm0, %v3943_v56, 0.0  ;;  %v3100_v16 = vpop.f32.mrb[3].mxu1 }
 0x299   :  { %v3391_v2 = vrot.slane %v3390_v15, 4  ;;  %v3397_v17 = vsel %vm3389_vm0, %v3944_v12, 0.0 }
 0x29a   :  { %v3398_v18 = vrot.slane %v3397_v17, 4 }
 0x29b   :  { %v3392_v20 = vadd.f32 %v3391_v2, %v3390_v15 }
 0x29c   :  { %v3399_v8 = vadd.f32 %v3398_v18, %v3397_v17 }
 0x29d   :  { %v3393_v14 = vrot.slane %v3392_v20, 2 }
 0x29e   :  { %v3400_v41 = vrot.slane %v3399_v8, 2 }
 0x29f   :  { %v3394_v21 = vadd.f32 %v3393_v14, %v3392_v20 }
 0x2a0   :  { %v3401_v22 = vadd.f32 %v3400_v41, %v3399_v8 }
 0x2a1   :  { %v3395_v23 = vrot.slane %v3394_v21, 1 }
 0x2a2   :  { %v3402_v24 = vrot.slane %v3401_v22, 1 }
 0x2a3   :  { %v3396_v25 = vadd.f32 %v3395_v23, %v3394_v21 }
 0x2a4   :  { %v3403_v26 = vadd.f32 %v3402_v24, %v3401_v22 }
 0x2a5   :  { %v3404_v27 = vmul.f32 0.5, %v3396_v25 }
 0x2a6   :  { %v3405_v52 = vmul.f32 0.5, %v3403_v26 }
 0x2a7   :  { %v3406_v4 = vsub.f32 %v3943_v56, %v3404_v27 }
 0x2a8   :  { %v3407_v29 = vsub.f32 %v3944_v12, %v3405_v52 }
 0x2a9   :  { %v3408_v30 = vmul.f32 %v3406_v4, %v3406_v4 }
 0x2aa   :  { %v3409_v31 = vmul.f32 %v3407_v29, %v3407_v29 }
 0x2ab   :  { %v3410_v32 = vsel %vm3389_vm0, %v3408_v30, 0.0 }
 0x2ac   :  { %v3411_v33 = vrot.slane %v3410_v32, 4  ;;  %v3417_v34 = vsel %vm3389_vm0, %v3409_v31, 0.0 }
 0x2ad   :  { %v3418_v35 = vrot.slane %v3417_v34, 4 }
 0x2ae   :  { %v3412_v37 = vadd.f32 %v3411_v33, %v3410_v32 }
 0x2af   :  { %v3419_v38 = vadd.f32 %v3418_v35, %v3417_v34 }
 0x2b0   :  { %v3413_v19 = vrot.slane %v3412_v37, 2 }
 0x2b1   :  { %v3420_v40 = vrot.slane %v3419_v38, 2 }
 0x2b2   :  { %v3414_v48 = vadd.f32 %v3413_v19, %v3412_v37 }
 0x2b3   :  { %v3421_v42 = vadd.f32 %v3420_v40, %v3419_v38 }
 0x2b4   :  { %v3415_v43 = vrot.slane %v3414_v48, 1 }
 0x2b5   :  { %v3422_v44 = vrot.slane %v3421_v42, 1 }
 0x2b6   :  { %v3416_v45 = vadd.f32 %v3415_v43, %v3414_v48 }
 0x2b7   :  { %v3423_v47 = vadd.f32 %v3422_v44, %v3421_v42 }
 0x2b8   :  { %v3424_v49 = vmul.f32 0.5, %v3416_v45 }
 0x2b9   :  { %v3425_v53 = vmul.f32 0.5, %v3423_v47 }
 0x2ba   :  { %v3427_v54 = vadd.f32 1e-05, %v3424_v49 }
 0x2bb   :  { %v3428_v55 = vadd.f32 1e-05, %v3425_v53 }
 0x2bc   :  { %4646 = vrsqrt.f32 %v3427_v54 }
 0x2bd   :  { %4648 = vrsqrt.f32 %v3428_v55 }
 0x2c6   :  { %v4647_v28 = vpop.eup %4646 }
 0x2c7   :  { %v4649_v57 = vpop.eup %4648 }
 0x2c8   :  { %v3433_v58 = vcombine.low %v4647_v28, %v4649_v57 }
 0x2ca   :  { %v3440_v39 = vrot.slane %v3433_v58, %v4820_v51 }
 0x2cc   :  { %v3447_v60 = vrot.slane %v3440_v39, %v4820_v51 }
 0x2ce   :  { %v3449_v1 = vmul.f32 %v3447_v60, %v3426_v59 }
 0x2d0   :  { %v3454_v50 = vrot.slane %v3449_v1, %v3453_v61  ;;  %v3458_v3 = vrot.slane %v3449_v1, %v3457_v62 }
 0x2d2   :  { %v3461_v36 = vmul.f32 %v3454_v50, %v3406_v4  ;;  %v3462_v7 = vmul.f32 %v3458_v3, %v3407_v29 }
 0x2d4   :  { %v3475_v9 = vadd.f32 %v3468_v5, %v3461_v36  ;;  %v3476_v10 = vadd.f32 %v3472_v6, %v3462_v7 }
 0x2d6   :  { %vm3477_vm1 = vcmp.ge.f32.partialorder %v3475_v9, 0.0  ;;  %vm3478_vm2 = vcmp.ge.f32.partialorder %v3476_v10, 0.0  ;;  %v3479_v11 = vmul.f32 0.2, %v3475_v9  ;;  %v3480_v56 = vmul.f32 0.2, %v3476_v10 }
 0x2d8   :  { %v3481_v63 = vsel %vm3477_vm1, %v3475_v9, %v3479_v11  ;;  %v3482_v12 = vsel %vm3478_vm2, %v3476_v10, %v3480_v56 }
 0x2d9   :  { %v3941_v46 = vpack.c.bf16 %v3482_v12, %v3481_v63 }
 0x2db   :  { %v3494_v13 = vrot.slane %v3941_v46, %v4820_v51 }
 0x2dd   :  { %3942 = vst.sshfl [vmem:[%s6131_s4] sm:$0x5 pattern:$0x73625140] %v3494_v13 }

</bundles_post_ra>
